<compile_context>
chip_gen: v5e
topology: v5e:2x2
jax: 0.10.0
libtpu: 0.0.40
codegen_flags: <defaults>
</compile_context>

<pallas_src>
import functools

import jax
import jax.numpy as jnp
from jax import lax
from jax.experimental import pallas as pl
from jax.experimental.pallas import tpu as pltpu

# ---------------- model config (scaled-down densenet121-style) -------------
GROWTH = 8
BLOCK_CONFIG = (2, 2, 2, 2)
INIT_FEATURES = 16
BN_SIZE = 4
NUM_CLASSES = 5
BN_EPS = 1e-5

CP = 128                                   # lane-dense channel padding
K0 = 7 * 7 * 3                             # conv0 im2col contraction size
K0_PAD = ((K0 + 127) // 128) * 128         # pad K to a lane multiple (256)

_VMEM = pl.BlockSpec(memory_space=pltpu.MemorySpace.VMEM)


def _choose_tile_m(m):
    """Largest tile that divides M and gives >=2 grid steps (else whole M)."""
    for tm in (512, 256, 128, 64, 32, 16, 8):
        if m % tm == 0 and m // tm >= 2:
            return tm
    return m


# ---------------- Pallas kernels --------------------------------------------
def _conv0_kernel(a_ref, w_ref, s_ref, b_ref, o_ref):
    # conv0 matmul with fused BN0+ReLU epilogue.
    y = jnp.dot(a_ref[...], w_ref[...], preferred_element_type=jnp.float32)
    o_ref[...] = jnp.maximum(y * s_ref[...] + b_ref[...], 0.0)


def _bottleneck_kernel(x_ref, s1_ref, b1_ref, w1_ref, s2_ref, b2_ref, o_ref):
    # fused: relu(bn1(x)) @ W1  -> bn2 -> relu   (prologue + 1x1 conv + epilogue)
    a = jnp.maximum(x_ref[...] * s1_ref[...] + b1_ref[...], 0.0)
    y = jnp.dot(a.astype(jnp.bfloat16), w1_ref[...],
                preferred_element_type=jnp.float32)
    o_ref[...] = jnp.maximum(y * s2_ref[...] + b2_ref[...], 0.0)


def _transition_kernel(x_ref, s_ref, b_ref, w_ref, o_ref):
    # fused: relu(bn(x)) @ W   (transition 1x1 conv)
    a = jnp.maximum(x_ref[...] * s_ref[...] + b_ref[...], 0.0)
    o_ref[...] = jnp.dot(a.astype(jnp.bfloat16), w_ref[...],
                         preferred_element_type=jnp.float32)


def _dense33_kernel(z_ref, feat_ref, w_ref, o_ref, pad_ref, cols_ref,
                    *, nb, hh, ww, cp):
    # 3x3 growth conv with in-VMEM patch extraction + in-place dense "concat".
    wp = ww + 2
    pad_ref[...] = jnp.zeros_like(pad_ref)        # zero halo
    for n in range(nb):
        for i in range(hh):
            src = (n * hh + i) * ww
            dst = (n * (hh + 2) + i + 1) * wp + 1
            pad_ref[dst:dst + ww, :] = z_ref[src:src + ww, :]
    # im2col lives only in VMEM: 9 shifted windows along the contraction dim.
    for t in range(9):
        ky, kx = divmod(t, 3)
        for n in range(nb):
            for i in range(hh):
                dst = (n * hh + i) * ww
                src = (n * (hh + 2) + i + ky) * wp + kx
                cols_ref[dst:dst + ww, t * cp:(t + 1) * cp] = \
                    pad_ref[src:src + ww, :]
    acc = jnp.dot(cols_ref[...].astype(jnp.bfloat16), w_ref[...],
                  preferred_element_type=jnp.float32)
    # growth channels were placed at their lane offset in the padded weights,
    # and those lanes are zero in feat -> one lane-dense add replaces concat.
    o_ref[...] = feat_ref[...] + acc


def _tail_kernel(x_ref, s_ref, b_ref, p_ref, w_ref, bias_ref, o_ref):
    # fused: norm5 + ReLU + global-avg-pool (block-diag matmul) + classifier.
    h = jnp.maximum(x_ref[...] * s_ref[...] + b_ref[...], 0.0)
    g = jnp.dot(p_ref[...], h, preferred_element_type=jnp.float32)
    o_ref[...] = jnp.dot(g, w_ref[...],
                         preferred_element_type=jnp.float32) + bias_ref[...]


# ---------------- pallas_call wrappers ---------------------------------------
_PARALLEL = pltpu.CompilerParams(dimension_semantics=("parallel",))


def conv0_bnrelu(cols, w, scale, bias):
    m, k = cols.shape
    n = w.shape[1]
    tm = _choose_tile_m(m)
    return pl.pallas_call(
        _conv0_kernel,
        out_shape=jax.ShapeDtypeStruct((m, n), jnp.float32),
        grid=(m // tm,),
        in_specs=[pl.BlockSpec((tm, k), lambda i: (i, 0)),
                  pl.BlockSpec((k, n), lambda i: (0, 0)),
                  pl.BlockSpec((1, n), lambda i: (0, 0)),
                  pl.BlockSpec((1, n), lambda i: (0, 0))],
        out_specs=pl.BlockSpec((tm, n), lambda i: (i, 0)),
        compiler_params=_PARALLEL,
    )(cols, w, scale, bias)


def bottleneck_1x1(x, s1, b1, w1, s2, b2):
    m, k = x.shape
    n = w1.shape[1]
    tm = _choose_tile_m(m)
    return pl.pallas_call(
        _bottleneck_kernel,
        out_shape=jax.ShapeDtypeStruct((m, n), jnp.float32),
        grid=(m // tm,),
        in_specs=[pl.BlockSpec((tm, k), lambda i: (i, 0)),
                  pl.BlockSpec((1, k), lambda i: (0, 0)),
                  pl.BlockSpec((1, k), lambda i: (0, 0)),
                  pl.BlockSpec((k, n), lambda i: (0, 0)),
                  pl.BlockSpec((1, n), lambda i: (0, 0)),
                  pl.BlockSpec((1, n), lambda i: (0, 0))],
        out_specs=pl.BlockSpec((tm, n), lambda i: (i, 0)),
        compiler_params=_PARALLEL,
    )(x, s1, b1, w1, s2, b2)


def transition_1x1(x, s, b, w):
    m, k = x.shape
    n = w.shape[1]
    tm = _choose_tile_m(m)
    return pl.pallas_call(
        _transition_kernel,
        out_shape=jax.ShapeDtypeStruct((m, n), jnp.float32),
        grid=(m // tm,),
        in_specs=[pl.BlockSpec((tm, k), lambda i: (i, 0)),
                  pl.BlockSpec((1, k), lambda i: (0, 0)),
                  pl.BlockSpec((1, k), lambda i: (0, 0)),
                  pl.BlockSpec((k, n), lambda i: (0, 0))],
        out_specs=pl.BlockSpec((tm, n), lambda i: (i, 0)),
        compiler_params=_PARALLEL,
    )(x, s, b, w)


def dense_3x3_merge(z, feat, w9, n, h, w_sp):
    hw = h * w_sp
    cp = feat.shape[1]
    nb = 1 if hw % 8 == 0 else n           # keep blocks (8,128)-legal
    rb = nb * hw
    kern = functools.partial(_dense33_kernel, nb=nb, hh=h, ww=w_sp, cp=cp)
    return pl.pallas_call(
        kern,
        out_shape=jax.ShapeDtypeStruct((n * hw, cp), jnp.float32),
        grid=(n // nb,),
        in_specs=[pl.BlockSpec((rb, cp), lambda i: (i, 0)),
                  pl.BlockSpec((rb, cp), lambda i: (i, 0)),
                  pl.BlockSpec((9 * cp, cp), lambda i: (0, 0))],
        out_specs=pl.BlockSpec((rb, cp), lambda i: (i, 0)),
        scratch_shapes=[pltpu.VMEM((nb * (h + 2) * (w_sp + 2), cp), jnp.float32),
                        pltpu.VMEM((rb, 9 * cp), jnp.float32)],
        compiler_params=_PARALLEL,
    )(z, feat, w9)


def tail_classifier(feat, s5, b5, pool, wc, bc):
    n = pool.shape[0]
    return pl.pallas_call(
        _tail_kernel,
        out_shape=jax.ShapeDtypeStruct((n, wc.shape[1]), jnp.float32),
        in_specs=[_VMEM] * 6,
        out_specs=_VMEM,
    )(feat, s5, b5, pool, wc, bc)


# ---------------- XLA glue (boundary only) -----------------------------------
def _im2col(x, kh, kw, stride, pad):
    # one-off stem-conv im2col on the 3-channel input (3x3 growth convs do
    # their patch extraction inside the Pallas kernel instead).
    n, h, w, c = x.shape
    xp = jnp.pad(x, ((0, 0), (pad, pad), (pad, pad), (0, 0)))
    ho = (h + 2 * pad - kh) // stride + 1
    wo = (w + 2 * pad - kw) // stride + 1
    cols = []
    for i in range(kh):
        for j in range(kw):
            cols.append(xp[:, i:i + stride * ho:stride,
                           j:j + stride * wo:stride, :])
    patches = jnp.concatenate(cols, axis=-1)
    return patches.reshape(n * ho * wo, kh * kw * c), (n, ho, wo)


# ---------------- deterministic parameter construction ----------------------
def make_params(key):
    keys = iter(jax.random.split(key, 1024))

    def nk():
        return next(keys)

    def bn_sb(c):
        gamma = 1.0 + 0.1 * jax.random.normal(nk(), (c,), jnp.float32)
        beta = 0.1 * jax.random.normal(nk(), (c,), jnp.float32)
        mean = 0.1 * jax.random.normal(nk(), (c,), jnp.float32)
        var = 0.5 + jnp.abs(jax.random.normal(nk(), (c,), jnp.float32))
        scale = gamma / jnp.sqrt(var + BN_EPS)
        bias = beta - mean * scale
        pad = (0, CP - c)
        return (jnp.pad(scale, pad).reshape(1, CP),
                jnp.pad(bias, pad).reshape(1, CP))

    def conv_w(kh, kw, cin, cout, cin_pad, cout_off=0):
        w = 0.1 * jax.random.normal(nk(), (kh, kw, cin, cout), jnp.float32)
        wp = jnp.zeros((kh, kw, cin_pad, CP), jnp.float32)
        wp = wp.at[:, :, :cin, cout_off:cout_off + cout].set(w)
        return wp.reshape(kh * kw * cin_pad, CP).astype(jnp.bfloat16)

    params = {}
    w0 = conv_w(7, 7, 3, INIT_FEATURES, cin_pad=3)            # (147, CP)
    params["conv0_w"] = jnp.pad(w0, ((0, K0_PAD - K0), (0, 0)))  # (256, CP)
    params["norm0"] = bn_sb(INIT_FEATURES)

    c = INIT_FEATURES
    blocks, transitions = [], []
    for bi, n_layers in enumerate(BLOCK_CONFIG):
        layers = []
        for _ in range(n_layers):
            s1, b1 = bn_sb(c)
            w1 = conv_w(1, 1, c, BN_SIZE * GROWTH, cin_pad=CP)
            s2, b2 = bn_sb(BN_SIZE * GROWTH)
            # growth weights placed at lane offset c -> in-place dense concat
            w2 = conv_w(3, 3, BN_SIZE * GROWTH, GROWTH, cin_pad=CP, cout_off=c)
            layers.append(dict(s1=s1, b1=b1, w1=w1, s2=s2, b2=b2, w2=w2))
            c += GROWTH
        blocks.append(layers)
        if bi != len(BLOCK_CONFIG) - 1:
            st, bt = bn_sb(c)
            wt = conv_w(1, 1, c, c // 2, cin_pad=CP)
            transitions.append(dict(s=st, b=bt, w=wt))
            c = c // 2
    params["blocks"] = blocks
    params["transitions"] = transitions
    params["norm5"] = bn_sb(c)
    wc = 0.1 * jax.random.normal(nk(), (c, NUM_CLASSES), jnp.float32)
    params["cls_w"] = jnp.pad(wc, ((0, CP - c), (0, 0)))      # (CP, 5) f32
    params["cls_b"] = 0.1 * jax.random.normal(
        nk(), (NUM_CLASSES,), jnp.float32).reshape(1, NUM_CLASSES)
    return params


# ---------------- forward (mirrors torchvision DenseNet.forward) ------------
def densenet_forward(params, x_nchw):
    x = jnp.transpose(x_nchw, (0, 2, 3, 1)).astype(jnp.float32)   # -> NHWC
    # conv0 (7x7/2 pad3) + fused BN0+ReLU epilogue
    cols, (n, h, w) = _im2col(x, 7, 7, 2, 3)
    cols = jnp.pad(cols, ((0, 0), (0, K0_PAD - cols.shape[1])))
    s0, b0 = params["norm0"]
    feat = conv0_bnrelu(cols.astype(jnp.bfloat16), params["conv0_w"], s0, b0)
    # TODO(synk): tiny-window maxpool left to XLA reduce_window (not a hot path);
    # channel padding is preserved so the layout does not bounce.
    xm = lax.reduce_window(feat.reshape(n, h, w, CP), -jnp.inf, lax.max,
                           (1, 3, 3, 1), (1, 2, 2, 1),
                           ((0, 0), (1, 1), (1, 1), (0, 0)))
    h, w = (h + 2 - 3) // 2 + 1, (w + 2 - 3) // 2 + 1
    feat = xm.reshape(n * h * w, CP)                              # rows layout

    for bi, layers in enumerate(params["blocks"]):
        for layer in layers:
            # fused BN1+ReLU -> 1x1 conv -> BN2+ReLU
            z = bottleneck_1x1(feat, layer["s1"], layer["b1"], layer["w1"],
                               layer["s2"], layer["b2"])
            # 3x3 growth conv (in-kernel patch extraction) + in-place concat
            feat = dense_3x3_merge(z, feat, layer["w2"], n, h, w)
        if bi != len(params["blocks"]) - 1:
            t = params["transitions"][bi]
            feat = transition_1x1(feat, t["s"], t["b"], t["w"])   # fused BN+ReLU+1x1
            # TODO(synk): 2x2 average pool left to XLA reshape/mean (tiny).
            feat = feat.reshape(n, h, w, CP).reshape(
                n, h // 2, 2, w // 2, 2, CP).mean(axis=(2, 4))
            h, w = h // 2, w // 2
            feat = feat.reshape(n * h * w, CP)

    # fused tail: norm5 + ReLU + adaptive_avg_pool2d((1,1)) + classifier
    s5, b5 = params["norm5"]
    hw = h * w
    pool = jnp.kron(jnp.eye(n, dtype=jnp.float32),
                    jnp.ones((1, hw), jnp.float32)) / float(hw)   # (n, n*hw)
    return tail_classifier(feat, s5, b5, pool,
                           params["cls_w"], params["cls_b"])


if __name__ == "__main__":
    root = jax.random.PRNGKey(0)
    pkey, xkey = jax.random.split(root)
    params = make_params(pkey)
    # PyTorch NCHW input, small image size
    x = jax.random.normal(xkey, (2, 3, 32, 32), jnp.float32)
    forward = jax.jit(densenet_forward)
    logits = forward(params, x)
    logits = jax.block_until_ready(logits)
    assert logits.shape == (2, NUM_CLASSES), logits.shape
    assert bool(jnp.all(jnp.isfinite(logits)))
    print("KERNEL_OK")
</pallas_src>

<mosaic_0001>
module attributes {stable_mosaic.version = 11 : i64} {
  func.func @_conv0_kernel(%arg0: i32, %arg1: memref<256x256xbf16, #tpu.memory_space<vmem>>, %arg2: memref<256x128xbf16, #tpu.memory_space<vmem>>, %arg3: memref<1x128xf32, #tpu.memory_space<vmem>>, %arg4: memref<1x128xf32, #tpu.memory_space<vmem>>, %arg5: memref<256x128xf32, #tpu.memory_space<vmem>>) attributes {dimension_semantics = [#tpu.dimension_semantics<parallel>], iteration_bounds = array<i64: 2>, scalar_prefetch = 0 : i64, scratch_operands = 0 : i64, tpu.core_type = #tpu.core_type<tc>, window_params = [{transform_indices = @transform_0, window_bounds = array<i64: 256, 256>}, {pipeline_mode = #tpu.pipeline_mode<synchronous>, transform_indices = @transform_1, window_bounds = array<i64: 256, 128>}, {pipeline_mode = #tpu.pipeline_mode<synchronous>, transform_indices = @transform_2, window_bounds = array<i64: 1, 128>}, {pipeline_mode = #tpu.pipeline_mode<synchronous>, transform_indices = @transform_3, window_bounds = array<i64: 1, 128>}, {transform_indices = @transform_4, window_bounds = array<i64: 256, 128>}]} {
    %c0 = arith.constant 0 : index
    %c0_0 = arith.constant 0 : index
    %0 = vector.load %arg1[%c0, %c0_0] : memref<256x256xbf16, #tpu.memory_space<vmem>>, vector<256x256xbf16>
    %c0_1 = arith.constant 0 : index
    %c0_2 = arith.constant 0 : index
    %1 = vector.load %arg2[%c0_1, %c0_2] : memref<256x128xbf16, #tpu.memory_space<vmem>>, vector<256x128xbf16>
    %cst = arith.constant dense<0.000000e+00> : vector<256x128xf32>
    %2 = tpu.matmul %0, %1, %cst {dimension_numbers = #tpu.dot_dimension_numbers<[1], [0], [0], [1], [0, 0, 1, 1], [], []>} : vector<256x256xbf16>, vector<256x128xbf16>, vector<256x128xf32> -> vector<256x128xf32>
    %c0_3 = arith.constant 0 : index
    %c0_4 = arith.constant 0 : index
    %3 = vector.load %arg3[%c0_3, %c0_4] : memref<1x128xf32, #tpu.memory_space<vmem>>, vector<1x128xf32>
    %4 = vector.broadcast %3 : vector<1x128xf32> to vector<256x128xf32>
    %5 = arith.mulf %2, %4 : vector<256x128xf32>
    %c0_5 = arith.constant 0 : index
    %c0_6 = arith.constant 0 : index
    %6 = vector.load %arg4[%c0_5, %c0_6] : memref<1x128xf32, #tpu.memory_space<vmem>>, vector<1x128xf32>
    %7 = vector.broadcast %6 : vector<1x128xf32> to vector<256x128xf32>
    %8 = arith.addf %5, %7 : vector<256x128xf32>
    %cst_7 = arith.constant 0.000000e+00 : f32
    %9 = vector.broadcast %cst_7 : f32 to vector<256x128xf32>
    %10 = arith.maximumf %8, %9 : vector<256x128xf32>
    %c0_8 = arith.constant 0 : index
    %c0_9 = arith.constant 0 : index
    %11 = vector.load %arg5[%c0_8, %c0_9] : memref<256x128xf32, #tpu.memory_space<vmem>>, vector<256x128xf32>
    tpu.vector_store %arg5[%c0_8, %c0_9], %10 {strides = array<i32>} : memref<256x128xf32, #tpu.memory_space<vmem>>, vector<256x128xf32>,
    return
  }
  func.func @transform_0(%arg0: i32) -> (i32, i32) {
    %c0_i32 = arith.constant 0 : i32
    %c0_i32_0 = arith.constant 0 : i32
    return %arg0, %c0_i32 : i32, i32
  }
  func.func @transform_1(%arg0: i32) -> (i32, i32) {
    %c0_i32 = arith.constant 0 : i32
    %c0_i32_0 = arith.constant 0 : i32
    %c0_i32_1 = arith.constant 0 : i32
    return %c0_i32, %c0_i32_0 : i32, i32
  }
  func.func @transform_2(%arg0: i32) -> (i32, i32) {
    %c0_i32 = arith.constant 0 : i32
    %c0_i32_0 = arith.constant 0 : i32
    %c0_i32_1 = arith.constant 0 : i32
    return %c0_i32, %c0_i32_0 : i32, i32
  }
  func.func @transform_3(%arg0: i32) -> (i32, i32) {
    %c0_i32 = arith.constant 0 : i32
    %c0_i32_0 = arith.constant 0 : i32
    %c0_i32_1 = arith.constant 0 : i32
    return %c0_i32, %c0_i32_0 : i32, i32
  }
  func.func @transform_4(%arg0: i32) -> (i32, i32) {
    %c0_i32 = arith.constant 0 : i32
    %c0_i32_0 = arith.constant 0 : i32
    return %arg0, %c0_i32 : i32, i32
  }
}

module attributes {stable_mosaic.version = 11 : i64} {
  func.func @_bottleneck_kernel(%arg0: i32, %arg1: memref<64x128xf32, #tpu.memory_space<vmem>>, %arg2: memref<1x128xf32, #tpu.memory_space<vmem>>, %arg3: memref<1x128xf32, #tpu.memory_space<vmem>>, %arg4: memref<128x128xbf16, #tpu.memory_space<vmem>>, %arg5: memref<1x128xf32, #tpu.memory_space<vmem>>, %arg6: memref<1x128xf32, #tpu.memory_space<vmem>>, %arg7: memref<64x128xf32, #tpu.memory_space<vmem>>) attributes {dimension_semantics = [#tpu.dimension_semantics<parallel>], iteration_bounds = array<i64: 2>, scalar_prefetch = 0 : i64, scratch_operands = 0 : i64, tpu.core_type = #tpu.core_type<tc>, window_params = [{transform_indices = @transform_0, window_bounds = array<i64: 64, 128>}, {pipeline_mode = #tpu.pipeline_mode<synchronous>, transform_indices = @transform_1, window_bounds = array<i64: 1, 128>}, {pipeline_mode = #tpu.pipeline_mode<synchronous>, transform_indices = @transform_2, window_bounds = array<i64: 1, 128>}, {pipeline_mode = #tpu.pipeline_mode<synchronous>, transform_indices = @transform_3, window_bounds = array<i64: 128, 128>}, {pipeline_mode = #tpu.pipeline_mode<synchronous>, transform_indices = @transform_4, window_bounds = array<i64: 1, 128>}, {pipeline_mode = #tpu.pipeline_mode<synchronous>, transform_indices = @transform_5, window_bounds = array<i64: 1, 128>}, {transform_indices = @transform_6, window_bounds = array<i64: 64, 128>}]} {
    %c0 = arith.constant 0 : index
    %c0_0 = arith.constant 0 : index
    %0 = vector.load %arg1[%c0, %c0_0] : memref<64x128xf32, #tpu.memory_space<vmem>>, vector<64x128xf32>
    %c0_1 = arith.constant 0 : index
    %c0_2 = arith.constant 0 : index
    %1 = vector.load %arg2[%c0_1, %c0_2] : memref<1x128xf32, #tpu.memory_space<vmem>>, vector<1x128xf32>
    %2 = vector.broadcast %1 : vector<1x128xf32> to vector<64x128xf32>
    %3 = arith.mulf %0, %2 : vector<64x128xf32>
    %c0_3 = arith.constant 0 : index
    %c0_4 = arith.constant 0 : index
    %4 = vector.load %arg3[%c0_3, %c0_4] : memref<1x128xf32, #tpu.memory_space<vmem>>, vector<1x128xf32>
    %5 = vector.broadcast %4 : vector<1x128xf32> to vector<64x128xf32>
    %6 = arith.addf %3, %5 : vector<64x128xf32>
    %cst = arith.constant 0.000000e+00 : f32
    %7 = vector.broadcast %cst : f32 to vector<64x128xf32>
    %8 = arith.maximumf %6, %7 : vector<64x128xf32>
    %9 = arith.truncf %8 : vector<64x128xf32> to vector<64x128xbf16>
    %c0_5 = arith.constant 0 : index
    %c0_6 = arith.constant 0 : index
    %10 = vector.load %arg4[%c0_5, %c0_6] : memref<128x128xbf16, #tpu.memory_space<vmem>>, vector<128x128xbf16>
    %cst_7 = arith.constant dense<0.000000e+00> : vector<64x128xf32>
    %11 = tpu.matmul %9, %10, %cst_7 {dimension_numbers = #tpu.dot_dimension_numbers<[1], [0], [0], [1], [0, 0, 1, 1], [], []>} : vector<64x128xbf16>, vector<128x128xbf16>, vector<64x128xf32> -> vector<64x128xf32>
    %c0_8 = arith.constant 0 : index
    %c0_9 = arith.constant 0 : index
    %12 = vector.load %arg5[%c0_8, %c0_9] : memref<1x128xf32, #tpu.memory_space<vmem>>, vector<1x128xf32>
    %13 = vector.broadcast %12 : vector<1x128xf32> to vector<64x128xf32>
    %14 = arith.mulf %11, %13 : vector<64x128xf32>
    %c0_10 = arith.constant 0 : index
    %c0_11 = arith.constant 0 : index
    %15 = vector.load %arg6[%c0_10, %c0_11] : memref<1x128xf32, #tpu.memory_space<vmem>>, vector<1x128xf32>
    %16 = vector.broadcast %15 : vector<1x128xf32> to vector<64x128xf32>
    %17 = arith.addf %14, %16 : vector<64x128xf32>
    %cst_12 = arith.constant 0.000000e+00 : f32
    %18 = vector.broadcast %cst_12 : f32 to vector<64x128xf32>
    %19 = arith.maximumf %17, %18 : vector<64x128xf32>
    %c0_13 = arith.constant 0 : index
    %c0_14 = arith.constant 0 : index
    %20 = vector.load %arg7[%c0_13, %c0_14] : memref<64x128xf32, #tpu.memory_space<vmem>>, vector<64x128xf32>
    tpu.vector_store %arg7[%c0_13, %c0_14], %19 {strides = array<i32>} : memref<64x128xf32, #tpu.memory_space<vmem>>, vector<64x128xf32>,
    return
  }
  func.func @transform_0(%arg0: i32) -> (i32, i32) {
    %c0_i32 = arith.constant 0 : i32
    %c0_i32_0 = arith.constant 0 : i32
    return %arg0, %c0_i32 : i32, i32
  }
  func.func @transform_1(%arg0: i32) -> (i32, i32) {
    %c0_i32 = arith.constant 0 : i32
    %c0_i32_0 = arith.constant 0 : i32
    %c0_i32_1 = arith.constant 0 : i32
    return %c0_i32, %c0_i32_0 : i32, i32
  }
  func.func @transform_2(%arg0: i32) -> (i32, i32) {
    %c0_i32 = arith.constant 0 : i32
    %c0_i32_0 = arith.constant 0 : i32
    %c0_i32_1 = arith.constant 0 : i32
    return %c0_i32, %c0_i32_0 : i32, i32
  }
  func.func @transform_3(%arg0: i32) -> (i32, i32) {
    %c0_i32 = arith.constant 0 : i32
    %c0_i32_0 = arith.constant 0 : i32
    %c0_i32_1 = arith.constant 0 : i32
    return %c0_i32, %c0_i32_0 : i32, i32
  }
  func.func @transform_4(%arg0: i32) -> (i32, i32) {
    %c0_i32 = arith.constant 0 : i32
    %c0_i32_0 = arith.constant 0 : i32
    %c0_i32_1 = arith.constant 0 : i32
    return %c0_i32, %c0_i32_0 : i32, i32
  }
  func.func @transform_5(%arg0: i32) -> (i32, i32) {
    %c0_i32 = arith.constant 0 : i32
    %c0_i32_0 = arith.constant 0 : i32
    %c0_i32_1 = arith.constant 0 : i32
    return %c0_i32, %c0_i32_0 : i32, i32
  }
  func.func @transform_6(%arg0: i32) -> (i32, i32) {
    %c0_i32 = arith.constant 0 : i32
    %c0_i32_0 = arith.constant 0 : i32
    return %arg0, %c0_i32 : i32, i32
  }
}

module attributes {stable_mosaic.version = 11 : i64} {
  func.func @_dense33_kernel(%arg0: i32, %arg1: memref<64x128xf32, #tpu.memory_space<vmem>>, %arg2: memref<64x128xf32, #tpu.memory_space<vmem>>, %arg3: memref<1152x128xbf16, #tpu.memory_space<vmem>>, %arg4: memref<64x128xf32, #tpu.memory_space<vmem>>, %arg5: memref<100x128xf32, #tpu.memory_space<vmem>>, %arg6: memref<64x1152xf32, #tpu.memory_space<vmem>>) attributes {dimension_semantics = [#tpu.dimension_semantics<parallel>], iteration_bounds = array<i64: 2>, scalar_prefetch = 0 : i64, scratch_operands = 2 : i64, tpu.core_type = #tpu.core_type<tc>, window_params = [{transform_indices = @transform_0, window_bounds = array<i64: 64, 128>}, {transform_indices = @transform_1, window_bounds = array<i64: 64, 128>}, {pipeline_mode = #tpu.pipeline_mode<synchronous>, transform_indices = @transform_2, window_bounds = array<i64: 1152, 128>}, {transform_indices = @transform_3, window_bounds = array<i64: 64, 128>}]} {
    %cst = arith.constant 0.000000e+00 : f32
    %0 = vector.broadcast %cst : f32 to vector<100x128xf32>
    %c0 = arith.constant 0 : index
    %c0_0 = arith.constant 0 : index
    %1 = vector.load %arg5[%c0, %c0_0] : memref<100x128xf32, #tpu.memory_space<vmem>>, vector<100x128xf32>
    tpu.vector_store %arg5[%c0, %c0_0], %0 {strides = array<i32>} : memref<100x128xf32, #tpu.memory_space<vmem>>, vector<100x128xf32>,
    %c0_1 = arith.constant 0 : index
    %c0_2 = arith.constant 0 : index
    %2 = vector.load %arg1[%c0_1, %c0_2] : memref<64x128xf32, #tpu.memory_space<vmem>>, vector<8x128xf32>
    %c11 = arith.constant 11 : index
    %c0_3 = arith.constant 0 : index
    %3 = vector.load %arg5[%c11, %c0_3] : memref<100x128xf32, #tpu.memory_space<vmem>>, vector<8x128xf32>
    tpu.vector_store %arg5[%c11, %c0_3], %2 {strides = array<i32>} : memref<100x128xf32, #tpu.memory_space<vmem>>, vector<8x128xf32>,
    %c8 = arith.constant 8 : index
    %c0_4 = arith.constant 0 : index
    %4 = vector.load %arg1[%c8, %c0_4] : memref<64x128xf32, #tpu.memory_space<vmem>>, vector<8x128xf32>
    %c21 = arith.constant 21 : index
    %c0_5 = arith.constant 0 : index
    %5 = vector.load %arg5[%c21, %c0_5] : memref<100x128xf32, #tpu.memory_space<vmem>>, vector<8x128xf32>
    tpu.vector_store %arg5[%c21, %c0_5], %4 {strides = array<i32>} : memref<100x128xf32, #tpu.memory_space<vmem>>, vector<8x128xf32>,
    %c16 = arith.constant 16 : index
    %c0_6 = arith.constant 0 : index
    %6 = vector.load %arg1[%c16, %c0_6] : memref<64x128xf32, #tpu.memory_space<vmem>>, vector<8x128xf32>
    %c31 = arith.constant 31 : index
    %c0_7 = arith.constant 0 : index
    %7 = vector.load %arg5[%c31, %c0_7] : memref<100x128xf32, #tpu.memory_space<vmem>>, vector<8x128xf32>
    tpu.vector_store %arg5[%c31, %c0_7], %6 {strides = array<i32>} : memref<100x128xf32, #tpu.memory_space<vmem>>, vector<8x128xf32>,
    %c24 = arith.constant 24 : index
    %c0_8 = arith.constant 0 : index
    %8 = vector.load %arg1[%c24, %c0_8] : memref<64x128xf32, #tpu.memory_space<vmem>>, vector<8x128xf32>
    %c41 = arith.constant 41 : index
    %c0_9 = arith.constant 0 : index
    %9 = vector.load %arg5[%c41, %c0_9] : memref<100x128xf32, #tpu.memory_space<vmem>>, vector<8x128xf32>
    tpu.vector_store %arg5[%c41, %c0_9], %8 {strides = array<i32>} : memref<100x128xf32, #tpu.memory_space<vmem>>, vector<8x128xf32>,
    %c32 = arith.constant 32 : index
    %c0_10 = arith.constant 0 : index
    %10 = vector.load %arg1[%c32, %c0_10] : memref<64x128xf32, #tpu.memory_space<vmem>>, vector<8x128xf32>
    %c51 = arith.constant 51 : index
    %c0_11 = arith.constant 0 : index
    %11 = vector.load %arg5[%c51, %c0_11] : memref<100x128xf32, #tpu.memory_space<vmem>>, vector<8x128xf32>
    tpu.vector_store %arg5[%c51, %c0_11], %10 {strides = array<i32>} : memref<100x128xf32, #tpu.memory_space<vmem>>, vector<8x128xf32>,
    %c40 = arith.constant 40 : index
    %c0_12 = arith.constant 0 : index
    %12 = vector.load %arg1[%c40, %c0_12] : memref<64x128xf32, #tpu.memory_space<vmem>>, vector<8x128xf32>
    %c61 = arith.constant 61 : index
    %c0_13 = arith.constant 0 : index
    %13 = vector.load %arg5[%c61, %c0_13] : memref<100x128xf32, #tpu.memory_space<vmem>>, vector<8x128xf32>
    tpu.vector_store %arg5[%c61, %c0_13], %12 {strides = array<i32>} : memref<100x128xf32, #tpu.memory_space<vmem>>, vector<8x128xf32>,
    %c48 = arith.constant 48 : index
    %c0_14 = arith.constant 0 : index
    %14 = vector.load %arg1[%c48, %c0_14] : memref<64x128xf32, #tpu.memory_space<vmem>>, vector<8x128xf32>
    %c71 = arith.constant 71 : index
    %c0_15 = arith.constant 0 : index
    %15 = vector.load %arg5[%c71, %c0_15] : memref<100x128xf32, #tpu.memory_space<vmem>>, vector<8x128xf32>
    tpu.vector_store %arg5[%c71, %c0_15], %14 {strides = array<i32>} : memref<100x128xf32, #tpu.memory_space<vmem>>, vector<8x128xf32>,
    %c56 = arith.constant 56 : index
    %c0_16 = arith.constant 0 : index
    %16 = vector.load %arg1[%c56, %c0_16] : memref<64x128xf32, #tpu.memory_space<vmem>>, vector<8x128xf32>
    %c81 = arith.constant 81 : index
    %c0_17 = arith.constant 0 : index
    %17 = vector.load %arg5[%c81, %c0_17] : memref<100x128xf32, #tpu.memory_space<vmem>>, vector<8x128xf32>
    tpu.vector_store %arg5[%c81, %c0_17], %16 {strides = array<i32>} : memref<100x128xf32, #tpu.memory_space<vmem>>, vector<8x128xf32>,
    %c0_18 = arith.constant 0 : index
    %c0_19 = arith.constant 0 : index
    %18 = vector.load %arg5[%c0_18, %c0_19] : memref<100x128xf32, #tpu.memory_space<vmem>>, vector<8x128xf32>
    %c0_20 = arith.constant 0 : index
    %c0_21 = arith.constant 0 : index
    %19 = vector.load %arg6[%c0_20, %c0_21] : memref<64x1152xf32, #tpu.memory_space<vmem>>, vector<8x128xf32>
    tpu.vector_store %arg6[%c0_20, %c0_21], %18 {strides = array<i32>} : memref<64x1152xf32, #tpu.memory_space<vmem>>, vector<8x128xf32>,
    %c10 = arith.constant 10 : index
    %c0_22 = arith.constant 0 : index
    %20 = vector.load %arg5[%c10, %c0_22] : memref<100x128xf32, #tpu.memory_space<vmem>>, vector<8x128xf32>
    %c8_23 = arith.constant 8 : index
    %c0_24 = arith.constant 0 : index
    %21 = vector.load %arg6[%c8_23, %c0_24] : memref<64x1152xf32, #tpu.memory_space<vmem>>, vector<8x128xf32>
    tpu.vector_store %arg6[%c8_23, %c0_24], %20 {strides = array<i32>} : memref<64x1152xf32, #tpu.memory_space<vmem>>, vector<8x128xf32>,
    %c20 = arith.constant 20 : index
    %c0_25 = arith.constant 0 : index
    %22 = vector.load %arg5[%c20, %c0_25] : memref<100x128xf32, #tpu.memory_space<vmem>>, vector<8x128xf32>
    %c16_26 = arith.constant 16 : index
    %c0_27 = arith.constant 0 : index
    %23 = vector.load %arg6[%c16_26, %c0_27] : memref<64x1152xf32, #tpu.memory_space<vmem>>, vector<8x128xf32>
    tpu.vector_store %arg6[%c16_26, %c0_27], %22 {strides = array<i32>} : memref<64x1152xf32, #tpu.memory_space<vmem>>, vector<8x128xf32>,
    %c30 = arith.constant 30 : index
    %c0_28 = arith.constant 0 : index
    %24 = vector.load %arg5[%c30, %c0_28] : memref<100x128xf32, #tpu.memory_space<vmem>>, vector<8x128xf32>
    %c24_29 = arith.constant 24 : index
    %c0_30 = arith.constant 0 : index
    %25 = vector.load %arg6[%c24_29, %c0_30] : memref<64x1152xf32, #tpu.memory_space<vmem>>, vector<8x128xf32>
    tpu.vector_store %arg6[%c24_29, %c0_30], %24 {strides = array<i32>} : memref<64x1152xf32, #tpu.memory_space<vmem>>, vector<8x128xf32>,
    %c40_31 = arith.constant 40 : index
    %c0_32 = arith.constant 0 : index
    %26 = vector.load %arg5[%c40_31, %c0_32] : memref<100x128xf32, #tpu.memory_space<vmem>>, vector<8x128xf32>
    %c32_33 = arith.constant 32 : index
    %c0_34 = arith.constant 0 : index
    %27 = vector.load %arg6[%c32_33, %c0_34] : memref<64x1152xf32, #tpu.memory_space<vmem>>, vector<8x128xf32>
    tpu.vector_store %arg6[%c32_33, %c0_34], %26 {strides = array<i32>} : memref<64x1152xf32, #tpu.memory_space<vmem>>, vector<8x128xf32>,
    %c50 = arith.constant 50 : index
    %c0_35 = arith.constant 0 : index
    %28 = vector.load %arg5[%c50, %c0_35] : memref<100x128xf32, #tpu.memory_space<vmem>>, vector<8x128xf32>
    %c40_36 = arith.constant 40 : index
    %c0_37 = arith.constant 0 : index
    %29 = vector.load %arg6[%c40_36, %c0_37] : memref<64x1152xf32, #tpu.memory_space<vmem>>, vector<8x128xf32>
    tpu.vector_store %arg6[%c40_36, %c0_37], %28 {strides = array<i32>} : memref<64x1152xf32, #tpu.memory_space<vmem>>, vector<8x128xf32>,
    %c60 = arith.constant 60 : index
    %c0_38 = arith.constant 0 : index
    %30 = vector.load %arg5[%c60, %c0_38] : memref<100x128xf32, #tpu.memory_space<vmem>>, vector<8x128xf32>
    %c48_39 = arith.constant 48 : index
    %c0_40 = arith.constant 0 : index
    %31 = vector.load %arg6[%c48_39, %c0_40] : memref<64x1152xf32, #tpu.memory_space<vmem>>, vector<8x128xf32>
    tpu.vector_store %arg6[%c48_39, %c0_40], %30 {strides = array<i32>} : memref<64x1152xf32, #tpu.memory_space<vmem>>, vector<8x128xf32>,
    %c70 = arith.constant 70 : index
    %c0_41 = arith.constant 0 : index
    %32 = vector.load %arg5[%c70, %c0_41] : memref<100x128xf32, #tpu.memory_space<vmem>>, vector<8x128xf32>
    %c56_42 = arith.constant 56 : index
    %c0_43 = arith.constant 0 : index
    %33 = vector.load %arg6[%c56_42, %c0_43] : memref<64x1152xf32, #tpu.memory_space<vmem>>, vector<8x128xf32>
    tpu.vector_store %arg6[%c56_42, %c0_43], %32 {strides = array<i32>} : memref<64x1152xf32, #tpu.memory_space<vmem>>, vector<8x128xf32>,
    %c1 = arith.constant 1 : index
    %c0_44 = arith.constant 0 : index
    %34 = vector.load %arg5[%c1, %c0_44] : memref<100x128xf32, #tpu.memory_space<vmem>>, vector<8x128xf32>
    %c0_45 = arith.constant 0 : index
    %c128 = arith.constant 128 : index
    %35 = vector.load %arg6[%c0_45, %c128] : memref<64x1152xf32, #tpu.memory_space<vmem>>, vector<8x128xf32>
    tpu.vector_store %arg6[%c0_45, %c128], %34 {strides = array<i32>} : memref<64x1152xf32, #tpu.memory_space<vmem>>, vector<8x128xf32>,
    %c11_46 = arith.constant 11 : index
    %c0_47 = arith.constant 0 : index
    %36 = vector.load %arg5[%c11_46, %c0_47] : memref<100x128xf32, #tpu.memory_space<vmem>>, vector<8x128xf32>
    %c8_48 = arith.constant 8 : index
    %c128_49 = arith.constant 128 : index
    %37 = vector.load %arg6[%c8_48, %c128_49] : memref<64x1152xf32, #tpu.memory_space<vmem>>, vector<8x128xf32>
    tpu.vector_store %arg6[%c8_48, %c128_49], %36 {strides = array<i32>} : memref<64x1152xf32, #tpu.memory_space<vmem>>, vector<8x128xf32>,
    %c21_50 = arith.constant 21 : index
    %c0_51 = arith.constant 0 : index
    %38 = vector.load %arg5[%c21_50, %c0_51] : memref<100x128xf32, #tpu.memory_space<vmem>>, vector<8x128xf32>
    %c16_52 = arith.constant 16 : index
    %c128_53 = arith.constant 128 : index
    %39 = vector.load %arg6[%c16_52, %c128_53] : memref<64x1152xf32, #tpu.memory_space<vmem>>, vector<8x128xf32>
    tpu.vector_store %arg6[%c16_52, %c128_53], %38 {strides = array<i32>} : memref<64x1152xf32, #tpu.memory_space<vmem>>, vector<8x128xf32>,
    %c31_54 = arith.constant 31 : index
    %c0_55 = arith.constant 0 : index
    %40 = vector.load %arg5[%c31_54, %c0_55] : memref<100x128xf32, #tpu.memory_space<vmem>>, vector<8x128xf32>
    %c24_56 = arith.constant 24 : index
    %c128_57 = arith.constant 128 : index
    %41 = vector.load %arg6[%c24_56, %c128_57] : memref<64x1152xf32, #tpu.memory_space<vmem>>, vector<8x128xf32>
    tpu.vector_store %arg6[%c24_56, %c128_57], %40 {strides = array<i32>} : memref<64x1152xf32, #tpu.memory_space<vmem>>, vector<8x128xf32>,
    %c41_58 = arith.constant 41 : index
    %c0_59 = arith.constant 0 : index
    %42 = vector.load %arg5[%c41_58, %c0_59] : memref<100x128xf32, #tpu.memory_space<vmem>>, vector<8x128xf32>
    %c32_60 = arith.constant 32 : index
    %c128_61 = arith.constant 128 : index
    %43 = vector.load %arg6[%c32_60, %c128_61] : memref<64x1152xf32, #tpu.memory_space<vmem>>, vector<8x128xf32>
    tpu.vector_store %arg6[%c32_60, %c128_61], %42 {strides = array<i32>} : memref<64x1152xf32, #tpu.memory_space<vmem>>, vector<8x128xf32>,
    %c51_62 = arith.constant 51 : index
    %c0_63 = arith.constant 0 : index
    %44 = vector.load %arg5[%c51_62, %c0_63] : memref<100x128xf32, #tpu.memory_space<vmem>>, vector<8x128xf32>
    %c40_64 = arith.constant 40 : index
    %c128_65 = arith.constant 128 : index
    %45 = vector.load %arg6[%c40_64, %c128_65] : memref<64x1152xf32, #tpu.memory_space<vmem>>, vector<8x128xf32>
    tpu.vector_store %arg6[%c40_64, %c128_65], %44 {strides = array<i32>} : memref<64x1152xf32, #tpu.memory_space<vmem>>, vector<8x128xf32>,
    %c61_66 = arith.constant 61 : index
    %c0_67 = arith.constant 0 : index
    %46 = vector.load %arg5[%c61_66, %c0_67] : memref<100x128xf32, #tpu.memory_space<vmem>>, vector<8x128xf32>
    %c48_68 = arith.constant 48 : index
    %c128_69 = arith.constant 128 : index
    %47 = vector.load %arg6[%c48_68, %c128_69] : memref<64x1152xf32, #tpu.memory_space<vmem>>, vector<8x128xf32>
    tpu.vector_store %arg6[%c48_68, %c128_69], %46 {strides = array<i32>} : memref<64x1152xf32, #tpu.memory_space<vmem>>, vector<8x128xf32>,
    %c71_70 = arith.constant 71 : index
    %c0_71 = arith.constant 0 : index
    %48 = vector.load %arg5[%c71_70, %c0_71] : memref<100x128xf32, #tpu.memory_space<vmem>>, vector<8x128xf32>
    %c56_72 = arith.constant 56 : index
    %c128_73 = arith.constant 128 : index
    %49 = vector.load %arg6[%c56_72, %c128_73] : memref<64x1152xf32, #tpu.memory_space<vmem>>, vector<8x128xf32>
    tpu.vector_store %arg6[%c56_72, %c128_73], %48 {strides = array<i32>} : memref<64x1152xf32, #tpu.memory_space<vmem>>, vector<8x128xf32>,
    %c2 = arith.constant 2 : index
    %c0_74 = arith.constant 0 : index
    %50 = vector.load %arg5[%c2, %c0_74] : memref<100x128xf32, #tpu.memory_space<vmem>>, vector<8x128xf32>
    %c0_75 = arith.constant 0 : index
    %c256 = arith.constant 256 : index
    %51 = vector.load %arg6[%c0_75, %c256] : memref<64x1152xf32, #tpu.memory_space<vmem>>, vector<8x128xf32>
    tpu.vector_store %arg6[%c0_75, %c256], %50 {strides = array<i32>} : memref<64x1152xf32, #tpu.memory_space<vmem>>, vector<8x128xf32>,
    %c12 = arith.constant 12 : index
    %c0_76 = arith.constant 0 : index
    %52 = vector.load %arg5[%c12, %c0_76] : memref<100x128xf32, #tpu.memory_space<vmem>>, vector<8x128xf32>
    %c8_77 = arith.constant 8 : index
    %c256_78 = arith.constant 256 : index
    %53 = vector.load %arg6[%c8_77, %c256_78] : memref<64x1152xf32, #tpu.memory_space<vmem>>, vector<8x128xf32>
    tpu.vector_store %arg6[%c8_77, %c256_78], %52 {strides = array<i32>} : memref<64x1152xf32, #tpu.memory_space<vmem>>, vector<8x128xf32>,
    %c22 = arith.constant 22 : index
    %c0_79 = arith.constant 0 : index
    %54 = vector.load %arg5[%c22, %c0_79] : memref<100x128xf32, #tpu.memory_space<vmem>>, vector<8x128xf32>
    %c16_80 = arith.constant 16 : index
    %c256_81 = arith.constant 256 : index
    %55 = vector.load %arg6[%c16_80, %c256_81] : memref<64x1152xf32, #tpu.memory_space<vmem>>, vector<8x128xf32>
    tpu.vector_store %arg6[%c16_80, %c256_81], %54 {strides = array<i32>} : memref<64x1152xf32, #tpu.memory_space<vmem>>, vector<8x128xf32>,
    %c32_82 = arith.constant 32 : index
    %c0_83 = arith.constant 0 : index
    %56 = vector.load %arg5[%c32_82, %c0_83] : memref<100x128xf32, #tpu.memory_space<vmem>>, vector<8x128xf32>
    %c24_84 = arith.constant 24 : index
    %c256_85 = arith.constant 256 : index
    %57 = vector.load %arg6[%c24_84, %c256_85] : memref<64x1152xf32, #tpu.memory_space<vmem>>, vector<8x128xf32>
    tpu.vector_store %arg6[%c24_84, %c256_85], %56 {strides = array<i32>} : memref<64x1152xf32, #tpu.memory_space<vmem>>, vector<8x128xf32>,
    %c42 = arith.constant 42 : index
    %c0_86 = arith.constant 0 : index
    %58 = vector.load %arg5[%c42, %c0_86] : memref<100x128xf32, #tpu.memory_space<vmem>>, vector<8x128xf32>
    %c32_87 = arith.constant 32 : index
    %c256_88 = arith.constant 256 : index
    %59 = vector.load %arg6[%c32_87, %c256_88] : memref<64x1152xf32, #tpu.memory_space<vmem>>, vector<8x128xf32>
    tpu.vector_store %arg6[%c32_87, %c256_88], %58 {strides = array<i32>} : memref<64x1152xf32, #tpu.memory_space<vmem>>, vector<8x128xf32>,
    %c52 = arith.constant 52 : index
    %c0_89 = arith.constant 0 : index
    %60 = vector.load %arg5[%c52, %c0_89] : memref<100x128xf32, #tpu.memory_space<vmem>>, vector<8x128xf32>
    %c40_90 = arith.constant 40 : index
    %c256_91 = arith.constant 256 : index
    %61 = vector.load %arg6[%c40_90, %c256_91] : memref<64x1152xf32, #tpu.memory_space<vmem>>, vector<8x128xf32>
    tpu.vector_store %arg6[%c40_90, %c256_91], %60 {strides = array<i32>} : memref<64x1152xf32, #tpu.memory_space<vmem>>, vector<8x128xf32>,
    %c62 = arith.constant 62 : index
    %c0_92 = arith.constant 0 : index
    %62 = vector.load %arg5[%c62, %c0_92] : memref<100x128xf32, #tpu.memory_space<vmem>>, vector<8x128xf32>
    %c48_93 = arith.constant 48 : index
    %c256_94 = arith.constant 256 : index
    %63 = vector.load %arg6[%c48_93, %c256_94] : memref<64x1152xf32, #tpu.memory_space<vmem>>, vector<8x128xf32>
    tpu.vector_store %arg6[%c48_93, %c256_94], %62 {strides = array<i32>} : memref<64x1152xf32, #tpu.memory_space<vmem>>, vector<8x128xf32>,
    %c72 = arith.constant 72 : index
    %c0_95 = arith.constant 0 : index
    %64 = vector.load %arg5[%c72, %c0_95] : memref<100x128xf32, #tpu.memory_space<vmem>>, vector<8x128xf32>
    %c56_96 = arith.constant 56 : index
    %c256_97 = arith.constant 256 : index
    %65 = vector.load %arg6[%c56_96, %c256_97] : memref<64x1152xf32, #tpu.memory_space<vmem>>, vector<8x128xf32>
    tpu.vector_store %arg6[%c56_96, %c256_97], %64 {strides = array<i32>} : memref<64x1152xf32, #tpu.memory_space<vmem>>, vector<8x128xf32>,
    %c10_98 = arith.constant 10 : index
    %c0_99 = arith.constant 0 : index
    %66 = vector.load %arg5[%c10_98, %c0_99] : memref<100x128xf32, #tpu.memory_space<vmem>>, vector<8x128xf32>
    %c0_100 = arith.constant 0 : index
    %c384 = arith.constant 384 : index
    %67 = vector.load %arg6[%c0_100, %c384] : memref<64x1152xf32, #tpu.memory_space<vmem>>, vector<8x128xf32>
    tpu.vector_store %arg6[%c0_100, %c384], %66 {strides = array<i32>} : memref<64x1152xf32, #tpu.memory_space<vmem>>, vector<8x128xf32>,
    %c20_101 = arith.constant 20 : index
    %c0_102 = arith.constant 0 : index
    %68 = vector.load %arg5[%c20_101, %c0_102] : memref<100x128xf32, #tpu.memory_space<vmem>>, vector<8x128xf32>
    %c8_103 = arith.constant 8 : index
    %c384_104 = arith.constant 384 : index
    %69 = vector.load %arg6[%c8_103, %c384_104] : memref<64x1152xf32, #tpu.memory_space<vmem>>, vector<8x128xf32>
    tpu.vector_store %arg6[%c8_103, %c384_104], %68 {strides = array<i32>} : memref<64x1152xf32, #tpu.memory_space<vmem>>, vector<8x128xf32>,
    %c30_105 = arith.constant 30 : index
    %c0_106 = arith.constant 0 : index
    %70 = vector.load %arg5[%c30_105, %c0_106] : memref<100x128xf32, #tpu.memory_space<vmem>>, vector<8x128xf32>
    %c16_107 = arith.constant 16 : index
    %c384_108 = arith.constant 384 : index
    %71 = vector.load %arg6[%c16_107, %c384_108] : memref<64x1152xf32, #tpu.memory_space<vmem>>, vector<8x128xf32>
    tpu.vector_store %arg6[%c16_107, %c384_108], %70 {strides = array<i32>} : memref<64x1152xf32, #tpu.memory_space<vmem>>, vector<8x128xf32>,
    %c40_109 = arith.constant 40 : index
    %c0_110 = arith.constant 0 : index
    %72 = vector.load %arg5[%c40_109, %c0_110] : memref<100x128xf32, #tpu.memory_space<vmem>>, vector<8x128xf32>
    %c24_111 = arith.constant 24 : index
    %c384_112 = arith.constant 384 : index
    %73 = vector.load %arg6[%c24_111, %c384_112] : memref<64x1152xf32, #tpu.memory_space<vmem>>, vector<8x128xf32>
    tpu.vector_store %arg6[%c24_111, %c384_112], %72 {strides = array<i32>} : memref<64x1152xf32, #tpu.memory_space<vmem>>, vector<8x128xf32>,
    %c50_113 = arith.constant 50 : index
    %c0_114 = arith.constant 0 : index
    %74 = vector.load %arg5[%c50_113, %c0_114] : memref<100x128xf32, #tpu.memory_space<vmem>>, vector<8x128xf32>
    %c32_115 = arith.constant 32 : index
    %c384_116 = arith.constant 384 : index
    %75 = vector.load %arg6[%c32_115, %c384_116] : memref<64x1152xf32, #tpu.memory_space<vmem>>, vector<8x128xf32>
    tpu.vector_store %arg6[%c32_115, %c384_116], %74 {strides = array<i32>} : memref<64x1152xf32, #tpu.memory_space<vmem>>, vector<8x128xf32>,
    %c60_117 = arith.constant 60 : index
    %c0_118 = arith.constant 0 : index
    %76 = vector.load %arg5[%c60_117, %c0_118] : memref<100x128xf32, #tpu.memory_space<vmem>>, vector<8x128xf32>
    %c40_119 = arith.constant 40 : index
    %c384_120 = arith.constant 384 : index
    %77 = vector.load %arg6[%c40_119, %c384_120] : memref<64x1152xf32, #tpu.memory_space<vmem>>, vector<8x128xf32>
    tpu.vector_store %arg6[%c40_119, %c384_120], %76 {strides = array<i32>} : memref<64x1152xf32, #tpu.memory_space<vmem>>, vector<8x128xf32>,
    %c70_121 = arith.constant 70 : index
    %c0_122 = arith.constant 0 : index
    %78 = vector.load %arg5[%c70_121, %c0_122] : memref<100x128xf32, #tpu.memory_space<vmem>>, vector<8x128xf32>
    %c48_123 = arith.constant 48 : index
    %c384_124 = arith.constant 384 : index
    %79 = vector.load %arg6[%c48_123, %c384_124] : memref<64x1152xf32, #tpu.memory_space<vmem>>, vector<8x128xf32>
    tpu.vector_store %arg6[%c48_123, %c384_124], %78 {strides = array<i32>} : memref<64x1152xf32, #tpu.memory_space<vmem>>, vector<8x128xf32>,
    %c80 = arith.constant 80 : index
    %c0_125 = arith.constant 0 : index
    %80 = vector.load %arg5[%c80, %c0_125] : memref<100x128xf32, #tpu.memory_space<vmem>>, vector<8x128xf32>
    %c56_126 = arith.constant 56 : index
    %c384_127 = arith.constant 384 : index
    %81 = vector.load %arg6[%c56_126, %c384_127] : memref<64x1152xf32, #tpu.memory_space<vmem>>, vector<8x128xf32>
    tpu.vector_store %arg6[%c56_126, %c384_127], %80 {strides = array<i32>} : memref<64x1152xf32, #tpu.memory_space<vmem>>, vector<8x128xf32>,
    %c11_128 = arith.constant 11 : index
    %c0_129 = arith.constant 0 : index
    %82 = vector.load %arg5[%c11_128, %c0_129] : memref<100x128xf32, #tpu.memory_space<vmem>>, vector<8x128xf32>
    %c0_130 = arith.constant 0 : index
    %c512 = arith.constant 512 : index
    %83 = vector.load %arg6[%c0_130, %c512] : memref<64x1152xf32, #tpu.memory_space<vmem>>, vector<8x128xf32>
    tpu.vector_store %arg6[%c0_130, %c512], %82 {strides = array<i32>} : memref<64x1152xf32, #tpu.memory_space<vmem>>, vector<8x128xf32>,
    %c21_131 = arith.constant 21 : index
    %c0_132 = arith.constant 0 : index
    %84 = vector.load %arg5[%c21_131, %c0_132] : memref<100x128xf32, #tpu.memory_space<vmem>>, vector<8x128xf32>
    %c8_133 = arith.constant 8 : index
    %c512_134 = arith.constant 512 : index
    %85 = vector.load %arg6[%c8_133, %c512_134] : memref<64x1152xf32, #tpu.memory_space<vmem>>, vector<8x128xf32>
    tpu.vector_store %arg6[%c8_133, %c512_134], %84 {strides = array<i32>} : memref<64x1152xf32, #tpu.memory_space<vmem>>, vector<8x128xf32>,
    %c31_135 = arith.constant 31 : index
    %c0_136 = arith.constant 0 : index
    %86 = vector.load %arg5[%c31_135, %c0_136] : memref<100x128xf32, #tpu.memory_space<vmem>>, vector<8x128xf32>
    %c16_137 = arith.constant 16 : index
    %c512_138 = arith.constant 512 : index
    %87 = vector.load %arg6[%c16_137, %c512_138] : memref<64x1152xf32, #tpu.memory_space<vmem>>, vector<8x128xf32>
    tpu.vector_store %arg6[%c16_137, %c512_138], %86 {strides = array<i32>} : memref<64x1152xf32, #tpu.memory_space<vmem>>, vector<8x128xf32>,
    %c41_139 = arith.constant 41 : index
    %c0_140 = arith.constant 0 : index
    %88 = vector.load %arg5[%c41_139, %c0_140] : memref<100x128xf32, #tpu.memory_space<vmem>>, vector<8x128xf32>
    %c24_141 = arith.constant 24 : index
    %c512_142 = arith.constant 512 : index
    %89 = vector.load %arg6[%c24_141, %c512_142] : memref<64x1152xf32, #tpu.memory_space<vmem>>, vector<8x128xf32>
    tpu.vector_store %arg6[%c24_141, %c512_142], %88 {strides = array<i32>} : memref<64x1152xf32, #tpu.memory_space<vmem>>, vector<8x128xf32>,
    %c51_143 = arith.constant 51 : index
    %c0_144 = arith.constant 0 : index
    %90 = vector.load %arg5[%c51_143, %c0_144] : memref<100x128xf32, #tpu.memory_space<vmem>>, vector<8x128xf32>
    %c32_145 = arith.constant 32 : index
    %c512_146 = arith.constant 512 : index
    %91 = vector.load %arg6[%c32_145, %c512_146] : memref<64x1152xf32, #tpu.memory_space<vmem>>, vector<8x128xf32>
    tpu.vector_store %arg6[%c32_145, %c512_146], %90 {strides = array<i32>} : memref<64x1152xf32, #tpu.memory_space<vmem>>, vector<8x128xf32>,
    %c61_147 = arith.constant 61 : index
    %c0_148 = arith.constant 0 : index
    %92 = vector.load %arg5[%c61_147, %c0_148] : memref<100x128xf32, #tpu.memory_space<vmem>>, vector<8x128xf32>
    %c40_149 = arith.constant 40 : index
    %c512_150 = arith.constant 512 : index
    %93 = vector.load %arg6[%c40_149, %c512_150] : memref<64x1152xf32, #tpu.memory_space<vmem>>, vector<8x128xf32>
    tpu.vector_store %arg6[%c40_149, %c512_150], %92 {strides = array<i32>} : memref<64x1152xf32, #tpu.memory_space<vmem>>, vector<8x128xf32>,
    %c71_151 = arith.constant 71 : index
    %c0_152 = arith.constant 0 : index
    %94 = vector.load %arg5[%c71_151, %c0_152] : memref<100x128xf32, #tpu.memory_space<vmem>>, vector<8x128xf32>
    %c48_153 = arith.constant 48 : index
    %c512_154 = arith.constant 512 : index
    %95 = vector.load %arg6[%c48_153, %c512_154] : memref<64x1152xf32, #tpu.memory_space<vmem>>, vector<8x128xf32>
    tpu.vector_store %arg6[%c48_153, %c512_154], %94 {strides = array<i32>} : memref<64x1152xf32, #tpu.memory_space<vmem>>, vector<8x128xf32>,
    %c81_155 = arith.constant 81 : index
    %c0_156 = arith.constant 0 : index
    %96 = vector.load %arg5[%c81_155, %c0_156] : memref<100x128xf32, #tpu.memory_space<vmem>>, vector<8x128xf32>
    %c56_157 = arith.constant 56 : index
    %c512_158 = arith.constant 512 : index
    %97 = vector.load %arg6[%c56_157, %c512_158] : memref<64x1152xf32, #tpu.memory_space<vmem>>, vector<8x128xf32>
    tpu.vector_store %arg6[%c56_157, %c512_158], %96 {strides = array<i32>} : memref<64x1152xf32, #tpu.memory_space<vmem>>, vector<8x128xf32>,
    %c12_159 = arith.constant 12 : index
    %c0_160 = arith.constant 0 : index
    %98 = vector.load %arg5[%c12_159, %c0_160] : memref<100x128xf32, #tpu.memory_space<vmem>>, vector<8x128xf32>
    %c0_161 = arith.constant 0 : index
    %c640 = arith.constant 640 : index
    %99 = vector.load %arg6[%c0_161, %c640] : memref<64x1152xf32, #tpu.memory_space<vmem>>, vector<8x128xf32>
    tpu.vector_store %arg6[%c0_161, %c640], %98 {strides = array<i32>} : memref<64x1152xf32, #tpu.memory_space<vmem>>, vector<8x128xf32>,
    %c22_162 = arith.constant 22 : index
    %c0_163 = arith.constant 0 : index
    %100 = vector.load %arg5[%c22_162, %c0_163] : memref<100x128xf32, #tpu.memory_space<vmem>>, vector<8x128xf32>
    %c8_164 = arith.constant 8 : index
    %c640_165 = arith.constant 640 : index
    %101 = vector.load %arg6[%c8_164, %c640_165] : memref<64x1152xf32, #tpu.memory_space<vmem>>, vector<8x128xf32>
    tpu.vector_store %arg6[%c8_164, %c640_165], %100 {strides = array<i32>} : memref<64x1152xf32, #tpu.memory_space<vmem>>, vector<8x128xf32>,
    %c32_166 = arith.constant 32 : index
    %c0_167 = arith.constant 0 : index
    %102 = vector.load %arg5[%c32_166, %c0_167] : memref<100x128xf32, #tpu.memory_space<vmem>>, vector<8x128xf32>
    %c16_168 = arith.constant 16 : index
    %c640_169 = arith.constant 640 : index
    %103 = vector.load %arg6[%c16_168, %c640_169] : memref<64x1152xf32, #tpu.memory_space<vmem>>, vector<8x128xf32>
    tpu.vector_store %arg6[%c16_168, %c640_169], %102 {strides = array<i32>} : memref<64x1152xf32, #tpu.memory_space<vmem>>, vector<8x128xf32>,
    %c42_170 = arith.constant 42 : index
    %c0_171 = arith.constant 0 : index
    %104 = vector.load %arg5[%c42_170, %c0_171] : memref<100x128xf32, #tpu.memory_space<vmem>>, vector<8x128xf32>
    %c24_172 = arith.constant 24 : index
    %c640_173 = arith.constant 640 : index
    %105 = vector.load %arg6[%c24_172, %c640_173] : memref<64x1152xf32, #tpu.memory_space<vmem>>, vector<8x128xf32>
    tpu.vector_store %arg6[%c24_172, %c640_173], %104 {strides = array<i32>} : memref<64x1152xf32, #tpu.memory_space<vmem>>, vector<8x128xf32>,
    %c52_174 = arith.constant 52 : index
    %c0_175 = arith.constant 0 : index
    %106 = vector.load %arg5[%c52_174, %c0_175] : memref<100x128xf32, #tpu.memory_space<vmem>>, vector<8x128xf32>
    %c32_176 = arith.constant 32 : index
    %c640_177 = arith.constant 640 : index
    %107 = vector.load %arg6[%c32_176, %c640_177] : memref<64x1152xf32, #tpu.memory_space<vmem>>, vector<8x128xf32>
    tpu.vector_store %arg6[%c32_176, %c640_177], %106 {strides = array<i32>} : memref<64x1152xf32, #tpu.memory_space<vmem>>, vector<8x128xf32>,
    %c62_178 = arith.constant 62 : index
    %c0_179 = arith.constant 0 : index
    %108 = vector.load %arg5[%c62_178, %c0_179] : memref<100x128xf32, #tpu.memory_space<vmem>>, vector<8x128xf32>
    %c40_180 = arith.constant 40 : index
    %c640_181 = arith.constant 640 : index
    %109 = vector.load %arg6[%c40_180, %c640_181] : memref<64x1152xf32, #tpu.memory_space<vmem>>, vector<8x128xf32>
    tpu.vector_store %arg6[%c40_180, %c640_181], %108 {strides = array<i32>} : memref<64x1152xf32, #tpu.memory_space<vmem>>, vector<8x128xf32>,
    %c72_182 = arith.constant 72 : index
    %c0_183 = arith.constant 0 : index
    %110 = vector.load %arg5[%c72_182, %c0_183] : memref<100x128xf32, #tpu.memory_space<vmem>>, vector<8x128xf32>
    %c48_184 = arith.constant 48 : index
    %c640_185 = arith.constant 640 : index
    %111 = vector.load %arg6[%c48_184, %c640_185] : memref<64x1152xf32, #tpu.memory_space<vmem>>, vector<8x128xf32>
    tpu.vector_store %arg6[%c48_184, %c640_185], %110 {strides = array<i32>} : memref<64x1152xf32, #tpu.memory_space<vmem>>, vector<8x128xf32>,
    %c82 = arith.constant 82 : index
    %c0_186 = arith.constant 0 : index
    %112 = vector.load %arg5[%c82, %c0_186] : memref<100x128xf32, #tpu.memory_space<vmem>>, vector<8x128xf32>
    %c56_187 = arith.constant 56 : index
    %c640_188 = arith.constant 640 : index
    %113 = vector.load %arg6[%c56_187, %c640_188] : memref<64x1152xf32, #tpu.memory_space<vmem>>, vector<8x128xf32>
    tpu.vector_store %arg6[%c56_187, %c640_188], %112 {strides = array<i32>} : memref<64x1152xf32, #tpu.memory_space<vmem>>, vector<8x128xf32>,
    %c20_189 = arith.constant 20 : index
    %c0_190 = arith.constant 0 : index
    %114 = vector.load %arg5[%c20_189, %c0_190] : memref<100x128xf32, #tpu.memory_space<vmem>>, vector<8x128xf32>
    %c0_191 = arith.constant 0 : index
    %c768 = arith.constant 768 : index
    %115 = vector.load %arg6[%c0_191, %c768] : memref<64x1152xf32, #tpu.memory_space<vmem>>, vector<8x128xf32>
    tpu.vector_store %arg6[%c0_191, %c768], %114 {strides = array<i32>} : memref<64x1152xf32, #tpu.memory_space<vmem>>, vector<8x128xf32>,
    %c30_192 = arith.constant 30 : index
    %c0_193 = arith.constant 0 : index
    %116 = vector.load %arg5[%c30_192, %c0_193] : memref<100x128xf32, #tpu.memory_space<vmem>>, vector<8x128xf32>
    %c8_194 = arith.constant 8 : index
    %c768_195 = arith.constant 768 : index
    %117 = vector.load %arg6[%c8_194, %c768_195] : memref<64x1152xf32, #tpu.memory_space<vmem>>, vector<8x128xf32>
    tpu.vector_store %arg6[%c8_194, %c768_195], %116 {strides = array<i32>} : memref<64x1152xf32, #tpu.memory_space<vmem>>, vector<8x128xf32>,
    %c40_196 = arith.constant 40 : index
    %c0_197 = arith.constant 0 : index
    %118 = vector.load %arg5[%c40_196, %c0_197] : memref<100x128xf32, #tpu.memory_space<vmem>>, vector<8x128xf32>
    %c16_198 = arith.constant 16 : index
    %c768_199 = arith.constant 768 : index
    %119 = vector.load %arg6[%c16_198, %c768_199] : memref<64x1152xf32, #tpu.memory_space<vmem>>, vector<8x128xf32>
    tpu.vector_store %arg6[%c16_198, %c768_199], %118 {strides = array<i32>} : memref<64x1152xf32, #tpu.memory_space<vmem>>, vector<8x128xf32>,
    %c50_200 = arith.constant 50 : index
    %c0_201 = arith.constant 0 : index
    %120 = vector.load %arg5[%c50_200, %c0_201] : memref<100x128xf32, #tpu.memory_space<vmem>>, vector<8x128xf32>
    %c24_202 = arith.constant 24 : index
    %c768_203 = arith.constant 768 : index
    %121 = vector.load %arg6[%c24_202, %c768_203] : memref<64x1152xf32, #tpu.memory_space<vmem>>, vector<8x128xf32>
    tpu.vector_store %arg6[%c24_202, %c768_203], %120 {strides = array<i32>} : memref<64x1152xf32, #tpu.memory_space<vmem>>, vector<8x128xf32>,
    %c60_204 = arith.constant 60 : index
    %c0_205 = arith.constant 0 : index
    %122 = vector.load %arg5[%c60_204, %c0_205] : memref<100x128xf32, #tpu.memory_space<vmem>>, vector<8x128xf32>
    %c32_206 = arith.constant 32 : index
    %c768_207 = arith.constant 768 : index
    %123 = vector.load %arg6[%c32_206, %c768_207] : memref<64x1152xf32, #tpu.memory_space<vmem>>, vector<8x128xf32>
    tpu.vector_store %arg6[%c32_206, %c768_207], %122 {strides = array<i32>} : memref<64x1152xf32, #tpu.memory_space<vmem>>, vector<8x128xf32>,
    %c70_208 = arith.constant 70 : index
    %c0_209 = arith.constant 0 : index
    %124 = vector.load %arg5[%c70_208, %c0_209] : memref<100x128xf32, #tpu.memory_space<vmem>>, vector<8x128xf32>
    %c40_210 = arith.constant 40 : index
    %c768_211 = arith.constant 768 : index
    %125 = vector.load %arg6[%c40_210, %c768_211] : memref<64x1152xf32, #tpu.memory_space<vmem>>, vector<8x128xf32>
    tpu.vector_store %arg6[%c40_210, %c768_211], %124 {strides = array<i32>} : memref<64x1152xf32, #tpu.memory_space<vmem>>, vector<8x128xf32>,
    %c80_212 = arith.constant 80 : index
    %c0_213 = arith.constant 0 : index
    %126 = vector.load %arg5[%c80_212, %c0_213] : memref<100x128xf32, #tpu.memory_space<vmem>>, vector<8x128xf32>
    %c48_214 = arith.constant 48 : index
    %c768_215 = arith.constant 768 : index
    %127 = vector.load %arg6[%c48_214, %c768_215] : memref<64x1152xf32, #tpu.memory_space<vmem>>, vector<8x128xf32>
    tpu.vector_store %arg6[%c48_214, %c768_215], %126 {strides = array<i32>} : memref<64x1152xf32, #tpu.memory_space<vmem>>, vector<8x128xf32>,
    %c90 = arith.constant 90 : index
    %c0_216 = arith.constant 0 : index
    %128 = vector.load %arg5[%c90, %c0_216] : memref<100x128xf32, #tpu.memory_space<vmem>>, vector<8x128xf32>
    %c56_217 = arith.constant 56 : index
    %c768_218 = arith.constant 768 : index
    %129 = vector.load %arg6[%c56_217, %c768_218] : memref<64x1152xf32, #tpu.memory_space<vmem>>, vector<8x128xf32>
    tpu.vector_store %arg6[%c56_217, %c768_218], %128 {strides = array<i32>} : memref<64x1152xf32, #tpu.memory_space<vmem>>, vector<8x128xf32>,
    %c21_219 = arith.constant 21 : index
    %c0_220 = arith.constant 0 : index
    %130 = vector.load %arg5[%c21_219, %c0_220] : memref<100x128xf32, #tpu.memory_space<vmem>>, vector<8x128xf32>
    %c0_221 = arith.constant 0 : index
    %c896 = arith.constant 896 : index
    %131 = vector.load %arg6[%c0_221, %c896] : memref<64x1152xf32, #tpu.memory_space<vmem>>, vector<8x128xf32>
    tpu.vector_store %arg6[%c0_221, %c896], %130 {strides = array<i32>} : memref<64x1152xf32, #tpu.memory_space<vmem>>, vector<8x128xf32>,
    %c31_222 = arith.constant 31 : index
    %c0_223 = arith.constant 0 : index
    %132 = vector.load %arg5[%c31_222, %c0_223] : memref<100x128xf32, #tpu.memory_space<vmem>>, vector<8x128xf32>
    %c8_224 = arith.constant 8 : index
    %c896_225 = arith.constant 896 : index
    %133 = vector.load %arg6[%c8_224, %c896_225] : memref<64x1152xf32, #tpu.memory_space<vmem>>, vector<8x128xf32>
    tpu.vector_store %arg6[%c8_224, %c896_225], %132 {strides = array<i32>} : memref<64x1152xf32, #tpu.memory_space<vmem>>, vector<8x128xf32>,
    %c41_226 = arith.constant 41 : index
    %c0_227 = arith.constant 0 : index
    %134 = vector.load %arg5[%c41_226, %c0_227] : memref<100x128xf32, #tpu.memory_space<vmem>>, vector<8x128xf32>
    %c16_228 = arith.constant 16 : index
    %c896_229 = arith.constant 896 : index
    %135 = vector.load %arg6[%c16_228, %c896_229] : memref<64x1152xf32, #tpu.memory_space<vmem>>, vector<8x128xf32>
    tpu.vector_store %arg6[%c16_228, %c896_229], %134 {strides = array<i32>} : memref<64x1152xf32, #tpu.memory_space<vmem>>, vector<8x128xf32>,
    %c51_230 = arith.constant 51 : index
    %c0_231 = arith.constant 0 : index
    %136 = vector.load %arg5[%c51_230, %c0_231] : memref<100x128xf32, #tpu.memory_space<vmem>>, vector<8x128xf32>
    %c24_232 = arith.constant 24 : index
    %c896_233 = arith.constant 896 : index
    %137 = vector.load %arg6[%c24_232, %c896_233] : memref<64x1152xf32, #tpu.memory_space<vmem>>, vector<8x128xf32>
    tpu.vector_store %arg6[%c24_232, %c896_233], %136 {strides = array<i32>} : memref<64x1152xf32, #tpu.memory_space<vmem>>, vector<8x128xf32>,
    %c61_234 = arith.constant 61 : index
    %c0_235 = arith.constant 0 : index
    %138 = vector.load %arg5[%c61_234, %c0_235] : memref<100x128xf32, #tpu.memory_space<vmem>>, vector<8x128xf32>
    %c32_236 = arith.constant 32 : index
    %c896_237 = arith.constant 896 : index
    %139 = vector.load %arg6[%c32_236, %c896_237] : memref<64x1152xf32, #tpu.memory_space<vmem>>, vector<8x128xf32>
    tpu.vector_store %arg6[%c32_236, %c896_237], %138 {strides = array<i32>} : memref<64x1152xf32, #tpu.memory_space<vmem>>, vector<8x128xf32>,
    %c71_238 = arith.constant 71 : index
    %c0_239 = arith.constant 0 : index
    %140 = vector.load %arg5[%c71_238, %c0_239] : memref<100x128xf32, #tpu.memory_space<vmem>>, vector<8x128xf32>
    %c40_240 = arith.constant 40 : index
    %c896_241 = arith.constant 896 : index
    %141 = vector.load %arg6[%c40_240, %c896_241] : memref<64x1152xf32, #tpu.memory_space<vmem>>, vector<8x128xf32>
    tpu.vector_store %arg6[%c40_240, %c896_241], %140 {strides = array<i32>} : memref<64x1152xf32, #tpu.memory_space<vmem>>, vector<8x128xf32>,
    %c81_242 = arith.constant 81 : index
    %c0_243 = arith.constant 0 : index
    %142 = vector.load %arg5[%c81_242, %c0_243] : memref<100x128xf32, #tpu.memory_space<vmem>>, vector<8x128xf32>
    %c48_244 = arith.constant 48 : index
    %c896_245 = arith.constant 896 : index
    %143 = vector.load %arg6[%c48_244, %c896_245] : memref<64x1152xf32, #tpu.memory_space<vmem>>, vector<8x128xf32>
    tpu.vector_store %arg6[%c48_244, %c896_245], %142 {strides = array<i32>} : memref<64x1152xf32, #tpu.memory_space<vmem>>, vector<8x128xf32>,
    %c91 = arith.constant 91 : index
    %c0_246 = arith.constant 0 : index
    %144 = vector.load %arg5[%c91, %c0_246] : memref<100x128xf32, #tpu.memory_space<vmem>>, vector<8x128xf32>
    %c56_247 = arith.constant 56 : index
    %c896_248 = arith.constant 896 : index
    %145 = vector.load %arg6[%c56_247, %c896_248] : memref<64x1152xf32, #tpu.memory_space<vmem>>, vector<8x128xf32>
    tpu.vector_store %arg6[%c56_247, %c896_248], %144 {strides = array<i32>} : memref<64x1152xf32, #tpu.memory_space<vmem>>, vector<8x128xf32>,
    %c22_249 = arith.constant 22 : index
    %c0_250 = arith.constant 0 : index
    %146 = vector.load %arg5[%c22_249, %c0_250] : memref<100x128xf32, #tpu.memory_space<vmem>>, vector<8x128xf32>
    %c0_251 = arith.constant 0 : index
    %c1024 = arith.constant 1024 : index
    %147 = vector.load %arg6[%c0_251, %c1024] : memref<64x1152xf32, #tpu.memory_space<vmem>>, vector<8x128xf32>
    tpu.vector_store %arg6[%c0_251, %c1024], %146 {strides = array<i32>} : memref<64x1152xf32, #tpu.memory_space<vmem>>, vector<8x128xf32>,
    %c32_252 = arith.constant 32 : index
    %c0_253 = arith.constant 0 : index
    %148 = vector.load %arg5[%c32_252, %c0_253] : memref<100x128xf32, #tpu.memory_space<vmem>>, vector<8x128xf32>
    %c8_254 = arith.constant 8 : index
    %c1024_255 = arith.constant 1024 : index
    %149 = vector.load %arg6[%c8_254, %c1024_255] : memref<64x1152xf32, #tpu.memory_space<vmem>>, vector<8x128xf32>
    tpu.vector_store %arg6[%c8_254, %c1024_255], %148 {strides = array<i32>} : memref<64x1152xf32, #tpu.memory_space<vmem>>, vector<8x128xf32>,
    %c42_256 = arith.constant 42 : index
    %c0_257 = arith.constant 0 : index
    %150 = vector.load %arg5[%c42_256, %c0_257] : memref<100x128xf32, #tpu.memory_space<vmem>>, vector<8x128xf32>
    %c16_258 = arith.constant 16 : index
    %c1024_259 = arith.constant 1024 : index
    %151 = vector.load %arg6[%c16_258, %c1024_259] : memref<64x1152xf32, #tpu.memory_space<vmem>>, vector<8x128xf32>
    tpu.vector_store %arg6[%c16_258, %c1024_259], %150 {strides = array<i32>} : memref<64x1152xf32, #tpu.memory_space<vmem>>, vector<8x128xf32>,
    %c52_260 = arith.constant 52 : index
    %c0_261 = arith.constant 0 : index
    %152 = vector.load %arg5[%c52_260, %c0_261] : memref<100x128xf32, #tpu.memory_space<vmem>>, vector<8x128xf32>
    %c24_262 = arith.constant 24 : index
    %c1024_263 = arith.constant 1024 : index
    %153 = vector.load %arg6[%c24_262, %c1024_263] : memref<64x1152xf32, #tpu.memory_space<vmem>>, vector<8x128xf32>
    tpu.vector_store %arg6[%c24_262, %c1024_263], %152 {strides = array<i32>} : memref<64x1152xf32, #tpu.memory_space<vmem>>, vector<8x128xf32>,
    %c62_264 = arith.constant 62 : index
    %c0_265 = arith.constant 0 : index
    %154 = vector.load %arg5[%c62_264, %c0_265] : memref<100x128xf32, #tpu.memory_space<vmem>>, vector<8x128xf32>
    %c32_266 = arith.constant 32 : index
    %c1024_267 = arith.constant 1024 : index
    %155 = vector.load %arg6[%c32_266, %c1024_267] : memref<64x1152xf32, #tpu.memory_space<vmem>>, vector<8x128xf32>
    tpu.vector_store %arg6[%c32_266, %c1024_267], %154 {strides = array<i32>} : memref<64x1152xf32, #tpu.memory_space<vmem>>, vector<8x128xf32>,
    %c72_268 = arith.constant 72 : index
    %c0_269 = arith.constant 0 : index
    %156 = vector.load %arg5[%c72_268, %c0_269] : memref<100x128xf32, #tpu.memory_space<vmem>>, vector<8x128xf32>
    %c40_270 = arith.constant 40 : index
    %c1024_271 = arith.constant 1024 : index
    %157 = vector.load %arg6[%c40_270, %c1024_271] : memref<64x1152xf32, #tpu.memory_space<vmem>>, vector<8x128xf32>
    tpu.vector_store %arg6[%c40_270, %c1024_271], %156 {strides = array<i32>} : memref<64x1152xf32, #tpu.memory_space<vmem>>, vector<8x128xf32>,
    %c82_272 = arith.constant 82 : index
    %c0_273 = arith.constant 0 : index
    %158 = vector.load %arg5[%c82_272, %c0_273] : memref<100x128xf32, #tpu.memory_space<vmem>>, vector<8x128xf32>
    %c48_274 = arith.constant 48 : index
    %c1024_275 = arith.constant 1024 : index
    %159 = vector.load %arg6[%c48_274, %c1024_275] : memref<64x1152xf32, #tpu.memory_space<vmem>>, vector<8x128xf32>
    tpu.vector_store %arg6[%c48_274, %c1024_275], %158 {strides = array<i32>} : memref<64x1152xf32, #tpu.memory_space<vmem>>, vector<8x128xf32>,
    %c92 = arith.constant 92 : index
    %c0_276 = arith.constant 0 : index
    %160 = vector.load %arg5[%c92, %c0_276] : memref<100x128xf32, #tpu.memory_space<vmem>>, vector<8x128xf32>
    %c56_277 = arith.constant 56 : index
    %c1024_278 = arith.constant 1024 : index
    %161 = vector.load %arg6[%c56_277, %c1024_278] : memref<64x1152xf32, #tpu.memory_space<vmem>>, vector<8x128xf32>
    tpu.vector_store %arg6[%c56_277, %c1024_278], %160 {strides = array<i32>} : memref<64x1152xf32, #tpu.memory_space<vmem>>, vector<8x128xf32>,
    %c0_279 = arith.constant 0 : index
    %c0_280 = arith.constant 0 : index
    %162 = vector.load %arg6[%c0_279, %c0_280] : memref<64x1152xf32, #tpu.memory_space<vmem>>, vector<64x1152xf32>
    %163 = arith.truncf %162 : vector<64x1152xf32> to vector<64x1152xbf16>
    %c0_281 = arith.constant 0 : index
    %c0_282 = arith.constant 0 : index
    %164 = vector.load %arg3[%c0_281, %c0_282] : memref<1152x128xbf16, #tpu.memory_space<vmem>>, vector<1152x128xbf16>
    %cst_283 = arith.constant dense<0.000000e+00> : vector<64x128xf32>
    %165 = tpu.matmul %163, %164, %cst_283 {dimension_numbers = #tpu.dot_dimension_numbers<[1], [0], [0], [1], [0, 0, 1, 1], [], []>} : vector<64x1152xbf16>, vector<1152x128xbf16>, vector<64x128xf32> -> vector<64x128xf32>
    %c0_284 = arith.constant 0 : index
    %c0_285 = arith.constant 0 : index
    %166 = vector.load %arg2[%c0_284, %c0_285] : memref<64x128xf32, #tpu.memory_space<vmem>>, vector<64x128xf32>
    %167 = arith.addf %166, %165 : vector<64x128xf32>
    %c0_286 = arith.constant 0 : index
    %c0_287 = arith.constant 0 : index
    %168 = vector.load %arg4[%c0_286, %c0_287] : memref<64x128xf32, #tpu.memory_space<vmem>>, vector<64x128xf32>
    tpu.vector_store %arg4[%c0_286, %c0_287], %167 {strides = array<i32>} : memref<64x128xf32, #tpu.memory_space<vmem>>, vector<64x128xf32>,
    return
  }
  func.func @transform_0(%arg0: i32) -> (i32, i32) {
    %c0_i32 = arith.constant 0 : i32
    %c0_i32_0 = arith.constant 0 : i32
    return %arg0, %c0_i32 : i32, i32
  }
  func.func @transform_1(%arg0: i32) -> (i32, i32) {
    %c0_i32 = arith.constant 0 : i32
    %c0_i32_0 = arith.constant 0 : i32
    return %arg0, %c0_i32 : i32, i32
  }
  func.func @transform_2(%arg0: i32) -> (i32, i32) {
    %c0_i32 = arith.constant 0 : i32
    %c0_i32_0 = arith.constant 0 : i32
    %c0_i32_1 = arith.constant 0 : i32
    return %c0_i32, %c0_i32_0 : i32, i32
  }
  func.func @transform_3(%arg0: i32) -> (i32, i32) {
    %c0_i32 = arith.constant 0 : i32
    %c0_i32_0 = arith.constant 0 : i32
    return %arg0, %c0_i32 : i32, i32
  }
}

module attributes {stable_mosaic.version = 11 : i64} {
  func.func @_transition_kernel(%arg0: i32, %arg1: memref<64x128xf32, #tpu.memory_space<vmem>>, %arg2: memref<1x128xf32, #tpu.memory_space<vmem>>, %arg3: memref<1x128xf32, #tpu.memory_space<vmem>>, %arg4: memref<128x128xbf16, #tpu.memory_space<vmem>>, %arg5: memref<64x128xf32, #tpu.memory_space<vmem>>) attributes {dimension_semantics = [#tpu.dimension_semantics<parallel>], iteration_bounds = array<i64: 2>, scalar_prefetch = 0 : i64, scratch_operands = 0 : i64, tpu.core_type = #tpu.core_type<tc>, window_params = [{transform_indices = @transform_0, window_bounds = array<i64: 64, 128>}, {pipeline_mode = #tpu.pipeline_mode<synchronous>, transform_indices = @transform_1, window_bounds = array<i64: 1, 128>}, {pipeline_mode = #tpu.pipeline_mode<synchronous>, transform_indices = @transform_2, window_bounds = array<i64: 1, 128>}, {pipeline_mode = #tpu.pipeline_mode<synchronous>, transform_indices = @transform_3, window_bounds = array<i64: 128, 128>}, {transform_indices = @transform_4, window_bounds = array<i64: 64, 128>}]} {
    %c0 = arith.constant 0 : index
    %c0_0 = arith.constant 0 : index
    %0 = vector.load %arg1[%c0, %c0_0] : memref<64x128xf32, #tpu.memory_space<vmem>>, vector<64x128xf32>
    %c0_1 = arith.constant 0 : index
    %c0_2 = arith.constant 0 : index
    %1 = vector.load %arg2[%c0_1, %c0_2] : memref<1x128xf32, #tpu.memory_space<vmem>>, vector<1x128xf32>
    %2 = vector.broadcast %1 : vector<1x128xf32> to vector<64x128xf32>
    %3 = arith.mulf %0, %2 : vector<64x128xf32>
    %c0_3 = arith.constant 0 : index
    %c0_4 = arith.constant 0 : index
    %4 = vector.load %arg3[%c0_3, %c0_4] : memref<1x128xf32, #tpu.memory_space<vmem>>, vector<1x128xf32>
    %5 = vector.broadcast %4 : vector<1x128xf32> to vector<64x128xf32>
    %6 = arith.addf %3, %5 : vector<64x128xf32>
    %cst = arith.constant 0.000000e+00 : f32
    %7 = vector.broadcast %cst : f32 to vector<64x128xf32>
    %8 = arith.maximumf %6, %7 : vector<64x128xf32>
    %9 = arith.truncf %8 : vector<64x128xf32> to vector<64x128xbf16>
    %c0_5 = arith.constant 0 : index
    %c0_6 = arith.constant 0 : index
    %10 = vector.load %arg4[%c0_5, %c0_6] : memref<128x128xbf16, #tpu.memory_space<vmem>>, vector<128x128xbf16>
    %cst_7 = arith.constant dense<0.000000e+00> : vector<64x128xf32>
    %11 = tpu.matmul %9, %10, %cst_7 {dimension_numbers = #tpu.dot_dimension_numbers<[1], [0], [0], [1], [0, 0, 1, 1], [], []>} : vector<64x128xbf16>, vector<128x128xbf16>, vector<64x128xf32> -> vector<64x128xf32>
    %c0_8 = arith.constant 0 : index
    %c0_9 = arith.constant 0 : index
    %12 = vector.load %arg5[%c0_8, %c0_9] : memref<64x128xf32, #tpu.memory_space<vmem>>, vector<64x128xf32>
    tpu.vector_store %arg5[%c0_8, %c0_9], %11 {strides = array<i32>} : memref<64x128xf32, #tpu.memory_space<vmem>>, vector<64x128xf32>,
    return
  }
  func.func @transform_0(%arg0: i32) -> (i32, i32) {
    %c0_i32 = arith.constant 0 : i32
    %c0_i32_0 = arith.constant 0 : i32
    return %arg0, %c0_i32 : i32, i32
  }
  func.func @transform_1(%arg0: i32) -> (i32, i32) {
    %c0_i32 = arith.constant 0 : i32
    %c0_i32_0 = arith.constant 0 : i32
    %c0_i32_1 = arith.constant 0 : i32
    return %c0_i32, %c0_i32_0 : i32, i32
  }
  func.func @transform_2(%arg0: i32) -> (i32, i32) {
    %c0_i32 = arith.constant 0 : i32
    %c0_i32_0 = arith.constant 0 : i32
    %c0_i32_1 = arith.constant 0 : i32
    return %c0_i32, %c0_i32_0 : i32, i32
  }
  func.func @transform_3(%arg0: i32) -> (i32, i32) {
    %c0_i32 = arith.constant 0 : i32
    %c0_i32_0 = arith.constant 0 : i32
    %c0_i32_1 = arith.constant 0 : i32
    return %c0_i32, %c0_i32_0 : i32, i32
  }
  func.func @transform_4(%arg0: i32) -> (i32, i32) {
    %c0_i32 = arith.constant 0 : i32
    %c0_i32_0 = arith.constant 0 : i32
    return %arg0, %c0_i32 : i32, i32
  }
}

module attributes {stable_mosaic.version = 11 : i64} {
  func.func @_bottleneck_kernel(%arg0: i32, %arg1: memref<16x128xf32, #tpu.memory_space<vmem>>, %arg2: memref<1x128xf32, #tpu.memory_space<vmem>>, %arg3: memref<1x128xf32, #tpu.memory_space<vmem>>, %arg4: memref<128x128xbf16, #tpu.memory_space<vmem>>, %arg5: memref<1x128xf32, #tpu.memory_space<vmem>>, %arg6: memref<1x128xf32, #tpu.memory_space<vmem>>, %arg7: memref<16x128xf32, #tpu.memory_space<vmem>>) attributes {dimension_semantics = [#tpu.dimension_semantics<parallel>], iteration_bounds = array<i64: 2>, scalar_prefetch = 0 : i64, scratch_operands = 0 : i64, tpu.core_type = #tpu.core_type<tc>, window_params = [{transform_indices = @transform_0, window_bounds = array<i64: 16, 128>}, {pipeline_mode = #tpu.pipeline_mode<synchronous>, transform_indices = @transform_1, window_bounds = array<i64: 1, 128>}, {pipeline_mode = #tpu.pipeline_mode<synchronous>, transform_indices = @transform_2, window_bounds = array<i64: 1, 128>}, {pipeline_mode = #tpu.pipeline_mode<synchronous>, transform_indices = @transform_3, window_bounds = array<i64: 128, 128>}, {pipeline_mode = #tpu.pipeline_mode<synchronous>, transform_indices = @transform_4, window_bounds = array<i64: 1, 128>}, {pipeline_mode = #tpu.pipeline_mode<synchronous>, transform_indices = @transform_5, window_bounds = array<i64: 1, 128>}, {transform_indices = @transform_6, window_bounds = array<i64: 16, 128>}]} {
    %c0 = arith.constant 0 : index
    %c0_0 = arith.constant 0 : index
    %0 = vector.load %arg1[%c0, %c0_0] : memref<16x128xf32, #tpu.memory_space<vmem>>, vector<16x128xf32>
    %c0_1 = arith.constant 0 : index
    %c0_2 = arith.constant 0 : index
    %1 = vector.load %arg2[%c0_1, %c0_2] : memref<1x128xf32, #tpu.memory_space<vmem>>, vector<1x128xf32>
    %2 = vector.broadcast %1 : vector<1x128xf32> to vector<16x128xf32>
    %3 = arith.mulf %0, %2 : vector<16x128xf32>
    %c0_3 = arith.constant 0 : index
    %c0_4 = arith.constant 0 : index
    %4 = vector.load %arg3[%c0_3, %c0_4] : memref<1x128xf32, #tpu.memory_space<vmem>>, vector<1x128xf32>
    %5 = vector.broadcast %4 : vector<1x128xf32> to vector<16x128xf32>
    %6 = arith.addf %3, %5 : vector<16x128xf32>
    %cst = arith.constant 0.000000e+00 : f32
    %7 = vector.broadcast %cst : f32 to vector<16x128xf32>
    %8 = arith.maximumf %6, %7 : vector<16x128xf32>
    %9 = arith.truncf %8 : vector<16x128xf32> to vector<16x128xbf16>
    %c0_5 = arith.constant 0 : index
    %c0_6 = arith.constant 0 : index
    %10 = vector.load %arg4[%c0_5, %c0_6] : memref<128x128xbf16, #tpu.memory_space<vmem>>, vector<128x128xbf16>
    %cst_7 = arith.constant dense<0.000000e+00> : vector<16x128xf32>
    %11 = tpu.matmul %9, %10, %cst_7 {dimension_numbers = #tpu.dot_dimension_numbers<[1], [0], [0], [1], [0, 0, 1, 1], [], []>} : vector<16x128xbf16>, vector<128x128xbf16>, vector<16x128xf32> -> vector<16x128xf32>
    %c0_8 = arith.constant 0 : index
    %c0_9 = arith.constant 0 : index
    %12 = vector.load %arg5[%c0_8, %c0_9] : memref<1x128xf32, #tpu.memory_space<vmem>>, vector<1x128xf32>
    %13 = vector.broadcast %12 : vector<1x128xf32> to vector<16x128xf32>
    %14 = arith.mulf %11, %13 : vector<16x128xf32>
    %c0_10 = arith.constant 0 : index
    %c0_11 = arith.constant 0 : index
    %15 = vector.load %arg6[%c0_10, %c0_11] : memref<1x128xf32, #tpu.memory_space<vmem>>, vector<1x128xf32>
    %16 = vector.broadcast %15 : vector<1x128xf32> to vector<16x128xf32>
    %17 = arith.addf %14, %16 : vector<16x128xf32>
    %cst_12 = arith.constant 0.000000e+00 : f32
    %18 = vector.broadcast %cst_12 : f32 to vector<16x128xf32>
    %19 = arith.maximumf %17, %18 : vector<16x128xf32>
    %c0_13 = arith.constant 0 : index
    %c0_14 = arith.constant 0 : index
    %20 = vector.load %arg7[%c0_13, %c0_14] : memref<16x128xf32, #tpu.memory_space<vmem>>, vector<16x128xf32>
    tpu.vector_store %arg7[%c0_13, %c0_14], %19 {strides = array<i32>} : memref<16x128xf32, #tpu.memory_space<vmem>>, vector<16x128xf32>,
    return
  }
  func.func @transform_0(%arg0: i32) -> (i32, i32) {
    %c0_i32 = arith.constant 0 : i32
    %c0_i32_0 = arith.constant 0 : i32
    return %arg0, %c0_i32 : i32, i32
  }
  func.func @transform_1(%arg0: i32) -> (i32, i32) {
    %c0_i32 = arith.constant 0 : i32
    %c0_i32_0 = arith.constant 0 : i32
    %c0_i32_1 = arith.constant 0 : i32
    return %c0_i32, %c0_i32_0 : i32, i32
  }
  func.func @transform_2(%arg0: i32) -> (i32, i32) {
    %c0_i32 = arith.constant 0 : i32
    %c0_i32_0 = arith.constant 0 : i32
    %c0_i32_1 = arith.constant 0 : i32
    return %c0_i32, %c0_i32_0 : i32, i32
  }
  func.func @transform_3(%arg0: i32) -> (i32, i32) {
    %c0_i32 = arith.constant 0 : i32
    %c0_i32_0 = arith.constant 0 : i32
    %c0_i32_1 = arith.constant 0 : i32
    return %c0_i32, %c0_i32_0 : i32, i32
  }
  func.func @transform_4(%arg0: i32) -> (i32, i32) {
    %c0_i32 = arith.constant 0 : i32
    %c0_i32_0 = arith.constant 0 : i32
    %c0_i32_1 = arith.constant 0 : i32
    return %c0_i32, %c0_i32_0 : i32, i32
  }
  func.func @transform_5(%arg0: i32) -> (i32, i32) {
    %c0_i32 = arith.constant 0 : i32
    %c0_i32_0 = arith.constant 0 : i32
    %c0_i32_1 = arith.constant 0 : i32
    return %c0_i32, %c0_i32_0 : i32, i32
  }
  func.func @transform_6(%arg0: i32) -> (i32, i32) {
    %c0_i32 = arith.constant 0 : i32
    %c0_i32_0 = arith.constant 0 : i32
    return %arg0, %c0_i32 : i32, i32
  }
}

module attributes {stable_mosaic.version = 11 : i64} {
  func.func @_transition_kernel(%arg0: i32, %arg1: memref<16x128xf32, #tpu.memory_space<vmem>>, %arg2: memref<1x128xf32, #tpu.memory_space<vmem>>, %arg3: memref<1x128xf32, #tpu.memory_space<vmem>>, %arg4: memref<128x128xbf16, #tpu.memory_space<vmem>>, %arg5: memref<16x128xf32, #tpu.memory_space<vmem>>) attributes {dimension_semantics = [#tpu.dimension_semantics<parallel>], iteration_bounds = array<i64: 2>, scalar_prefetch = 0 : i64, scratch_operands = 0 : i64, tpu.core_type = #tpu.core_type<tc>, window_params = [{transform_indices = @transform_0, window_bounds = array<i64: 16, 128>}, {pipeline_mode = #tpu.pipeline_mode<synchronous>, transform_indices = @transform_1, window_bounds = array<i64: 1, 128>}, {pipeline_mode = #tpu.pipeline_mode<synchronous>, transform_indices = @transform_2, window_bounds = array<i64: 1, 128>}, {pipeline_mode = #tpu.pipeline_mode<synchronous>, transform_indices = @transform_3, window_bounds = array<i64: 128, 128>}, {transform_indices = @transform_4, window_bounds = array<i64: 16, 128>}]} {
    %c0 = arith.constant 0 : index
    %c0_0 = arith.constant 0 : index
    %0 = vector.load %arg1[%c0, %c0_0] : memref<16x128xf32, #tpu.memory_space<vmem>>, vector<16x128xf32>
    %c0_1 = arith.constant 0 : index
    %c0_2 = arith.constant 0 : index
    %1 = vector.load %arg2[%c0_1, %c0_2] : memref<1x128xf32, #tpu.memory_space<vmem>>, vector<1x128xf32>
    %2 = vector.broadcast %1 : vector<1x128xf32> to vector<16x128xf32>
    %3 = arith.mulf %0, %2 : vector<16x128xf32>
    %c0_3 = arith.constant 0 : index
    %c0_4 = arith.constant 0 : index
    %4 = vector.load %arg3[%c0_3, %c0_4] : memref<1x128xf32, #tpu.memory_space<vmem>>, vector<1x128xf32>
    %5 = vector.broadcast %4 : vector<1x128xf32> to vector<16x128xf32>
    %6 = arith.addf %3, %5 : vector<16x128xf32>
    %cst = arith.constant 0.000000e+00 : f32
    %7 = vector.broadcast %cst : f32 to vector<16x128xf32>
    %8 = arith.maximumf %6, %7 : vector<16x128xf32>
    %9 = arith.truncf %8 : vector<16x128xf32> to vector<16x128xbf16>
    %c0_5 = arith.constant 0 : index
    %c0_6 = arith.constant 0 : index
    %10 = vector.load %arg4[%c0_5, %c0_6] : memref<128x128xbf16, #tpu.memory_space<vmem>>, vector<128x128xbf16>
    %cst_7 = arith.constant dense<0.000000e+00> : vector<16x128xf32>
    %11 = tpu.matmul %9, %10, %cst_7 {dimension_numbers = #tpu.dot_dimension_numbers<[1], [0], [0], [1], [0, 0, 1, 1], [], []>} : vector<16x128xbf16>, vector<128x128xbf16>, vector<16x128xf32> -> vector<16x128xf32>
    %c0_8 = arith.constant 0 : index
    %c0_9 = arith.constant 0 : index
    %12 = vector.load %arg5[%c0_8, %c0_9] : memref<16x128xf32, #tpu.memory_space<vmem>>, vector<16x128xf32>
    tpu.vector_store %arg5[%c0_8, %c0_9], %11 {strides = array<i32>} : memref<16x128xf32, #tpu.memory_space<vmem>>, vector<16x128xf32>,
    return
  }
  func.func @transform_0(%arg0: i32) -> (i32, i32) {
    %c0_i32 = arith.constant 0 : i32
    %c0_i32_0 = arith.constant 0 : i32
    return %arg0, %c0_i32 : i32, i32
  }
  func.func @transform_1(%arg0: i32) -> (i32, i32) {
    %c0_i32 = arith.constant 0 : i32
    %c0_i32_0 = arith.constant 0 : i32
    %c0_i32_1 = arith.constant 0 : i32
    return %c0_i32, %c0_i32_0 : i32, i32
  }
  func.func @transform_2(%arg0: i32) -> (i32, i32) {
    %c0_i32 = arith.constant 0 : i32
    %c0_i32_0 = arith.constant 0 : i32
    %c0_i32_1 = arith.constant 0 : i32
    return %c0_i32, %c0_i32_0 : i32, i32
  }
  func.func @transform_3(%arg0: i32) -> (i32, i32) {
    %c0_i32 = arith.constant 0 : i32
    %c0_i32_0 = arith.constant 0 : i32
    %c0_i32_1 = arith.constant 0 : i32
    return %c0_i32, %c0_i32_0 : i32, i32
  }
  func.func @transform_4(%arg0: i32) -> (i32, i32) {
    %c0_i32 = arith.constant 0 : i32
    %c0_i32_0 = arith.constant 0 : i32
    return %arg0, %c0_i32 : i32, i32
  }
}

module attributes {stable_mosaic.version = 11 : i64} {
  func.func @_dense33_kernel(%arg0: i32, %arg1: memref<16x128xf32, #tpu.memory_space<vmem>>, %arg2: memref<16x128xf32, #tpu.memory_space<vmem>>, %arg3: memref<1152x128xbf16, #tpu.memory_space<vmem>>, %arg4: memref<16x128xf32, #tpu.memory_space<vmem>>, %arg5: memref<36x128xf32, #tpu.memory_space<vmem>>, %arg6: memref<16x1152xf32, #tpu.memory_space<vmem>>) attributes {dimension_semantics = [#tpu.dimension_semantics<parallel>], iteration_bounds = array<i64: 2>, scalar_prefetch = 0 : i64, scratch_operands = 2 : i64, tpu.core_type = #tpu.core_type<tc>, window_params = [{transform_indices = @transform_0, window_bounds = array<i64: 16, 128>}, {transform_indices = @transform_1, window_bounds = array<i64: 16, 128>}, {pipeline_mode = #tpu.pipeline_mode<synchronous>, transform_indices = @transform_2, window_bounds = array<i64: 1152, 128>}, {transform_indices = @transform_3, window_bounds = array<i64: 16, 128>}]} {
    %cst = arith.constant 0.000000e+00 : f32
    %0 = vector.broadcast %cst : f32 to vector<36x128xf32>
    %c0 = arith.constant 0 : index
    %c0_0 = arith.constant 0 : index
    %1 = vector.load %arg5[%c0, %c0_0] : memref<36x128xf32, #tpu.memory_space<vmem>>, vector<36x128xf32>
    tpu.vector_store %arg5[%c0, %c0_0], %0 {strides = array<i32>} : memref<36x128xf32, #tpu.memory_space<vmem>>, vector<36x128xf32>,
    %c0_1 = arith.constant 0 : index
    %c0_2 = arith.constant 0 : index
    %2 = vector.load %arg1[%c0_1, %c0_2] : memref<16x128xf32, #tpu.memory_space<vmem>>, vector<4x128xf32>
    %c7 = arith.constant 7 : index
    %c0_3 = arith.constant 0 : index
    %3 = vector.load %arg5[%c7, %c0_3] : memref<36x128xf32, #tpu.memory_space<vmem>>, vector<4x128xf32>
    tpu.vector_store %arg5[%c7, %c0_3], %2 {strides = array<i32>} : memref<36x128xf32, #tpu.memory_space<vmem>>, vector<4x128xf32>,
    %c4 = arith.constant 4 : index
    %c0_4 = arith.constant 0 : index
    %4 = vector.load %arg1[%c4, %c0_4] : memref<16x128xf32, #tpu.memory_space<vmem>>, vector<4x128xf32>
    %c13 = arith.constant 13 : index
    %c0_5 = arith.constant 0 : index
    %5 = vector.load %arg5[%c13, %c0_5] : memref<36x128xf32, #tpu.memory_space<vmem>>, vector<4x128xf32>
    tpu.vector_store %arg5[%c13, %c0_5], %4 {strides = array<i32>} : memref<36x128xf32, #tpu.memory_space<vmem>>, vector<4x128xf32>,
    %c8 = arith.constant 8 : index
    %c0_6 = arith.constant 0 : index
    %6 = vector.load %arg1[%c8, %c0_6] : memref<16x128xf32, #tpu.memory_space<vmem>>, vector<4x128xf32>
    %c19 = arith.constant 19 : index
    %c0_7 = arith.constant 0 : index
    %7 = vector.load %arg5[%c19, %c0_7] : memref<36x128xf32, #tpu.memory_space<vmem>>, vector<4x128xf32>
    tpu.vector_store %arg5[%c19, %c0_7], %6 {strides = array<i32>} : memref<36x128xf32, #tpu.memory_space<vmem>>, vector<4x128xf32>,
    %c12 = arith.constant 12 : index
    %c0_8 = arith.constant 0 : index
    %8 = vector.load %arg1[%c12, %c0_8] : memref<16x128xf32, #tpu.memory_space<vmem>>, vector<4x128xf32>
    %c25 = arith.constant 25 : index
    %c0_9 = arith.constant 0 : index
    %9 = vector.load %arg5[%c25, %c0_9] : memref<36x128xf32, #tpu.memory_space<vmem>>, vector<4x128xf32>
    tpu.vector_store %arg5[%c25, %c0_9], %8 {strides = array<i32>} : memref<36x128xf32, #tpu.memory_space<vmem>>, vector<4x128xf32>,
    %c0_10 = arith.constant 0 : index
    %c0_11 = arith.constant 0 : index
    %10 = vector.load %arg5[%c0_10, %c0_11] : memref<36x128xf32, #tpu.memory_space<vmem>>, vector<4x128xf32>
    %c0_12 = arith.constant 0 : index
    %c0_13 = arith.constant 0 : index
    %11 = vector.load %arg6[%c0_12, %c0_13] : memref<16x1152xf32, #tpu.memory_space<vmem>>, vector<4x128xf32>
    tpu.vector_store %arg6[%c0_12, %c0_13], %10 {strides = array<i32>} : memref<16x1152xf32, #tpu.memory_space<vmem>>, vector<4x128xf32>,
    %c6 = arith.constant 6 : index
    %c0_14 = arith.constant 0 : index
    %12 = vector.load %arg5[%c6, %c0_14] : memref<36x128xf32, #tpu.memory_space<vmem>>, vector<4x128xf32>
    %c4_15 = arith.constant 4 : index
    %c0_16 = arith.constant 0 : index
    %13 = vector.load %arg6[%c4_15, %c0_16] : memref<16x1152xf32, #tpu.memory_space<vmem>>, vector<4x128xf32>
    tpu.vector_store %arg6[%c4_15, %c0_16], %12 {strides = array<i32>} : memref<16x1152xf32, #tpu.memory_space<vmem>>, vector<4x128xf32>,
    %c12_17 = arith.constant 12 : index
    %c0_18 = arith.constant 0 : index
    %14 = vector.load %arg5[%c12_17, %c0_18] : memref<36x128xf32, #tpu.memory_space<vmem>>, vector<4x128xf32>
    %c8_19 = arith.constant 8 : index
    %c0_20 = arith.constant 0 : index
    %15 = vector.load %arg6[%c8_19, %c0_20] : memref<16x1152xf32, #tpu.memory_space<vmem>>, vector<4x128xf32>
    tpu.vector_store %arg6[%c8_19, %c0_20], %14 {strides = array<i32>} : memref<16x1152xf32, #tpu.memory_space<vmem>>, vector<4x128xf32>,
    %c18 = arith.constant 18 : index
    %c0_21 = arith.constant 0 : index
    %16 = vector.load %arg5[%c18, %c0_21] : memref<36x128xf32, #tpu.memory_space<vmem>>, vector<4x128xf32>
    %c12_22 = arith.constant 12 : index
    %c0_23 = arith.constant 0 : index
    %17 = vector.load %arg6[%c12_22, %c0_23] : memref<16x1152xf32, #tpu.memory_space<vmem>>, vector<4x128xf32>
    tpu.vector_store %arg6[%c12_22, %c0_23], %16 {strides = array<i32>} : memref<16x1152xf32, #tpu.memory_space<vmem>>, vector<4x128xf32>,
    %c1 = arith.constant 1 : index
    %c0_24 = arith.constant 0 : index
    %18 = vector.load %arg5[%c1, %c0_24] : memref<36x128xf32, #tpu.memory_space<vmem>>, vector<4x128xf32>
    %c0_25 = arith.constant 0 : index
    %c128 = arith.constant 128 : index
    %19 = vector.load %arg6[%c0_25, %c128] : memref<16x1152xf32, #tpu.memory_space<vmem>>, vector<4x128xf32>
    tpu.vector_store %arg6[%c0_25, %c128], %18 {strides = array<i32>} : memref<16x1152xf32, #tpu.memory_space<vmem>>, vector<4x128xf32>,
    %c7_26 = arith.constant 7 : index
    %c0_27 = arith.constant 0 : index
    %20 = vector.load %arg5[%c7_26, %c0_27] : memref<36x128xf32, #tpu.memory_space<vmem>>, vector<4x128xf32>
    %c4_28 = arith.constant 4 : index
    %c128_29 = arith.constant 128 : index
    %21 = vector.load %arg6[%c4_28, %c128_29] : memref<16x1152xf32, #tpu.memory_space<vmem>>, vector<4x128xf32>
    tpu.vector_store %arg6[%c4_28, %c128_29], %20 {strides = array<i32>} : memref<16x1152xf32, #tpu.memory_space<vmem>>, vector<4x128xf32>,
    %c13_30 = arith.constant 13 : index
    %c0_31 = arith.constant 0 : index
    %22 = vector.load %arg5[%c13_30, %c0_31] : memref<36x128xf32, #tpu.memory_space<vmem>>, vector<4x128xf32>
    %c8_32 = arith.constant 8 : index
    %c128_33 = arith.constant 128 : index
    %23 = vector.load %arg6[%c8_32, %c128_33] : memref<16x1152xf32, #tpu.memory_space<vmem>>, vector<4x128xf32>
    tpu.vector_store %arg6[%c8_32, %c128_33], %22 {strides = array<i32>} : memref<16x1152xf32, #tpu.memory_space<vmem>>, vector<4x128xf32>,
    %c19_34 = arith.constant 19 : index
    %c0_35 = arith.constant 0 : index
    %24 = vector.load %arg5[%c19_34, %c0_35] : memref<36x128xf32, #tpu.memory_space<vmem>>, vector<4x128xf32>
    %c12_36 = arith.constant 12 : index
    %c128_37 = arith.constant 128 : index
    %25 = vector.load %arg6[%c12_36, %c128_37] : memref<16x1152xf32, #tpu.memory_space<vmem>>, vector<4x128xf32>
    tpu.vector_store %arg6[%c12_36, %c128_37], %24 {strides = array<i32>} : memref<16x1152xf32, #tpu.memory_space<vmem>>, vector<4x128xf32>,
    %c2 = arith.constant 2 : index
    %c0_38 = arith.constant 0 : index
    %26 = vector.load %arg5[%c2, %c0_38] : memref<36x128xf32, #tpu.memory_space<vmem>>, vector<4x128xf32>
    %c0_39 = arith.constant 0 : index
    %c256 = arith.constant 256 : index
    %27 = vector.load %arg6[%c0_39, %c256] : memref<16x1152xf32, #tpu.memory_space<vmem>>, vector<4x128xf32>
    tpu.vector_store %arg6[%c0_39, %c256], %26 {strides = array<i32>} : memref<16x1152xf32, #tpu.memory_space<vmem>>, vector<4x128xf32>,
    %c8_40 = arith.constant 8 : index
    %c0_41 = arith.constant 0 : index
    %28 = vector.load %arg5[%c8_40, %c0_41] : memref<36x128xf32, #tpu.memory_space<vmem>>, vector<4x128xf32>
    %c4_42 = arith.constant 4 : index
    %c256_43 = arith.constant 256 : index
    %29 = vector.load %arg6[%c4_42, %c256_43] : memref<16x1152xf32, #tpu.memory_space<vmem>>, vector<4x128xf32>
    tpu.vector_store %arg6[%c4_42, %c256_43], %28 {strides = array<i32>} : memref<16x1152xf32, #tpu.memory_space<vmem>>, vector<4x128xf32>,
    %c14 = arith.constant 14 : index
    %c0_44 = arith.constant 0 : index
    %30 = vector.load %arg5[%c14, %c0_44] : memref<36x128xf32, #tpu.memory_space<vmem>>, vector<4x128xf32>
    %c8_45 = arith.constant 8 : index
    %c256_46 = arith.constant 256 : index
    %31 = vector.load %arg6[%c8_45, %c256_46] : memref<16x1152xf32, #tpu.memory_space<vmem>>, vector<4x128xf32>
    tpu.vector_store %arg6[%c8_45, %c256_46], %30 {strides = array<i32>} : memref<16x1152xf32, #tpu.memory_space<vmem>>, vector<4x128xf32>,
    %c20 = arith.constant 20 : index
    %c0_47 = arith.constant 0 : index
    %32 = vector.load %arg5[%c20, %c0_47] : memref<36x128xf32, #tpu.memory_space<vmem>>, vector<4x128xf32>
    %c12_48 = arith.constant 12 : index
    %c256_49 = arith.constant 256 : index
    %33 = vector.load %arg6[%c12_48, %c256_49] : memref<16x1152xf32, #tpu.memory_space<vmem>>, vector<4x128xf32>
    tpu.vector_store %arg6[%c12_48, %c256_49], %32 {strides = array<i32>} : memref<16x1152xf32, #tpu.memory_space<vmem>>, vector<4x128xf32>,
    %c6_50 = arith.constant 6 : index
    %c0_51 = arith.constant 0 : index
    %34 = vector.load %arg5[%c6_50, %c0_51] : memref<36x128xf32, #tpu.memory_space<vmem>>, vector<4x128xf32>
    %c0_52 = arith.constant 0 : index
    %c384 = arith.constant 384 : index
    %35 = vector.load %arg6[%c0_52, %c384] : memref<16x1152xf32, #tpu.memory_space<vmem>>, vector<4x128xf32>
    tpu.vector_store %arg6[%c0_52, %c384], %34 {strides = array<i32>} : memref<16x1152xf32, #tpu.memory_space<vmem>>, vector<4x128xf32>,
    %c12_53 = arith.constant 12 : index
    %c0_54 = arith.constant 0 : index
    %36 = vector.load %arg5[%c12_53, %c0_54] : memref<36x128xf32, #tpu.memory_space<vmem>>, vector<4x128xf32>
    %c4_55 = arith.constant 4 : index
    %c384_56 = arith.constant 384 : index
    %37 = vector.load %arg6[%c4_55, %c384_56] : memref<16x1152xf32, #tpu.memory_space<vmem>>, vector<4x128xf32>
    tpu.vector_store %arg6[%c4_55, %c384_56], %36 {strides = array<i32>} : memref<16x1152xf32, #tpu.memory_space<vmem>>, vector<4x128xf32>,
    %c18_57 = arith.constant 18 : index
    %c0_58 = arith.constant 0 : index
    %38 = vector.load %arg5[%c18_57, %c0_58] : memref<36x128xf32, #tpu.memory_space<vmem>>, vector<4x128xf32>
    %c8_59 = arith.constant 8 : index
    %c384_60 = arith.constant 384 : index
    %39 = vector.load %arg6[%c8_59, %c384_60] : memref<16x1152xf32, #tpu.memory_space<vmem>>, vector<4x128xf32>
    tpu.vector_store %arg6[%c8_59, %c384_60], %38 {strides = array<i32>} : memref<16x1152xf32, #tpu.memory_space<vmem>>, vector<4x128xf32>,
    %c24 = arith.constant 24 : index
    %c0_61 = arith.constant 0 : index
    %40 = vector.load %arg5[%c24, %c0_61] : memref<36x128xf32, #tpu.memory_space<vmem>>, vector<4x128xf32>
    %c12_62 = arith.constant 12 : index
    %c384_63 = arith.constant 384 : index
    %41 = vector.load %arg6[%c12_62, %c384_63] : memref<16x1152xf32, #tpu.memory_space<vmem>>, vector<4x128xf32>
    tpu.vector_store %arg6[%c12_62, %c384_63], %40 {strides = array<i32>} : memref<16x1152xf32, #tpu.memory_space<vmem>>, vector<4x128xf32>,
    %c7_64 = arith.constant 7 : index
    %c0_65 = arith.constant 0 : index
    %42 = vector.load %arg5[%c7_64, %c0_65] : memref<36x128xf32, #tpu.memory_space<vmem>>, vector<4x128xf32>
    %c0_66 = arith.constant 0 : index
    %c512 = arith.constant 512 : index
    %43 = vector.load %arg6[%c0_66, %c512] : memref<16x1152xf32, #tpu.memory_space<vmem>>, vector<4x128xf32>
    tpu.vector_store %arg6[%c0_66, %c512], %42 {strides = array<i32>} : memref<16x1152xf32, #tpu.memory_space<vmem>>, vector<4x128xf32>,
    %c13_67 = arith.constant 13 : index
    %c0_68 = arith.constant 0 : index
    %44 = vector.load %arg5[%c13_67, %c0_68] : memref<36x128xf32, #tpu.memory_space<vmem>>, vector<4x128xf32>
    %c4_69 = arith.constant 4 : index
    %c512_70 = arith.constant 512 : index
    %45 = vector.load %arg6[%c4_69, %c512_70] : memref<16x1152xf32, #tpu.memory_space<vmem>>, vector<4x128xf32>
    tpu.vector_store %arg6[%c4_69, %c512_70], %44 {strides = array<i32>} : memref<16x1152xf32, #tpu.memory_space<vmem>>, vector<4x128xf32>,
    %c19_71 = arith.constant 19 : index
    %c0_72 = arith.constant 0 : index
    %46 = vector.load %arg5[%c19_71, %c0_72] : memref<36x128xf32, #tpu.memory_space<vmem>>, vector<4x128xf32>
    %c8_73 = arith.constant 8 : index
    %c512_74 = arith.constant 512 : index
    %47 = vector.load %arg6[%c8_73, %c512_74] : memref<16x1152xf32, #tpu.memory_space<vmem>>, vector<4x128xf32>
    tpu.vector_store %arg6[%c8_73, %c512_74], %46 {strides = array<i32>} : memref<16x1152xf32, #tpu.memory_space<vmem>>, vector<4x128xf32>,
    %c25_75 = arith.constant 25 : index
    %c0_76 = arith.constant 0 : index
    %48 = vector.load %arg5[%c25_75, %c0_76] : memref<36x128xf32, #tpu.memory_space<vmem>>, vector<4x128xf32>
    %c12_77 = arith.constant 12 : index
    %c512_78 = arith.constant 512 : index
    %49 = vector.load %arg6[%c12_77, %c512_78] : memref<16x1152xf32, #tpu.memory_space<vmem>>, vector<4x128xf32>
    tpu.vector_store %arg6[%c12_77, %c512_78], %48 {strides = array<i32>} : memref<16x1152xf32, #tpu.memory_space<vmem>>, vector<4x128xf32>,
    %c8_79 = arith.constant 8 : index
    %c0_80 = arith.constant 0 : index
    %50 = vector.load %arg5[%c8_79, %c0_80] : memref<36x128xf32, #tpu.memory_space<vmem>>, vector<4x128xf32>
    %c0_81 = arith.constant 0 : index
    %c640 = arith.constant 640 : index
    %51 = vector.load %arg6[%c0_81, %c640] : memref<16x1152xf32, #tpu.memory_space<vmem>>, vector<4x128xf32>
    tpu.vector_store %arg6[%c0_81, %c640], %50 {strides = array<i32>} : memref<16x1152xf32, #tpu.memory_space<vmem>>, vector<4x128xf32>,
    %c14_82 = arith.constant 14 : index
    %c0_83 = arith.constant 0 : index
    %52 = vector.load %arg5[%c14_82, %c0_83] : memref<36x128xf32, #tpu.memory_space<vmem>>, vector<4x128xf32>
    %c4_84 = arith.constant 4 : index
    %c640_85 = arith.constant 640 : index
    %53 = vector.load %arg6[%c4_84, %c640_85] : memref<16x1152xf32, #tpu.memory_space<vmem>>, vector<4x128xf32>
    tpu.vector_store %arg6[%c4_84, %c640_85], %52 {strides = array<i32>} : memref<16x1152xf32, #tpu.memory_space<vmem>>, vector<4x128xf32>,
    %c20_86 = arith.constant 20 : index
    %c0_87 = arith.constant 0 : index
    %54 = vector.load %arg5[%c20_86, %c0_87] : memref<36x128xf32, #tpu.memory_space<vmem>>, vector<4x128xf32>
    %c8_88 = arith.constant 8 : index
    %c640_89 = arith.constant 640 : index
    %55 = vector.load %arg6[%c8_88, %c640_89] : memref<16x1152xf32, #tpu.memory_space<vmem>>, vector<4x128xf32>
    tpu.vector_store %arg6[%c8_88, %c640_89], %54 {strides = array<i32>} : memref<16x1152xf32, #tpu.memory_space<vmem>>, vector<4x128xf32>,
    %c26 = arith.constant 26 : index
    %c0_90 = arith.constant 0 : index
    %56 = vector.load %arg5[%c26, %c0_90] : memref<36x128xf32, #tpu.memory_space<vmem>>, vector<4x128xf32>
    %c12_91 = arith.constant 12 : index
    %c640_92 = arith.constant 640 : index
    %57 = vector.load %arg6[%c12_91, %c640_92] : memref<16x1152xf32, #tpu.memory_space<vmem>>, vector<4x128xf32>
    tpu.vector_store %arg6[%c12_91, %c640_92], %56 {strides = array<i32>} : memref<16x1152xf32, #tpu.memory_space<vmem>>, vector<4x128xf32>,
    %c12_93 = arith.constant 12 : index
    %c0_94 = arith.constant 0 : index
    %58 = vector.load %arg5[%c12_93, %c0_94] : memref<36x128xf32, #tpu.memory_space<vmem>>, vector<4x128xf32>
    %c0_95 = arith.constant 0 : index
    %c768 = arith.constant 768 : index
    %59 = vector.load %arg6[%c0_95, %c768] : memref<16x1152xf32, #tpu.memory_space<vmem>>, vector<4x128xf32>
    tpu.vector_store %arg6[%c0_95, %c768], %58 {strides = array<i32>} : memref<16x1152xf32, #tpu.memory_space<vmem>>, vector<4x128xf32>,
    %c18_96 = arith.constant 18 : index
    %c0_97 = arith.constant 0 : index
    %60 = vector.load %arg5[%c18_96, %c0_97] : memref<36x128xf32, #tpu.memory_space<vmem>>, vector<4x128xf32>
    %c4_98 = arith.constant 4 : index
    %c768_99 = arith.constant 768 : index
    %61 = vector.load %arg6[%c4_98, %c768_99] : memref<16x1152xf32, #tpu.memory_space<vmem>>, vector<4x128xf32>
    tpu.vector_store %arg6[%c4_98, %c768_99], %60 {strides = array<i32>} : memref<16x1152xf32, #tpu.memory_space<vmem>>, vector<4x128xf32>,
    %c24_100 = arith.constant 24 : index
    %c0_101 = arith.constant 0 : index
    %62 = vector.load %arg5[%c24_100, %c0_101] : memref<36x128xf32, #tpu.memory_space<vmem>>, vector<4x128xf32>
    %c8_102 = arith.constant 8 : index
    %c768_103 = arith.constant 768 : index
    %63 = vector.load %arg6[%c8_102, %c768_103] : memref<16x1152xf32, #tpu.memory_space<vmem>>, vector<4x128xf32>
    tpu.vector_store %arg6[%c8_102, %c768_103], %62 {strides = array<i32>} : memref<16x1152xf32, #tpu.memory_space<vmem>>, vector<4x128xf32>,
    %c30 = arith.constant 30 : index
    %c0_104 = arith.constant 0 : index
    %64 = vector.load %arg5[%c30, %c0_104] : memref<36x128xf32, #tpu.memory_space<vmem>>, vector<4x128xf32>
    %c12_105 = arith.constant 12 : index
    %c768_106 = arith.constant 768 : index
    %65 = vector.load %arg6[%c12_105, %c768_106] : memref<16x1152xf32, #tpu.memory_space<vmem>>, vector<4x128xf32>
    tpu.vector_store %arg6[%c12_105, %c768_106], %64 {strides = array<i32>} : memref<16x1152xf32, #tpu.memory_space<vmem>>, vector<4x128xf32>,
    %c13_107 = arith.constant 13 : index
    %c0_108 = arith.constant 0 : index
    %66 = vector.load %arg5[%c13_107, %c0_108] : memref<36x128xf32, #tpu.memory_space<vmem>>, vector<4x128xf32>
    %c0_109 = arith.constant 0 : index
    %c896 = arith.constant 896 : index
    %67 = vector.load %arg6[%c0_109, %c896] : memref<16x1152xf32, #tpu.memory_space<vmem>>, vector<4x128xf32>
    tpu.vector_store %arg6[%c0_109, %c896], %66 {strides = array<i32>} : memref<16x1152xf32, #tpu.memory_space<vmem>>, vector<4x128xf32>,
    %c19_110 = arith.constant 19 : index
    %c0_111 = arith.constant 0 : index
    %68 = vector.load %arg5[%c19_110, %c0_111] : memref<36x128xf32, #tpu.memory_space<vmem>>, vector<4x128xf32>
    %c4_112 = arith.constant 4 : index
    %c896_113 = arith.constant 896 : index
    %69 = vector.load %arg6[%c4_112, %c896_113] : memref<16x1152xf32, #tpu.memory_space<vmem>>, vector<4x128xf32>
    tpu.vector_store %arg6[%c4_112, %c896_113], %68 {strides = array<i32>} : memref<16x1152xf32, #tpu.memory_space<vmem>>, vector<4x128xf32>,
    %c25_114 = arith.constant 25 : index
    %c0_115 = arith.constant 0 : index
    %70 = vector.load %arg5[%c25_114, %c0_115] : memref<36x128xf32, #tpu.memory_space<vmem>>, vector<4x128xf32>
    %c8_116 = arith.constant 8 : index
    %c896_117 = arith.constant 896 : index
    %71 = vector.load %arg6[%c8_116, %c896_117] : memref<16x1152xf32, #tpu.memory_space<vmem>>, vector<4x128xf32>
    tpu.vector_store %arg6[%c8_116, %c896_117], %70 {strides = array<i32>} : memref<16x1152xf32, #tpu.memory_space<vmem>>, vector<4x128xf32>,
    %c31 = arith.constant 31 : index
    %c0_118 = arith.constant 0 : index
    %72 = vector.load %arg5[%c31, %c0_118] : memref<36x128xf32, #tpu.memory_space<vmem>>, vector<4x128xf32>
    %c12_119 = arith.constant 12 : index
    %c896_120 = arith.constant 896 : index
    %73 = vector.load %arg6[%c12_119, %c896_120] : memref<16x1152xf32, #tpu.memory_space<vmem>>, vector<4x128xf32>
    tpu.vector_store %arg6[%c12_119, %c896_120], %72 {strides = array<i32>} : memref<16x1152xf32, #tpu.memory_space<vmem>>, vector<4x128xf32>,
    %c14_121 = arith.constant 14 : index
    %c0_122 = arith.constant 0 : index
    %74 = vector.load %arg5[%c14_121, %c0_122] : memref<36x128xf32, #tpu.memory_space<vmem>>, vector<4x128xf32>
    %c0_123 = arith.constant 0 : index
    %c1024 = arith.constant 1024 : index
    %75 = vector.load %arg6[%c0_123, %c1024] : memref<16x1152xf32, #tpu.memory_space<vmem>>, vector<4x128xf32>
    tpu.vector_store %arg6[%c0_123, %c1024], %74 {strides = array<i32>} : memref<16x1152xf32, #tpu.memory_space<vmem>>, vector<4x128xf32>,
    %c20_124 = arith.constant 20 : index
    %c0_125 = arith.constant 0 : index
    %76 = vector.load %arg5[%c20_124, %c0_125] : memref<36x128xf32, #tpu.memory_space<vmem>>, vector<4x128xf32>
    %c4_126 = arith.constant 4 : index
    %c1024_127 = arith.constant 1024 : index
    %77 = vector.load %arg6[%c4_126, %c1024_127] : memref<16x1152xf32, #tpu.memory_space<vmem>>, vector<4x128xf32>
    tpu.vector_store %arg6[%c4_126, %c1024_127], %76 {strides = array<i32>} : memref<16x1152xf32, #tpu.memory_space<vmem>>, vector<4x128xf32>,
    %c26_128 = arith.constant 26 : index
    %c0_129 = arith.constant 0 : index
    %78 = vector.load %arg5[%c26_128, %c0_129] : memref<36x128xf32, #tpu.memory_space<vmem>>, vector<4x128xf32>
    %c8_130 = arith.constant 8 : index
    %c1024_131 = arith.constant 1024 : index
    %79 = vector.load %arg6[%c8_130, %c1024_131] : memref<16x1152xf32, #tpu.memory_space<vmem>>, vector<4x128xf32>
    tpu.vector_store %arg6[%c8_130, %c1024_131], %78 {strides = array<i32>} : memref<16x1152xf32, #tpu.memory_space<vmem>>, vector<4x128xf32>,
    %c32 = arith.constant 32 : index
    %c0_132 = arith.constant 0 : index
    %80 = vector.load %arg5[%c32, %c0_132] : memref<36x128xf32, #tpu.memory_space<vmem>>, vector<4x128xf32>
    %c12_133 = arith.constant 12 : index
    %c1024_134 = arith.constant 1024 : index
    %81 = vector.load %arg6[%c12_133, %c1024_134] : memref<16x1152xf32, #tpu.memory_space<vmem>>, vector<4x128xf32>
    tpu.vector_store %arg6[%c12_133, %c1024_134], %80 {strides = array<i32>} : memref<16x1152xf32, #tpu.memory_space<vmem>>, vector<4x128xf32>,
    %c0_135 = arith.constant 0 : index
    %c0_136 = arith.constant 0 : index
    %82 = vector.load %arg6[%c0_135, %c0_136] : memref<16x1152xf32, #tpu.memory_space<vmem>>, vector<16x1152xf32>
    %83 = arith.truncf %82 : vector<16x1152xf32> to vector<16x1152xbf16>
    %c0_137 = arith.constant 0 : index
    %c0_138 = arith.constant 0 : index
    %84 = vector.load %arg3[%c0_137, %c0_138] : memref<1152x128xbf16, #tpu.memory_space<vmem>>, vector<1152x128xbf16>
    %cst_139 = arith.constant dense<0.000000e+00> : vector<16x128xf32>
    %85 = tpu.matmul %83, %84, %cst_139 {dimension_numbers = #tpu.dot_dimension_numbers<[1], [0], [0], [1], [0, 0, 1, 1], [], []>} : vector<16x1152xbf16>, vector<1152x128xbf16>, vector<16x128xf32> -> vector<16x128xf32>
    %c0_140 = arith.constant 0 : index
    %c0_141 = arith.constant 0 : index
    %86 = vector.load %arg2[%c0_140, %c0_141] : memref<16x128xf32, #tpu.memory_space<vmem>>, vector<16x128xf32>
    %87 = arith.addf %86, %85 : vector<16x128xf32>
    %c0_142 = arith.constant 0 : index
    %c0_143 = arith.constant 0 : index
    %88 = vector.load %arg4[%c0_142, %c0_143] : memref<16x128xf32, #tpu.memory_space<vmem>>, vector<16x128xf32>
    tpu.vector_store %arg4[%c0_142, %c0_143], %87 {strides = array<i32>} : memref<16x128xf32, #tpu.memory_space<vmem>>, vector<16x128xf32>,
    return
  }
  func.func @transform_0(%arg0: i32) -> (i32, i32) {
    %c0_i32 = arith.constant 0 : i32
    %c0_i32_0 = arith.constant 0 : i32
    return %arg0, %c0_i32 : i32, i32
  }
  func.func @transform_1(%arg0: i32) -> (i32, i32) {
    %c0_i32 = arith.constant 0 : i32
    %c0_i32_0 = arith.constant 0 : i32
    return %arg0, %c0_i32 : i32, i32
  }
  func.func @transform_2(%arg0: i32) -> (i32, i32) {
    %c0_i32 = arith.constant 0 : i32
    %c0_i32_0 = arith.constant 0 : i32
    %c0_i32_1 = arith.constant 0 : i32
    return %c0_i32, %c0_i32_0 : i32, i32
  }
  func.func @transform_3(%arg0: i32) -> (i32, i32) {
    %c0_i32 = arith.constant 0 : i32
    %c0_i32_0 = arith.constant 0 : i32
    return %arg0, %c0_i32 : i32, i32
  }
}

module attributes {stable_mosaic.version = 11 : i64} {
  func.func @_transition_kernel(%arg0: i32, %arg1: memref<8x128xf32, #tpu.memory_space<vmem>>, %arg2: memref<1x128xf32, #tpu.memory_space<vmem>>, %arg3: memref<1x128xf32, #tpu.memory_space<vmem>>, %arg4: memref<128x128xbf16, #tpu.memory_space<vmem>>, %arg5: memref<8x128xf32, #tpu.memory_space<vmem>>) attributes {dimension_semantics = [#tpu.dimension_semantics<parallel>], iteration_bounds = array<i64: 1>, scalar_prefetch = 0 : i64, scratch_operands = 0 : i64, tpu.core_type = #tpu.core_type<tc>, window_params = [{transform_indices = @transform_0, window_bounds = array<i64: 8, 128>}, {pipeline_mode = #tpu.pipeline_mode<synchronous>, transform_indices = @transform_1, window_bounds = array<i64: 1, 128>}, {pipeline_mode = #tpu.pipeline_mode<synchronous>, transform_indices = @transform_2, window_bounds = array<i64: 1, 128>}, {pipeline_mode = #tpu.pipeline_mode<synchronous>, transform_indices = @transform_3, window_bounds = array<i64: 128, 128>}, {transform_indices = @transform_4, window_bounds = array<i64: 8, 128>}]} {
    %c0 = arith.constant 0 : index
    %c0_0 = arith.constant 0 : index
    %0 = vector.load %arg1[%c0, %c0_0] : memref<8x128xf32, #tpu.memory_space<vmem>>, vector<8x128xf32>
    %c0_1 = arith.constant 0 : index
    %c0_2 = arith.constant 0 : index
    %1 = vector.load %arg2[%c0_1, %c0_2] : memref<1x128xf32, #tpu.memory_space<vmem>>, vector<1x128xf32>
    %2 = vector.broadcast %1 : vector<1x128xf32> to vector<8x128xf32>
    %3 = arith.mulf %0, %2 : vector<8x128xf32>
    %c0_3 = arith.constant 0 : index
    %c0_4 = arith.constant 0 : index
    %4 = vector.load %arg3[%c0_3, %c0_4] : memref<1x128xf32, #tpu.memory_space<vmem>>, vector<1x128xf32>
    %5 = vector.broadcast %4 : vector<1x128xf32> to vector<8x128xf32>
    %6 = arith.addf %3, %5 : vector<8x128xf32>
    %cst = arith.constant 0.000000e+00 : f32
    %7 = vector.broadcast %cst : f32 to vector<8x128xf32>
    %8 = arith.maximumf %6, %7 : vector<8x128xf32>
    %9 = arith.truncf %8 : vector<8x128xf32> to vector<8x128xbf16>
    %c0_5 = arith.constant 0 : index
    %c0_6 = arith.constant 0 : index
    %10 = vector.load %arg4[%c0_5, %c0_6] : memref<128x128xbf16, #tpu.memory_space<vmem>>, vector<128x128xbf16>
    %cst_7 = arith.constant dense<0.000000e+00> : vector<8x128xf32>
    %11 = tpu.matmul %9, %10, %cst_7 {dimension_numbers = #tpu.dot_dimension_numbers<[1], [0], [0], [1], [0, 0, 1, 1], [], []>} : vector<8x128xbf16>, vector<128x128xbf16>, vector<8x128xf32> -> vector<8x128xf32>
    %c0_8 = arith.constant 0 : index
    %c0_9 = arith.constant 0 : index
    %12 = vector.load %arg5[%c0_8, %c0_9] : memref<8x128xf32, #tpu.memory_space<vmem>>, vector<8x128xf32>
    tpu.vector_store %arg5[%c0_8, %c0_9], %11 {strides = array<i32>} : memref<8x128xf32, #tpu.memory_space<vmem>>, vector<8x128xf32>,
    return
  }
  func.func @transform_0(%arg0: i32) -> (i32, i32) {
    %c0_i32 = arith.constant 0 : i32
    %c0_i32_0 = arith.constant 0 : i32
    return %arg0, %c0_i32 : i32, i32
  }
  func.func @transform_1(%arg0: i32) -> (i32, i32) {
    %c0_i32 = arith.constant 0 : i32
    %c0_i32_0 = arith.constant 0 : i32
    %c0_i32_1 = arith.constant 0 : i32
    return %c0_i32, %c0_i32_0 : i32, i32
  }
  func.func @transform_2(%arg0: i32) -> (i32, i32) {
    %c0_i32 = arith.constant 0 : i32
    %c0_i32_0 = arith.constant 0 : i32
    %c0_i32_1 = arith.constant 0 : i32
    return %c0_i32, %c0_i32_0 : i32, i32
  }
  func.func @transform_3(%arg0: i32) -> (i32, i32) {
    %c0_i32 = arith.constant 0 : i32
    %c0_i32_0 = arith.constant 0 : i32
    %c0_i32_1 = arith.constant 0 : i32
    return %c0_i32, %c0_i32_0 : i32, i32
  }
  func.func @transform_4(%arg0: i32) -> (i32, i32) {
    %c0_i32 = arith.constant 0 : i32
    %c0_i32_0 = arith.constant 0 : i32
    return %arg0, %c0_i32 : i32, i32
  }
}

module attributes {stable_mosaic.version = 11 : i64} {
  func.func @_bottleneck_kernel(%arg0: i32, %arg1: memref<8x128xf32, #tpu.memory_space<vmem>>, %arg2: memref<1x128xf32, #tpu.memory_space<vmem>>, %arg3: memref<1x128xf32, #tpu.memory_space<vmem>>, %arg4: memref<128x128xbf16, #tpu.memory_space<vmem>>, %arg5: memref<1x128xf32, #tpu.memory_space<vmem>>, %arg6: memref<1x128xf32, #tpu.memory_space<vmem>>, %arg7: memref<8x128xf32, #tpu.memory_space<vmem>>) attributes {dimension_semantics = [#tpu.dimension_semantics<parallel>], iteration_bounds = array<i64: 1>, scalar_prefetch = 0 : i64, scratch_operands = 0 : i64, tpu.core_type = #tpu.core_type<tc>, window_params = [{transform_indices = @transform_0, window_bounds = array<i64: 8, 128>}, {pipeline_mode = #tpu.pipeline_mode<synchronous>, transform_indices = @transform_1, window_bounds = array<i64: 1, 128>}, {pipeline_mode = #tpu.pipeline_mode<synchronous>, transform_indices = @transform_2, window_bounds = array<i64: 1, 128>}, {pipeline_mode = #tpu.pipeline_mode<synchronous>, transform_indices = @transform_3, window_bounds = array<i64: 128, 128>}, {pipeline_mode = #tpu.pipeline_mode<synchronous>, transform_indices = @transform_4, window_bounds = array<i64: 1, 128>}, {pipeline_mode = #tpu.pipeline_mode<synchronous>, transform_indices = @transform_5, window_bounds = array<i64: 1, 128>}, {transform_indices = @transform_6, window_bounds = array<i64: 8, 128>}]} {
    %c0 = arith.constant 0 : index
    %c0_0 = arith.constant 0 : index
    %0 = vector.load %arg1[%c0, %c0_0] : memref<8x128xf32, #tpu.memory_space<vmem>>, vector<8x128xf32>
    %c0_1 = arith.constant 0 : index
    %c0_2 = arith.constant 0 : index
    %1 = vector.load %arg2[%c0_1, %c0_2] : memref<1x128xf32, #tpu.memory_space<vmem>>, vector<1x128xf32>
    %2 = vector.broadcast %1 : vector<1x128xf32> to vector<8x128xf32>
    %3 = arith.mulf %0, %2 : vector<8x128xf32>
    %c0_3 = arith.constant 0 : index
    %c0_4 = arith.constant 0 : index
    %4 = vector.load %arg3[%c0_3, %c0_4] : memref<1x128xf32, #tpu.memory_space<vmem>>, vector<1x128xf32>
    %5 = vector.broadcast %4 : vector<1x128xf32> to vector<8x128xf32>
    %6 = arith.addf %3, %5 : vector<8x128xf32>
    %cst = arith.constant 0.000000e+00 : f32
    %7 = vector.broadcast %cst : f32 to vector<8x128xf32>
    %8 = arith.maximumf %6, %7 : vector<8x128xf32>
    %9 = arith.truncf %8 : vector<8x128xf32> to vector<8x128xbf16>
    %c0_5 = arith.constant 0 : index
    %c0_6 = arith.constant 0 : index
    %10 = vector.load %arg4[%c0_5, %c0_6] : memref<128x128xbf16, #tpu.memory_space<vmem>>, vector<128x128xbf16>
    %cst_7 = arith.constant dense<0.000000e+00> : vector<8x128xf32>
    %11 = tpu.matmul %9, %10, %cst_7 {dimension_numbers = #tpu.dot_dimension_numbers<[1], [0], [0], [1], [0, 0, 1, 1], [], []>} : vector<8x128xbf16>, vector<128x128xbf16>, vector<8x128xf32> -> vector<8x128xf32>
    %c0_8 = arith.constant 0 : index
    %c0_9 = arith.constant 0 : index
    %12 = vector.load %arg5[%c0_8, %c0_9] : memref<1x128xf32, #tpu.memory_space<vmem>>, vector<1x128xf32>
    %13 = vector.broadcast %12 : vector<1x128xf32> to vector<8x128xf32>
    %14 = arith.mulf %11, %13 : vector<8x128xf32>
    %c0_10 = arith.constant 0 : index
    %c0_11 = arith.constant 0 : index
    %15 = vector.load %arg6[%c0_10, %c0_11] : memref<1x128xf32, #tpu.memory_space<vmem>>, vector<1x128xf32>
    %16 = vector.broadcast %15 : vector<1x128xf32> to vector<8x128xf32>
    %17 = arith.addf %14, %16 : vector<8x128xf32>
    %cst_12 = arith.constant 0.000000e+00 : f32
    %18 = vector.broadcast %cst_12 : f32 to vector<8x128xf32>
    %19 = arith.maximumf %17, %18 : vector<8x128xf32>
    %c0_13 = arith.constant 0 : index
    %c0_14 = arith.constant 0 : index
    %20 = vector.load %arg7[%c0_13, %c0_14] : memref<8x128xf32, #tpu.memory_space<vmem>>, vector<8x128xf32>
    tpu.vector_store %arg7[%c0_13, %c0_14], %19 {strides = array<i32>} : memref<8x128xf32, #tpu.memory_space<vmem>>, vector<8x128xf32>,
    return
  }
  func.func @transform_0(%arg0: i32) -> (i32, i32) {
    %c0_i32 = arith.constant 0 : i32
    %c0_i32_0 = arith.constant 0 : i32
    return %arg0, %c0_i32 : i32, i32
  }
  func.func @transform_1(%arg0: i32) -> (i32, i32) {
    %c0_i32 = arith.constant 0 : i32
    %c0_i32_0 = arith.constant 0 : i32
    %c0_i32_1 = arith.constant 0 : i32
    return %c0_i32, %c0_i32_0 : i32, i32
  }
  func.func @transform_2(%arg0: i32) -> (i32, i32) {
    %c0_i32 = arith.constant 0 : i32
    %c0_i32_0 = arith.constant 0 : i32
    %c0_i32_1 = arith.constant 0 : i32
    return %c0_i32, %c0_i32_0 : i32, i32
  }
  func.func @transform_3(%arg0: i32) -> (i32, i32) {
    %c0_i32 = arith.constant 0 : i32
    %c0_i32_0 = arith.constant 0 : i32
    %c0_i32_1 = arith.constant 0 : i32
    return %c0_i32, %c0_i32_0 : i32, i32
  }
  func.func @transform_4(%arg0: i32) -> (i32, i32) {
    %c0_i32 = arith.constant 0 : i32
    %c0_i32_0 = arith.constant 0 : i32
    %c0_i32_1 = arith.constant 0 : i32
    return %c0_i32, %c0_i32_0 : i32, i32
  }
  func.func @transform_5(%arg0: i32) -> (i32, i32) {
    %c0_i32 = arith.constant 0 : i32
    %c0_i32_0 = arith.constant 0 : i32
    %c0_i32_1 = arith.constant 0 : i32
    return %c0_i32, %c0_i32_0 : i32, i32
  }
  func.func @transform_6(%arg0: i32) -> (i32, i32) {
    %c0_i32 = arith.constant 0 : i32
    %c0_i32_0 = arith.constant 0 : i32
    return %arg0, %c0_i32 : i32, i32
  }
}

module attributes {stable_mosaic.version = 11 : i64} {
  func.func @_dense33_kernel(%arg0: i32, %arg1: memref<8x128xf32, #tpu.memory_space<vmem>>, %arg2: memref<8x128xf32, #tpu.memory_space<vmem>>, %arg3: memref<1152x128xbf16, #tpu.memory_space<vmem>>, %arg4: memref<8x128xf32, #tpu.memory_space<vmem>>, %arg5: memref<32x128xf32, #tpu.memory_space<vmem>>, %arg6: memref<8x1152xf32, #tpu.memory_space<vmem>>) attributes {dimension_semantics = [#tpu.dimension_semantics<parallel>], iteration_bounds = array<i64: 1>, scalar_prefetch = 0 : i64, scratch_operands = 2 : i64, tpu.core_type = #tpu.core_type<tc>, window_params = [{transform_indices = @transform_0, window_bounds = array<i64: 8, 128>}, {transform_indices = @transform_1, window_bounds = array<i64: 8, 128>}, {pipeline_mode = #tpu.pipeline_mode<synchronous>, transform_indices = @transform_2, window_bounds = array<i64: 1152, 128>}, {transform_indices = @transform_3, window_bounds = array<i64: 8, 128>}]} {
    %cst = arith.constant 0.000000e+00 : f32
    %0 = vector.broadcast %cst : f32 to vector<32x128xf32>
    %c0 = arith.constant 0 : index
    %c0_0 = arith.constant 0 : index
    %1 = vector.load %arg5[%c0, %c0_0] : memref<32x128xf32, #tpu.memory_space<vmem>>, vector<32x128xf32>
    tpu.vector_store %arg5[%c0, %c0_0], %0 {strides = array<i32>} : memref<32x128xf32, #tpu.memory_space<vmem>>, vector<32x128xf32>,
    %c0_1 = arith.constant 0 : index
    %c0_2 = arith.constant 0 : index
    %2 = vector.load %arg1[%c0_1, %c0_2] : memref<8x128xf32, #tpu.memory_space<vmem>>, vector<2x128xf32>
    %c5 = arith.constant 5 : index
    %c0_3 = arith.constant 0 : index
    %3 = vector.load %arg5[%c5, %c0_3] : memref<32x128xf32, #tpu.memory_space<vmem>>, vector<2x128xf32>
    tpu.vector_store %arg5[%c5, %c0_3], %2 {strides = array<i32>} : memref<32x128xf32, #tpu.memory_space<vmem>>, vector<2x128xf32>,
    %c2 = arith.constant 2 : index
    %c0_4 = arith.constant 0 : index
    %4 = vector.load %arg1[%c2, %c0_4] : memref<8x128xf32, #tpu.memory_space<vmem>>, vector<2x128xf32>
    %c9 = arith.constant 9 : index
    %c0_5 = arith.constant 0 : index
    %5 = vector.load %arg5[%c9, %c0_5] : memref<32x128xf32, #tpu.memory_space<vmem>>, vector<2x128xf32>
    tpu.vector_store %arg5[%c9, %c0_5], %4 {strides = array<i32>} : memref<32x128xf32, #tpu.memory_space<vmem>>, vector<2x128xf32>,
    %c4 = arith.constant 4 : index
    %c0_6 = arith.constant 0 : index
    %6 = vector.load %arg1[%c4, %c0_6] : memref<8x128xf32, #tpu.memory_space<vmem>>, vector<2x128xf32>
    %c21 = arith.constant 21 : index
    %c0_7 = arith.constant 0 : index
    %7 = vector.load %arg5[%c21, %c0_7] : memref<32x128xf32, #tpu.memory_space<vmem>>, vector<2x128xf32>
    tpu.vector_store %arg5[%c21, %c0_7], %6 {strides = array<i32>} : memref<32x128xf32, #tpu.memory_space<vmem>>, vector<2x128xf32>,
    %c6 = arith.constant 6 : index
    %c0_8 = arith.constant 0 : index
    %8 = vector.load %arg1[%c6, %c0_8] : memref<8x128xf32, #tpu.memory_space<vmem>>, vector<2x128xf32>
    %c25 = arith.constant 25 : index
    %c0_9 = arith.constant 0 : index
    %9 = vector.load %arg5[%c25, %c0_9] : memref<32x128xf32, #tpu.memory_space<vmem>>, vector<2x128xf32>
    tpu.vector_store %arg5[%c25, %c0_9], %8 {strides = array<i32>} : memref<32x128xf32, #tpu.memory_space<vmem>>, vector<2x128xf32>,
    %c0_10 = arith.constant 0 : index
    %c0_11 = arith.constant 0 : index
    %10 = vector.load %arg5[%c0_10, %c0_11] : memref<32x128xf32, #tpu.memory_space<vmem>>, vector<2x128xf32>
    %c0_12 = arith.constant 0 : index
    %c0_13 = arith.constant 0 : index
    %11 = vector.load %arg6[%c0_12, %c0_13] : memref<8x1152xf32, #tpu.memory_space<vmem>>, vector<2x128xf32>
    tpu.vector_store %arg6[%c0_12, %c0_13], %10 {strides = array<i32>} : memref<8x1152xf32, #tpu.memory_space<vmem>>, vector<2x128xf32>,
    %c4_14 = arith.constant 4 : index
    %c0_15 = arith.constant 0 : index
    %12 = vector.load %arg5[%c4_14, %c0_15] : memref<32x128xf32, #tpu.memory_space<vmem>>, vector<2x128xf32>
    %c2_16 = arith.constant 2 : index
    %c0_17 = arith.constant 0 : index
    %13 = vector.load %arg6[%c2_16, %c0_17] : memref<8x1152xf32, #tpu.memory_space<vmem>>, vector<2x128xf32>
    tpu.vector_store %arg6[%c2_16, %c0_17], %12 {strides = array<i32>} : memref<8x1152xf32, #tpu.memory_space<vmem>>, vector<2x128xf32>,
    %c16 = arith.constant 16 : index
    %c0_18 = arith.constant 0 : index
    %14 = vector.load %arg5[%c16, %c0_18] : memref<32x128xf32, #tpu.memory_space<vmem>>, vector<2x128xf32>
    %c4_19 = arith.constant 4 : index
    %c0_20 = arith.constant 0 : index
    %15 = vector.load %arg6[%c4_19, %c0_20] : memref<8x1152xf32, #tpu.memory_space<vmem>>, vector<2x128xf32>
    tpu.vector_store %arg6[%c4_19, %c0_20], %14 {strides = array<i32>} : memref<8x1152xf32, #tpu.memory_space<vmem>>, vector<2x128xf32>,
    %c20 = arith.constant 20 : index
    %c0_21 = arith.constant 0 : index
    %16 = vector.load %arg5[%c20, %c0_21] : memref<32x128xf32, #tpu.memory_space<vmem>>, vector<2x128xf32>
    %c6_22 = arith.constant 6 : index
    %c0_23 = arith.constant 0 : index
    %17 = vector.load %arg6[%c6_22, %c0_23] : memref<8x1152xf32, #tpu.memory_space<vmem>>, vector<2x128xf32>
    tpu.vector_store %arg6[%c6_22, %c0_23], %16 {strides = array<i32>} : memref<8x1152xf32, #tpu.memory_space<vmem>>, vector<2x128xf32>,
    %c1 = arith.constant 1 : index
    %c0_24 = arith.constant 0 : index
    %18 = vector.load %arg5[%c1, %c0_24] : memref<32x128xf32, #tpu.memory_space<vmem>>, vector<2x128xf32>
    %c0_25 = arith.constant 0 : index
    %c128 = arith.constant 128 : index
    %19 = vector.load %arg6[%c0_25, %c128] : memref<8x1152xf32, #tpu.memory_space<vmem>>, vector<2x128xf32>
    tpu.vector_store %arg6[%c0_25, %c128], %18 {strides = array<i32>} : memref<8x1152xf32, #tpu.memory_space<vmem>>, vector<2x128xf32>,
    %c5_26 = arith.constant 5 : index
    %c0_27 = arith.constant 0 : index
    %20 = vector.load %arg5[%c5_26, %c0_27] : memref<32x128xf32, #tpu.memory_space<vmem>>, vector<2x128xf32>
    %c2_28 = arith.constant 2 : index
    %c128_29 = arith.constant 128 : index
    %21 = vector.load %arg6[%c2_28, %c128_29] : memref<8x1152xf32, #tpu.memory_space<vmem>>, vector<2x128xf32>
    tpu.vector_store %arg6[%c2_28, %c128_29], %20 {strides = array<i32>} : memref<8x1152xf32, #tpu.memory_space<vmem>>, vector<2x128xf32>,
    %c17 = arith.constant 17 : index
    %c0_30 = arith.constant 0 : index
    %22 = vector.load %arg5[%c17, %c0_30] : memref<32x128xf32, #tpu.memory_space<vmem>>, vector<2x128xf32>
    %c4_31 = arith.constant 4 : index
    %c128_32 = arith.constant 128 : index
    %23 = vector.load %arg6[%c4_31, %c128_32] : memref<8x1152xf32, #tpu.memory_space<vmem>>, vector<2x128xf32>
    tpu.vector_store %arg6[%c4_31, %c128_32], %22 {strides = array<i32>} : memref<8x1152xf32, #tpu.memory_space<vmem>>, vector<2x128xf32>,
    %c21_33 = arith.constant 21 : index
    %c0_34 = arith.constant 0 : index
    %24 = vector.load %arg5[%c21_33, %c0_34] : memref<32x128xf32, #tpu.memory_space<vmem>>, vector<2x128xf32>
    %c6_35 = arith.constant 6 : index
    %c128_36 = arith.constant 128 : index
    %25 = vector.load %arg6[%c6_35, %c128_36] : memref<8x1152xf32, #tpu.memory_space<vmem>>, vector<2x128xf32>
    tpu.vector_store %arg6[%c6_35, %c128_36], %24 {strides = array<i32>} : memref<8x1152xf32, #tpu.memory_space<vmem>>, vector<2x128xf32>,
    %c2_37 = arith.constant 2 : index
    %c0_38 = arith.constant 0 : index
    %26 = vector.load %arg5[%c2_37, %c0_38] : memref<32x128xf32, #tpu.memory_space<vmem>>, vector<2x128xf32>
    %c0_39 = arith.constant 0 : index
    %c256 = arith.constant 256 : index
    %27 = vector.load %arg6[%c0_39, %c256] : memref<8x1152xf32, #tpu.memory_space<vmem>>, vector<2x128xf32>
    tpu.vector_store %arg6[%c0_39, %c256], %26 {strides = array<i32>} : memref<8x1152xf32, #tpu.memory_space<vmem>>, vector<2x128xf32>,
    %c6_40 = arith.constant 6 : index
    %c0_41 = arith.constant 0 : index
    %28 = vector.load %arg5[%c6_40, %c0_41] : memref<32x128xf32, #tpu.memory_space<vmem>>, vector<2x128xf32>
    %c2_42 = arith.constant 2 : index
    %c256_43 = arith.constant 256 : index
    %29 = vector.load %arg6[%c2_42, %c256_43] : memref<8x1152xf32, #tpu.memory_space<vmem>>, vector<2x128xf32>
    tpu.vector_store %arg6[%c2_42, %c256_43], %28 {strides = array<i32>} : memref<8x1152xf32, #tpu.memory_space<vmem>>, vector<2x128xf32>,
    %c18 = arith.constant 18 : index
    %c0_44 = arith.constant 0 : index
    %30 = vector.load %arg5[%c18, %c0_44] : memref<32x128xf32, #tpu.memory_space<vmem>>, vector<2x128xf32>
    %c4_45 = arith.constant 4 : index
    %c256_46 = arith.constant 256 : index
    %31 = vector.load %arg6[%c4_45, %c256_46] : memref<8x1152xf32, #tpu.memory_space<vmem>>, vector<2x128xf32>
    tpu.vector_store %arg6[%c4_45, %c256_46], %30 {strides = array<i32>} : memref<8x1152xf32, #tpu.memory_space<vmem>>, vector<2x128xf32>,
    %c22 = arith.constant 22 : index
    %c0_47 = arith.constant 0 : index
    %32 = vector.load %arg5[%c22, %c0_47] : memref<32x128xf32, #tpu.memory_space<vmem>>, vector<2x128xf32>
    %c6_48 = arith.constant 6 : index
    %c256_49 = arith.constant 256 : index
    %33 = vector.load %arg6[%c6_48, %c256_49] : memref<8x1152xf32, #tpu.memory_space<vmem>>, vector<2x128xf32>
    tpu.vector_store %arg6[%c6_48, %c256_49], %32 {strides = array<i32>} : memref<8x1152xf32, #tpu.memory_space<vmem>>, vector<2x128xf32>,
    %c4_50 = arith.constant 4 : index
    %c0_51 = arith.constant 0 : index
    %34 = vector.load %arg5[%c4_50, %c0_51] : memref<32x128xf32, #tpu.memory_space<vmem>>, vector<2x128xf32>
    %c0_52 = arith.constant 0 : index
    %c384 = arith.constant 384 : index
    %35 = vector.load %arg6[%c0_52, %c384] : memref<8x1152xf32, #tpu.memory_space<vmem>>, vector<2x128xf32>
    tpu.vector_store %arg6[%c0_52, %c384], %34 {strides = array<i32>} : memref<8x1152xf32, #tpu.memory_space<vmem>>, vector<2x128xf32>,
    %c8 = arith.constant 8 : index
    %c0_53 = arith.constant 0 : index
    %36 = vector.load %arg5[%c8, %c0_53] : memref<32x128xf32, #tpu.memory_space<vmem>>, vector<2x128xf32>
    %c2_54 = arith.constant 2 : index
    %c384_55 = arith.constant 384 : index
    %37 = vector.load %arg6[%c2_54, %c384_55] : memref<8x1152xf32, #tpu.memory_space<vmem>>, vector<2x128xf32>
    tpu.vector_store %arg6[%c2_54, %c384_55], %36 {strides = array<i32>} : memref<8x1152xf32, #tpu.memory_space<vmem>>, vector<2x128xf32>,
    %c20_56 = arith.constant 20 : index
    %c0_57 = arith.constant 0 : index
    %38 = vector.load %arg5[%c20_56, %c0_57] : memref<32x128xf32, #tpu.memory_space<vmem>>, vector<2x128xf32>
    %c4_58 = arith.constant 4 : index
    %c384_59 = arith.constant 384 : index
    %39 = vector.load %arg6[%c4_58, %c384_59] : memref<8x1152xf32, #tpu.memory_space<vmem>>, vector<2x128xf32>
    tpu.vector_store %arg6[%c4_58, %c384_59], %38 {strides = array<i32>} : memref<8x1152xf32, #tpu.memory_space<vmem>>, vector<2x128xf32>,
    %c24 = arith.constant 24 : index
    %c0_60 = arith.constant 0 : index
    %40 = vector.load %arg5[%c24, %c0_60] : memref<32x128xf32, #tpu.memory_space<vmem>>, vector<2x128xf32>
    %c6_61 = arith.constant 6 : index
    %c384_62 = arith.constant 384 : index
    %41 = vector.load %arg6[%c6_61, %c384_62] : memref<8x1152xf32, #tpu.memory_space<vmem>>, vector<2x128xf32>
    tpu.vector_store %arg6[%c6_61, %c384_62], %40 {strides = array<i32>} : memref<8x1152xf32, #tpu.memory_space<vmem>>, vector<2x128xf32>,
    %c5_63 = arith.constant 5 : index
    %c0_64 = arith.constant 0 : index
    %42 = vector.load %arg5[%c5_63, %c0_64] : memref<32x128xf32, #tpu.memory_space<vmem>>, vector<2x128xf32>
    %c0_65 = arith.constant 0 : index
    %c512 = arith.constant 512 : index
    %43 = vector.load %arg6[%c0_65, %c512] : memref<8x1152xf32, #tpu.memory_space<vmem>>, vector<2x128xf32>
    tpu.vector_store %arg6[%c0_65, %c512], %42 {strides = array<i32>} : memref<8x1152xf32, #tpu.memory_space<vmem>>, vector<2x128xf32>,
    %c9_66 = arith.constant 9 : index
    %c0_67 = arith.constant 0 : index
    %44 = vector.load %arg5[%c9_66, %c0_67] : memref<32x128xf32, #tpu.memory_space<vmem>>, vector<2x128xf32>
    %c2_68 = arith.constant 2 : index
    %c512_69 = arith.constant 512 : index
    %45 = vector.load %arg6[%c2_68, %c512_69] : memref<8x1152xf32, #tpu.memory_space<vmem>>, vector<2x128xf32>
    tpu.vector_store %arg6[%c2_68, %c512_69], %44 {strides = array<i32>} : memref<8x1152xf32, #tpu.memory_space<vmem>>, vector<2x128xf32>,
    %c21_70 = arith.constant 21 : index
    %c0_71 = arith.constant 0 : index
    %46 = vector.load %arg5[%c21_70, %c0_71] : memref<32x128xf32, #tpu.memory_space<vmem>>, vector<2x128xf32>
    %c4_72 = arith.constant 4 : index
    %c512_73 = arith.constant 512 : index
    %47 = vector.load %arg6[%c4_72, %c512_73] : memref<8x1152xf32, #tpu.memory_space<vmem>>, vector<2x128xf32>
    tpu.vector_store %arg6[%c4_72, %c512_73], %46 {strides = array<i32>} : memref<8x1152xf32, #tpu.memory_space<vmem>>, vector<2x128xf32>,
    %c25_74 = arith.constant 25 : index
    %c0_75 = arith.constant 0 : index
    %48 = vector.load %arg5[%c25_74, %c0_75] : memref<32x128xf32, #tpu.memory_space<vmem>>, vector<2x128xf32>
    %c6_76 = arith.constant 6 : index
    %c512_77 = arith.constant 512 : index
    %49 = vector.load %arg6[%c6_76, %c512_77] : memref<8x1152xf32, #tpu.memory_space<vmem>>, vector<2x128xf32>
    tpu.vector_store %arg6[%c6_76, %c512_77], %48 {strides = array<i32>} : memref<8x1152xf32, #tpu.memory_space<vmem>>, vector<2x128xf32>,
    %c6_78 = arith.constant 6 : index
    %c0_79 = arith.constant 0 : index
    %50 = vector.load %arg5[%c6_78, %c0_79] : memref<32x128xf32, #tpu.memory_space<vmem>>, vector<2x128xf32>
    %c0_80 = arith.constant 0 : index
    %c640 = arith.constant 640 : index
    %51 = vector.load %arg6[%c0_80, %c640] : memref<8x1152xf32, #tpu.memory_space<vmem>>, vector<2x128xf32>
    tpu.vector_store %arg6[%c0_80, %c640], %50 {strides = array<i32>} : memref<8x1152xf32, #tpu.memory_space<vmem>>, vector<2x128xf32>,
    %c10 = arith.constant 10 : index
    %c0_81 = arith.constant 0 : index
    %52 = vector.load %arg5[%c10, %c0_81] : memref<32x128xf32, #tpu.memory_space<vmem>>, vector<2x128xf32>
    %c2_82 = arith.constant 2 : index
    %c640_83 = arith.constant 640 : index
    %53 = vector.load %arg6[%c2_82, %c640_83] : memref<8x1152xf32, #tpu.memory_space<vmem>>, vector<2x128xf32>
    tpu.vector_store %arg6[%c2_82, %c640_83], %52 {strides = array<i32>} : memref<8x1152xf32, #tpu.memory_space<vmem>>, vector<2x128xf32>,
    %c22_84 = arith.constant 22 : index
    %c0_85 = arith.constant 0 : index
    %54 = vector.load %arg5[%c22_84, %c0_85] : memref<32x128xf32, #tpu.memory_space<vmem>>, vector<2x128xf32>
    %c4_86 = arith.constant 4 : index
    %c640_87 = arith.constant 640 : index
    %55 = vector.load %arg6[%c4_86, %c640_87] : memref<8x1152xf32, #tpu.memory_space<vmem>>, vector<2x128xf32>
    tpu.vector_store %arg6[%c4_86, %c640_87], %54 {strides = array<i32>} : memref<8x1152xf32, #tpu.memory_space<vmem>>, vector<2x128xf32>,
    %c26 = arith.constant 26 : index
    %c0_88 = arith.constant 0 : index
    %56 = vector.load %arg5[%c26, %c0_88] : memref<32x128xf32, #tpu.memory_space<vmem>>, vector<2x128xf32>
    %c6_89 = arith.constant 6 : index
    %c640_90 = arith.constant 640 : index
    %57 = vector.load %arg6[%c6_89, %c640_90] : memref<8x1152xf32, #tpu.memory_space<vmem>>, vector<2x128xf32>
    tpu.vector_store %arg6[%c6_89, %c640_90], %56 {strides = array<i32>} : memref<8x1152xf32, #tpu.memory_space<vmem>>, vector<2x128xf32>,
    %c8_91 = arith.constant 8 : index
    %c0_92 = arith.constant 0 : index
    %58 = vector.load %arg5[%c8_91, %c0_92] : memref<32x128xf32, #tpu.memory_space<vmem>>, vector<2x128xf32>
    %c0_93 = arith.constant 0 : index
    %c768 = arith.constant 768 : index
    %59 = vector.load %arg6[%c0_93, %c768] : memref<8x1152xf32, #tpu.memory_space<vmem>>, vector<2x128xf32>
    tpu.vector_store %arg6[%c0_93, %c768], %58 {strides = array<i32>} : memref<8x1152xf32, #tpu.memory_space<vmem>>, vector<2x128xf32>,
    %c12 = arith.constant 12 : index
    %c0_94 = arith.constant 0 : index
    %60 = vector.load %arg5[%c12, %c0_94] : memref<32x128xf32, #tpu.memory_space<vmem>>, vector<2x128xf32>
    %c2_95 = arith.constant 2 : index
    %c768_96 = arith.constant 768 : index
    %61 = vector.load %arg6[%c2_95, %c768_96] : memref<8x1152xf32, #tpu.memory_space<vmem>>, vector<2x128xf32>
    tpu.vector_store %arg6[%c2_95, %c768_96], %60 {strides = array<i32>} : memref<8x1152xf32, #tpu.memory_space<vmem>>, vector<2x128xf32>,
    %c24_97 = arith.constant 24 : index
    %c0_98 = arith.constant 0 : index
    %62 = vector.load %arg5[%c24_97, %c0_98] : memref<32x128xf32, #tpu.memory_space<vmem>>, vector<2x128xf32>
    %c4_99 = arith.constant 4 : index
    %c768_100 = arith.constant 768 : index
    %63 = vector.load %arg6[%c4_99, %c768_100] : memref<8x1152xf32, #tpu.memory_space<vmem>>, vector<2x128xf32>
    tpu.vector_store %arg6[%c4_99, %c768_100], %62 {strides = array<i32>} : memref<8x1152xf32, #tpu.memory_space<vmem>>, vector<2x128xf32>,
    %c28 = arith.constant 28 : index
    %c0_101 = arith.constant 0 : index
    %64 = vector.load %arg5[%c28, %c0_101] : memref<32x128xf32, #tpu.memory_space<vmem>>, vector<2x128xf32>
    %c6_102 = arith.constant 6 : index
    %c768_103 = arith.constant 768 : index
    %65 = vector.load %arg6[%c6_102, %c768_103] : memref<8x1152xf32, #tpu.memory_space<vmem>>, vector<2x128xf32>
    tpu.vector_store %arg6[%c6_102, %c768_103], %64 {strides = array<i32>} : memref<8x1152xf32, #tpu.memory_space<vmem>>, vector<2x128xf32>,
    %c9_104 = arith.constant 9 : index
    %c0_105 = arith.constant 0 : index
    %66 = vector.load %arg5[%c9_104, %c0_105] : memref<32x128xf32, #tpu.memory_space<vmem>>, vector<2x128xf32>
    %c0_106 = arith.constant 0 : index
    %c896 = arith.constant 896 : index
    %67 = vector.load %arg6[%c0_106, %c896] : memref<8x1152xf32, #tpu.memory_space<vmem>>, vector<2x128xf32>
    tpu.vector_store %arg6[%c0_106, %c896], %66 {strides = array<i32>} : memref<8x1152xf32, #tpu.memory_space<vmem>>, vector<2x128xf32>,
    %c13 = arith.constant 13 : index
    %c0_107 = arith.constant 0 : index
    %68 = vector.load %arg5[%c13, %c0_107] : memref<32x128xf32, #tpu.memory_space<vmem>>, vector<2x128xf32>
    %c2_108 = arith.constant 2 : index
    %c896_109 = arith.constant 896 : index
    %69 = vector.load %arg6[%c2_108, %c896_109] : memref<8x1152xf32, #tpu.memory_space<vmem>>, vector<2x128xf32>
    tpu.vector_store %arg6[%c2_108, %c896_109], %68 {strides = array<i32>} : memref<8x1152xf32, #tpu.memory_space<vmem>>, vector<2x128xf32>,
    %c25_110 = arith.constant 25 : index
    %c0_111 = arith.constant 0 : index
    %70 = vector.load %arg5[%c25_110, %c0_111] : memref<32x128xf32, #tpu.memory_space<vmem>>, vector<2x128xf32>
    %c4_112 = arith.constant 4 : index
    %c896_113 = arith.constant 896 : index
    %71 = vector.load %arg6[%c4_112, %c896_113] : memref<8x1152xf32, #tpu.memory_space<vmem>>, vector<2x128xf32>
    tpu.vector_store %arg6[%c4_112, %c896_113], %70 {strides = array<i32>} : memref<8x1152xf32, #tpu.memory_space<vmem>>, vector<2x128xf32>,
    %c29 = arith.constant 29 : index
    %c0_114 = arith.constant 0 : index
    %72 = vector.load %arg5[%c29, %c0_114] : memref<32x128xf32, #tpu.memory_space<vmem>>, vector<2x128xf32>
    %c6_115 = arith.constant 6 : index
    %c896_116 = arith.constant 896 : index
    %73 = vector.load %arg6[%c6_115, %c896_116] : memref<8x1152xf32, #tpu.memory_space<vmem>>, vector<2x128xf32>
    tpu.vector_store %arg6[%c6_115, %c896_116], %72 {strides = array<i32>} : memref<8x1152xf32, #tpu.memory_space<vmem>>, vector<2x128xf32>,
    %c10_117 = arith.constant 10 : index
    %c0_118 = arith.constant 0 : index
    %74 = vector.load %arg5[%c10_117, %c0_118] : memref<32x128xf32, #tpu.memory_space<vmem>>, vector<2x128xf32>
    %c0_119 = arith.constant 0 : index
    %c1024 = arith.constant 1024 : index
    %75 = vector.load %arg6[%c0_119, %c1024] : memref<8x1152xf32, #tpu.memory_space<vmem>>, vector<2x128xf32>
    tpu.vector_store %arg6[%c0_119, %c1024], %74 {strides = array<i32>} : memref<8x1152xf32, #tpu.memory_space<vmem>>, vector<2x128xf32>,
    %c14 = arith.constant 14 : index
    %c0_120 = arith.constant 0 : index
    %76 = vector.load %arg5[%c14, %c0_120] : memref<32x128xf32, #tpu.memory_space<vmem>>, vector<2x128xf32>
    %c2_121 = arith.constant 2 : index
    %c1024_122 = arith.constant 1024 : index
    %77 = vector.load %arg6[%c2_121, %c1024_122] : memref<8x1152xf32, #tpu.memory_space<vmem>>, vector<2x128xf32>
    tpu.vector_store %arg6[%c2_121, %c1024_122], %76 {strides = array<i32>} : memref<8x1152xf32, #tpu.memory_space<vmem>>, vector<2x128xf32>,
    %c26_123 = arith.constant 26 : index
    %c0_124 = arith.constant 0 : index
    %78 = vector.load %arg5[%c26_123, %c0_124] : memref<32x128xf32, #tpu.memory_space<vmem>>, vector<2x128xf32>
    %c4_125 = arith.constant 4 : index
    %c1024_126 = arith.constant 1024 : index
    %79 = vector.load %arg6[%c4_125, %c1024_126] : memref<8x1152xf32, #tpu.memory_space<vmem>>, vector<2x128xf32>
    tpu.vector_store %arg6[%c4_125, %c1024_126], %78 {strides = array<i32>} : memref<8x1152xf32, #tpu.memory_space<vmem>>, vector<2x128xf32>,
    %c30 = arith.constant 30 : index
    %c0_127 = arith.constant 0 : index
    %80 = vector.load %arg5[%c30, %c0_127] : memref<32x128xf32, #tpu.memory_space<vmem>>, vector<2x128xf32>
    %c6_128 = arith.constant 6 : index
    %c1024_129 = arith.constant 1024 : index
    %81 = vector.load %arg6[%c6_128, %c1024_129] : memref<8x1152xf32, #tpu.memory_space<vmem>>, vector<2x128xf32>
    tpu.vector_store %arg6[%c6_128, %c1024_129], %80 {strides = array<i32>} : memref<8x1152xf32, #tpu.memory_space<vmem>>, vector<2x128xf32>,
    %c0_130 = arith.constant 0 : index
    %c0_131 = arith.constant 0 : index
    %82 = vector.load %arg6[%c0_130, %c0_131] : memref<8x1152xf32, #tpu.memory_space<vmem>>, vector<8x1152xf32>
    %83 = arith.truncf %82 : vector<8x1152xf32> to vector<8x1152xbf16>
    %c0_132 = arith.constant 0 : index
    %c0_133 = arith.constant 0 : index
    %84 = vector.load %arg3[%c0_132, %c0_133] : memref<1152x128xbf16, #tpu.memory_space<vmem>>, vector<1152x128xbf16>
    %cst_134 = arith.constant dense<0.000000e+00> : vector<8x128xf32>
    %85 = tpu.matmul %83, %84, %cst_134 {dimension_numbers = #tpu.dot_dimension_numbers<[1], [0], [0], [1], [0, 0, 1, 1], [], []>} : vector<8x1152xbf16>, vector<1152x128xbf16>, vector<8x128xf32> -> vector<8x128xf32>
    %c0_135 = arith.constant 0 : index
    %c0_136 = arith.constant 0 : index
    %86 = vector.load %arg2[%c0_135, %c0_136] : memref<8x128xf32, #tpu.memory_space<vmem>>, vector<8x128xf32>
    %87 = arith.addf %86, %85 : vector<8x128xf32>
    %c0_137 = arith.constant 0 : index
    %c0_138 = arith.constant 0 : index
    %88 = vector.load %arg4[%c0_137, %c0_138] : memref<8x128xf32, #tpu.memory_space<vmem>>, vector<8x128xf32>
    tpu.vector_store %arg4[%c0_137, %c0_138], %87 {strides = array<i32>} : memref<8x128xf32, #tpu.memory_space<vmem>>, vector<8x128xf32>,
    return
  }
  func.func @transform_0(%arg0: i32) -> (i32, i32) {
    %c0_i32 = arith.constant 0 : i32
    %c0_i32_0 = arith.constant 0 : i32
    return %arg0, %c0_i32 : i32, i32
  }
  func.func @transform_1(%arg0: i32) -> (i32, i32) {
    %c0_i32 = arith.constant 0 : i32
    %c0_i32_0 = arith.constant 0 : i32
    return %arg0, %c0_i32 : i32, i32
  }
  func.func @transform_2(%arg0: i32) -> (i32, i32) {
    %c0_i32 = arith.constant 0 : i32
    %c0_i32_0 = arith.constant 0 : i32
    %c0_i32_1 = arith.constant 0 : i32
    return %c0_i32, %c0_i32_0 : i32, i32
  }
  func.func @transform_3(%arg0: i32) -> (i32, i32) {
    %c0_i32 = arith.constant 0 : i32
    %c0_i32_0 = arith.constant 0 : i32
    return %arg0, %c0_i32 : i32, i32
  }
}

module attributes {stable_mosaic.version = 11 : i64} {
  func.func @_bottleneck_kernel(%arg0: i32, %arg1: memref<2x128xf32, #tpu.memory_space<vmem>>, %arg2: memref<1x128xf32, #tpu.memory_space<vmem>>, %arg3: memref<1x128xf32, #tpu.memory_space<vmem>>, %arg4: memref<128x128xbf16, #tpu.memory_space<vmem>>, %arg5: memref<1x128xf32, #tpu.memory_space<vmem>>, %arg6: memref<1x128xf32, #tpu.memory_space<vmem>>, %arg7: memref<2x128xf32, #tpu.memory_space<vmem>>) attributes {dimension_semantics = [#tpu.dimension_semantics<parallel>], iteration_bounds = array<i64: 1>, scalar_prefetch = 0 : i64, scratch_operands = 0 : i64, tpu.core_type = #tpu.core_type<tc>, window_params = [{transform_indices = @transform_0, window_bounds = array<i64: 2, 128>}, {pipeline_mode = #tpu.pipeline_mode<synchronous>, transform_indices = @transform_1, window_bounds = array<i64: 1, 128>}, {pipeline_mode = #tpu.pipeline_mode<synchronous>, transform_indices = @transform_2, window_bounds = array<i64: 1, 128>}, {pipeline_mode = #tpu.pipeline_mode<synchronous>, transform_indices = @transform_3, window_bounds = array<i64: 128, 128>}, {pipeline_mode = #tpu.pipeline_mode<synchronous>, transform_indices = @transform_4, window_bounds = array<i64: 1, 128>}, {pipeline_mode = #tpu.pipeline_mode<synchronous>, transform_indices = @transform_5, window_bounds = array<i64: 1, 128>}, {transform_indices = @transform_6, window_bounds = array<i64: 2, 128>}]} {
    %c0 = arith.constant 0 : index
    %c0_0 = arith.constant 0 : index
    %0 = vector.load %arg1[%c0, %c0_0] : memref<2x128xf32, #tpu.memory_space<vmem>>, vector<2x128xf32>
    %c0_1 = arith.constant 0 : index
    %c0_2 = arith.constant 0 : index
    %1 = vector.load %arg2[%c0_1, %c0_2] : memref<1x128xf32, #tpu.memory_space<vmem>>, vector<1x128xf32>
    %2 = vector.broadcast %1 : vector<1x128xf32> to vector<2x128xf32>
    %3 = arith.mulf %0, %2 : vector<2x128xf32>
    %c0_3 = arith.constant 0 : index
    %c0_4 = arith.constant 0 : index
    %4 = vector.load %arg3[%c0_3, %c0_4] : memref<1x128xf32, #tpu.memory_space<vmem>>, vector<1x128xf32>
    %5 = vector.broadcast %4 : vector<1x128xf32> to vector<2x128xf32>
    %6 = arith.addf %3, %5 : vector<2x128xf32>
    %cst = arith.constant 0.000000e+00 : f32
    %7 = vector.broadcast %cst : f32 to vector<2x128xf32>
    %8 = arith.maximumf %6, %7 : vector<2x128xf32>
    %9 = arith.truncf %8 : vector<2x128xf32> to vector<2x128xbf16>
    %c0_5 = arith.constant 0 : index
    %c0_6 = arith.constant 0 : index
    %10 = vector.load %arg4[%c0_5, %c0_6] : memref<128x128xbf16, #tpu.memory_space<vmem>>, vector<128x128xbf16>
    %cst_7 = arith.constant dense<0.000000e+00> : vector<2x128xf32>
    %11 = tpu.matmul %9, %10, %cst_7 {dimension_numbers = #tpu.dot_dimension_numbers<[1], [0], [0], [1], [0, 0, 1, 1], [], []>} : vector<2x128xbf16>, vector<128x128xbf16>, vector<2x128xf32> -> vector<2x128xf32>
    %c0_8 = arith.constant 0 : index
    %c0_9 = arith.constant 0 : index
    %12 = vector.load %arg5[%c0_8, %c0_9] : memref<1x128xf32, #tpu.memory_space<vmem>>, vector<1x128xf32>
    %13 = vector.broadcast %12 : vector<1x128xf32> to vector<2x128xf32>
    %14 = arith.mulf %11, %13 : vector<2x128xf32>
    %c0_10 = arith.constant 0 : index
    %c0_11 = arith.constant 0 : index
    %15 = vector.load %arg6[%c0_10, %c0_11] : memref<1x128xf32, #tpu.memory_space<vmem>>, vector<1x128xf32>
    %16 = vector.broadcast %15 : vector<1x128xf32> to vector<2x128xf32>
    %17 = arith.addf %14, %16 : vector<2x128xf32>
    %cst_12 = arith.constant 0.000000e+00 : f32
    %18 = vector.broadcast %cst_12 : f32 to vector<2x128xf32>
    %19 = arith.maximumf %17, %18 : vector<2x128xf32>
    %c0_13 = arith.constant 0 : index
    %c0_14 = arith.constant 0 : index
    %20 = vector.load %arg7[%c0_13, %c0_14] : memref<2x128xf32, #tpu.memory_space<vmem>>, vector<2x128xf32>
    tpu.vector_store %arg7[%c0_13, %c0_14], %19 {strides = array<i32>} : memref<2x128xf32, #tpu.memory_space<vmem>>, vector<2x128xf32>,
    return
  }
  func.func @transform_0(%arg0: i32) -> (i32, i32) {
    %c0_i32 = arith.constant 0 : i32
    %c0_i32_0 = arith.constant 0 : i32
    return %arg0, %c0_i32 : i32, i32
  }
  func.func @transform_1(%arg0: i32) -> (i32, i32) {
    %c0_i32 = arith.constant 0 : i32
    %c0_i32_0 = arith.constant 0 : i32
    %c0_i32_1 = arith.constant 0 : i32
    return %c0_i32, %c0_i32_0 : i32, i32
  }
  func.func @transform_2(%arg0: i32) -> (i32, i32) {
    %c0_i32 = arith.constant 0 : i32
    %c0_i32_0 = arith.constant 0 : i32
    %c0_i32_1 = arith.constant 0 : i32
    return %c0_i32, %c0_i32_0 : i32, i32
  }
  func.func @transform_3(%arg0: i32) -> (i32, i32) {
    %c0_i32 = arith.constant 0 : i32
    %c0_i32_0 = arith.constant 0 : i32
    %c0_i32_1 = arith.constant 0 : i32
    return %c0_i32, %c0_i32_0 : i32, i32
  }
  func.func @transform_4(%arg0: i32) -> (i32, i32) {
    %c0_i32 = arith.constant 0 : i32
    %c0_i32_0 = arith.constant 0 : i32
    %c0_i32_1 = arith.constant 0 : i32
    return %c0_i32, %c0_i32_0 : i32, i32
  }
  func.func @transform_5(%arg0: i32) -> (i32, i32) {
    %c0_i32 = arith.constant 0 : i32
    %c0_i32_0 = arith.constant 0 : i32
    %c0_i32_1 = arith.constant 0 : i32
    return %c0_i32, %c0_i32_0 : i32, i32
  }
  func.func @transform_6(%arg0: i32) -> (i32, i32) {
    %c0_i32 = arith.constant 0 : i32
    %c0_i32_0 = arith.constant 0 : i32
    return %arg0, %c0_i32 : i32, i32
  }
}

module attributes {stable_mosaic.version = 11 : i64} {
  func.func @_dense33_kernel(%arg0: i32, %arg1: memref<2x128xf32, #tpu.memory_space<vmem>>, %arg2: memref<2x128xf32, #tpu.memory_space<vmem>>, %arg3: memref<1152x128xbf16, #tpu.memory_space<vmem>>, %arg4: memref<2x128xf32, #tpu.memory_space<vmem>>, %arg5: memref<18x128xf32, #tpu.memory_space<vmem>>, %arg6: memref<2x1152xf32, #tpu.memory_space<vmem>>) attributes {dimension_semantics = [#tpu.dimension_semantics<parallel>], iteration_bounds = array<i64: 1>, scalar_prefetch = 0 : i64, scratch_operands = 2 : i64, tpu.core_type = #tpu.core_type<tc>, window_params = [{transform_indices = @transform_0, window_bounds = array<i64: 2, 128>}, {transform_indices = @transform_1, window_bounds = array<i64: 2, 128>}, {pipeline_mode = #tpu.pipeline_mode<synchronous>, transform_indices = @transform_2, window_bounds = array<i64: 1152, 128>}, {transform_indices = @transform_3, window_bounds = array<i64: 2, 128>}]} {
    %cst = arith.constant 0.000000e+00 : f32
    %0 = vector.broadcast %cst : f32 to vector<18x128xf32>
    %c0 = arith.constant 0 : index
    %c0_0 = arith.constant 0 : index
    %1 = vector.load %arg5[%c0, %c0_0] : memref<18x128xf32, #tpu.memory_space<vmem>>, vector<18x128xf32>
    tpu.vector_store %arg5[%c0, %c0_0], %0 {strides = array<i32>} : memref<18x128xf32, #tpu.memory_space<vmem>>, vector<18x128xf32>,
    %c0_1 = arith.constant 0 : index
    %c0_2 = arith.constant 0 : index
    %2 = vector.load %arg1[%c0_1, %c0_2] : memref<2x128xf32, #tpu.memory_space<vmem>>, vector<1x128xf32>
    %c4 = arith.constant 4 : index
    %c0_3 = arith.constant 0 : index
    %3 = vector.load %arg5[%c4, %c0_3] : memref<18x128xf32, #tpu.memory_space<vmem>>, vector<1x128xf32>
    tpu.vector_store %arg5[%c4, %c0_3], %2 {strides = array<i32>} : memref<18x128xf32, #tpu.memory_space<vmem>>, vector<1x128xf32>,
    %c1 = arith.constant 1 : index
    %c0_4 = arith.constant 0 : index
    %4 = vector.load %arg1[%c1, %c0_4] : memref<2x128xf32, #tpu.memory_space<vmem>>, vector<1x128xf32>
    %c13 = arith.constant 13 : index
    %c0_5 = arith.constant 0 : index
    %5 = vector.load %arg5[%c13, %c0_5] : memref<18x128xf32, #tpu.memory_space<vmem>>, vector<1x128xf32>
    tpu.vector_store %arg5[%c13, %c0_5], %4 {strides = array<i32>} : memref<18x128xf32, #tpu.memory_space<vmem>>, vector<1x128xf32>,
    %c0_6 = arith.constant 0 : index
    %c0_7 = arith.constant 0 : index
    %6 = vector.load %arg5[%c0_6, %c0_7] : memref<18x128xf32, #tpu.memory_space<vmem>>, vector<1x128xf32>
    %c0_8 = arith.constant 0 : index
    %c0_9 = arith.constant 0 : index
    %7 = vector.load %arg6[%c0_8, %c0_9] : memref<2x1152xf32, #tpu.memory_space<vmem>>, vector<1x128xf32>
    tpu.vector_store %arg6[%c0_8, %c0_9], %6 {strides = array<i32>} : memref<2x1152xf32, #tpu.memory_space<vmem>>, vector<1x128xf32>,
    %c9 = arith.constant 9 : index
    %c0_10 = arith.constant 0 : index
    %8 = vector.load %arg5[%c9, %c0_10] : memref<18x128xf32, #tpu.memory_space<vmem>>, vector<1x128xf32>
    %c1_11 = arith.constant 1 : index
    %c0_12 = arith.constant 0 : index
    %9 = vector.load %arg6[%c1_11, %c0_12] : memref<2x1152xf32, #tpu.memory_space<vmem>>, vector<1x128xf32>
    tpu.vector_store %arg6[%c1_11, %c0_12], %8 {strides = array<i32>} : memref<2x1152xf32, #tpu.memory_space<vmem>>, vector<1x128xf32>,
    %c1_13 = arith.constant 1 : index
    %c0_14 = arith.constant 0 : index
    %10 = vector.load %arg5[%c1_13, %c0_14] : memref<18x128xf32, #tpu.memory_space<vmem>>, vector<1x128xf32>
    %c0_15 = arith.constant 0 : index
    %c128 = arith.constant 128 : index
    %11 = vector.load %arg6[%c0_15, %c128] : memref<2x1152xf32, #tpu.memory_space<vmem>>, vector<1x128xf32>
    tpu.vector_store %arg6[%c0_15, %c128], %10 {strides = array<i32>} : memref<2x1152xf32, #tpu.memory_space<vmem>>, vector<1x128xf32>,
    %c10 = arith.constant 10 : index
    %c0_16 = arith.constant 0 : index
    %12 = vector.load %arg5[%c10, %c0_16] : memref<18x128xf32, #tpu.memory_space<vmem>>, vector<1x128xf32>
    %c1_17 = arith.constant 1 : index
    %c128_18 = arith.constant 128 : index
    %13 = vector.load %arg6[%c1_17, %c128_18] : memref<2x1152xf32, #tpu.memory_space<vmem>>, vector<1x128xf32>
    tpu.vector_store %arg6[%c1_17, %c128_18], %12 {strides = array<i32>} : memref<2x1152xf32, #tpu.memory_space<vmem>>, vector<1x128xf32>,
    %c2 = arith.constant 2 : index
    %c0_19 = arith.constant 0 : index
    %14 = vector.load %arg5[%c2, %c0_19] : memref<18x128xf32, #tpu.memory_space<vmem>>, vector<1x128xf32>
    %c0_20 = arith.constant 0 : index
    %c256 = arith.constant 256 : index
    %15 = vector.load %arg6[%c0_20, %c256] : memref<2x1152xf32, #tpu.memory_space<vmem>>, vector<1x128xf32>
    tpu.vector_store %arg6[%c0_20, %c256], %14 {strides = array<i32>} : memref<2x1152xf32, #tpu.memory_space<vmem>>, vector<1x128xf32>,
    %c11 = arith.constant 11 : index
    %c0_21 = arith.constant 0 : index
    %16 = vector.load %arg5[%c11, %c0_21] : memref<18x128xf32, #tpu.memory_space<vmem>>, vector<1x128xf32>
    %c1_22 = arith.constant 1 : index
    %c256_23 = arith.constant 256 : index
    %17 = vector.load %arg6[%c1_22, %c256_23] : memref<2x1152xf32, #tpu.memory_space<vmem>>, vector<1x128xf32>
    tpu.vector_store %arg6[%c1_22, %c256_23], %16 {strides = array<i32>} : memref<2x1152xf32, #tpu.memory_space<vmem>>, vector<1x128xf32>,
    %c3 = arith.constant 3 : index
    %c0_24 = arith.constant 0 : index
    %18 = vector.load %arg5[%c3, %c0_24] : memref<18x128xf32, #tpu.memory_space<vmem>>, vector<1x128xf32>
    %c0_25 = arith.constant 0 : index
    %c384 = arith.constant 384 : index
    %19 = vector.load %arg6[%c0_25, %c384] : memref<2x1152xf32, #tpu.memory_space<vmem>>, vector<1x128xf32>
    tpu.vector_store %arg6[%c0_25, %c384], %18 {strides = array<i32>} : memref<2x1152xf32, #tpu.memory_space<vmem>>, vector<1x128xf32>,
    %c12 = arith.constant 12 : index
    %c0_26 = arith.constant 0 : index
    %20 = vector.load %arg5[%c12, %c0_26] : memref<18x128xf32, #tpu.memory_space<vmem>>, vector<1x128xf32>
    %c1_27 = arith.constant 1 : index
    %c384_28 = arith.constant 384 : index
    %21 = vector.load %arg6[%c1_27, %c384_28] : memref<2x1152xf32, #tpu.memory_space<vmem>>, vector<1x128xf32>
    tpu.vector_store %arg6[%c1_27, %c384_28], %20 {strides = array<i32>} : memref<2x1152xf32, #tpu.memory_space<vmem>>, vector<1x128xf32>,
    %c4_29 = arith.constant 4 : index
    %c0_30 = arith.constant 0 : index
    %22 = vector.load %arg5[%c4_29, %c0_30] : memref<18x128xf32, #tpu.memory_space<vmem>>, vector<1x128xf32>
    %c0_31 = arith.constant 0 : index
    %c512 = arith.constant 512 : index
    %23 = vector.load %arg6[%c0_31, %c512] : memref<2x1152xf32, #tpu.memory_space<vmem>>, vector<1x128xf32>
    tpu.vector_store %arg6[%c0_31, %c512], %22 {strides = array<i32>} : memref<2x1152xf32, #tpu.memory_space<vmem>>, vector<1x128xf32>,
    %c13_32 = arith.constant 13 : index
    %c0_33 = arith.constant 0 : index
    %24 = vector.load %arg5[%c13_32, %c0_33] : memref<18x128xf32, #tpu.memory_space<vmem>>, vector<1x128xf32>
    %c1_34 = arith.constant 1 : index
    %c512_35 = arith.constant 512 : index
    %25 = vector.load %arg6[%c1_34, %c512_35] : memref<2x1152xf32, #tpu.memory_space<vmem>>, vector<1x128xf32>
    tpu.vector_store %arg6[%c1_34, %c512_35], %24 {strides = array<i32>} : memref<2x1152xf32, #tpu.memory_space<vmem>>, vector<1x128xf32>,
    %c5 = arith.constant 5 : index
    %c0_36 = arith.constant 0 : index
    %26 = vector.load %arg5[%c5, %c0_36] : memref<18x128xf32, #tpu.memory_space<vmem>>, vector<1x128xf32>
    %c0_37 = arith.constant 0 : index
    %c640 = arith.constant 640 : index
    %27 = vector.load %arg6[%c0_37, %c640] : memref<2x1152xf32, #tpu.memory_space<vmem>>, vector<1x128xf32>
    tpu.vector_store %arg6[%c0_37, %c640], %26 {strides = array<i32>} : memref<2x1152xf32, #tpu.memory_space<vmem>>, vector<1x128xf32>,
    %c14 = arith.constant 14 : index
    %c0_38 = arith.constant 0 : index
    %28 = vector.load %arg5[%c14, %c0_38] : memref<18x128xf32, #tpu.memory_space<vmem>>, vector<1x128xf32>
    %c1_39 = arith.constant 1 : index
    %c640_40 = arith.constant 640 : index
    %29 = vector.load %arg6[%c1_39, %c640_40] : memref<2x1152xf32, #tpu.memory_space<vmem>>, vector<1x128xf32>
    tpu.vector_store %arg6[%c1_39, %c640_40], %28 {strides = array<i32>} : memref<2x1152xf32, #tpu.memory_space<vmem>>, vector<1x128xf32>,
    %c6 = arith.constant 6 : index
    %c0_41 = arith.constant 0 : index
    %30 = vector.load %arg5[%c6, %c0_41] : memref<18x128xf32, #tpu.memory_space<vmem>>, vector<1x128xf32>
    %c0_42 = arith.constant 0 : index
    %c768 = arith.constant 768 : index
    %31 = vector.load %arg6[%c0_42, %c768] : memref<2x1152xf32, #tpu.memory_space<vmem>>, vector<1x128xf32>
    tpu.vector_store %arg6[%c0_42, %c768], %30 {strides = array<i32>} : memref<2x1152xf32, #tpu.memory_space<vmem>>, vector<1x128xf32>,
    %c15 = arith.constant 15 : index
    %c0_43 = arith.constant 0 : index
    %32 = vector.load %arg5[%c15, %c0_43] : memref<18x128xf32, #tpu.memory_space<vmem>>, vector<1x128xf32>
    %c1_44 = arith.constant 1 : index
    %c768_45 = arith.constant 768 : index
    %33 = vector.load %arg6[%c1_44, %c768_45] : memref<2x1152xf32, #tpu.memory_space<vmem>>, vector<1x128xf32>
    tpu.vector_store %arg6[%c1_44, %c768_45], %32 {strides = array<i32>} : memref<2x1152xf32, #tpu.memory_space<vmem>>, vector<1x128xf32>,
    %c7 = arith.constant 7 : index
    %c0_46 = arith.constant 0 : index
    %34 = vector.load %arg5[%c7, %c0_46] : memref<18x128xf32, #tpu.memory_space<vmem>>, vector<1x128xf32>
    %c0_47 = arith.constant 0 : index
    %c896 = arith.constant 896 : index
    %35 = vector.load %arg6[%c0_47, %c896] : memref<2x1152xf32, #tpu.memory_space<vmem>>, vector<1x128xf32>
    tpu.vector_store %arg6[%c0_47, %c896], %34 {strides = array<i32>} : memref<2x1152xf32, #tpu.memory_space<vmem>>, vector<1x128xf32>,
    %c16 = arith.constant 16 : index
    %c0_48 = arith.constant 0 : index
    %36 = vector.load %arg5[%c16, %c0_48] : memref<18x128xf32, #tpu.memory_space<vmem>>, vector<1x128xf32>
    %c1_49 = arith.constant 1 : index
    %c896_50 = arith.constant 896 : index
    %37 = vector.load %arg6[%c1_49, %c896_50] : memref<2x1152xf32, #tpu.memory_space<vmem>>, vector<1x128xf32>
    tpu.vector_store %arg6[%c1_49, %c896_50], %36 {strides = array<i32>} : memref<2x1152xf32, #tpu.memory_space<vmem>>, vector<1x128xf32>,
    %c8 = arith.constant 8 : index
    %c0_51 = arith.constant 0 : index
    %38 = vector.load %arg5[%c8, %c0_51] : memref<18x128xf32, #tpu.memory_space<vmem>>, vector<1x128xf32>
    %c0_52 = arith.constant 0 : index
    %c1024 = arith.constant 1024 : index
    %39 = vector.load %arg6[%c0_52, %c1024] : memref<2x1152xf32, #tpu.memory_space<vmem>>, vector<1x128xf32>
    tpu.vector_store %arg6[%c0_52, %c1024], %38 {strides = array<i32>} : memref<2x1152xf32, #tpu.memory_space<vmem>>, vector<1x128xf32>,
    %c17 = arith.constant 17 : index
    %c0_53 = arith.constant 0 : index
    %40 = vector.load %arg5[%c17, %c0_53] : memref<18x128xf32, #tpu.memory_space<vmem>>, vector<1x128xf32>
    %c1_54 = arith.constant 1 : index
    %c1024_55 = arith.constant 1024 : index
    %41 = vector.load %arg6[%c1_54, %c1024_55] : memref<2x1152xf32, #tpu.memory_space<vmem>>, vector<1x128xf32>
    tpu.vector_store %arg6[%c1_54, %c1024_55], %40 {strides = array<i32>} : memref<2x1152xf32, #tpu.memory_space<vmem>>, vector<1x128xf32>,
    %c0_56 = arith.constant 0 : index
    %c0_57 = arith.constant 0 : index
    %42 = vector.load %arg6[%c0_56, %c0_57] : memref<2x1152xf32, #tpu.memory_space<vmem>>, vector<2x1152xf32>
    %43 = arith.truncf %42 : vector<2x1152xf32> to vector<2x1152xbf16>
    %c0_58 = arith.constant 0 : index
    %c0_59 = arith.constant 0 : index
    %44 = vector.load %arg3[%c0_58, %c0_59] : memref<1152x128xbf16, #tpu.memory_space<vmem>>, vector<1152x128xbf16>
    %cst_60 = arith.constant dense<0.000000e+00> : vector<2x128xf32>
    %45 = tpu.matmul %43, %44, %cst_60 {dimension_numbers = #tpu.dot_dimension_numbers<[1], [0], [0], [1], [0, 0, 1, 1], [], []>} : vector<2x1152xbf16>, vector<1152x128xbf16>, vector<2x128xf32> -> vector<2x128xf32>
    %c0_61 = arith.constant 0 : index
    %c0_62 = arith.constant 0 : index
    %46 = vector.load %arg2[%c0_61, %c0_62] : memref<2x128xf32, #tpu.memory_space<vmem>>, vector<2x128xf32>
    %47 = arith.addf %46, %45 : vector<2x128xf32>
    %c0_63 = arith.constant 0 : index
    %c0_64 = arith.constant 0 : index
    %48 = vector.load %arg4[%c0_63, %c0_64] : memref<2x128xf32, #tpu.memory_space<vmem>>, vector<2x128xf32>
    tpu.vector_store %arg4[%c0_63, %c0_64], %47 {strides = array<i32>} : memref<2x128xf32, #tpu.memory_space<vmem>>, vector<2x128xf32>,
    return
  }
  func.func @transform_0(%arg0: i32) -> (i32, i32) {
    %c0_i32 = arith.constant 0 : i32
    %c0_i32_0 = arith.constant 0 : i32
    return %arg0, %c0_i32 : i32, i32
  }
  func.func @transform_1(%arg0: i32) -> (i32, i32) {
    %c0_i32 = arith.constant 0 : i32
    %c0_i32_0 = arith.constant 0 : i32
    return %arg0, %c0_i32 : i32, i32
  }
  func.func @transform_2(%arg0: i32) -> (i32, i32) {
    %c0_i32 = arith.constant 0 : i32
    %c0_i32_0 = arith.constant 0 : i32
    %c0_i32_1 = arith.constant 0 : i32
    return %c0_i32, %c0_i32_0 : i32, i32
  }
  func.func @transform_3(%arg0: i32) -> (i32, i32) {
    %c0_i32 = arith.constant 0 : i32
    %c0_i32_0 = arith.constant 0 : i32
    return %arg0, %c0_i32 : i32, i32
  }
}

module attributes {stable_mosaic.version = 11 : i64} {
  func.func @_bottleneck_kernel(%arg0: i32, %arg1: memref<2x128xf32, #tpu.memory_space<vmem>>, %arg2: memref<1x128xf32, #tpu.memory_space<vmem>>, %arg3: memref<1x128xf32, #tpu.memory_space<vmem>>, %arg4: memref<128x128xbf16, #tpu.memory_space<vmem>>, %arg5: memref<1x128xf32, #tpu.memory_space<vmem>>, %arg6: memref<1x128xf32, #tpu.memory_space<vmem>>, %arg7: memref<2x128xf32, #tpu.memory_space<vmem>>) attributes {dimension_semantics = [#tpu.dimension_semantics<parallel>], iteration_bounds = array<i64: 1>, scalar_prefetch = 0 : i64, scratch_operands = 0 : i64, tpu.core_type = #tpu.core_type<tc>, window_params = [{transform_indices = @transform_0, window_bounds = array<i64: 2, 128>}, {pipeline_mode = #tpu.pipeline_mode<synchronous>, transform_indices = @transform_1, window_bounds = array<i64: 1, 128>}, {pipeline_mode = #tpu.pipeline_mode<synchronous>, transform_indices = @transform_2, window_bounds = array<i64: 1, 128>}, {pipeline_mode = #tpu.pipeline_mode<synchronous>, transform_indices = @transform_3, window_bounds = array<i64: 128, 128>}, {pipeline_mode = #tpu.pipeline_mode<synchronous>, transform_indices = @transform_4, window_bounds = array<i64: 1, 128>}, {pipeline_mode = #tpu.pipeline_mode<synchronous>, transform_indices = @transform_5, window_bounds = array<i64: 1, 128>}, {transform_indices = @transform_6, window_bounds = array<i64: 2, 128>}]} {
    %c0 = arith.constant 0 : index
    %c0_0 = arith.constant 0 : index
    %0 = vector.load %arg1[%c0, %c0_0] : memref<2x128xf32, #tpu.memory_space<vmem>>, vector<2x128xf32>
    %c0_1 = arith.constant 0 : index
    %c0_2 = arith.constant 0 : index
    %1 = vector.load %arg2[%c0_1, %c0_2] : memref<1x128xf32, #tpu.memory_space<vmem>>, vector<1x128xf32>
    %2 = vector.broadcast %1 : vector<1x128xf32> to vector<2x128xf32>
    %3 = arith.mulf %0, %2 : vector<2x128xf32>
    %c0_3 = arith.constant 0 : index
    %c0_4 = arith.constant 0 : index
    %4 = vector.load %arg3[%c0_3, %c0_4] : memref<1x128xf32, #tpu.memory_space<vmem>>, vector<1x128xf32>
    %5 = vector.broadcast %4 : vector<1x128xf32> to vector<2x128xf32>
    %6 = arith.addf %3, %5 : vector<2x128xf32>
    %cst = arith.constant 0.000000e+00 : f32
    %7 = vector.broadcast %cst : f32 to vector<2x128xf32>
    %8 = arith.maximumf %6, %7 : vector<2x128xf32>
    %9 = arith.truncf %8 : vector<2x128xf32> to vector<2x128xbf16>
    %c0_5 = arith.constant 0 : index
    %c0_6 = arith.constant 0 : index
    %10 = vector.load %arg4[%c0_5, %c0_6] : memref<128x128xbf16, #tpu.memory_space<vmem>>, vector<128x128xbf16>
    %cst_7 = arith.constant dense<0.000000e+00> : vector<2x128xf32>
    %11 = tpu.matmul %9, %10, %cst_7 {dimension_numbers = #tpu.dot_dimension_numbers<[1], [0], [0], [1], [0, 0, 1, 1], [], []>} : vector<2x128xbf16>, vector<128x128xbf16>, vector<2x128xf32> -> vector<2x128xf32>
    %c0_8 = arith.constant 0 : index
    %c0_9 = arith.constant 0 : index
    %12 = vector.load %arg5[%c0_8, %c0_9] : memref<1x128xf32, #tpu.memory_space<vmem>>, vector<1x128xf32>
    %13 = vector.broadcast %12 : vector<1x128xf32> to vector<2x128xf32>
    %14 = arith.mulf %11, %13 : vector<2x128xf32>
    %c0_10 = arith.constant 0 : index
    %c0_11 = arith.constant 0 : index
    %15 = vector.load %arg6[%c0_10, %c0_11] : memref<1x128xf32, #tpu.memory_space<vmem>>, vector<1x128xf32>
    %16 = vector.broadcast %15 : vector<1x128xf32> to vector<2x128xf32>
    %17 = arith.addf %14, %16 : vector<2x128xf32>
    %cst_12 = arith.constant 0.000000e+00 : f32
    %18 = vector.broadcast %cst_12 : f32 to vector<2x128xf32>
    %19 = arith.maximumf %17, %18 : vector<2x128xf32>
    %c0_13 = arith.constant 0 : index
    %c0_14 = arith.constant 0 : index
    %20 = vector.load %arg7[%c0_13, %c0_14] : memref<2x128xf32, #tpu.memory_space<vmem>>, vector<2x128xf32>
    tpu.vector_store %arg7[%c0_13, %c0_14], %19 {strides = array<i32>} : memref<2x128xf32, #tpu.memory_space<vmem>>, vector<2x128xf32>,
    return
  }
  func.func @transform_0(%arg0: i32) -> (i32, i32) {
    %c0_i32 = arith.constant 0 : i32
    %c0_i32_0 = arith.constant 0 : i32
    return %arg0, %c0_i32 : i32, i32
  }
  func.func @transform_1(%arg0: i32) -> (i32, i32) {
    %c0_i32 = arith.constant 0 : i32
    %c0_i32_0 = arith.constant 0 : i32
    %c0_i32_1 = arith.constant 0 : i32
    return %c0_i32, %c0_i32_0 : i32, i32
  }
  func.func @transform_2(%arg0: i32) -> (i32, i32) {
    %c0_i32 = arith.constant 0 : i32
    %c0_i32_0 = arith.constant 0 : i32
    %c0_i32_1 = arith.constant 0 : i32
    return %c0_i32, %c0_i32_0 : i32, i32
  }
  func.func @transform_3(%arg0: i32) -> (i32, i32) {
    %c0_i32 = arith.constant 0 : i32
    %c0_i32_0 = arith.constant 0 : i32
    %c0_i32_1 = arith.constant 0 : i32
    return %c0_i32, %c0_i32_0 : i32, i32
  }
  func.func @transform_4(%arg0: i32) -> (i32, i32) {
    %c0_i32 = arith.constant 0 : i32
    %c0_i32_0 = arith.constant 0 : i32
    %c0_i32_1 = arith.constant 0 : i32
    return %c0_i32, %c0_i32_0 : i32, i32
  }
  func.func @transform_5(%arg0: i32) -> (i32, i32) {
    %c0_i32 = arith.constant 0 : i32
    %c0_i32_0 = arith.constant 0 : i32
    %c0_i32_1 = arith.constant 0 : i32
    return %c0_i32, %c0_i32_0 : i32, i32
  }
  func.func @transform_6(%arg0: i32) -> (i32, i32) {
    %c0_i32 = arith.constant 0 : i32
    %c0_i32_0 = arith.constant 0 : i32
    return %arg0, %c0_i32 : i32, i32
  }
}

module attributes {stable_mosaic.version = 11 : i64} {
  func.func @_tail_kernel(%arg0: memref<2x128xf32, #tpu.memory_space<vmem>>, %arg1: memref<1x128xf32, #tpu.memory_space<vmem>>, %arg2: memref<1x128xf32, #tpu.memory_space<vmem>>, %arg3: memref<2x2xf32, #tpu.memory_space<vmem>>, %arg4: memref<128x5xf32, #tpu.memory_space<vmem>>, %arg5: memref<1x5xf32, #tpu.memory_space<vmem>>, %arg6: memref<2x5xf32, #tpu.memory_space<vmem>>) attributes {dimension_semantics = [], scalar_prefetch = 0 : i64, scratch_operands = 0 : i64, tpu.core_type = #tpu.core_type<tc>} {
    %c0 = arith.constant 0 : index
    %c0_0 = arith.constant 0 : index
    %0 = vector.load %arg0[%c0, %c0_0] : memref<2x128xf32, #tpu.memory_space<vmem>>, vector<2x128xf32>
    %c0_1 = arith.constant 0 : index
    %c0_2 = arith.constant 0 : index
    %1 = vector.load %arg1[%c0_1, %c0_2] : memref<1x128xf32, #tpu.memory_space<vmem>>, vector<1x128xf32>
    %2 = vector.broadcast %1 : vector<1x128xf32> to vector<2x128xf32>
    %3 = arith.mulf %0, %2 : vector<2x128xf32>
    %c0_3 = arith.constant 0 : index
    %c0_4 = arith.constant 0 : index
    %4 = vector.load %arg2[%c0_3, %c0_4] : memref<1x128xf32, #tpu.memory_space<vmem>>, vector<1x128xf32>
    %5 = vector.broadcast %4 : vector<1x128xf32> to vector<2x128xf32>
    %6 = arith.addf %3, %5 : vector<2x128xf32>
    %cst = arith.constant 0.000000e+00 : f32
    %7 = vector.broadcast %cst : f32 to vector<2x128xf32>
    %8 = arith.maximumf %6, %7 : vector<2x128xf32>
    %c0_5 = arith.constant 0 : index
    %c0_6 = arith.constant 0 : index
    %9 = vector.load %arg3[%c0_5, %c0_6] : memref<2x2xf32, #tpu.memory_space<vmem>>, vector<2x2xf32>
    %cst_7 = arith.constant dense<0.000000e+00> : vector<2x128xf32>
    %10 = tpu.matmul %9, %8, %cst_7 {dimension_numbers = #tpu.dot_dimension_numbers<[1], [0], [0], [1], [0, 0, 1, 1], [], []>} : vector<2x2xf32>, vector<2x128xf32>, vector<2x128xf32> -> vector<2x128xf32>
    %c0_8 = arith.constant 0 : index
    %c0_9 = arith.constant 0 : index
    %11 = vector.load %arg4[%c0_8, %c0_9] : memref<128x5xf32, #tpu.memory_space<vmem>>, vector<128x5xf32>
    %cst_10 = arith.constant dense<0.000000e+00> : vector<2x5xf32>
    %12 = tpu.matmul %10, %11, %cst_10 {dimension_numbers = #tpu.dot_dimension_numbers<[1], [0], [0], [1], [0, 0, 1, 1], [], []>} : vector<2x128xf32>, vector<128x5xf32>, vector<2x5xf32> -> vector<2x5xf32>
    %c0_11 = arith.constant 0 : index
    %c0_12 = arith.constant 0 : index
    %13 = vector.load %arg5[%c0_11, %c0_12] : memref<1x5xf32, #tpu.memory_space<vmem>>, vector<1x5xf32>
    %14 = vector.broadcast %13 : vector<1x5xf32> to vector<2x5xf32>
    %15 = arith.addf %12, %14 : vector<2x5xf32>
    %c0_13 = arith.constant 0 : index
    %c0_14 = arith.constant 0 : index
    %16 = vector.load %arg6[%c0_13, %c0_14] : memref<2x5xf32, #tpu.memory_space<vmem>>, vector<2x5xf32>
    tpu.vector_store %arg6[%c0_13, %c0_14], %15 {strides = array<i32>} : memref<2x5xf32, #tpu.memory_space<vmem>>, vector<2x5xf32>,
    return
  }
}

</mosaic_0001>

<bundles_post_ra>
// kernel: densenet_forward.22
= control target key start
LH: loop header
LB: loop body
LE: loop exit
PB: predicated region body
PF: predicated region fallthrough
CT: control target
= control target key end

     0   :  { %s618_s21 = smov 0   ;;  %s688_s0 = inlined_call_operand.vmem [shape: f32[128,128], index: 0, kind: input, shape index: {}]   ;;  %s689_s1 = inlined_call_operand.vmem [shape: f32[1,128], index: 1, kind: input, shape index: {}]   ;;  %s690_s2 = inlined_call_operand.vmem [shape: f32[1,128], index: 2, kind: input, shape index: {}]   ;;  %s691_s3 = inlined_call_operand.vmem [shape: bf16[128,128], index: 3, kind: input, shape index: {}]   ;;  %s692_s4 = inlined_call_operand.vmem [shape: f32[1,128], index: 4, kind: input, shape index: {}]   ;;  %s693_s5 = inlined_call_operand.vmem [shape: f32[1,128], index: 5, kind: input, shape index: {}]   ;;  %s694_s6 = inlined_call_operand.vmem [shape: f32[128,128], index: 6, kind: output, shape index: {}]  }
   0x1 LB: > { %s488_s22 = sadd.s32 4294967295, %s581_s21   ;;  %p492_p0 = scmp.ge.s32.totalorder %s581_s21, 1  ;;  %s581_s21 = sphi %s618_s21, %s16_s21  }
   0x2   : > { %p213_p1 = scmp.lt.s32.totalorder %s581_s21, 3 }
   0x4   : > { %p214_p2 = pnand %p492_p0, %p213_p1 }
   0x5   : > { %s493_s25 = sshll.u32 (!%p214_p2), %s488_s22, 3 }
   0x6   : > { %217 = sbr.rel (%p214_p2) target bundleno = 192 (0xc0), region = 44  ;;  %p244_p3 = scmp.lt.s32.totalorder (!%p214_p2), %s493_s25, 15 }
   0xb   : > { %v538_v0 = vld [vmem:[%s691_s3 + $0x38] sm:$0xff]  ;;  %v537_v1 = vld [vmem:[%s691_s3 + $0x30] sm:$0xff]  ;;  %s696_s25 = smov (!%p244_p3, %s493_s25), 15  ;;  %v536_v2 = vld [vmem:[%s691_s3 + $0x28] sm:$0xff] }
   0xc   : > { %363 = vmatpush.bf16.msra.mxu0 %v538_v0  ;;  %539 = vmatpush.bf16.msra.mxu1 %v538_v0  ;;  %s494_s30 = sshll.u32 %s696_s25, 3  ;;  %v535_v3 = vld [vmem:[%s691_s3 + $0x20] sm:$0xff]  ;;  %v534_v5 = vld [vmem:[%s691_s3 + $0x18] sm:$0xff]  ;;  %v533_v20 = vld [vmem:[%s691_s3 + $0x10] sm:$0xff] }
   0xd   : > { %540 = vmatpush.bf16.msra.mxu2 %v538_v0  ;;  %541 = vmatpush.bf16.msra.mxu3 %v538_v0  ;;  %s247_s11 = scalar_lea.vmem %s688_s0, %s494_s30  ;;  %v571_v4 = vld [vmem:[%s689_s1] ss:$0 sm:$0xff]  ;;  %v532_v29 = vld [vmem:[%s691_s3 + $0x8] sm:$0xff]  ;;  %s675_s9 = scalar_lea.vmem %s694_s6, %s494_s30 }
   0xe   : > { %v255_v6 = vld [vmem:[%s247_s11] sm:$0xff]  ;;  %v256_v7 = vld [vmem:[%s247_s11 + $0x8] sm:$0xff]  ;;  %v257_v8 = vld [vmem:[%s247_s11 + $0x10] sm:$0xff] }
   0xf   : > { %v258_v9 = vld [vmem:[%s247_s11 + $0x18] sm:$0xff]  ;;  %v259_v10 = vld [vmem:[%s247_s11 + $0x20] sm:$0xff]  ;;  %v260_v11 = vld [vmem:[%s247_s11 + $0x28] sm:$0xff]  ;;  %v267_v14 = vmul.f32 %v571_v4, %v255_v6  ;;  %v268_v16 = vmul.f32 %v571_v4, %v256_v7  ;;  %v269_v17 = vmul.f32 %v571_v4, %v257_v8 }
  0x10   : > { %364 = vmatpush.bf16.msra.mxu0 %v537_v1  ;;  %542 = vmatpush.bf16.msra.mxu1 %v537_v1  ;;  %v261_v12 = vld [vmem:[%s247_s11 + $0x30] sm:$0xff]  ;;  %v262_v13 = vld [vmem:[%s247_s11 + $0x38] sm:$0xff]  ;;  %v572_v15 = vld [vmem:[%s690_s2] ss:$0 sm:$0xff]  ;;  %v270_v18 = vmul.f32 %v571_v4, %v258_v9  ;;  %v271_v19 = vmul.f32 %v571_v4, %v259_v10  ;;  %v272_v21 = vmul.f32 %v571_v4, %v260_v11 }
  0x11   : > { %543 = vmatpush.bf16.msra.mxu2 %v537_v1  ;;  %544 = vmatpush.bf16.msra.mxu3 %v537_v1  ;;  %v273_v22 = vmul.f32 %v571_v4, %v261_v12  ;;  %v274_v23 = vmul.f32 %v571_v4, %v262_v13  ;;  %v279_v24 = vadd.f32 %v572_v15, %v267_v14  ;;  %v531_v37 = vld [vmem:[%s691_s3] sm:$0xff] }
  0x12   : > { %v280_v25 = vadd.f32 %v572_v15, %v268_v16  ;;  %v281_v26 = vadd.f32 %v572_v15, %v269_v17  ;;  %v282_v27 = vadd.f32 %v572_v15, %v270_v18  ;;  %v283_v28 = vadd.f32 %v572_v15, %v271_v19  ;;  %v573_v46 = vld [vmem:[%s692_s4] ss:$0 sm:$0xff] }
  0x13   : > { %v284_v30 = vadd.f32 %v572_v15, %v272_v21  ;;  %v285_v31 = vadd.f32 %v572_v15, %v273_v22  ;;  %v286_v32 = vadd.f32 %v572_v15, %v274_v23  ;;  %v287_v33 = vmax.f32 %v279_v24, 0.0  ;;  %v574_v47 = vld [vmem:[%s693_s5] ss:$0 sm:$0xff] }
  0x14   : > { %365 = vmatpush.bf16.msra.mxu0 %v536_v2  ;;  %545 = vmatpush.bf16.msra.mxu1 %v536_v2  ;;  %v288_v34 = vmax.f32 %v280_v25, 0.0  ;;  %v289_v35 = vmax.f32 %v281_v26, 0.0  ;;  %v290_v36 = vmax.f32 %v282_v27, 0.0  ;;  %v291_v38 = vmax.f32 %v283_v28, 0.0 }
  0x15   : > { %546 = vmatpush.bf16.msra.mxu2 %v536_v2  ;;  %547 = vmatpush.bf16.msra.mxu3 %v536_v2  ;;  %v292_v39 = vmax.f32 %v284_v30, 0.0  ;;  %v293_v40 = vmax.f32 %v285_v31, 0.0  ;;  %v294_v41 = vmax.f32 %v286_v32, 0.0 }
  0x16   : > { %v295_v42 = vpack.c.bf16 %v288_v34, %v287_v33  ;;  %v296_v43 = vpack.c.bf16 %v290_v36, %v289_v35 }
  0x17   : > { %v297_v44 = vpack.c.bf16 %v292_v39, %v291_v38  ;;  %v298_v45 = vpack.c.bf16 %v294_v41, %v293_v40 }
  0x18   : > { %366 = vmatpush.bf16.msra.mxu0 %v535_v3  ;;  %548 = vmatpush.bf16.msra.mxu1 %v535_v3 }
  0x19   : > { %549 = vmatpush.bf16.msra.mxu2 %v535_v3  ;;  %550 = vmatpush.bf16.msra.mxu3 %v535_v3 }
  0x1c   : > { %367 = vmatpush.bf16.msra.mxu0 %v534_v5  ;;  %551 = vmatpush.bf16.msra.mxu1 %v534_v5 }
  0x1d   : > { %552 = vmatpush.bf16.msra.mxu2 %v534_v5  ;;  %553 = vmatpush.bf16.msra.mxu3 %v534_v5 }
  0x20   : > { %368 = vmatpush.bf16.msra.mxu0 %v533_v20  ;;  %554 = vmatpush.bf16.msra.mxu1 %v533_v20 }
  0x21   : > { %555 = vmatpush.bf16.msra.mxu2 %v533_v20  ;;  %556 = vmatpush.bf16.msra.mxu3 %v533_v20 }
  0x24   : > { %369 = vmatpush.bf16.msra.mxu0 %v532_v29  ;;  %557 = vmatpush.bf16.msra.mxu1 %v532_v29 }
  0x25   : > { %558 = vmatpush.bf16.msra.mxu2 %v532_v29  ;;  %559 = vmatpush.bf16.msra.mxu3 %v532_v29 }
  0x28   : > { %370 = vmatpush.bf16.msra.mxu0 %v531_v37  ;;  %560 = vmatpush.bf16.msra.mxu1 %v531_v37 }
  0x29   : > { %561 = vmatpush.bf16.msra.mxu2 %v531_v37  ;;  %562 = vmatpush.bf16.msra.mxu3 %v531_v37 }
  0x2b   : > { %371 = vmatmul.bf16.vlgmr.msra.gmra.mxu0 %v295_v42  ;;  %376 = vmatmul.bf16.vlgmr.msra.gmra.mxu1 %v296_v43 }
  0x2c   : > { %381 = vmatmul.bf16.vlgmr.msra.gmra.mxu2 %v297_v44  ;;  %386 = vmatmul.bf16.vlgmr.msra.gmra.mxu3 %v298_v45 }
  0xa8   : > { %v372_v48 = vpop.f32.mrf.mxu0  ;;  %v377_v49 = vpop.f32.mrf.mxu1 }
  0xa9   : > { %v396_v50 = vmul.f32 %v573_v46, %v372_v48  ;;  %v398_v51 = vmul.f32 %v573_v46, %v377_v49 }
  0xab   : > { %v408_v52 = vadd.f32 %v574_v47, %v396_v50  ;;  %v410_v53 = vadd.f32 %v574_v47, %v398_v51 }
  0xad   : > { %v416_v54 = vmax.f32 %v408_v52, 0.0  ;;  %v418_v55 = vmax.f32 %v410_v53, 0.0 }
  0xaf   : > { %424 = vst [vmem:[%s675_s9] sm:$0xff] %v416_v54  ;;  %v382_v56 = vpop.f32.mrf.mxu2  ;;  %v387_v57 = vpop.f32.mrf.mxu3 }
  0xb0   : > { %426 = vst [vmem:[%s675_s9 + $0x10] sm:$0xff] %v418_v55  ;;  %v400_v58 = vmul.f32 %v573_v46, %v382_v56  ;;  %v402_v59 = vmul.f32 %v573_v46, %v387_v57  ;;  %v374_v60 = vpop.f32.mrf.mxu0  ;;  %v379_v61 = vpop.f32.mrf.mxu1 }
  0xb1   : > { %v397_v62 = vmul.f32 %v573_v46, %v374_v60  ;;  %v399_v63 = vmul.f32 %v573_v46, %v379_v61 }
  0xb2   : > { %v412_v0 = vadd.f32 %v574_v47, %v400_v58  ;;  %v414_v1 = vadd.f32 %v574_v47, %v402_v59 }
  0xb3   : > { %v409_v2 = vadd.f32 %v574_v47, %v397_v62  ;;  %v411_v3 = vadd.f32 %v574_v47, %v399_v63 }
  0xb4   : > { %v420_v4 = vmax.f32 %v412_v0, 0.0  ;;  %v422_v5 = vmax.f32 %v414_v1, 0.0 }
  0xb5   : > { %v417_v6 = vmax.f32 %v409_v2, 0.0  ;;  %v419_v7 = vmax.f32 %v411_v3, 0.0 }
  0xb6   : > { %428 = vst [vmem:[%s675_s9 + $0x20] sm:$0xff] %v420_v4 }
  0xb7   : > { %430 = vst [vmem:[%s675_s9 + $0x30] sm:$0xff] %v422_v5  ;;  %v384_v8 = vpop.f32.mrf.mxu2  ;;  %v389_v9 = vpop.f32.mrf.mxu3 }
  0xb8   : > { %425 = vst [vmem:[%s675_s9 + $0x8] sm:$0xff] %v417_v6  ;;  %v401_v10 = vmul.f32 %v573_v46, %v384_v8  ;;  %v403_v11 = vmul.f32 %v573_v46, %v389_v9 }
  0xb9   : > { %427 = vst [vmem:[%s675_s9 + $0x18] sm:$0xff] %v419_v7 }
  0xba   : > { %v413_v12 = vadd.f32 %v574_v47, %v401_v10  ;;  %v415_v13 = vadd.f32 %v574_v47, %v403_v11 }
  0xbc   : > { %v421_v14 = vmax.f32 %v413_v12, 0.0  ;;  %v423_v15 = vmax.f32 %v415_v13, 0.0 }
  0xbe   : > { %429 = vst [vmem:[%s675_s9 + $0x28] sm:$0xff] %v421_v14 }
  0xbf   : > { %431 = vst [vmem:[%s675_s9 + $0x38] sm:$0xff] %v423_v15 }
  0xc0 PF: > { %s16_s21 = sadd.s32 1, %s581_s21  }
  0xc1   : > { %p13_p4 = scmp.ge.s32.totalorder %s16_s21, 4  }
  0xc3   :  { %15 = sbr.rel (!%p13_p4) target bundleno = 1 (0x1), region = 74 }

// kernel: densenet_forward.21
= control target key start
LH: loop header
LB: loop body
LE: loop exit
PB: predicated region body
PF: predicated region fallthrough
CT: control target
= control target key end

     0   :  { %s1206_s15 = smov 0   ;;  %s1452_s0 = inlined_call_operand.vmem [shape: bf16[512,256], index: 0, kind: input, shape index: {}]   ;;  %s1453_s1 = inlined_call_operand.vmem [shape: bf16[256,128], index: 1, kind: input, shape index: {}]   ;;  %s1454_s2 = inlined_call_operand.vmem [shape: f32[1,128], index: 2, kind: input, shape index: {}]   ;;  %s1455_s3 = inlined_call_operand.vmem [shape: f32[1,128], index: 3, kind: input, shape index: {}]   ;;  %s1456_s4 = inlined_call_operand.vmem [shape: f32[512,128], index: 4, kind: output, shape index: {}]  }
   0x1 LB: > { %s894_s16 = sadd.s32 4294967295, %s1179_s15   ;;  %p898_p0 = scmp.ge.s32.totalorder %s1179_s15, 1  ;;  %s1179_s15 = sphi %s1206_s15, %s14_s15  }
   0x2   : > { %p164_p1 = scmp.lt.s32.totalorder %s1179_s15, 3 }
   0x4   : > { %p165_p2 = pnand %p898_p0, %p164_p1 }
   0x5   : > { %s899_s29 = sshll.u32 (!%p165_p2), %s894_s16, 5 }
   0x6   : > { %168 = sbr.rel (%p165_p2) target bundleno = 305 (0x131), region = 36  ;;  %p192_p3 = scmp.lt.s32.totalorder (!%p165_p2), %s899_s29, 63 }
   0xb   : > { %v1138_v0 = vld [vmem:[%s1453_s1 + $0x38] sm:$0xff]  ;;  %v1137_v2 = vld [vmem:[%s1453_s1 + $0x30] sm:$0xff]  ;;  %v1136_v4 = vld [vmem:[%s1453_s1 + $0x28] sm:$0xff]  ;;  %s1458_s29 = smov (!%p192_p3, %s899_s29), 63 }
   0xc   : > { %v1146_v1 = vld [vmem:[%s1453_s1 + $0x78] sm:$0xff]  ;;  %524 = vmatpush.bf16.msra.mxu0 %v1138_v0  ;;  %1147 = vmatpush.bf16.msra.mxu2 %v1138_v0  ;;  %v1145_v3 = vld [vmem:[%s1453_s1 + $0x70] sm:$0xff]  ;;  %v1144_v5 = vld [vmem:[%s1453_s1 + $0x68] sm:$0xff]  ;;  %s1098_s17 = sshll.u32 %s1458_s29, 3 }
   0xd   : > { %613 = vmatpush.bf16.msra.mxu1 %v1146_v1  ;;  %1155 = vmatpush.bf16.msra.mxu3 %v1146_v1  ;;  %v1135_v6 = vld [vmem:[%s1453_s1 + $0x20] sm:$0xff]  ;;  %v1134_v8 = vld [vmem:[%s1453_s1 + $0x18] sm:$0xff]  ;;  %v1133_v10 = vld [vmem:[%s1453_s1 + $0x10] sm:$0xff]  ;;  %s1261_s22 = scalar_lea.vmem %s1452_s0, %s1098_s17  ;;  %s1353_s10 = scalar_lea.vmem %s1456_s4, %s1098_s17 }
   0xe   : > { %v1143_v7 = vld [vmem:[%s1453_s1 + $0x60] sm:$0xff]  ;;  %v1142_v9 = vld [vmem:[%s1453_s1 + $0x58] sm:$0xff]  ;;  %v1141_v11 = vld [vmem:[%s1453_s1 + $0x50] sm:$0xff] }
   0xf   : > { %v1132_v12 = vld [vmem:[%s1453_s1 + $0x8] sm:$0xff]  ;;  %v1131_v14 = vld [vmem:[%s1453_s1] sm:$0xff]  ;;  %v914_v28 = vld [vmem:[%s1261_s22 + $0x10] sm:$0xf] }
  0x10   : > { %525 = vmatpush.bf16.msra.mxu0 %v1137_v2  ;;  %1148 = vmatpush.bf16.msra.mxu2 %v1137_v2  ;;  %v1140_v13 = vld [vmem:[%s1453_s1 + $0x48] sm:$0xff]  ;;  %v1139_v15 = vld [vmem:[%s1453_s1 + $0x40] sm:$0xff]  ;;  %v1102_v29 = vld [vmem:[%s1261_s22 + $0x14] sm:$0xf0] }
  0x11   : > { %614 = vmatpush.bf16.msra.mxu1 %v1145_v3  ;;  %1156 = vmatpush.bf16.msra.mxu3 %v1145_v3  ;;  %v906_v16 = vld [vmem:[%s1261_s22] sm:$0xf]  ;;  %v1100_v17 = vld [vmem:[%s1261_s22 + $0x4] sm:$0xf0]  ;;  %v1099_v20 = vld [vmem:[%s1261_s22 + $0x4] sm:$0xf]  ;;  %v915_v36 = vor.u32 %v1102_v29, %v914_v28 }
  0x12   : > { %v970_v18 = vld [vmem:[%s1261_s22 + $0x80] sm:$0xf]  ;;  %v1116_v19 = vld [vmem:[%s1261_s22 + $0x84] sm:$0xf0]  ;;  %v908_v21 = vld [vmem:[%s1261_s22 + $0x8] sm:$0xf0]  ;;  %v907_v24 = vor.u32 %v1100_v17, %v906_v16 }
  0x13   : > { %v1115_v22 = vld [vmem:[%s1261_s22 + $0x84] sm:$0xf]  ;;  %v972_v23 = vld [vmem:[%s1261_s22 + $0x88] sm:$0xf0]  ;;  %v971_v25 = vor.u32 %v1116_v19, %v970_v18  ;;  %v911_v26 = vor.u32 %v1099_v20, %v908_v21  ;;  %v978_v30 = vld [vmem:[%s1261_s22 + $0x90] sm:$0xf] }
  0x14   : > { %526 = vmatpush.bf16.msra.mxu0 %v1136_v4  ;;  %1149 = vmatpush.bf16.msra.mxu2 %v1136_v4  ;;  %v975_v27 = vor.u32 %v1115_v22, %v972_v23  ;;  %v1118_v31 = vld [vmem:[%s1261_s22 + $0x94] sm:$0xf0]  ;;  %v1101_v32 = vld [vmem:[%s1261_s22 + $0x14] sm:$0xf]  ;;  %v916_v33 = vld [vmem:[%s1261_s22 + $0x18] sm:$0xf0] }
  0x15   : > { %615 = vmatpush.bf16.msra.mxu1 %v1144_v5  ;;  %1157 = vmatpush.bf16.msra.mxu3 %v1144_v5  ;;  %v1117_v34 = vld [vmem:[%s1261_s22 + $0x94] sm:$0xf]  ;;  %v980_v35 = vld [vmem:[%s1261_s22 + $0x98] sm:$0xf0]  ;;  %v979_v37 = vor.u32 %v1118_v31, %v978_v30  ;;  %v919_v38 = vor.u32 %v1101_v32, %v916_v33  ;;  %v922_v40 = vld [vmem:[%s1261_s22 + $0x20] sm:$0xf] }
  0x16   : > { %v983_v39 = vor.u32 %v1117_v34, %v980_v35  ;;  %v1104_v41 = vld [vmem:[%s1261_s22 + $0x24] sm:$0xf0]  ;;  %v986_v42 = vld [vmem:[%s1261_s22 + $0xa0] sm:$0xf]  ;;  %v1103_v44 = vld [vmem:[%s1261_s22 + $0x24] sm:$0xf] }
  0x17   : > { %v1120_v43 = vld [vmem:[%s1261_s22 + $0xa4] sm:$0xf0]  ;;  %v924_v45 = vld [vmem:[%s1261_s22 + $0x28] sm:$0xf0]  ;;  %v1119_v46 = vld [vmem:[%s1261_s22 + $0xa4] sm:$0xf]  ;;  %v923_v48 = vor.u32 %v1104_v41, %v922_v40 }
  0x18   : > { %527 = vmatpush.bf16.msra.mxu0 %v1135_v6  ;;  %1150 = vmatpush.bf16.msra.mxu2 %v1135_v6  ;;  %v988_v47 = vld [vmem:[%s1261_s22 + $0xa8] sm:$0xf0]  ;;  %v987_v49 = vor.u32 %v1120_v43, %v986_v42  ;;  %v927_v50 = vor.u32 %v1103_v44, %v924_v45  ;;  %v930_v52 = vld [vmem:[%s1261_s22 + $0x30] sm:$0xf]  ;;  %v1106_v53 = vld [vmem:[%s1261_s22 + $0x34] sm:$0xf0] }
  0x19   : > { %616 = vmatpush.bf16.msra.mxu1 %v1143_v7  ;;  %1158 = vmatpush.bf16.msra.mxu3 %v1143_v7  ;;  %v991_v51 = vor.u32 %v1119_v46, %v988_v47  ;;  %v994_v54 = vld [vmem:[%s1261_s22 + $0xb0] sm:$0xf]  ;;  %v1122_v55 = vld [vmem:[%s1261_s22 + $0xb4] sm:$0xf0]  ;;  %v1105_v56 = vld [vmem:[%s1261_s22 + $0x34] sm:$0xf]  ;;  %v931_v60 = vor.u32 %v1106_v53, %v930_v52 }
  0x1a   : > { %v932_v57 = vld [vmem:[%s1261_s22 + $0x38] sm:$0xf0]  ;;  %v1121_v58 = vld [vmem:[%s1261_s22 + $0xb4] sm:$0xf]  ;;  %v995_v61 = vor.u32 %v1122_v55, %v994_v54  ;;  %v938_v0 = vld [vmem:[%s1261_s22 + $0x40] sm:$0xf] }
  0x1b   : > { %v996_v59 = vld [vmem:[%s1261_s22 + $0xb8] sm:$0xf0]  ;;  %v935_v62 = vor.u32 %v1105_v56, %v932_v57  ;;  %v1108_v1 = vld [vmem:[%s1261_s22 + $0x44] sm:$0xf0]  ;;  %v1002_v2 = vld [vmem:[%s1261_s22 + $0xc0] sm:$0xf] }
  0x1c   : > { %528 = vmatpush.bf16.msra.mxu0 %v1134_v8  ;;  %1151 = vmatpush.bf16.msra.mxu2 %v1134_v8  ;;  %v999_v63 = vor.u32 %v1121_v58, %v996_v59  ;;  %v1124_v3 = vld [vmem:[%s1261_s22 + $0xc4] sm:$0xf0]  ;;  %v1107_v4 = vld [vmem:[%s1261_s22 + $0x44] sm:$0xf]  ;;  %v940_v5 = vld [vmem:[%s1261_s22 + $0x48] sm:$0xf0]  ;;  %v939_v8 = vor.u32 %v1108_v1, %v938_v0 }
  0x1d   : > { %617 = vmatpush.bf16.msra.mxu1 %v1142_v9  ;;  %1159 = vmatpush.bf16.msra.mxu3 %v1142_v9  ;;  %v1123_v6 = vld [vmem:[%s1261_s22 + $0xc4] sm:$0xf]  ;;  %v1004_v7 = vld [vmem:[%s1261_s22 + $0xc8] sm:$0xf0]  ;;  %v1003_v9 = vor.u32 %v1124_v3, %v1002_v2  ;;  %v1109_v16 = vld [vmem:[%s1261_s22 + $0x54] sm:$0xf] }
  0x1e   : > { %v948_v17 = vld [vmem:[%s1261_s22 + $0x58] sm:$0xf0]  ;;  %v1125_v18 = vld [vmem:[%s1261_s22 + $0xd4] sm:$0xf]  ;;  %v1111_v28 = vld [vmem:[%s1261_s22 + $0x64] sm:$0xf] }
  0x1f   : > { %v1012_v19 = vld [vmem:[%s1261_s22 + $0xd8] sm:$0xf0]  ;;  %v951_v22 = vor.u32 %v1109_v16, %v948_v17  ;;  %v956_v29 = vld [vmem:[%s1261_s22 + $0x68] sm:$0xf0]  ;;  %v1127_v30 = vld [vmem:[%s1261_s22 + $0xe4] sm:$0xf] }
  0x20   : > { %529 = vmatpush.bf16.msra.mxu0 %v1133_v10  ;;  %1152 = vmatpush.bf16.msra.mxu2 %v1133_v10  ;;  %v943_v10 = vor.u32 %v1107_v4, %v940_v5  ;;  %v1015_v23 = vor.u32 %v1125_v18, %v1012_v19  ;;  %v1020_v31 = vld [vmem:[%s1261_s22 + $0xe8] sm:$0xf0]  ;;  %v959_v34 = vor.u32 %v1111_v28, %v956_v29  ;;  %v1113_v40 = vld [vmem:[%s1261_s22 + $0x74] sm:$0xf]  ;;  %v964_v41 = vld [vmem:[%s1261_s22 + $0x78] sm:$0xf0] }
  0x21   : > { %618 = vmatpush.bf16.msra.mxu1 %v1141_v11  ;;  %1160 = vmatpush.bf16.msra.mxu3 %v1141_v11  ;;  %v1007_v11 = vor.u32 %v1123_v6, %v1004_v7  ;;  %v1023_v35 = vor.u32 %v1127_v30, %v1020_v31  ;;  %v1129_v42 = vld [vmem:[%s1261_s22 + $0xf4] sm:$0xf]  ;;  %v1028_v43 = vld [vmem:[%s1261_s22 + $0xf8] sm:$0xf0]  ;;  %v967_v46 = vor.u32 %v1113_v40, %v964_v41  ;;  %v1344_v52 = vld [vmem:[%s1455_s3] ss:$0 sm:$0xff] }
  0x22   : > { %v1031_v47 = vor.u32 %v1129_v42, %v1028_v43 }
  0x24   : > { %530 = vmatpush.bf16.msra.mxu0 %v1132_v12  ;;  %1153 = vmatpush.bf16.msra.mxu2 %v1132_v12  ;;  %v946_v12 = vld [vmem:[%s1261_s22 + $0x50] sm:$0xf] }
  0x25   : > { %619 = vmatpush.bf16.msra.mxu1 %v1140_v13  ;;  %1161 = vmatpush.bf16.msra.mxu3 %v1140_v13  ;;  %v1110_v13 = vld [vmem:[%s1261_s22 + $0x54] sm:$0xf0] }
  0x26   : > { %v947_v20 = vor.u32 %v1110_v13, %v946_v12 }
  0x28   : > { %531 = vmatpush.bf16.msra.mxu0 %v1131_v14  ;;  %1154 = vmatpush.bf16.msra.mxu2 %v1131_v14  ;;  %v1010_v14 = vld [vmem:[%s1261_s22 + $0xd0] sm:$0xf] }
  0x29   : > { %620 = vmatpush.bf16.msra.mxu1 %v1139_v15  ;;  %1162 = vmatpush.bf16.msra.mxu3 %v1139_v15  ;;  %v1126_v15 = vld [vmem:[%s1261_s22 + $0xd4] sm:$0xf0] }
  0x2a   : > { %v1011_v21 = vor.u32 %v1126_v15, %v1010_v14 }
  0x2b   : > { %532 = vmatmul.bf16.vlgmr.msra.gmra.mxu0 %v907_v24  ;;  %572 = vmatmul.bf16.vlgmr.msra.gmra.mxu2 %v971_v25  ;;  %v954_v24 = vld [vmem:[%s1261_s22 + $0x60] sm:$0xf]  ;;  %v1112_v25 = vld [vmem:[%s1261_s22 + $0x64] sm:$0xf0] }
  0x2c   : > { %621 = vmatmul.bf16.vlgmr.msra.gmra.mxu1 %v911_v26  ;;  %661 = vmatmul.bf16.vlgmr.msra.gmra.mxu3 %v975_v27  ;;  %v1018_v26 = vld [vmem:[%s1261_s22 + $0xe0] sm:$0xf]  ;;  %v1128_v27 = vld [vmem:[%s1261_s22 + $0xe4] sm:$0xf0]  ;;  %v955_v32 = vor.u32 %v1112_v25, %v954_v24 }
  0x2d   : > { %v1019_v33 = vor.u32 %v1128_v27, %v1018_v26 }
  0x3b   : > { %537 = vmatmul.bf16.gmra.mxu0 %v915_v36  ;;  %577 = vmatmul.bf16.gmra.mxu2 %v979_v37  ;;  %v962_v36 = vld [vmem:[%s1261_s22 + $0x70] sm:$0xf]  ;;  %v1114_v37 = vld [vmem:[%s1261_s22 + $0x74] sm:$0xf0] }
  0x3c   : > { %626 = vmatmul.bf16.gmra.mxu1 %v919_v38  ;;  %666 = vmatmul.bf16.gmra.mxu3 %v983_v39  ;;  %v1026_v38 = vld [vmem:[%s1261_s22 + $0xf0] sm:$0xf]  ;;  %v1130_v39 = vld [vmem:[%s1261_s22 + $0xf4] sm:$0xf0]  ;;  %v963_v44 = vor.u32 %v1114_v37, %v962_v36 }
  0x3d   : > { %v1027_v45 = vor.u32 %v1130_v39, %v1026_v38 }
  0x4b   : > { %542 = vmatmul.bf16.gmra.mxu0 %v923_v48  ;;  %582 = vmatmul.bf16.gmra.mxu2 %v987_v49  ;;  %v1339_v49 = vld [vmem:[%s1454_s2] ss:$0 sm:$0xff] }
  0x4c   : > { %631 = vmatmul.bf16.gmra.mxu1 %v927_v50  ;;  %671 = vmatmul.bf16.gmra.mxu3 %v991_v51 }
  0x5b   : > { %547 = vmatmul.bf16.gmra.mxu0 %v931_v60  ;;  %587 = vmatmul.bf16.gmra.mxu2 %v995_v61 }
  0x5c   : > { %636 = vmatmul.bf16.gmra.mxu1 %v935_v62  ;;  %676 = vmatmul.bf16.gmra.mxu3 %v999_v63 }
  0x6b   : > { %552 = vmatmul.bf16.gmra.mxu0 %v939_v8  ;;  %592 = vmatmul.bf16.gmra.mxu2 %v1003_v9 }
  0x6c   : > { %641 = vmatmul.bf16.gmra.mxu1 %v943_v10  ;;  %681 = vmatmul.bf16.gmra.mxu3 %v1007_v11 }
  0x7b   : > { %557 = vmatmul.bf16.gmra.mxu0 %v947_v20  ;;  %597 = vmatmul.bf16.gmra.mxu2 %v1011_v21 }
  0x7c   : > { %646 = vmatmul.bf16.gmra.mxu1 %v951_v22  ;;  %686 = vmatmul.bf16.gmra.mxu3 %v1015_v23 }
  0x8b   : > { %562 = vmatmul.bf16.gmra.mxu0 %v955_v32  ;;  %602 = vmatmul.bf16.gmra.mxu2 %v1019_v33 }
  0x8c   : > { %651 = vmatmul.bf16.gmra.mxu1 %v959_v34  ;;  %691 = vmatmul.bf16.gmra.mxu3 %v1023_v35 }
  0x9b   : > { %567 = vmatmul.bf16.gmra.mxu0 %v963_v44  ;;  %607 = vmatmul.bf16.gmra.mxu2 %v1027_v45 }
  0x9c   : > { %656 = vmatmul.bf16.gmra.mxu1 %v967_v46  ;;  %696 = vmatmul.bf16.gmra.mxu3 %v1031_v47 }
  0xa8   : > { %v533_v48 = vpop.f32.mrf.mxu0 }
  0xa9   : > { %v622_v50 = vpop.f32.mrf.mxu1 }
  0xaa   : > { %v623_v51 = vadd.f32 %v622_v50, %v533_v48 }
  0xac   : > { %v706_v53 = vmul.f32 %v1339_v49, %v623_v51 }
  0xae   : > { %v742_v54 = vadd.f32 %v1344_v52, %v706_v53  ;;  %v573_v55 = vpop.f32.mrf.mxu2 }
  0xaf   : > { %v662_v56 = vpop.f32.mrf.mxu3 }
  0xb0   : > { %v774_v57 = vmax.f32 %v742_v54, 0.0  ;;  %v663_v58 = vadd.f32 %v662_v56, %v573_v55  ;;  %v535_v59 = vpop.f32.mrf.mxu0 }
  0xb1   : > { %v624_v60 = vpop.f32.mrf.mxu1 }
  0xb2   : > { %806 = vst [vmem:[%s1353_s10] sm:$0xff] %v774_v57  ;;  %v722_v61 = vmul.f32 %v1339_v49, %v663_v58  ;;  %v625_v62 = vadd.f32 %v624_v60, %v535_v59 }
  0xb4   : > { %v758_v63 = vadd.f32 %v1344_v52, %v722_v61  ;;  %v707_v0 = vmul.f32 %v1339_v49, %v625_v62 }
  0xb6   : > { %v790_v1 = vmax.f32 %v758_v63, 0.0  ;;  %v743_v2 = vadd.f32 %v1344_v52, %v707_v0  ;;  %v575_v3 = vpop.f32.mrf.mxu2 }
  0xb7   : > { %v664_v4 = vpop.f32.mrf.mxu3 }
  0xb8   : > { %822 = vst [vmem:[%s1353_s10 + $0x80] sm:$0xff] %v790_v1  ;;  %v775_v5 = vmax.f32 %v743_v2, 0.0  ;;  %v665_v6 = vadd.f32 %v664_v4, %v575_v3  ;;  %v538_v7 = vpop.f32.mrf.mxu0 }
  0xb9   : > { %v627_v8 = vpop.f32.mrf.mxu1 }
  0xba   : > { %807 = vst [vmem:[%s1353_s10 + $0x8] sm:$0xff] %v775_v5  ;;  %v723_v9 = vmul.f32 %v1339_v49, %v665_v6  ;;  %v628_v10 = vadd.f32 %v627_v8, %v538_v7 }
  0xbc   : > { %v759_v11 = vadd.f32 %v1344_v52, %v723_v9  ;;  %v708_v12 = vmul.f32 %v1339_v49, %v628_v10 }
  0xbe   : > { %v791_v13 = vmax.f32 %v759_v11, 0.0  ;;  %v744_v14 = vadd.f32 %v1344_v52, %v708_v12  ;;  %v578_v15 = vpop.f32.mrf.mxu2 }
  0xbf   : > { %v667_v16 = vpop.f32.mrf.mxu3 }
  0xc0   : > { %823 = vst [vmem:[%s1353_s10 + $0x88] sm:$0xff] %v791_v13  ;;  %v776_v17 = vmax.f32 %v744_v14, 0.0  ;;  %v668_v18 = vadd.f32 %v667_v16, %v578_v15  ;;  %v540_v19 = vpop.f32.mrf.mxu0 }
  0xc1   : > { %v629_v20 = vpop.f32.mrf.mxu1 }
  0xc2   : > { %808 = vst [vmem:[%s1353_s10 + $0x10] sm:$0xff] %v776_v17  ;;  %v724_v21 = vmul.f32 %v1339_v49, %v668_v18  ;;  %v630_v22 = vadd.f32 %v629_v20, %v540_v19 }
  0xc4   : > { %v760_v23 = vadd.f32 %v1344_v52, %v724_v21  ;;  %v709_v24 = vmul.f32 %v1339_v49, %v630_v22 }
  0xc6   : > { %v792_v25 = vmax.f32 %v760_v23, 0.0  ;;  %v745_v26 = vadd.f32 %v1344_v52, %v709_v24  ;;  %v580_v27 = vpop.f32.mrf.mxu2 }
  0xc7   : > { %v669_v28 = vpop.f32.mrf.mxu3 }
  0xc8   : > { %824 = vst [vmem:[%s1353_s10 + $0x90] sm:$0xff] %v792_v25  ;;  %v777_v29 = vmax.f32 %v745_v26, 0.0  ;;  %v670_v30 = vadd.f32 %v669_v28, %v580_v27  ;;  %v543_v31 = vpop.f32.mrf.mxu0 }
  0xc9   : > { %v632_v32 = vpop.f32.mrf.mxu1 }
  0xca   : > { %809 = vst [vmem:[%s1353_s10 + $0x18] sm:$0xff] %v777_v29  ;;  %v725_v33 = vmul.f32 %v1339_v49, %v670_v30  ;;  %v633_v34 = vadd.f32 %v632_v32, %v543_v31 }
  0xcc   : > { %v761_v35 = vadd.f32 %v1344_v52, %v725_v33  ;;  %v710_v36 = vmul.f32 %v1339_v49, %v633_v34 }
  0xce   : > { %v793_v37 = vmax.f32 %v761_v35, 0.0  ;;  %v746_v38 = vadd.f32 %v1344_v52, %v710_v36  ;;  %v583_v39 = vpop.f32.mrf.mxu2 }
  0xcf   : > { %v672_v40 = vpop.f32.mrf.mxu3 }
  0xd0   : > { %825 = vst [vmem:[%s1353_s10 + $0x98] sm:$0xff] %v793_v37  ;;  %v778_v41 = vmax.f32 %v746_v38, 0.0  ;;  %v673_v42 = vadd.f32 %v672_v40, %v583_v39  ;;  %v545_v43 = vpop.f32.mrf.mxu0 }
  0xd1   : > { %v634_v44 = vpop.f32.mrf.mxu1 }
  0xd2   : > { %810 = vst [vmem:[%s1353_s10 + $0x20] sm:$0xff] %v778_v41  ;;  %v726_v45 = vmul.f32 %v1339_v49, %v673_v42  ;;  %v635_v46 = vadd.f32 %v634_v44, %v545_v43 }
  0xd4   : > { %v762_v47 = vadd.f32 %v1344_v52, %v726_v45  ;;  %v711_v48 = vmul.f32 %v1339_v49, %v635_v46 }
  0xd6   : > { %v794_v50 = vmax.f32 %v762_v47, 0.0  ;;  %v747_v51 = vadd.f32 %v1344_v52, %v711_v48  ;;  %v585_v53 = vpop.f32.mrf.mxu2 }
  0xd7   : > { %v674_v54 = vpop.f32.mrf.mxu3 }
  0xd8   : > { %826 = vst [vmem:[%s1353_s10 + $0xa0] sm:$0xff] %v794_v50  ;;  %v779_v55 = vmax.f32 %v747_v51, 0.0  ;;  %v675_v56 = vadd.f32 %v674_v54, %v585_v53  ;;  %v548_v57 = vpop.f32.mrf.mxu0 }
  0xd9   : > { %v637_v58 = vpop.f32.mrf.mxu1 }
  0xda   : > { %811 = vst [vmem:[%s1353_s10 + $0x28] sm:$0xff] %v779_v55  ;;  %v727_v59 = vmul.f32 %v1339_v49, %v675_v56  ;;  %v638_v60 = vadd.f32 %v637_v58, %v548_v57 }
  0xdc   : > { %v763_v61 = vadd.f32 %v1344_v52, %v727_v59  ;;  %v712_v62 = vmul.f32 %v1339_v49, %v638_v60 }
  0xde   : > { %v795_v63 = vmax.f32 %v763_v61, 0.0  ;;  %v748_v0 = vadd.f32 %v1344_v52, %v712_v62  ;;  %v588_v1 = vpop.f32.mrf.mxu2 }
  0xdf   : > { %v677_v2 = vpop.f32.mrf.mxu3 }
  0xe0   : > { %827 = vst [vmem:[%s1353_s10 + $0xa8] sm:$0xff] %v795_v63  ;;  %v780_v3 = vmax.f32 %v748_v0, 0.0  ;;  %v678_v4 = vadd.f32 %v677_v2, %v588_v1  ;;  %v550_v5 = vpop.f32.mrf.mxu0 }
  0xe1   : > { %v639_v6 = vpop.f32.mrf.mxu1 }
  0xe2   : > { %812 = vst [vmem:[%s1353_s10 + $0x30] sm:$0xff] %v780_v3  ;;  %v728_v7 = vmul.f32 %v1339_v49, %v678_v4  ;;  %v640_v8 = vadd.f32 %v639_v6, %v550_v5 }
  0xe4   : > { %v764_v9 = vadd.f32 %v1344_v52, %v728_v7  ;;  %v713_v10 = vmul.f32 %v1339_v49, %v640_v8 }
  0xe6   : > { %v796_v11 = vmax.f32 %v764_v9, 0.0  ;;  %v749_v12 = vadd.f32 %v1344_v52, %v713_v10  ;;  %v590_v13 = vpop.f32.mrf.mxu2 }
  0xe7   : > { %v679_v14 = vpop.f32.mrf.mxu3 }
  0xe8   : > { %828 = vst [vmem:[%s1353_s10 + $0xb0] sm:$0xff] %v796_v11  ;;  %v781_v15 = vmax.f32 %v749_v12, 0.0  ;;  %v680_v16 = vadd.f32 %v679_v14, %v590_v13  ;;  %v553_v17 = vpop.f32.mrf.mxu0 }
  0xe9   : > { %v642_v18 = vpop.f32.mrf.mxu1 }
  0xea   : > { %813 = vst [vmem:[%s1353_s10 + $0x38] sm:$0xff] %v781_v15  ;;  %v729_v19 = vmul.f32 %v1339_v49, %v680_v16  ;;  %v643_v20 = vadd.f32 %v642_v18, %v553_v17 }
  0xec   : > { %v765_v21 = vadd.f32 %v1344_v52, %v729_v19  ;;  %v714_v22 = vmul.f32 %v1339_v49, %v643_v20 }
  0xee   : > { %v797_v23 = vmax.f32 %v765_v21, 0.0  ;;  %v750_v24 = vadd.f32 %v1344_v52, %v714_v22  ;;  %v593_v25 = vpop.f32.mrf.mxu2 }
  0xef   : > { %v682_v26 = vpop.f32.mrf.mxu3 }
  0xf0   : > { %829 = vst [vmem:[%s1353_s10 + $0xb8] sm:$0xff] %v797_v23  ;;  %v782_v27 = vmax.f32 %v750_v24, 0.0  ;;  %v683_v28 = vadd.f32 %v682_v26, %v593_v25  ;;  %v555_v29 = vpop.f32.mrf.mxu0 }
  0xf1   : > { %v644_v30 = vpop.f32.mrf.mxu1 }
  0xf2   : > { %814 = vst [vmem:[%s1353_s10 + $0x40] sm:$0xff] %v782_v27  ;;  %v730_v31 = vmul.f32 %v1339_v49, %v683_v28  ;;  %v645_v32 = vadd.f32 %v644_v30, %v555_v29 }
  0xf4   : > { %v766_v33 = vadd.f32 %v1344_v52, %v730_v31  ;;  %v715_v34 = vmul.f32 %v1339_v49, %v645_v32 }
  0xf6   : > { %v798_v35 = vmax.f32 %v766_v33, 0.0  ;;  %v751_v36 = vadd.f32 %v1344_v52, %v715_v34  ;;  %v595_v37 = vpop.f32.mrf.mxu2 }
  0xf7   : > { %v684_v38 = vpop.f32.mrf.mxu3 }
  0xf8   : > { %830 = vst [vmem:[%s1353_s10 + $0xc0] sm:$0xff] %v798_v35  ;;  %v783_v39 = vmax.f32 %v751_v36, 0.0  ;;  %v685_v40 = vadd.f32 %v684_v38, %v595_v37  ;;  %v558_v41 = vpop.f32.mrf.mxu0 }
  0xf9   : > { %v647_v42 = vpop.f32.mrf.mxu1 }
  0xfa   : > { %815 = vst [vmem:[%s1353_s10 + $0x48] sm:$0xff] %v783_v39  ;;  %v731_v43 = vmul.f32 %v1339_v49, %v685_v40  ;;  %v648_v44 = vadd.f32 %v647_v42, %v558_v41 }
  0xfc   : > { %v767_v45 = vadd.f32 %v1344_v52, %v731_v43  ;;  %v716_v46 = vmul.f32 %v1339_v49, %v648_v44 }
  0xfe   : > { %v799_v47 = vmax.f32 %v767_v45, 0.0  ;;  %v752_v48 = vadd.f32 %v1344_v52, %v716_v46  ;;  %v598_v50 = vpop.f32.mrf.mxu2 }
  0xff   : > { %v687_v51 = vpop.f32.mrf.mxu3 }
 0x100   : > { %831 = vst [vmem:[%s1353_s10 + $0xc8] sm:$0xff] %v799_v47  ;;  %v784_v53 = vmax.f32 %v752_v48, 0.0  ;;  %v688_v54 = vadd.f32 %v687_v51, %v598_v50  ;;  %v560_v55 = vpop.f32.mrf.mxu0 }
 0x101   : > { %v649_v56 = vpop.f32.mrf.mxu1 }
 0x102   : > { %816 = vst [vmem:[%s1353_s10 + $0x50] sm:$0xff] %v784_v53  ;;  %v732_v57 = vmul.f32 %v1339_v49, %v688_v54  ;;  %v650_v58 = vadd.f32 %v649_v56, %v560_v55 }
 0x104   : > { %v768_v59 = vadd.f32 %v1344_v52, %v732_v57  ;;  %v717_v60 = vmul.f32 %v1339_v49, %v650_v58 }
 0x106   : > { %v800_v61 = vmax.f32 %v768_v59, 0.0  ;;  %v753_v62 = vadd.f32 %v1344_v52, %v717_v60  ;;  %v600_v63 = vpop.f32.mrf.mxu2 }
 0x107   : > { %v689_v0 = vpop.f32.mrf.mxu3 }
 0x108   : > { %832 = vst [vmem:[%s1353_s10 + $0xd0] sm:$0xff] %v800_v61  ;;  %v785_v1 = vmax.f32 %v753_v62, 0.0  ;;  %v690_v2 = vadd.f32 %v689_v0, %v600_v63  ;;  %v563_v3 = vpop.f32.mrf.mxu0 }
 0x109   : > { %v652_v4 = vpop.f32.mrf.mxu1 }
 0x10a   : > { %817 = vst [vmem:[%s1353_s10 + $0x58] sm:$0xff] %v785_v1  ;;  %v733_v5 = vmul.f32 %v1339_v49, %v690_v2  ;;  %v653_v6 = vadd.f32 %v652_v4, %v563_v3 }
 0x10c   : > { %v769_v7 = vadd.f32 %v1344_v52, %v733_v5  ;;  %v718_v8 = vmul.f32 %v1339_v49, %v653_v6 }
 0x10e   : > { %v801_v9 = vmax.f32 %v769_v7, 0.0  ;;  %v754_v10 = vadd.f32 %v1344_v52, %v718_v8  ;;  %v603_v11 = vpop.f32.mrf.mxu2 }
 0x10f   : > { %v692_v12 = vpop.f32.mrf.mxu3 }
 0x110   : > { %833 = vst [vmem:[%s1353_s10 + $0xd8] sm:$0xff] %v801_v9  ;;  %v786_v13 = vmax.f32 %v754_v10, 0.0  ;;  %v693_v14 = vadd.f32 %v692_v12, %v603_v11  ;;  %v565_v15 = vpop.f32.mrf.mxu0 }
 0x111   : > { %v654_v16 = vpop.f32.mrf.mxu1 }
 0x112   : > { %818 = vst [vmem:[%s1353_s10 + $0x60] sm:$0xff] %v786_v13  ;;  %v734_v17 = vmul.f32 %v1339_v49, %v693_v14  ;;  %v655_v18 = vadd.f32 %v654_v16, %v565_v15 }
 0x114   : > { %v770_v19 = vadd.f32 %v1344_v52, %v734_v17  ;;  %v719_v20 = vmul.f32 %v1339_v49, %v655_v18 }
 0x116   : > { %v802_v21 = vmax.f32 %v770_v19, 0.0  ;;  %v755_v22 = vadd.f32 %v1344_v52, %v719_v20  ;;  %v605_v23 = vpop.f32.mrf.mxu2 }
 0x117   : > { %v694_v24 = vpop.f32.mrf.mxu3 }
 0x118   : > { %834 = vst [vmem:[%s1353_s10 + $0xe0] sm:$0xff] %v802_v21  ;;  %v787_v25 = vmax.f32 %v755_v22, 0.0  ;;  %v695_v26 = vadd.f32 %v694_v24, %v605_v23  ;;  %v568_v27 = vpop.f32.mrf.mxu0 }
 0x119   : > { %v657_v28 = vpop.f32.mrf.mxu1 }
 0x11a   : > { %819 = vst [vmem:[%s1353_s10 + $0x68] sm:$0xff] %v787_v25  ;;  %v735_v29 = vmul.f32 %v1339_v49, %v695_v26  ;;  %v658_v30 = vadd.f32 %v657_v28, %v568_v27 }
 0x11c   : > { %v771_v31 = vadd.f32 %v1344_v52, %v735_v29  ;;  %v720_v32 = vmul.f32 %v1339_v49, %v658_v30 }
 0x11e   : > { %v803_v33 = vmax.f32 %v771_v31, 0.0  ;;  %v756_v34 = vadd.f32 %v1344_v52, %v720_v32  ;;  %v608_v35 = vpop.f32.mrf.mxu2 }
 0x11f   : > { %v697_v36 = vpop.f32.mrf.mxu3 }
 0x120   : > { %835 = vst [vmem:[%s1353_s10 + $0xe8] sm:$0xff] %v803_v33  ;;  %v788_v37 = vmax.f32 %v756_v34, 0.0  ;;  %v698_v38 = vadd.f32 %v697_v36, %v608_v35  ;;  %v570_v39 = vpop.f32.mrf.mxu0 }
 0x121   : > { %v659_v40 = vpop.f32.mrf.mxu1 }
 0x122   : > { %820 = vst [vmem:[%s1353_s10 + $0x70] sm:$0xff] %v788_v37  ;;  %v736_v41 = vmul.f32 %v1339_v49, %v698_v38  ;;  %v660_v42 = vadd.f32 %v659_v40, %v570_v39 }
 0x124   : > { %v772_v43 = vadd.f32 %v1344_v52, %v736_v41  ;;  %v721_v44 = vmul.f32 %v1339_v49, %v660_v42 }
 0x126   : > { %v804_v45 = vmax.f32 %v772_v43, 0.0  ;;  %v757_v46 = vadd.f32 %v1344_v52, %v721_v44  ;;  %v610_v47 = vpop.f32.mrf.mxu2 }
 0x127   : > { %v699_v48 = vpop.f32.mrf.mxu3 }
 0x128   : > { %836 = vst [vmem:[%s1353_s10 + $0xf0] sm:$0xff] %v804_v45  ;;  %v789_v50 = vmax.f32 %v757_v46, 0.0  ;;  %v700_v51 = vadd.f32 %v699_v48, %v610_v47 }
 0x12a   : > { %821 = vst [vmem:[%s1353_s10 + $0x78] sm:$0xff] %v789_v50  ;;  %v737_v53 = vmul.f32 %v1339_v49, %v700_v51 }
 0x12c   : > { %v773_v54 = vadd.f32 %v1344_v52, %v737_v53 }
 0x12e   : > { %v805_v55 = vmax.f32 %v773_v54, 0.0 }
 0x130   : > { %837 = vst [vmem:[%s1353_s10 + $0xf8] sm:$0xff] %v805_v55 }
 0x131 PF: > { %s14_s15 = sadd.s32 1, %s1179_s15  }
 0x132   : > { %p11_p4 = scmp.ge.s32.totalorder %s14_s15, 4  }
 0x134   :  { %13 = sbr.rel (!%p11_p4) target bundleno = 1 (0x1), region = 66 }

// kernel: densenet_forward.26
= control target key start
LH: loop header
LB: loop body
LE: loop exit
PB: predicated region body
PF: predicated region fallthrough
CT: control target
= control target key end

     0   :  { %s520_s15 = smov 0   ;;  %s574_s0 = inlined_call_operand.vmem [shape: f32[128,128], index: 0, kind: input, shape index: {}]   ;;  %s575_s1 = inlined_call_operand.vmem [shape: f32[1,128], index: 1, kind: input, shape index: {}]   ;;  %s576_s2 = inlined_call_operand.vmem [shape: f32[1,128], index: 2, kind: input, shape index: {}]   ;;  %s577_s3 = inlined_call_operand.vmem [shape: bf16[128,128], index: 3, kind: input, shape index: {}]   ;;  %s578_s4 = inlined_call_operand.vmem [shape: f32[128,128], index: 4, kind: output, shape index: {}]  }
   0x1 LB: > { %s402_s16 = sadd.s32 4294967295, %s493_s15   ;;  %p406_p0 = scmp.ge.s32.totalorder %s493_s15, 1  ;;  %s493_s15 = sphi %s520_s15, %s14_s15  }
   0x2   : > { %p163_p1 = scmp.lt.s32.totalorder %s493_s15, 3 }
   0x4   : > { %p164_p2 = pnand %p406_p0, %p163_p1 }
   0x5   : > { %s407_s19 = sshll.u32 (!%p164_p2), %s402_s16, 3 }
   0x6   : > { %167 = sbr.rel (%p164_p2) target bundleno = 186 (0xba), region = 36  ;;  %p190_p3 = scmp.lt.s32.totalorder (!%p164_p2), %s407_s19, 15 }
   0xb   : > { %v452_v0 = vld [vmem:[%s577_s3 + $0x38] sm:$0xff]  ;;  %v451_v1 = vld [vmem:[%s577_s3 + $0x30] sm:$0xff]  ;;  %s580_s19 = smov (!%p190_p3, %s407_s19), 15  ;;  %v450_v2 = vld [vmem:[%s577_s3 + $0x28] sm:$0xff] }
   0xc   : > { %309 = vmatpush.bf16.msra.mxu0 %v452_v0  ;;  %453 = vmatpush.bf16.msra.mxu1 %v452_v0  ;;  %s408_s24 = sshll.u32 %s580_s19, 3  ;;  %v449_v3 = vld [vmem:[%s577_s3 + $0x20] sm:$0xff]  ;;  %v448_v5 = vld [vmem:[%s577_s3 + $0x18] sm:$0xff]  ;;  %v447_v20 = vld [vmem:[%s577_s3 + $0x10] sm:$0xff] }
   0xd   : > { %454 = vmatpush.bf16.msra.mxu2 %v452_v0  ;;  %455 = vmatpush.bf16.msra.mxu3 %v452_v0  ;;  %s193_s29 = scalar_lea.vmem %s574_s0, %s408_s24  ;;  %v485_v4 = vld [vmem:[%s575_s1] ss:$0 sm:$0xff]  ;;  %v446_v29 = vld [vmem:[%s577_s3 + $0x8] sm:$0xff]  ;;  %s199_s20 = scalar_lea.vmem %s578_s4, %s408_s24 }
   0xe   : > { %v201_v6 = vld [vmem:[%s193_s29] sm:$0xff]  ;;  %v202_v7 = vld [vmem:[%s193_s29 + $0x8] sm:$0xff]  ;;  %v203_v8 = vld [vmem:[%s193_s29 + $0x10] sm:$0xff] }
   0xf   : > { %v204_v9 = vld [vmem:[%s193_s29 + $0x18] sm:$0xff]  ;;  %v205_v10 = vld [vmem:[%s193_s29 + $0x20] sm:$0xff]  ;;  %v206_v11 = vld [vmem:[%s193_s29 + $0x28] sm:$0xff]  ;;  %v213_v14 = vmul.f32 %v485_v4, %v201_v6  ;;  %v214_v16 = vmul.f32 %v485_v4, %v202_v7  ;;  %v215_v17 = vmul.f32 %v485_v4, %v203_v8 }
  0x10   : > { %310 = vmatpush.bf16.msra.mxu0 %v451_v1  ;;  %456 = vmatpush.bf16.msra.mxu1 %v451_v1  ;;  %v207_v12 = vld [vmem:[%s193_s29 + $0x30] sm:$0xff]  ;;  %v208_v13 = vld [vmem:[%s193_s29 + $0x38] sm:$0xff]  ;;  %v486_v15 = vld [vmem:[%s576_s2] ss:$0 sm:$0xff]  ;;  %v216_v18 = vmul.f32 %v485_v4, %v204_v9  ;;  %v217_v19 = vmul.f32 %v485_v4, %v205_v10  ;;  %v218_v21 = vmul.f32 %v485_v4, %v206_v11 }
  0x11   : > { %457 = vmatpush.bf16.msra.mxu2 %v451_v1  ;;  %458 = vmatpush.bf16.msra.mxu3 %v451_v1  ;;  %v219_v22 = vmul.f32 %v485_v4, %v207_v12  ;;  %v220_v23 = vmul.f32 %v485_v4, %v208_v13  ;;  %v225_v24 = vadd.f32 %v486_v15, %v213_v14  ;;  %v445_v37 = vld [vmem:[%s577_s3] sm:$0xff] }
  0x12   : > { %v226_v25 = vadd.f32 %v486_v15, %v214_v16  ;;  %v227_v26 = vadd.f32 %v486_v15, %v215_v17  ;;  %v228_v27 = vadd.f32 %v486_v15, %v216_v18  ;;  %v229_v28 = vadd.f32 %v486_v15, %v217_v19 }
  0x13   : > { %v230_v30 = vadd.f32 %v486_v15, %v218_v21  ;;  %v231_v31 = vadd.f32 %v486_v15, %v219_v22  ;;  %v232_v32 = vadd.f32 %v486_v15, %v220_v23  ;;  %v233_v33 = vmax.f32 %v225_v24, 0.0 }
  0x14   : > { %311 = vmatpush.bf16.msra.mxu0 %v450_v2  ;;  %459 = vmatpush.bf16.msra.mxu1 %v450_v2  ;;  %v234_v34 = vmax.f32 %v226_v25, 0.0  ;;  %v235_v35 = vmax.f32 %v227_v26, 0.0  ;;  %v236_v36 = vmax.f32 %v228_v27, 0.0  ;;  %v237_v38 = vmax.f32 %v229_v28, 0.0 }
  0x15   : > { %460 = vmatpush.bf16.msra.mxu2 %v450_v2  ;;  %461 = vmatpush.bf16.msra.mxu3 %v450_v2  ;;  %v238_v39 = vmax.f32 %v230_v30, 0.0  ;;  %v239_v40 = vmax.f32 %v231_v31, 0.0  ;;  %v240_v41 = vmax.f32 %v232_v32, 0.0 }
  0x16   : > { %v241_v42 = vpack.c.bf16 %v234_v34, %v233_v33  ;;  %v242_v43 = vpack.c.bf16 %v236_v36, %v235_v35 }
  0x17   : > { %v243_v44 = vpack.c.bf16 %v238_v39, %v237_v38  ;;  %v244_v45 = vpack.c.bf16 %v240_v41, %v239_v40 }
  0x18   : > { %312 = vmatpush.bf16.msra.mxu0 %v449_v3  ;;  %462 = vmatpush.bf16.msra.mxu1 %v449_v3 }
  0x19   : > { %463 = vmatpush.bf16.msra.mxu2 %v449_v3  ;;  %464 = vmatpush.bf16.msra.mxu3 %v449_v3 }
  0x1c   : > { %313 = vmatpush.bf16.msra.mxu0 %v448_v5  ;;  %465 = vmatpush.bf16.msra.mxu1 %v448_v5 }
  0x1d   : > { %466 = vmatpush.bf16.msra.mxu2 %v448_v5  ;;  %467 = vmatpush.bf16.msra.mxu3 %v448_v5 }
  0x20   : > { %314 = vmatpush.bf16.msra.mxu0 %v447_v20  ;;  %468 = vmatpush.bf16.msra.mxu1 %v447_v20 }
  0x21   : > { %469 = vmatpush.bf16.msra.mxu2 %v447_v20  ;;  %470 = vmatpush.bf16.msra.mxu3 %v447_v20 }
  0x24   : > { %315 = vmatpush.bf16.msra.mxu0 %v446_v29  ;;  %471 = vmatpush.bf16.msra.mxu1 %v446_v29 }
  0x25   : > { %472 = vmatpush.bf16.msra.mxu2 %v446_v29  ;;  %473 = vmatpush.bf16.msra.mxu3 %v446_v29 }
  0x28   : > { %316 = vmatpush.bf16.msra.mxu0 %v445_v37  ;;  %474 = vmatpush.bf16.msra.mxu1 %v445_v37 }
  0x29   : > { %475 = vmatpush.bf16.msra.mxu2 %v445_v37  ;;  %476 = vmatpush.bf16.msra.mxu3 %v445_v37 }
  0x2b   : > { %317 = vmatmul.bf16.vlgmr.msra.gmra.mxu0 %v241_v42  ;;  %322 = vmatmul.bf16.vlgmr.msra.gmra.mxu1 %v242_v43 }
  0x2c   : > { %327 = vmatmul.bf16.vlgmr.msra.gmra.mxu2 %v243_v44  ;;  %332 = vmatmul.bf16.vlgmr.msra.gmra.mxu3 %v244_v45 }
  0xa8   : > { %v318_v46 = vpop.f32.mrf.mxu0  ;;  %v323_v47 = vpop.f32.mrf.mxu1 }
  0xa9   : > { %338 = vst [vmem:[%s199_s20] sm:$0xff] %v318_v46 }
  0xaa   : > { %340 = vst [vmem:[%s199_s20 + $0x10] sm:$0xff] %v323_v47 }
  0xaf   : > { %v328_v48 = vpop.f32.mrf.mxu2  ;;  %v333_v49 = vpop.f32.mrf.mxu3 }
  0xb0   : > { %342 = vst [vmem:[%s199_s20 + $0x20] sm:$0xff] %v328_v48  ;;  %v320_v50 = vpop.f32.mrf.mxu0  ;;  %v325_v51 = vpop.f32.mrf.mxu1 }
  0xb1   : > { %344 = vst [vmem:[%s199_s20 + $0x30] sm:$0xff] %v333_v49 }
  0xb2   : > { %339 = vst [vmem:[%s199_s20 + $0x8] sm:$0xff] %v320_v50 }
  0xb3   : > { %341 = vst [vmem:[%s199_s20 + $0x18] sm:$0xff] %v325_v51 }
  0xb7   : > { %v330_v52 = vpop.f32.mrf.mxu2  ;;  %v335_v53 = vpop.f32.mrf.mxu3 }
  0xb8   : > { %343 = vst [vmem:[%s199_s20 + $0x28] sm:$0xff] %v330_v52 }
  0xb9   : > { %345 = vst [vmem:[%s199_s20 + $0x38] sm:$0xff] %v335_v53 }
  0xba PF: > { %s14_s15 = sadd.s32 1, %s493_s15  }
  0xbb   : > { %p11_p4 = scmp.ge.s32.totalorder %s14_s15, 4  }
  0xbd   :  { %13 = sbr.rel (!%p11_p4) target bundleno = 1 (0x1), region = 66 }

// kernel: densenet_forward.27
= control target key start
LH: loop header
LB: loop body
LE: loop exit
PB: predicated region body
PF: predicated region fallthrough
CT: control target
= control target key end

     0   :  { %s528_s21 = smov 0   ;;  %s588_s0 = inlined_call_operand.vmem [shape: f32[32,128], index: 0, kind: input, shape index: {}]   ;;  %s589_s1 = inlined_call_operand.vmem [shape: f32[1,128], index: 1, kind: input, shape index: {}]   ;;  %s590_s2 = inlined_call_operand.vmem [shape: f32[1,128], index: 2, kind: input, shape index: {}]   ;;  %s591_s3 = inlined_call_operand.vmem [shape: bf16[128,128], index: 3, kind: input, shape index: {}]   ;;  %s592_s4 = inlined_call_operand.vmem [shape: f32[1,128], index: 4, kind: input, shape index: {}]   ;;  %s593_s5 = inlined_call_operand.vmem [shape: f32[1,128], index: 5, kind: input, shape index: {}]   ;;  %s594_s6 = inlined_call_operand.vmem [shape: f32[32,128], index: 6, kind: output, shape index: {}]  }
   0x1 LB: > { %s422_s22 = sadd.s32 4294967295, %s491_s21   ;;  %p426_p0 = scmp.ge.s32.totalorder %s491_s21, 1  ;;  %s491_s21 = sphi %s528_s21, %s16_s21  }
   0x2   : > { %p213_p1 = scmp.lt.s32.totalorder %s491_s21, 3 }
   0x4   : > { %p214_p2 = pnand %p426_p0, %p213_p1 }
   0x5   : > { %s427_s25 = sshll.u32 (!%p214_p2), %s422_s22, 1 }
   0x6   : > { %217 = sbr.rel (%p214_p2) target bundleno = 184 (0xb8), region = 44  ;;  %p244_p3 = scmp.lt.s32.totalorder (!%p214_p2), %s427_s25, 3 }
   0xb   : > { %v472_v0 = vld [vmem:[%s591_s3 + $0x38] sm:$0xff]  ;;  %v471_v1 = vld [vmem:[%s591_s3 + $0x30] sm:$0xff]  ;;  %s596_s25 = smov (!%p244_p3, %s427_s25), 3  ;;  %v470_v2 = vld [vmem:[%s591_s3 + $0x28] sm:$0xff] }
   0xc   : > { %336 = vmatpush.bf16.msra.mxu0 %v472_v0  ;;  %s428_s30 = sshll.u32 %s596_s25, 3  ;;  %v469_v3 = vld [vmem:[%s591_s3 + $0x20] sm:$0xff]  ;;  %v468_v5 = vld [vmem:[%s591_s3 + $0x18] sm:$0xff]  ;;  %v467_v11 = vld [vmem:[%s591_s3 + $0x10] sm:$0xff] }
   0xd   : > { %s247_s11 = scalar_lea.vmem %s588_s0, %s428_s30  ;;  %v481_v4 = vld [vmem:[%s589_s1] ss:$0 sm:$0xff]  ;;  %v466_v14 = vld [vmem:[%s591_s3 + $0x8] sm:$0xff]  ;;  %s253_s9 = scalar_lea.vmem %s594_s6, %s428_s30 }
   0xe   : > { %v255_v6 = vld [vmem:[%s247_s11] sm:$0xff]  ;;  %v256_v7 = vld [vmem:[%s247_s11 + $0x8] sm:$0xff] }
   0xf   : > { %v261_v8 = vmul.f32 %v481_v4, %v255_v6  ;;  %v262_v9 = vmul.f32 %v481_v4, %v256_v7  ;;  %v482_v10 = vld [vmem:[%s590_s2] ss:$0 sm:$0xff] }
  0x10   : > { %337 = vmatpush.bf16.msra.mxu0 %v471_v1  ;;  %v465_v17 = vld [vmem:[%s591_s3] sm:$0xff] }
  0x11   : > { %v267_v12 = vadd.f32 %v482_v10, %v261_v8  ;;  %v268_v13 = vadd.f32 %v482_v10, %v262_v9  ;;  %v483_v19 = vld [vmem:[%s592_s4] ss:$0 sm:$0xff] }
  0x12   : > { %v484_v20 = vld [vmem:[%s593_s5] ss:$0 sm:$0xff] }
  0x13   : > { %v269_v15 = vmax.f32 %v267_v12, 0.0  ;;  %v270_v16 = vmax.f32 %v268_v13, 0.0 }
  0x14   : > { %338 = vmatpush.bf16.msra.mxu0 %v470_v2 }
  0x15   : > { %v271_v18 = vpack.c.bf16 %v270_v16, %v269_v15 }
  0x18   : > { %339 = vmatpush.bf16.msra.mxu0 %v469_v3 }
  0x1c   : > { %340 = vmatpush.bf16.msra.mxu0 %v468_v5 }
  0x20   : > { %341 = vmatpush.bf16.msra.mxu0 %v467_v11 }
  0x24   : > { %342 = vmatpush.bf16.msra.mxu0 %v466_v14 }
  0x28   : > { %343 = vmatpush.bf16.msra.mxu0 %v465_v17 }
  0x2b   : > { %344 = vmatmul.bf16.vlgmr.msra.gmra.mxu0 %v271_v18 }
  0xa8   : > { %v345_v21 = vpop.f32.mrf.mxu0 }
  0xa9   : > { %v354_v22 = vmul.f32 %v483_v19, %v345_v21 }
  0xab   : > { %v360_v23 = vadd.f32 %v484_v20, %v354_v22 }
  0xad   : > { %v362_v24 = vmax.f32 %v360_v23, 0.0 }
  0xaf   : > { %364 = vst [vmem:[%s253_s9] sm:$0xff] %v362_v24 }
  0xb0   : > { %v347_v25 = vpop.f32.mrf.mxu0 }
  0xb1   : > { %v355_v26 = vmul.f32 %v483_v19, %v347_v25 }
  0xb3   : > { %v361_v27 = vadd.f32 %v484_v20, %v355_v26 }
  0xb5   : > { %v363_v28 = vmax.f32 %v361_v27, 0.0 }
  0xb7   : > { %365 = vst [vmem:[%s253_s9 + $0x8] sm:$0xff] %v363_v28 }
  0xb8 PF: > { %s16_s21 = sadd.s32 1, %s491_s21  }
  0xb9   : > { %p13_p4 = scmp.ge.s32.totalorder %s16_s21, 4  }
  0xbb   :  { %15 = sbr.rel (!%p13_p4) target bundleno = 1 (0x1), region = 74 }

// kernel: densenet_forward.23
= control target key start
LH: loop header
LB: loop body
LE: loop exit
PB: predicated region body
PF: predicated region fallthrough
CT: control target
= control target key end

     0   :  { %s1833_s12 = smov 0   ;;  %s2275_s0 = inlined_call_operand.vmem [shape: f32[128,128], index: 0, kind: input, shape index: {}]   ;;  %s2276_s1 = inlined_call_operand.vmem [shape: f32[128,128], index: 1, kind: input, shape index: {}]   ;;  %s2277_s2 = inlined_call_operand.vmem [shape: bf16[1152,128], index: 2, kind: input, shape index: {}]   ;;  %s2278_s3 = inlined_call_operand.vmem [shape: f32[128,128], index: 3, kind: output, shape index: {}]  }
   0x1 LB: > { %s1406_s13 = sadd.s32 4294967295, %s1810_s12   ;;  %p1410_p0 = scmp.ge.s32.totalorder %s1810_s12, 1  ;;  %s1810_s12 = sphi %s1833_s12, %s13_s12  }
   0x2   : > { %p149_p1 = scmp.lt.s32.totalorder %s1810_s12, 3 }
   0x4   : > { %p150_p2 = pnand %p1410_p0, %p149_p1 }
   0x5   : > { %s1411_s16 = sshll.u32 (!%p150_p2), %s1406_s13, 3 }
   0x6   : > { %153 = sbr.rel (%p150_p2) target bundleno = 332 (0x14c), region = 32  ;;  %p179_p3 = scmp.lt.s32.totalorder (!%p150_p2), %s1411_s16, 15 }
   0xb   : > { %v1714_v0 = vld [vmem:[%s2277_s2 + $0x38] sm:$0xff]  ;;  %v1812_v2 = vmov 0.0   ;;  %v1713_v3 = vld [vmem:[%s2277_s2 + $0x30] sm:$0xff]  ;;  %s2280_s16 = smov (!%p179_p3, %s1411_s16), 15  ;;  %v1712_v7 = vld [vmem:[%s2277_s2 + $0x28] sm:$0xff] }
   0xc   : > { %v1730_v1 = vld [vmem:[%s2277_s2 + $0xb8] sm:$0xff]  ;;  %201 = vst [vmem:[#allocation2 + $0x28] sm:$0xff] %v1812_v2  ;;  %1779 = vmatpush.bf16.msra.mxu1 %v1714_v0  ;;  %1053 = vmatpush.bf16.msra.mxu0 %v1714_v0  ;;  %v1729_v4 = vld [vmem:[%s2277_s2 + $0xb0] sm:$0xff]  ;;  %s1863_s27 = sshll.u32 %s2280_s16, 3  ;;  %v1728_v8 = vld [vmem:[%s2277_s2 + $0xa8] sm:$0xff] }
   0xd   : > { %202 = vst [vmem:[#allocation2 + $0x30] sm:$0xff] %v1812_v2  ;;  %1111 = vmatpush.bf16.msra.mxu2 %v1730_v1  ;;  %v1738_v5 = vld [vmem:[%s2277_s2 + $0xf8] sm:$0xff]  ;;  %v1737_v6 = vld [vmem:[%s2277_s2 + $0xf0] sm:$0xff]  ;;  %s1873_s5 = scalar_lea.vmem %s2275_s0, %s1863_s27  ;;  %v1736_v11 = vld [vmem:[%s2277_s2 + $0xe8] sm:$0xff]  ;;  %s2233_s17 = scalar_lea.vmem %s2276_s1, %s1863_s27 }
   0xe   : > { %203 = vst [vmem:[#allocation2 + $0x38] sm:$0xff] %v1812_v2  ;;  %1140 = vmatpush.bf16.msra.mxu3 %v1738_v5  ;;  %v1880_v9 = vld [vmem:[%s1873_s5 + $0x18] sm:$0xff]  ;;  %v1883_v10 = vld [vmem:[%s1873_s5 + $0x20] sm:$0xff]  ;;  %v1912_v17 = vld [vmem:[%s1873_s5 + $0x28] sm:$0xff]  ;;  %s2240_s20 = scalar_lea.vmem %s2278_s3, %s1863_s27 }
   0xf   : > { %196 = vst [vmem:[#allocation2] sm:$0xff] %v1812_v2  ;;  %v1711_v12 = vld [vmem:[%s2277_s2 + $0x20] sm:$0xff]  ;;  %v1710_v16 = vld [vmem:[%s2277_s2 + $0x18] sm:$0xff]  ;;  %v1919_v19 = vld [vmem:[%s1873_s5 + $0x30] sm:$0xff] }
  0x10   : > { %197 = vst [vmem:[#allocation2 + $0x8] sm:$0xff] %v1812_v2  ;;  %1780 = vmatpush.bf16.msra.mxu1 %v1713_v3  ;;  %1054 = vmatpush.bf16.msra.mxu0 %v1713_v3  ;;  %v1727_v13 = vld [vmem:[%s2277_s2 + $0xa0] sm:$0xff]  ;;  %v1726_v18 = vld [vmem:[%s2277_s2 + $0x98] sm:$0xff]  ;;  %v1923_v20 = vld [vmem:[%s1873_s5 + $0x8] sm:$0xff] }
  0x11   : > { %198 = vst [vmem:[#allocation2 + $0x10] sm:$0xff] %v1812_v2  ;;  %1112 = vmatpush.bf16.msra.mxu2 %v1729_v4  ;;  %v1735_v14 = vld [vmem:[%s2277_s2 + $0xe0] sm:$0xff]  ;;  %v1734_v21 = vld [vmem:[%s2277_s2 + $0xd8] sm:$0xff]  ;;  %v1930_v22 = vld [vmem:[%s1873_s5 + $0x10] sm:$0xff] }
  0x12   : > { %199 = vst [vmem:[#allocation2 + $0x18] sm:$0xff] %v1812_v2  ;;  %1141 = vmatpush.bf16.msra.mxu3 %v1737_v6  ;;  %v1905_v15 = vld [vmem:[%s1873_s5] sm:$0xff]  ;;  %v1709_v23 = vld [vmem:[%s2277_s2 + $0x10] sm:$0xff]  ;;  %v1708_v26 = vld [vmem:[%s2277_s2 + $0x8] sm:$0xff] }
  0x13   : > { %216 = vst [vmem:[#allocation2 + $0x29] sm:$0xff] %v1880_v9  ;;  %v1725_v24 = vld [vmem:[%s2277_s2 + $0x90] sm:$0xff]  ;;  %v1724_v27 = vld [vmem:[%s2277_s2 + $0x88] sm:$0xff]  ;;  %v1707_v28 = vld [vmem:[%s2277_s2] sm:$0xff] }
  0x14   : > { %218 = vst [vmem:[#allocation2 + $0x33] sm:$0xff] %v1883_v10  ;;  %1781 = vmatpush.bf16.msra.mxu1 %v1712_v7  ;;  %1055 = vmatpush.bf16.msra.mxu0 %v1712_v7  ;;  %v1733_v25 = vld [vmem:[%s2277_s2 + $0xd0] sm:$0xff]  ;;  %v1722_v29 = vld [vmem:[%s2277_s2 + $0x78] sm:$0xff]  ;;  %v1732_v30 = vld [vmem:[%s2277_s2 + $0xc8] sm:$0xff] }
  0x15   : > { %200 = vst [vmem:[#allocation2 + $0x20] sm:$0xff] %v1812_v2  ;;  %1113 = vmatpush.bf16.msra.mxu2 %v1728_v8  ;;  %v1723_v34 = vld [vmem:[%s2277_s2 + $0x80] sm:$0xff]  ;;  %v1746_v37 = vld [vmem:[%s2277_s2 + $0x138] sm:$0xff]  ;;  %v1721_v44 = vld [vmem:[%s2277_s2 + $0x70] sm:$0xff]  ;;  %v2062_v8 = vpack.c.bf16 %v1883_v10, %v1880_v9 }
  0x16   : > { %204 = vst [vmem:[#allocation2 + $0x40] sm:$0xff] %v1812_v2  ;;  %1142 = vmatpush.bf16.msra.mxu3 %v1736_v11  ;;  %v1762_v38 = vld [vmem:[%s2277_s2 + $0x1b8] sm:$0xff]  ;;  %v1731_v42 = vld [vmem:[%s2277_s2 + $0xc0] sm:$0xff]  ;;  %v1745_v46 = vld [vmem:[%s2277_s2 + $0x130] sm:$0xff] }
  0x17   : > { %205 = vst [vmem:[#allocation2 + $0x48] sm:$0xff] %v1812_v2  ;;  %v257_v35 = vld [vmem:[#allocation2 + $0x2] sm:$0xff]  ;;  %v1770_v45 = vld [vmem:[%s2277_s2 + $0x1f8] sm:$0xff]  ;;  %v1761_v47 = vld [vmem:[%s2277_s2 + $0x1b0] sm:$0xff] }
  0x18   : > { %206 = vst [vmem:[#allocation2 + $0x50] sm:$0xff] %v1812_v2  ;;  %1782 = vmatpush.bf16.msra.mxu1 %v1711_v12  ;;  %1056 = vmatpush.bf16.msra.mxu0 %v1711_v12  ;;  %v1720_v49 = vld [vmem:[%s2277_s2 + $0x68] sm:$0xff]  ;;  %v1769_v50 = vld [vmem:[%s2277_s2 + $0x1f0] sm:$0xff]  ;;  %v1719_v53 = vld [vmem:[%s2277_s2 + $0x60] sm:$0xff] }
  0x19   : > { %207 = vst [vmem:[#allocation2 + $0x58] sm:$0xff] %v1812_v2  ;;  %1114 = vmatpush.bf16.msra.mxu2 %v1727_v13  ;;  %v1744_v51 = vld [vmem:[%s2277_s2 + $0x128] sm:$0xff]  ;;  %v1743_v55 = vld [vmem:[%s2277_s2 + $0x120] sm:$0xff]  ;;  %v1718_v60 = vld [vmem:[%s2277_s2 + $0x58] sm:$0xff] }
  0x1a   : > { %208 = vst [vmem:[#allocation2 + $0x60] sm:$0xf] %v1812_v2  ;;  %1143 = vmatpush.bf16.msra.mxu3 %v1735_v14  ;;  %v1959_v31 = vld [vmem:[#allocation2 + $0x28] sm:$0xff]  ;;  %v1759_v56 = vld [vmem:[%s2277_s2 + $0x1a0] sm:$0xff]  ;;  %v1742_v63 = vld [vmem:[%s2277_s2 + $0x118] sm:$0xff] }
  0x1b   : > { %210 = vst [vmem:[#allocation2 + $0xb] sm:$0xff] %v1905_v15  ;;  %v1961_v32 = vld [vmem:[#allocation2 + $0x32] sm:$0xff]  ;;  %v1760_v52 = vld [vmem:[%s2277_s2 + $0x1a8] sm:$0xff]  ;;  %v1767_v7 = vld [vmem:[%s2277_s2 + $0x1e0] sm:$0xff] }
  0x1c   : > { %220 = vst [vmem:[#allocation2 + $0x3d] sm:$0xff] %v1912_v17  ;;  %1783 = vmatpush.bf16.msra.mxu1 %v1710_v16  ;;  %1057 = vmatpush.bf16.msra.mxu0 %v1710_v16  ;;  %v1976_v39 = vpack.c.bf16 %v1961_v32, %v1959_v31  ;;  %v1768_v54 = vld [vmem:[%s2277_s2 + $0x1e8] sm:$0xff]  ;;  %v1717_v3 = vld [vmem:[%s2277_s2 + $0x50] sm:$0xff]  ;;  %v1758_v6 = vld [vmem:[%s2277_s2 + $0x198] sm:$0xff] }
  0x1d   : > { %222 = vst [vmem:[#allocation2 + $0x47] sm:$0xff] %v1919_v19  ;;  %1115 = vmatpush.bf16.msra.mxu2 %v1726_v18  ;;  %v1741_v4 = vld [vmem:[%s2277_s2 + $0x110] sm:$0xff]  ;;  %v1716_v11 = vld [vmem:[%s2277_s2 + $0x48] sm:$0xff]  ;;  %v1766_v14 = vld [vmem:[%s2277_s2 + $0x1d8] sm:$0xff] }
  0x1e   : > { %212 = vst [vmem:[#allocation2 + $0x15] sm:$0xff] %v1923_v20  ;;  %1144 = vmatpush.bf16.msra.mxu3 %v1734_v21  ;;  %v1757_v12 = vld [vmem:[%s2277_s2 + $0x190] sm:$0xff]  ;;  %v1740_v13 = vld [vmem:[%s2277_s2 + $0x108] sm:$0xff]  ;;  %v1715_v16 = vld [vmem:[%s2277_s2 + $0x40] sm:$0xff] }
  0x1f   : > { %214 = vst [vmem:[#allocation2 + $0x1f] sm:$0xff] %v1930_v22  ;;  %v1754_v18 = vld [vmem:[%s2277_s2 + $0x178] sm:$0xff]  ;;  %v1739_v21 = vld [vmem:[%s2277_s2 + $0x100] sm:$0xff] }
  0x20   : > { %1784 = vmatpush.bf16.msra.mxu1 %v1709_v23  ;;  %1058 = vmatpush.bf16.msra.mxu0 %v1709_v23  ;;  %v1778_v23 = vld [vmem:[%s2277_s2 + $0x238] sm:$0xff] }
  0x21   : > { %1116 = vmatpush.bf16.msra.mxu2 %v1725_v24  ;;  %v241_v24 = vld [vmem:[#allocation2 + $0x1] sm:$0xff] }
  0x22   : > { %1145 = vmatpush.bf16.msra.mxu3 %v1733_v25  ;;  %v227_v33 = vld [vmem:[#allocation2 + $0xa] sm:$0xff] }
  0x23   : > { %v1966_v36 = vld [vmem:[#allocation2 + $0xc] sm:$0xff]  ;;  %v441_v40 = vpack.c.bf16 %v227_v33, %v1812_v2  ;;  %v2020_v57 = vld [vmem:[#allocation2 + $0x3c] sm:$0xff] }
  0x24   : > { %1785 = vmatpush.bf16.msra.mxu1 %v1708_v26  ;;  %1059 = vmatpush.bf16.msra.mxu0 %v1708_v26  ;;  %v443_v41 = vpack.c.bf16 %v1966_v36, %v257_v35  ;;  %v2022_v58 = vld [vmem:[#allocation2 + $0x46] sm:$0xff]  ;;  %v2090_v26 = vld [vmem:[#allocation2 + $0x34] sm:$0xff]  ;;  %v462_v35 = vpack.c.bf16 %v2020_v57, %v1961_v32 }
  0x25   : > { %1117 = vmatpush.bf16.msra.mxu2 %v1724_v27  ;;  %v229_v43 = vld [vmem:[#allocation2 + $0x14] sm:$0xff]  ;;  %v2036_v0 = vpack.c.bf16 %v2022_v58, %v2020_v57  ;;  %v2088_v25 = vld [vmem:[#allocation2 + $0x2a] sm:$0xff] }
  0x26   : > { %1146 = vmatpush.bf16.msra.mxu3 %v1732_v30  ;;  %v444_v48 = vpack.c.bf16 %v229_v43, %v227_v33  ;;  %v231_v59 = vld [vmem:[#allocation2 + $0x1e] sm:$0xff]  ;;  %v2027_v61 = vld [vmem:[#allocation2 + $0x16] sm:$0xff]  ;;  %v445_v30 = vpack.c.bf16 %v1923_v20, %v1905_v15  ;;  %v1764_v32 = vld [vmem:[%s2277_s2 + $0x1c8] sm:$0xff] }
  0x27   : > { %v2029_v62 = vld [vmem:[#allocation2 + $0x20] sm:$0xff]  ;;  %v2038_v1 = vpack.c.bf16 %v231_v59, %v229_v43  ;;  %v453_v5 = vpack.c.bf16 %v1959_v31, %v231_v59  ;;  %v1753_v27 = vld [vmem:[%s2277_s2 + $0x170] sm:$0xff]  ;;  %v2104_v31 = vpack.c.bf16 %v2090_v26, %v2088_v25  ;;  %v1750_v43 = vld [vmem:[%s2277_s2 + $0x158] sm:$0xff] }
  0x28   : > { %1786 = vmatpush.bf16.msra.mxu1 %v1707_v28  ;;  %1060 = vmatpush.bf16.msra.mxu0 %v1707_v28  ;;  %v2042_v2 = vpack.c.bf16 %v2029_v62, %v2027_v61  ;;  %v2096_v28 = vld [vmem:[%s1873_s5 + $0x38] sm:$0xff]  ;;  %v1777_v33 = vld [vmem:[%s2277_s2 + $0x230] sm:$0xff] }
  0x29   : > { %1118 = vmatpush.bf16.msra.mxu2 %v1723_v34  ;;  %224 = vst [vmem:[#allocation2 + $0x51] sm:$0xff] %v2096_v28  ;;  %v1752_v34 = vld [vmem:[%s2277_s2 + $0x168] sm:$0xff]  ;;  %v335_v57 = vld [vmem:[#allocation2 + $0x5a] sm:$0xff] }
  0x2a   : > { %1147 = vmatpush.bf16.msra.mxu3 %v1731_v42  ;;  %v1751_v42 = vld [vmem:[%s2277_s2 + $0x160] sm:$0xff] }
  0x2b   : > { %1071 = vmatmul.bf16.vlgmr.msra.gmra.mxu1 %v1976_v39  ;;  %1061 = vmatmul.bf16.vlgmr.msra.gmra.mxu0 %v441_v40  ;;  %v1776_v40 = vld [vmem:[%s2277_s2 + $0x228] sm:$0xff] }
  0x2c   : > { %1082 = vmatpush.bf16.msrb.mxu1 %v1722_v29  ;;  %1169 = vmatpush.bf16.msrb.mxu0 %v1746_v37  ;;  %v442_v29 = vpack.c.bf16 %v1905_v15, %v241_v24  ;;  %v1756_v15 = vld [vmem:[%s2277_s2 + $0x188] sm:$0xff]  ;;  %v463_v37 = vpack.c.bf16 %v1912_v17, %v1883_v10  ;;  %v1755_v10 = vld [vmem:[%s2277_s2 + $0x180] sm:$0xff] }
  0x2d   : > { %1227 = vmatpush.bf16.msrb.mxu2 %v1762_v38  ;;  %1148 = vmatmul.bf16.vlgmr.msra.gmra.mxu3 %v444_v48  ;;  %v1765_v38 = vld [vmem:[%s2277_s2 + $0x1d0] sm:$0xff]  ;;  %v454_v48 = vpack.c.bf16 %v1880_v9, %v1930_v22  ;;  %v1774_v9 = vld [vmem:[%s2277_s2 + $0x218] sm:$0xff] }
  0x2e   : > { %1119 = vmatmul.bf16.vlgmr.msra.gmra.mxu2 %v443_v41  ;;  %1256 = vmatpush.bf16.msrb.mxu3 %v1770_v45  ;;  %v2128_v41 = vpack.c.bf16 %v1919_v19, %v1912_v17  ;;  %v1775_v17 = vld [vmem:[%s2277_s2 + $0x220] sm:$0xff]  ;;  %v2147_v45 = vld [vmem:[#allocation2 + $0x48] sm:$0xff] }
  0x30   : > { %1083 = vmatpush.bf16.msrb.mxu1 %v1721_v44  ;;  %1170 = vmatpush.bf16.msrb.mxu0 %v1745_v46  ;;  %v2145_v44 = vld [vmem:[#allocation2 + $0x3e] sm:$0xff]  ;;  %v1749_v46 = vld [vmem:[%s2277_s2 + $0x150] sm:$0xff] }
  0x31   : > { %1228 = vmatpush.bf16.msrb.mxu2 %v1761_v47  ;;  %v451_v47 = vpack.c.bf16 %v1930_v22, %v1923_v20  ;;  %v1763_v20 = vld [vmem:[%s2277_s2 + $0x1c0] sm:$0xff]  ;;  %v446_v22 = vpack.c.bf16 %v2027_v61, %v1966_v36 }
  0x32   : > { %1257 = vmatpush.bf16.msrb.mxu3 %v1769_v50  ;;  %v287_v50 = vld [vmem:[#allocation2 + $0x50] sm:$0xff]  ;;  %v1771_v36 = vld [vmem:[%s2277_s2 + $0x200] sm:$0xff] }
  0x33   : > { %v474_v59 = vpack.c.bf16 %v335_v57, %v287_v50  ;;  %v367_v61 = vld [vmem:[#allocation2 + $0x5c] sm:$0xff] }
  0x34   : > { %1084 = vmatpush.bf16.msrb.mxu1 %v1720_v49  ;;  %1171 = vmatpush.bf16.msrb.mxu0 %v1744_v51  ;;  %v470_v49 = vpack.c.bf16 %v2147_v45, %v2145_v44  ;;  %v471_v51 = vpack.c.bf16 %v287_v50, %v2022_v58  ;;  %v455_v58 = vpack.c.bf16 %v2088_v25, %v2029_v62 }
  0x35   : > { %1229 = vmatpush.bf16.msrb.mxu2 %v1760_v52  ;;  %v1748_v52 = vld [vmem:[%s2277_s2 + $0x148] sm:$0xff] }
  0x36   : > { %1258 = vmatpush.bf16.msrb.mxu3 %v1768_v54  ;;  %v1747_v54 = vld [vmem:[%s2277_s2 + $0x140] sm:$0xff] }
  0x38   : > { %1085 = vmatpush.bf16.msrb.mxu1 %v1719_v53  ;;  %1172 = vmatpush.bf16.msrb.mxu0 %v1743_v55  ;;  %v1773_v53 = vld [vmem:[%s2277_s2 + $0x210] sm:$0xff]  ;;  %v1772_v55 = vld [vmem:[%s2277_s2 + $0x208] sm:$0xff] }
  0x39   : > { %1230 = vmatpush.bf16.msrb.mxu2 %v1759_v56  ;;  %v472_v56 = vpack.c.bf16 %v2096_v28, %v1919_v19  ;;  %v351_v19 = vld [vmem:[#allocation2 + $0x5b] sm:$0xff] }
  0x3a   : > { %1259 = vmatpush.bf16.msrb.mxu3 %v1767_v7 }
  0x3b   : > { %1076 = vmatmul.bf16.gmra.mxu1 %v2036_v0  ;;  %1066 = vmatmul.bf16.gmra.mxu0 %v2038_v1 }
  0x3c   : > { %1086 = vmatpush.bf16.msrb.mxu1 %v1718_v60  ;;  %1173 = vmatpush.bf16.msrb.mxu0 %v1742_v63  ;;  %v365_v60 = vld [vmem:[#allocation2 + $0x52] sm:$0xff]  ;;  %v464_v63 = vpack.c.bf16 %v2145_v44, %v2090_v26 }
  0x3d   : > { %1231 = vmatpush.bf16.msrb.mxu2 %v1758_v6  ;;  %1153 = vmatmul.bf16.gmra.mxu3 %v453_v5  ;;  %v473_v6 = vpack.c.bf16 %v365_v60, %v2147_v45 }
  0x3e   : > { %1124 = vmatmul.bf16.gmra.mxu2 %v2042_v2  ;;  %1260 = vmatpush.bf16.msrb.mxu3 %v1766_v14 }
  0x40   : > { %1087 = vmatpush.bf16.msrb.mxu1 %v1717_v3  ;;  %1174 = vmatpush.bf16.msrb.mxu0 %v1741_v4 }
  0x41   : > { %1232 = vmatpush.bf16.msrb.mxu2 %v1757_v12 }
  0x42   : > { %1261 = vmatpush.bf16.msrb.mxu3 %v1765_v38 }
  0x44   : > { %1088 = vmatpush.bf16.msrb.mxu1 %v1716_v11  ;;  %1175 = vmatpush.bf16.msrb.mxu0 %v1740_v13 }
  0x45   : > { %1233 = vmatpush.bf16.msrb.mxu2 %v1756_v15 }
  0x46   : > { %1262 = vmatpush.bf16.msrb.mxu3 %v1764_v32 }
  0x48   : > { %1089 = vmatpush.bf16.msrb.mxu1 %v1715_v16  ;;  %1176 = vmatpush.bf16.msrb.mxu0 %v1739_v21 }
  0x49   : > { %1234 = vmatpush.bf16.msrb.mxu2 %v1755_v10 }
  0x4a   : > { %1263 = vmatpush.bf16.msrb.mxu3 %v1763_v20 }
  0x4b   : > { %1090 = vmatmul.bf16.vlgmr.msrb.gmra.mxu1 %v442_v29  ;;  %1177 = vmatmul.bf16.vlgmr.msrb.gmra.mxu0 %v445_v30 }
  0x4c   : > { %1198 = vmatpush.bf16.msra.mxu1 %v1754_v18  ;;  %1285 = vmatpush.bf16.msra.mxu0 %v1778_v23 }
  0x4d   : > { %1158 = vmatmul.bf16.gmra.mxu3 %v462_v35  ;;  %1787 = vmatpush.bf16.msra.mxu2 %v1778_v23 }
  0x4e   : > { %1129 = vmatmul.bf16.gmra.mxu2 %v2104_v31 }
  0x50   : > { %1199 = vmatpush.bf16.msra.mxu1 %v1753_v27  ;;  %1286 = vmatpush.bf16.msra.mxu0 %v1777_v33 }
  0x51   : > { %1788 = vmatpush.bf16.msra.mxu2 %v1777_v33 }
  0x54   : > { %1200 = vmatpush.bf16.msra.mxu1 %v1752_v34  ;;  %1287 = vmatpush.bf16.msra.mxu0 %v1776_v40 }
  0x55   : > { %1789 = vmatpush.bf16.msra.mxu2 %v1776_v40 }
  0x58   : > { %1201 = vmatpush.bf16.msra.mxu1 %v1751_v42  ;;  %1288 = vmatpush.bf16.msra.mxu0 %v1775_v17 }
  0x59   : > { %1790 = vmatpush.bf16.msra.mxu2 %v1775_v17 }
  0x5b   : > { %1095 = vmatmul.bf16.gmra.mxu1 %v451_v47  ;;  %1182 = vmatmul.bf16.gmra.mxu0 %v454_v48 }
  0x5c   : > { %1202 = vmatpush.bf16.msra.mxu1 %v1750_v43  ;;  %1289 = vmatpush.bf16.msra.mxu0 %v1774_v9 }
  0x5d   : > { %1163 = vmatmul.bf16.gmra.mxu3 %v471_v51  ;;  %1791 = vmatpush.bf16.msra.mxu2 %v1774_v9 }
  0x5e   : > { %1134 = vmatmul.bf16.gmra.mxu2 %v470_v49 }
  0x60   : > { %1203 = vmatpush.bf16.msra.mxu1 %v1749_v46  ;;  %1290 = vmatpush.bf16.msra.mxu0 %v1773_v53 }
  0x61   : > { %1792 = vmatpush.bf16.msra.mxu2 %v1773_v53 }
  0x64   : > { %1204 = vmatpush.bf16.msra.mxu1 %v1748_v52  ;;  %1291 = vmatpush.bf16.msra.mxu0 %v1772_v55 }
  0x65   : > { %1793 = vmatpush.bf16.msra.mxu2 %v1772_v55 }
  0x68   : > { %1205 = vmatpush.bf16.msra.mxu1 %v1747_v54  ;;  %1292 = vmatpush.bf16.msra.mxu0 %v1771_v36 }
  0x69   : > { %1794 = vmatpush.bf16.msra.mxu2 %v1771_v36 }
  0x6b   : > { %1100 = vmatmul.bf16.gmra.mxu1 %v2062_v8  ;;  %1187 = vmatmul.bf16.gmra.mxu0 %v463_v37 }
  0x6d   : > { %1264 = vmatmul.bf16.vlgmr.msrb.gmra.mxu3 %v451_v47 }
  0x6e   : > { %1235 = vmatmul.bf16.vlgmr.msrb.gmra.mxu2 %v2038_v1 }
  0x7b   : > { %1105 = vmatmul.bf16.gmra.mxu1 %v2128_v41  ;;  %1192 = vmatmul.bf16.gmra.mxu0 %v472_v56 }
  0x7d   : > { %1269 = vmatmul.bf16.gmra.mxu3 %v2062_v8 }
  0x7e   : > { %1240 = vmatmul.bf16.gmra.mxu2 %v1976_v39  ;;  %v475_v39 = vpack.c.bf16 %v351_v19, %v2096_v28 }
  0x8b   : > { %1206 = vmatmul.bf16.vlgmr.msra.gmra.mxu1 %v446_v22  ;;  %1293 = vmatmul.bf16.vlgmr.msra.gmra.mxu0 %v2042_v2  ;;  %v476_v2 = vpack.c.bf16 %v367_v61, %v365_v60 }
  0x8d   : > { %1274 = vmatmul.bf16.gmra.mxu3 %v2128_v41 }
  0x8e   : > { %1245 = vmatmul.bf16.gmra.mxu2 %v2036_v0 }
  0x9b   : > { %1211 = vmatmul.bf16.gmra.mxu1 %v455_v58  ;;  %1298 = vmatmul.bf16.gmra.mxu0 %v2104_v31 }
  0x9d   : > { %1279 = vmatmul.bf16.gmra.mxu3 %v475_v39 }
  0x9e   : > { %1250 = vmatmul.bf16.gmra.mxu2 %v474_v59 }
  0xa8   : > { %v1072_v0 = vpop.f32.mrf.mxu1  ;;  %v1062_v1 = vpop.f32.mrf.mxu0 }
  0xab   : > { %1216 = vmatmul.bf16.gmra.mxu1 %v464_v63  ;;  %1303 = vmatmul.bf16.gmra.mxu0 %v470_v49 }
  0xae   : > { %1308 = vmatmul.bf16.vlgmr.msra.gmra.mxu2 %v476_v2 }
  0xb0   : > { %v1074_v3 = vpop.f32.mrf.mxu1  ;;  %v1064_v4 = vpop.f32.mrf.mxu0 }
  0xb1   : > { %v1120_v62 = vpop.f32.mrf.mxu2  ;;  %v1149_v5 = vpop.f32.mrf.mxu3 }
  0xb8   : > { %v1077_v8 = vpop.f32.mrf.mxu1  ;;  %v1067_v11 = vpop.f32.mrf.mxu0 }
  0xb9   : > { %v1122_v7 = vpop.f32.mrf.mxu2  ;;  %v1151_v12 = vpop.f32.mrf.mxu3 }
  0xbb   : > { %1221 = vmatmul.bf16.gmra.mxu1 %v473_v6 }
  0xc0   : > { %v1079_v14 = vpop.f32.mrf.mxu1  ;;  %v1069_v16 = vpop.f32.mrf.mxu0 }
  0xc1   : > { %v1125_v13 = vpop.f32.mrf.mxu2  ;;  %v2199_v18 = vpop.f32.mrf.mxu3 }
  0xc8   : > { %v1091_v23 = vpop.f32.mrf.mxu1  ;;  %v1178_v24 = vpop.f32.mrf.mxu0 }
  0xc9   : > { %v1127_v21 = vpop.f32.mrf.mxu2  ;;  %v1092_v25 = vadd.f32 %v1091_v23, %v1062_v1  ;;  %v2201_v27 = vpop.f32.mrf.mxu3 }
  0xcb   : > { %v1121_v26 = vadd.f32 %v1120_v62, %v1092_v25 }
  0xcd   : > { %v1150_v60 = vadd.f32 %v1149_v5, %v1121_v26 }
  0xcf   : > { %v1179_v63 = vadd.f32 %v1178_v24, %v1150_v60 }
  0xd0   : > { %v1093_v29 = vpop.f32.mrf.mxu1  ;;  %v1180_v30 = vpop.f32.mrf.mxu0 }
  0xd1   : > { %v1130_v28 = vpop.f32.mrf.mxu2  ;;  %v1094_v31 = vadd.f32 %v1093_v29, %v1064_v4  ;;  %v2203_v34 = vpop.f32.mrf.mxu3 }
  0xd3   : > { %v1123_v33 = vadd.f32 %v1122_v7, %v1094_v31 }
  0xd5   : > { %v1152_v4 = vadd.f32 %v1151_v12, %v1123_v33 }
  0xd7   : > { %v1181_v5 = vadd.f32 %v1180_v30, %v1152_v4 }
  0xd8   : > { %v1096_v35 = vpop.f32.mrf.mxu1  ;;  %v1183_v37 = vpop.f32.mrf.mxu0 }
  0xd9   : > { %v1132_v15 = vpop.f32.mrf.mxu2  ;;  %v1097_v38 = vadd.f32 %v1096_v35, %v1067_v11  ;;  %v2205_v10 = vpop.f32.mrf.mxu3 }
  0xdb   : > { %v1126_v40 = vadd.f32 %v1125_v13, %v1097_v38 }
  0xdd   : > { %v1155_v23 = vadd.f32 %v2199_v18, %v1126_v40 }
  0xdf   : > { %v1184_v29 = vadd.f32 %v1183_v37, %v1155_v23 }
  0xe0   : > { %v1098_v32 = vpop.f32.mrf.mxu1  ;;  %v2207_v42 = vpop.f32.mrf.mxu0 }
  0xe1   : > { %v1135_v41 = vpop.f32.mrf.mxu2  ;;  %v1099_v17 = vadd.f32 %v1098_v32, %v1069_v16  ;;  %v2211_v48 = vpop.f32.mrf.mxu3 }
  0xe3   : > { %v1128_v43 = vadd.f32 %v1127_v21, %v1099_v17  ;;  %v1316_v17 = vld [vmem:[%s2233_s17 + $0x10] sm:$0xff] }
  0xe5   : > { %v1157_v38 = vadd.f32 %v2201_v27, %v1128_v43 }
  0xe8   : > { %v1101_v45 = vpop.f32.mrf.mxu1  ;;  %v2209_v46 = vpop.f32.mrf.mxu0 }
  0xe9   : > { %v1137_v44 = vpop.f32.mrf.mxu2  ;;  %v1102_v47 = vadd.f32 %v1101_v45, %v1072_v0  ;;  %v2219_v22 = vpop.f32.mrf.mxu3 }
  0xeb   : > { %v2213_v49 = vadd.f32 %v1130_v28, %v1102_v47  ;;  %v1315_v28 = vld [vmem:[%s2233_s17 + $0x8] sm:$0xff] }
  0xf0   : > { %v1103_v51 = vpop.f32.mrf.mxu1  ;;  %v2215_v52 = vpop.f32.mrf.mxu0 }
  0xf1   : > { %v1236_v50 = vpop.f32.mrf.mxu2  ;;  %v1104_v20 = vadd.f32 %v1103_v51, %v1074_v3  ;;  %v1265_v57 = vpop.f32.mrf.mxu3 }
  0xf3   : > { %v2217_v9 = vadd.f32 %v1132_v15, %v1104_v20  ;;  %v1160_v20 = vadd.f32 %v2203_v34, %v2213_v49 }
  0xf8   : > { %v1106_v54 = vpop.f32.mrf.mxu1  ;;  %v2221_v55 = vpop.f32.mrf.mxu0 }
  0xf9   : > { %v1238_v53 = vpop.f32.mrf.mxu2  ;;  %v1107_v36 = vadd.f32 %v1106_v54, %v1077_v8  ;;  %v1267_v0 = vpop.f32.mrf.mxu3  ;;  %v1314_v8 = vld [vmem:[%s2233_s17] sm:$0xff]  ;;  %v1317_v54 = vld [vmem:[%s2233_s17 + $0x18] sm:$0xff] }
  0xfb   : > { %v2223_v56 = vadd.f32 %v1135_v41, %v1107_v36  ;;  %v1189_v36 = vadd.f32 %v2209_v46, %v1160_v20 }
 0x100   : > { %v1108_v59 = vpop.f32.mrf.mxu1  ;;  %v2225_v19 = vpop.f32.mrf.mxu0 }
 0x101   : > { %v1241_v58 = vpop.f32.mrf.mxu2  ;;  %v1109_v39 = vadd.f32 %v1108_v59, %v1079_v14  ;;  %v1270_v21 = vpop.f32.mrf.mxu3 }
 0x103   : > { %v2227_v61 = vadd.f32 %v1137_v44, %v1109_v39  ;;  %v1186_v44 = vadd.f32 %v2207_v42, %v1157_v38 }
 0x108   : > { %v1207_v1 = vpop.f32.mrf.mxu1  ;;  %v1294_v2 = vpop.f32.mrf.mxu0 }
 0x109   : > { %v1208_v62 = vadd.f32 %v1207_v1, %v1179_v63  ;;  %v1243_v3 = vpop.f32.mrf.mxu2  ;;  %v1272_v32 = vpop.f32.mrf.mxu3  ;;  %v1162_v63 = vadd.f32 %v2205_v10, %v2217_v9 }
 0x10b   : > { %v1237_v6 = vadd.f32 %v1236_v50, %v1208_v62  ;;  %v1191_v1 = vadd.f32 %v2215_v52, %v1162_v63 }
 0x10d   : > { %v1266_v7 = vadd.f32 %v1265_v57, %v1237_v6 }
 0x10f   : > { %v1295_v11 = vadd.f32 %v1294_v2, %v1266_v7  ;;  %v1165_v7 = vadd.f32 %v2211_v48, %v2223_v56 }
 0x110   : > { %v1209_v13 = vpop.f32.mrf.mxu1  ;;  %v1296_v12 = vpop.f32.mrf.mxu0 }
 0x111   : > { %v1322_v14 = vadd.f32 %v1314_v8, %v1295_v11  ;;  %v1210_v16 = vadd.f32 %v1209_v13, %v1181_v5  ;;  %v1246_v25 = vpop.f32.mrf.mxu2  ;;  %v1319_v5 = vld [vmem:[%s2233_s17 + $0x28] sm:$0xff]  ;;  %v1194_v11 = vadd.f32 %v2221_v55, %v1165_v7 }
 0x113   : > { %1330 = vst [vmem:[%s2240_s20] sm:$0xff] %v1322_v14  ;;  %v1239_v24 = vadd.f32 %v1238_v53, %v1210_v16  ;;  %v1275_v53 = vpop.f32.mrf.mxu3 }
 0x115   : > { %v1268_v26 = vadd.f32 %v1267_v0, %v1239_v24  ;;  %v1318_v0 = vld [vmem:[%s2233_s17 + $0x20] sm:$0xff]  ;;  %v1320_v24 = vld [vmem:[%s2233_s17 + $0x30] sm:$0xff] }
 0x117   : > { %v1297_v30 = vadd.f32 %v1296_v12, %v1268_v26 }
 0x118   : > { %v1212_v31 = vpop.f32.mrf.mxu1  ;;  %v1299_v33 = vpop.f32.mrf.mxu0 }
 0x119   : > { %v1323_v15 = vadd.f32 %v1315_v28, %v1297_v30  ;;  %v1213_v35 = vadd.f32 %v1212_v31, %v1184_v29  ;;  %v1248_v40 = vpop.f32.mrf.mxu2 }
 0x11b   : > { %1331 = vst [vmem:[%s2240_s20 + $0x8] sm:$0xff] %v1323_v15  ;;  %v1242_v41 = vadd.f32 %v1241_v58, %v1213_v35  ;;  %v1277_v62 = vpop.f32.mrf.mxu3  ;;  %v1321_v35 = vld [vmem:[%s2233_s17 + $0x38] sm:$0xff] }
 0x11d   : > { %v1271_v18 = vadd.f32 %v1270_v21, %v1242_v41  ;;  %v1167_v21 = vadd.f32 %v2219_v22, %v2227_v61 }
 0x11f   : > { %v1300_v45 = vadd.f32 %v1299_v33, %v1271_v18 }
 0x120   : > { %v1214_v47 = vpop.f32.mrf.mxu1  ;;  %v1301_v37 = vpop.f32.mrf.mxu0 }
 0x121   : > { %v1324_v50 = vadd.f32 %v1316_v17, %v1300_v45  ;;  %v1215_v51 = vadd.f32 %v1214_v47, %v1186_v44  ;;  %v1251_v58 = vpop.f32.mrf.mxu2 }
 0x123   : > { %1332 = vst [vmem:[%s2240_s20 + $0x10] sm:$0xff] %v1324_v50  ;;  %v1244_v27 = vadd.f32 %v1243_v3, %v1215_v51  ;;  %v1280_v16 = vpop.f32.mrf.mxu3 }
 0x125   : > { %v1273_v43 = vadd.f32 %v1272_v32, %v1244_v27 }
 0x127   : > { %v1302_v57 = vadd.f32 %v1301_v37, %v1273_v43 }
 0x128   : > { %v1217_v42 = vpop.f32.mrf.mxu1  ;;  %v1304_v60 = vpop.f32.mrf.mxu0 }
 0x129   : > { %v1325_v59 = vadd.f32 %v1317_v54, %v1302_v57  ;;  %v1218_v39 = vadd.f32 %v1217_v42, %v1189_v36  ;;  %v1253_v6 = vpop.f32.mrf.mxu2 }
 0x12b   : > { %1333 = vst [vmem:[%s2240_s20 + $0x18] sm:$0xff] %v1325_v59  ;;  %v1247_v34 = vadd.f32 %v1246_v25, %v1218_v39  ;;  %v1196_v25 = vadd.f32 %v2225_v19, %v1167_v21  ;;  %v1282_v31 = vpop.f32.mrf.mxu3 }
 0x12d   : > { %v1276_v49 = vadd.f32 %v1275_v53, %v1247_v34 }
 0x12f   : > { %v1305_v2 = vadd.f32 %v1304_v60, %v1276_v49 }
 0x130   : > { %v1219_v46 = vpop.f32.mrf.mxu1  ;;  %v1306_v9 = vpop.f32.mrf.mxu0 }
 0x131   : > { %v1326_v3 = vadd.f32 %v1318_v0, %v1305_v2  ;;  %v1220_v4 = vadd.f32 %v1219_v46, %v1191_v1  ;;  %v1309_v56 = vpop.f32.mrf.mxu2 }
 0x133   : > { %1334 = vst [vmem:[%s2240_s20 + $0x20] sm:$0xff] %v1326_v3  ;;  %v1249_v10 = vadd.f32 %v1248_v40, %v1220_v4 }
 0x135   : > { %v1278_v8 = vadd.f32 %v1277_v62, %v1249_v10 }
 0x137   : > { %v1307_v13 = vadd.f32 %v1306_v9, %v1278_v8 }
 0x138   : > { %v1222_v52 = vpop.f32.mrf.mxu1 }
 0x139   : > { %v1327_v12 = vadd.f32 %v1319_v5, %v1307_v13  ;;  %v1223_v14 = vadd.f32 %v1222_v52, %v1194_v11  ;;  %v1311_v15 = vpop.f32.mrf.mxu2 }
 0x13b   : > { %1335 = vst [vmem:[%s2240_s20 + $0x28] sm:$0xff] %v1327_v12  ;;  %v1252_v48 = vadd.f32 %v1251_v58, %v1223_v14 }
 0x13d   : > { %v1281_v23 = vadd.f32 %v1280_v16, %v1252_v48 }
 0x13f   : > { %v1310_v26 = vadd.f32 %v1309_v56, %v1281_v23 }
 0x140   : > { %v1224_v55 = vpop.f32.mrf.mxu1 }
 0x141   : > { %v1328_v28 = vadd.f32 %v1320_v24, %v1310_v26  ;;  %v1225_v29 = vadd.f32 %v1224_v55, %v1196_v25 }
 0x143   : > { %1336 = vst [vmem:[%s2240_s20 + $0x30] sm:$0xff] %v1328_v28  ;;  %v1254_v30 = vadd.f32 %v1253_v6, %v1225_v29 }
 0x145   : > { %v1283_v33 = vadd.f32 %v1282_v31, %v1254_v30 }
 0x147   : > { %v1312_v22 = vadd.f32 %v1311_v15, %v1283_v33 }
 0x149   : > { %v1329_v61 = vadd.f32 %v1321_v35, %v1312_v22 }
 0x14b   : > { %1337 = vst [vmem:[%s2240_s20 + $0x38] sm:$0xff] %v1329_v61 }
 0x14c PF: > { %s13_s12 = sadd.s32 1, %s1810_s12  }
 0x14d   : > { %p10_p4 = scmp.ge.s32.totalorder %s13_s12, 4  }
 0x14f   :  { %12 = sbr.rel (!%p10_p4) target bundleno = 1 (0x1), region = 65 }

// kernel: densenet_forward.31
= control target key start
LH: loop header
LB: loop body
LE: loop exit
PB: predicated region body
PF: predicated region fallthrough
CT: control target
= control target key end

     0   :  { %s448_s15 = smov 0   ;;  %s498_s0 = inlined_call_operand.vmem [shape: f32[32,128], index: 0, kind: input, shape index: {}]   ;;  %s499_s1 = inlined_call_operand.vmem [shape: f32[1,128], index: 1, kind: input, shape index: {}]   ;;  %s500_s2 = inlined_call_operand.vmem [shape: f32[1,128], index: 2, kind: input, shape index: {}]   ;;  %s501_s3 = inlined_call_operand.vmem [shape: bf16[128,128], index: 3, kind: input, shape index: {}]   ;;  %s502_s4 = inlined_call_operand.vmem [shape: f32[32,128], index: 4, kind: output, shape index: {}]  }
   0x1 LB: > { %s354_s16 = sadd.s32 4294967295, %s421_s15   ;;  %p358_p0 = scmp.ge.s32.totalorder %s421_s15, 1  ;;  %s421_s15 = sphi %s448_s15, %s14_s15  }
   0x2   : > { %p163_p1 = scmp.lt.s32.totalorder %s421_s15, 3 }
   0x4   : > { %p164_p2 = pnand %p358_p0, %p163_p1 }
   0x5   : > { %s359_s19 = sshll.u32 (!%p164_p2), %s354_s16, 1 }
   0x6   : > { %167 = sbr.rel (%p164_p2) target bundleno = 178 (0xb2), region = 36  ;;  %p190_p3 = scmp.lt.s32.totalorder (!%p164_p2), %s359_s19, 3 }
   0xb   : > { %v404_v0 = vld [vmem:[%s501_s3 + $0x38] sm:$0xff]  ;;  %v403_v1 = vld [vmem:[%s501_s3 + $0x30] sm:$0xff]  ;;  %s504_s19 = smov (!%p190_p3, %s359_s19), 3  ;;  %v402_v2 = vld [vmem:[%s501_s3 + $0x28] sm:$0xff] }
   0xc   : > { %282 = vmatpush.bf16.msra.mxu0 %v404_v0  ;;  %s360_s24 = sshll.u32 %s504_s19, 3  ;;  %v401_v3 = vld [vmem:[%s501_s3 + $0x20] sm:$0xff]  ;;  %v400_v5 = vld [vmem:[%s501_s3 + $0x18] sm:$0xff]  ;;  %v399_v11 = vld [vmem:[%s501_s3 + $0x10] sm:$0xff] }
   0xd   : > { %s193_s29 = scalar_lea.vmem %s498_s0, %s360_s24  ;;  %v413_v4 = vld [vmem:[%s499_s1] ss:$0 sm:$0xff]  ;;  %v398_v14 = vld [vmem:[%s501_s3 + $0x8] sm:$0xff]  ;;  %s199_s19 = scalar_lea.vmem %s502_s4, %s360_s24 }
   0xe   : > { %v201_v6 = vld [vmem:[%s193_s29] sm:$0xff]  ;;  %v202_v7 = vld [vmem:[%s193_s29 + $0x8] sm:$0xff] }
   0xf   : > { %v207_v8 = vmul.f32 %v413_v4, %v201_v6  ;;  %v208_v9 = vmul.f32 %v413_v4, %v202_v7  ;;  %v414_v10 = vld [vmem:[%s500_s2] ss:$0 sm:$0xff] }
  0x10   : > { %283 = vmatpush.bf16.msra.mxu0 %v403_v1  ;;  %v397_v17 = vld [vmem:[%s501_s3] sm:$0xff] }
  0x11   : > { %v213_v12 = vadd.f32 %v414_v10, %v207_v8  ;;  %v214_v13 = vadd.f32 %v414_v10, %v208_v9 }
  0x13   : > { %v215_v15 = vmax.f32 %v213_v12, 0.0  ;;  %v216_v16 = vmax.f32 %v214_v13, 0.0 }
  0x14   : > { %284 = vmatpush.bf16.msra.mxu0 %v402_v2 }
  0x15   : > { %v217_v18 = vpack.c.bf16 %v216_v16, %v215_v15 }
  0x18   : > { %285 = vmatpush.bf16.msra.mxu0 %v401_v3 }
  0x1c   : > { %286 = vmatpush.bf16.msra.mxu0 %v400_v5 }
  0x20   : > { %287 = vmatpush.bf16.msra.mxu0 %v399_v11 }
  0x24   : > { %288 = vmatpush.bf16.msra.mxu0 %v398_v14 }
  0x28   : > { %289 = vmatpush.bf16.msra.mxu0 %v397_v17 }
  0x2b   : > { %290 = vmatmul.bf16.vlgmr.msra.gmra.mxu0 %v217_v18 }
  0xa8   : > { %v291_v19 = vpop.f32.mrf.mxu0 }
  0xa9   : > { %296 = vst [vmem:[%s199_s19] sm:$0xff] %v291_v19 }
  0xb0   : > { %v293_v20 = vpop.f32.mrf.mxu0 }
  0xb1   : > { %297 = vst [vmem:[%s199_s19 + $0x8] sm:$0xff] %v293_v20 }
  0xb2 PF: > { %s14_s15 = sadd.s32 1, %s421_s15  }
  0xb3   : > { %p11_p4 = scmp.ge.s32.totalorder %s14_s15, 4  }
  0xb5   :  { %13 = sbr.rel (!%p11_p4) target bundleno = 1 (0x1), region = 66 }

// kernel: densenet_forward.36
= control target key start
LH: loop header
LB: loop body
LE: loop exit
PB: predicated region body
PF: predicated region fallthrough
CT: control target
= control target key end

     0   :  { %9 = vsyncpa [#allocation3], 0  ;;  %s196_s18 = smov [#allocation2]   ;;  %s258_s0 = inlined_call_operand.vmem [shape: f32[8,128], index: 0, kind: input, shape index: {}]   ;;  %s259_s1 = inlined_call_operand.vmem [shape: f32[1,128], index: 1, kind: input, shape index: {}]   ;;  %s260_s2 = inlined_call_operand.hbm [shape: f32[1,128], index: 2, kind: input, shape index: {}]   ;;  %s261_s3 = inlined_call_operand.vmem [shape: bf16[128,128], index: 3, kind: input, shape index: {}]   ;;  %s262_s4 = inlined_call_operand.vmem [shape: f32[8,128], index: 4, kind: output, shape index: {}]  }
   0x1   :  { %s19_s17 = sshll.u32 %s260_s2, 4  ;;  %s21_s19 = sshll.u32 %s196_s18, 4  ;;  %s20_s17 = int_to_ptr.hbm [resolvable:$true] %s19_s17  ;;  %s22_s19 = int_to_ptr.vmem [resolvable:$true] %s21_s19 }
   0x2   :  { %24 = dma.hbm_to_vmem [thread:$0]  %s20_s17, 16, %s22_s19, [#allocation3]  }
   0x3   :  { %194 = dma.done.wait [#allocation3], 16  }
   0x4   :  { %195 = vsyncadd [#allocation3], 4294967280  ;;  %v166_v0 = vld [vmem:[%s261_s3 + $0x38] sm:$0xff]  ;;  %v165_v1 = vld [vmem:[%s261_s3 + $0x30] sm:$0xff] }
   0x5   :  { %108 = vmatpush.bf16.msra.mxu0 %v166_v0  ;;  %v164_v2 = vld [vmem:[%s261_s3 + $0x28] sm:$0xff]  ;;  %v163_v3 = vld [vmem:[%s261_s3 + $0x20] sm:$0xff]  ;;  %v162_v5 = vld [vmem:[%s261_s3 + $0x18] sm:$0xff] }
   0x6   :  { %v168_v4 = vld [vmem:[%s259_s1] ss:$0 sm:$0xff]  ;;  %v161_v9 = vld [vmem:[%s261_s3 + $0x10] sm:$0xff]  ;;  %v160_v11 = vld [vmem:[%s261_s3 + $0x8] sm:$0xff] }
   0x7   :  { %v31_v6 = vld [vmem:[%s258_s0] sm:$0xff] }
   0x8   :  { %v36_v7 = vmul.f32 %v168_v4, %v31_v6  ;;  %v169_v8 = vld [vmem:[#allocation2] ss:$0 sm:$0xff] }
   0x9   :  { %109 = vmatpush.bf16.msra.mxu0 %v165_v1  ;;  %v159_v13 = vld [vmem:[%s261_s3] sm:$0xff] }
   0xa   :  { %v41_v10 = vadd.f32 %v169_v8, %v36_v7 }
   0xc   :  { %v42_v12 = vmax.f32 %v41_v10, 0.0 }
   0xd   :  { %110 = vmatpush.bf16.msra.mxu0 %v164_v2 }
   0xe   :  { %v43_v14 = vpack.c.bf16 %v42_v12, %v42_v12 }
  0x11   :  { %111 = vmatpush.bf16.msra.mxu0 %v163_v3 }
  0x15   :  { %112 = vmatpush.bf16.msra.mxu0 %v162_v5 }
  0x19   :  { %113 = vmatpush.bf16.msra.mxu0 %v161_v9 }
  0x1d   :  { %114 = vmatpush.bf16.msra.mxu0 %v160_v11 }
  0x21   :  { %115 = vmatpush.bf16.msra.mxu0 %v159_v13 }
  0x24   :  { %116 = vmatmul.bf16.vlgmr.msra.gmra.mxu0 %v43_v14 }
  0xa1   :  { %v117_v15 = vpop.f32.mrf.mxu0 }
  0xa2   :  { %121 = vst [vmem:[%s262_s4] sm:$0xff] %v117_v15 }
  0xa9   :  { %v119_v16 = vpop.f32.mrf.mxu0 }
  0xaa   :  { %126 = vsyncpa [#allocation3], 1 }

// kernel: densenet_forward.32
= control target key start
LH: loop header
LB: loop body
LE: loop exit
PB: predicated region body
PF: predicated region fallthrough
CT: control target
= control target key end

     0   :  { %11 = vsyncpa [#allocation3], 0  ;;  %s375_s0 = inlined_call_operand.vmem [shape: f32[8,128], index: 0, kind: input, shape index: {}]   ;;  %s376_s1 = inlined_call_operand.vmem [shape: f32[1,128], index: 1, kind: input, shape index: {}]   ;;  %s377_s2 = inlined_call_operand.hbm [shape: f32[1,128], index: 2, kind: input, shape index: {}]   ;;  %s378_s3 = inlined_call_operand.vmem [shape: bf16[128,128], index: 3, kind: input, shape index: {}]   ;;  %s379_s4 = inlined_call_operand.hbm [shape: f32[1,128], index: 4, kind: input, shape index: {}]   ;;  %s380_s5 = inlined_call_operand.hbm [shape: f32[1,128], index: 5, kind: input, shape index: {}]   ;;  %s381_s6 = inlined_call_operand.vmem [shape: f32[8,128], index: 6, kind: output, shape index: {}]  }
   0x1   :  { %12 = vsyncpa [#allocation5], 0  ;;  %s35_s23 = sshll.u32 %s379_s4, 4  ;;  %s295_s24 = smov [#allocation4]   ;;  %s36_s23 = int_to_ptr.hbm [resolvable:$true] %s35_s23 }
   0x2   :  { %s37_s25 = sshll.u32 %s295_s24, 4  ;;  %s22_s28 = sshll.u32 %s377_s2, 4  ;;  %s38_s25 = int_to_ptr.vmem [resolvable:$true] %s37_s25  ;;  %s23_s28 = int_to_ptr.hbm [resolvable:$true] %s22_s28 }
   0x3   :  { %40 = dma.hbm_to_vmem [thread:$0]  %s36_s23, 16, %s38_s25, [#allocation5]  }
   0x4   :  { %s296_s29 = smov [#allocation2]   ;;  %s46_s9 = sshll.u32 %s380_s5, 4  ;;  %s47_s9 = int_to_ptr.hbm [resolvable:$true] %s46_s9 }
   0x5   :  { %s24_s30 = sshll.u32 %s296_s29, 4  ;;  %s297_s4 = smov [#allocation6]   ;;  %s25_s30 = int_to_ptr.vmem [resolvable:$true] %s24_s30 }
   0x6   :  { %27 = dma.hbm_to_vmem [thread:$0]  %s23_s28, 16, %s25_s30, [#allocation3]  }
   0x7   :  { %s48_s10 = sshll.u32 %s297_s4, 4  ;;  %s49_s10 = int_to_ptr.vmem [resolvable:$true] %s48_s10 }
   0x8   :  { %51 = dma.hbm_to_vmem [thread:$0]  %s47_s9, 16, %s49_s10, [#allocation5]  }
   0x9   :  { %291 = dma.done.wait [#allocation3], 16  }
   0xa   :  { %292 = vsyncadd [#allocation3], 4294967280 }
   0xb   :  { %293 = dma.done.wait [#allocation5], 32  }
   0xc   :  { %294 = vsyncadd [#allocation5], 4294967264  ;;  %v211_v0 = vld [vmem:[%s378_s3 + $0x38] sm:$0xff]  ;;  %v210_v1 = vld [vmem:[%s378_s3 + $0x30] sm:$0xff] }
   0xd   :  { %141 = vmatpush.bf16.msra.mxu0 %v211_v0  ;;  %v209_v2 = vld [vmem:[%s378_s3 + $0x28] sm:$0xff]  ;;  %v208_v3 = vld [vmem:[%s378_s3 + $0x20] sm:$0xff]  ;;  %v207_v5 = vld [vmem:[%s378_s3 + $0x18] sm:$0xff] }
   0xe   :  { %v215_v4 = vld [vmem:[%s376_s1] ss:$0 sm:$0xff]  ;;  %v206_v9 = vld [vmem:[%s378_s3 + $0x10] sm:$0xff]  ;;  %v205_v11 = vld [vmem:[%s378_s3 + $0x8] sm:$0xff] }
   0xf   :  { %v64_v6 = vld [vmem:[%s375_s0] sm:$0xff] }
  0x10   :  { %v69_v7 = vmul.f32 %v215_v4, %v64_v6  ;;  %v216_v8 = vld [vmem:[#allocation2] ss:$0 sm:$0xff]  ;;  %v217_v15 = vld [vmem:[#allocation4] ss:$0 sm:$0xff]  ;;  %v218_v16 = vld [vmem:[#allocation6] ss:$0 sm:$0xff] }
  0x11   :  { %142 = vmatpush.bf16.msra.mxu0 %v210_v1  ;;  %v204_v13 = vld [vmem:[%s378_s3] sm:$0xff] }
  0x12   :  { %v74_v10 = vadd.f32 %v216_v8, %v69_v7 }
  0x14   :  { %v75_v12 = vmax.f32 %v74_v10, 0.0 }
  0x15   :  { %143 = vmatpush.bf16.msra.mxu0 %v209_v2 }
  0x16   :  { %v76_v14 = vpack.c.bf16 %v75_v12, %v75_v12 }
  0x19   :  { %144 = vmatpush.bf16.msra.mxu0 %v208_v3 }
  0x1d   :  { %145 = vmatpush.bf16.msra.mxu0 %v207_v5 }
  0x21   :  { %146 = vmatpush.bf16.msra.mxu0 %v206_v9 }
  0x25   :  { %147 = vmatpush.bf16.msra.mxu0 %v205_v11 }
  0x29   :  { %148 = vmatpush.bf16.msra.mxu0 %v204_v13 }
  0x2c   :  { %149 = vmatmul.bf16.vlgmr.msra.gmra.mxu0 %v76_v14 }
  0xa9   :  { %v150_v17 = vpop.f32.mrf.mxu0 }
  0xaa   :  { %v158_v18 = vmul.f32 %v217_v15, %v150_v17 }
  0xac   :  { %v163_v19 = vadd.f32 %v218_v16, %v158_v18 }
  0xae   :  { %v164_v20 = vmax.f32 %v163_v19, 0.0 }
  0xb0   :  { %165 = vst [vmem:[%s381_s6] sm:$0xff] %v164_v20 }
  0xb1   :  { %v152_v21 = vpop.f32.mrf.mxu0 }
  0xb2   :  { %170 = vsyncpa [#allocation3], 1 }
  0xb3   :  { %171 = vsyncpa [#allocation5], 1 }

// kernel: densenet_forward.28
= control target key start
LH: loop header
LB: loop body
LE: loop exit
PB: predicated region body
PF: predicated region fallthrough
CT: control target
= control target key end

     0   :  { %s1549_s12 = smov 0   ;;  %s1790_s0 = inlined_call_operand.vmem [shape: f32[32,128], index: 0, kind: input, shape index: {}]   ;;  %s1791_s1 = inlined_call_operand.vmem [shape: f32[32,128], index: 1, kind: input, shape index: {}]   ;;  %s1792_s2 = inlined_call_operand.vmem [shape: bf16[1152,128], index: 2, kind: input, shape index: {}]   ;;  %s1793_s3 = inlined_call_operand.vmem [shape: f32[32,128], index: 3, kind: output, shape index: {}]  }
   0x1 LB: > { %s1138_s13 = sadd.s32 4294967295, %s1526_s12   ;;  %p1142_p0 = scmp.ge.s32.totalorder %s1526_s12, 1  ;;  %s1526_s12 = sphi %s1549_s12, %s13_s12  }
   0x2   : > { %p149_p1 = scmp.lt.s32.totalorder %s1526_s12, 3 }
   0x4   : > { %p150_p2 = pnand %p1142_p0, %p149_p1 }
   0x5   : > { %s1143_s20 = sshll.u32 (!%p150_p2), %s1138_s13, 1 }
   0x6   : > { %153 = sbr.rel (%p150_p2) target bundleno = 246 (0xf6), region = 32  ;;  %p179_p3 = scmp.lt.s32.totalorder (!%p150_p2), %s1143_s20, 3 }
   0xb   : > { %v1446_v0 = vld [vmem:[%s1792_s2 + $0x38] sm:$0xff]  ;;  %v1528_v4 = vmov 0.0   ;;  %v1445_v5 = vld [vmem:[%s1792_s2 + $0x30] sm:$0xff]  ;;  %v1444_v9 = vld [vmem:[%s1792_s2 + $0x28] sm:$0xff]  ;;  %s1795_s20 = smov (!%p179_p3, %s1143_s20), 3 }
   0xc   : > { %v1462_v1 = vld [vmem:[%s1792_s2 + $0xb8] sm:$0xff]  ;;  %196 = vst [vmem:[#allocation2] sm:$0xff] %v1528_v4  ;;  %938 = vmatpush.bf16.msra.mxu0 %v1446_v0  ;;  %v1461_v6 = vld [vmem:[%s1792_s2 + $0xb0] sm:$0xff]  ;;  %v1460_v10 = vld [vmem:[%s1792_s2 + $0xa8] sm:$0xff]  ;;  %s1599_s17 = sshll.u32 %s1795_s20, 3 }
   0xd   : > { %v1454_v2 = vld [vmem:[%s1792_s2 + $0x78] sm:$0xff]  ;;  %966 = vmatpush.bf16.msra.mxu2 %v1462_v1  ;;  %197 = vst [vmem:[#allocation2 + $0x8] sm:$0xff] %v1528_v4  ;;  %v1453_v7 = vld [vmem:[%s1792_s2 + $0x70] sm:$0xff]  ;;  %v1452_v11 = vld [vmem:[%s1792_s2 + $0x68] sm:$0xff]  ;;  %s182_s25 = scalar_lea.vmem %s1790_s0, %s1599_s17  ;;  %s188_s13 = scalar_lea.vmem %s1791_s1, %s1599_s17 }
   0xe   : > { %v1470_v3 = vld [vmem:[%s1792_s2 + $0xf8] sm:$0xff]  ;;  %952 = vmatpush.bf16.msra.mxu1 %v1454_v2  ;;  %v1469_v8 = vld [vmem:[%s1792_s2 + $0xf0] sm:$0xff]  ;;  %198 = vst [vmem:[#allocation2 + $0x10] sm:$0xff] %v1528_v4  ;;  %v1468_v12 = vld [vmem:[%s1792_s2 + $0xe8] sm:$0xff]  ;;  %s194_s16 = scalar_lea.vmem %s1793_s3, %s1599_s17 }
   0xf   : > { %980 = vmatpush.bf16.msra.mxu3 %v1470_v3  ;;  %199 = vst [vmem:[#allocation2 + $0x18] sm:$0xff] %v1528_v4  ;;  %v1443_v13 = vld [vmem:[%s1792_s2 + $0x20] sm:$0xff]  ;;  %v1442_v17 = vld [vmem:[%s1792_s2 + $0x18] sm:$0xff]  ;;  %v205_v23 = vld [vmem:[%s182_s25 + $0x8] sm:$0xf] }
  0x10   : > { %200 = vst [vmem:[#allocation2 + $0x20] sm:$0xf] %v1528_v4  ;;  %939 = vmatpush.bf16.msra.mxu0 %v1445_v5  ;;  %v1459_v14 = vld [vmem:[%s1792_s2 + $0xa0] sm:$0xff]  ;;  %v1458_v18 = vld [vmem:[%s1792_s2 + $0x98] sm:$0xff]  ;;  %v1441_v25 = vld [vmem:[%s1792_s2 + $0x10] sm:$0xff] }
  0x11   : > { %967 = vmatpush.bf16.msra.mxu2 %v1461_v6  ;;  %v1451_v15 = vld [vmem:[%s1792_s2 + $0x60] sm:$0xff]  ;;  %v1450_v19 = vld [vmem:[%s1792_s2 + $0x58] sm:$0xff]  ;;  %v1457_v26 = vld [vmem:[%s1792_s2 + $0x90] sm:$0xff]  ;;  %206 = vst [vmem:[#allocation2 + $0x13] sm:$0xf] %v205_v23 }
  0x12   : > { %953 = vmatpush.bf16.msra.mxu1 %v1453_v7  ;;  %v1467_v16 = vld [vmem:[%s1792_s2 + $0xe0] sm:$0xff]  ;;  %v1466_v20 = vld [vmem:[%s1792_s2 + $0xd8] sm:$0xff]  ;;  %v1449_v28 = vld [vmem:[%s1792_s2 + $0x50] sm:$0xff] }
  0x13   : > { %981 = vmatpush.bf16.msra.mxu3 %v1469_v8  ;;  %v201_v21 = vld [vmem:[%s182_s25] sm:$0xf]  ;;  %v203_v22 = vld [vmem:[%s182_s25 + $0x4] sm:$0xf]  ;;  %v1465_v29 = vld [vmem:[%s1792_s2 + $0xd0] sm:$0xff] }
  0x14   : > { %940 = vmatpush.bf16.msra.mxu0 %v1444_v9  ;;  %202 = vst [vmem:[#allocation2 + $0x7] sm:$0xf] %v201_v21  ;;  %v209_v24 = vld [vmem:[#allocation2] sm:$0xf]  ;;  %v207_v31 = vld [vmem:[%s182_s25 + $0xc] sm:$0xf] }
  0x15   : > { %968 = vmatpush.bf16.msra.mxu2 %v1460_v10  ;;  %204 = vst [vmem:[#allocation2 + $0xd] sm:$0xf] %v203_v22  ;;  %v237_v27 = vld [vmem:[#allocation2 + $0x2] sm:$0xf]  ;;  %v1440_v32 = vld [vmem:[%s1792_s2 + $0x8] sm:$0xff]  ;;  %v1478_v40 = vld [vmem:[%s1792_s2 + $0x138] sm:$0xff] }
  0x16   : > { %954 = vmatpush.bf16.msra.mxu1 %v1452_v11  ;;  %v223_v30 = vld [vmem:[#allocation2 + $0x1] sm:$0xf]  ;;  %210 = vst [vmem:[#allocation3] sm:$0xf] %v209_v24  ;;  %v1456_v33 = vld [vmem:[%s1792_s2 + $0x88] sm:$0xff]  ;;  %v1494_v41 = vld [vmem:[%s1792_s2 + $0x1b8] sm:$0xff] }
  0x17   : > { %982 = vmatpush.bf16.msra.mxu3 %v1468_v12  ;;  %238 = vst [vmem:[#allocation3 + $0x10] sm:$0xf] %v237_v27  ;;  %v1448_v34 = vld [vmem:[%s1792_s2 + $0x48] sm:$0xff]  ;;  %v1439_v36 = vld [vmem:[%s1792_s2] sm:$0xff]  ;;  %v1486_v55 = vld [vmem:[%s1792_s2 + $0x178] sm:$0xff] }
  0x18   : > { %941 = vmatpush.bf16.msra.mxu0 %v1443_v13  ;;  %224 = vst [vmem:[#allocation3 + $0x80] sm:$0xf] %v223_v30  ;;  %v1464_v35 = vld [vmem:[%s1792_s2 + $0xc8] sm:$0xff]  ;;  %v1455_v37 = vld [vmem:[%s1792_s2 + $0x80] sm:$0xff]  ;;  %v218_v47 = vld [vmem:[#allocation2 + $0x12] sm:$0xf] }
  0x19   : > { %969 = vmatpush.bf16.msra.mxu2 %v1459_v14  ;;  %208 = vst [vmem:[#allocation2 + $0x19] sm:$0xf] %v207_v31  ;;  %v1447_v46 = vld [vmem:[%s1792_s2 + $0x40] sm:$0xff]  ;;  %v246_v48 = vld [vmem:[#allocation2 + $0x14] sm:$0xf]  ;;  %v220_v49 = vrot.slane %v218_v47, 4 }
  0x1a   : > { %955 = vmatpush.bf16.msra.mxu1 %v1451_v15  ;;  %v248_v51 = vrot.slane %v246_v48, 4  ;;  %v1463_v52 = vld [vmem:[%s1792_s2 + $0xc0] sm:$0xff]  ;;  %v232_v54 = vld [vmem:[#allocation2 + $0x13] sm:$0xf]  ;;  %v1502_v56 = vld [vmem:[%s1792_s2 + $0x1f8] sm:$0xff] }
  0x1b   : > { %983 = vmatpush.bf16.msra.mxu3 %v1467_v16  ;;  %v211_v38 = vld [vmem:[#allocation2 + $0x6] sm:$0xf]  ;;  %222 = vst [vmem:[#allocation3 + $0x60] sm:$0xf0] %v220_v49  ;;  %v1477_v58 = vld [vmem:[%s1792_s2 + $0x130] sm:$0xff]  ;;  %v234_v59 = vrot.slane %v232_v54, 4 }
  0x1c   : > { %942 = vmatpush.bf16.msra.mxu0 %v1442_v17  ;;  %v239_v39 = vld [vmem:[#allocation2 + $0x8] sm:$0xf]  ;;  %v213_v42 = vrot.slane %v211_v38, 4  ;;  %v216_v43 = vld [vmem:[#allocation2 + $0xc] sm:$0xf]  ;;  %v1493_v61 = vld [vmem:[%s1792_s2 + $0x1b0] sm:$0xff] }
  0x1d   : > { %970 = vmatpush.bf16.msra.mxu2 %v1458_v18  ;;  %v241_v44 = vrot.slane %v239_v39, 4  ;;  %v225_v45 = vld [vmem:[#allocation2 + $0x7] sm:$0xf]  ;;  %217 = vst [vmem:[#allocation3 + $0x60] sm:$0xf] %v216_v43  ;;  %v1485_v62 = vld [vmem:[%s1792_s2 + $0x170] sm:$0xff] }
  0x1e   : > { %956 = vmatpush.bf16.msra.mxu1 %v1450_v19  ;;  %215 = vst [vmem:[#allocation3] sm:$0xf0] %v213_v42  ;;  %v244_v50 = vld [vmem:[#allocation2 + $0xe] sm:$0xf]  ;;  %v227_v53 = vrot.slane %v225_v45, 4  ;;  %v1475_v16 = vld [vmem:[%s1792_s2 + $0x120] sm:$0xff] }
  0x1f   : > { %984 = vmatpush.bf16.msra.mxu3 %v1466_v20  ;;  %243 = vst [vmem:[#allocation3 + $0x10] sm:$0xf0] %v241_v44  ;;  %v230_v57 = vld [vmem:[#allocation2 + $0xd] sm:$0xf]  ;;  %v251_v1 = vld [vmem:[#allocation2 + $0x6] sm:$0xf] }
  0x20   : > { %943 = vmatpush.bf16.msra.mxu0 %v1441_v25  ;;  %245 = vst [vmem:[#allocation3 + $0x48] sm:$0xf] %v244_v50  ;;  %v253_v60 = vld [vmem:[#allocation2 + $0xc] sm:$0xf]  ;;  %v260_v63 = vld [vmem:[#allocation2 + $0x18] sm:$0xf] }
  0x21   : > { %971 = vmatpush.bf16.msra.mxu2 %v1457_v26  ;;  %250 = vst [vmem:[#allocation3 + $0x48] sm:$0xf0] %v248_v51  ;;  %v1501_v0 = vld [vmem:[%s1792_s2 + $0x1f0] sm:$0xff]  ;;  %v255_v2 = vrot.slane %v253_v60, 4  ;;  %v1476_v3 = vld [vmem:[%s1792_s2 + $0x128] sm:$0xff]  ;;  %v262_v8 = vrot.slane %v260_v63, 4 }
  0x22   : > { %957 = vmatpush.bf16.msra.mxu1 %v1449_v28  ;;  %229 = vst [vmem:[#allocation3 + $0x80] sm:$0xf0] %v227_v53  ;;  %v1492_v4 = vld [vmem:[%s1792_s2 + $0x1a8] sm:$0xff]  ;;  %v258_v7 = vld [vmem:[#allocation2 + $0x12] sm:$0xf]  ;;  %v1491_v22 = vld [vmem:[%s1792_s2 + $0x1a0] sm:$0xff] }
  0x23   : > { %985 = vmatpush.bf16.msra.mxu3 %v1465_v29  ;;  %231 = vst [vmem:[#allocation3 + $0x70] sm:$0xf] %v230_v57  ;;  %v267_v5 = vld [vmem:[#allocation2 + $0xd] sm:$0xf]  ;;  %v265_v9 = vld [vmem:[#allocation2 + $0x7] sm:$0xf] }
  0x24   : > { %944 = vmatpush.bf16.msra.mxu0 %v1440_v32  ;;  %236 = vst [vmem:[#allocation3 + $0x70] sm:$0xf0] %v234_v59  ;;  %v274_v10 = vld [vmem:[#allocation2 + $0x19] sm:$0xf]  ;;  %v1484_v11 = vld [vmem:[%s1792_s2 + $0x168] sm:$0xff]  ;;  %v269_v14 = vrot.slane %v267_v5, 4 }
  0x25   : > { %972 = vmatpush.bf16.msra.mxu2 %v1456_v33  ;;  %v335_v6 = vld [vmem:[#allocation3] sm:$0xff]  ;;  %252 = vst [vmem:[#allocation3 + $0x38] sm:$0xf] %v251_v1  ;;  %v295_v18 = vld [vmem:[#allocation2 + $0x12] sm:$0xf]  ;;  %v276_v21 = vrot.slane %v274_v10, 4 }
  0x26   : > { %958 = vmatpush.bf16.msra.mxu1 %v1448_v34  ;;  %v344_v12 = vld [vmem:[#allocation3 + $0x60] sm:$0xff]  ;;  %v337_v13 = vld [vmem:[#allocation3 + $0x10] sm:$0xff]  ;;  %257 = vst [vmem:[#allocation3 + $0x38] sm:$0xf0] %v255_v2  ;;  %v272_v20 = vld [vmem:[#allocation2 + $0x13] sm:$0xf] }
  0x27   : > { %986 = vmatpush.bf16.msra.mxu3 %v1464_v35  ;;  %v1500_v15 = vld [vmem:[%s1792_s2 + $0x1e8] sm:$0xff]  ;;  %v353_v17 = vpack.c.bf16 %v344_v12, %v335_v6  ;;  %259 = vst [vmem:[#allocation3 + $0x40] sm:$0xf] %v258_v7  ;;  %v302_v25 = vld [vmem:[#allocation2 + $0x1e] sm:$0xf]  ;;  %v297_v28 = vrot.slane %v295_v18, 4 }
  0x28   : > { %945 = vmatpush.bf16.msra.mxu0 %v1439_v36  ;;  %v346_v19 = vld [vmem:[#allocation3 + $0x48] sm:$0xff]  ;;  %264 = vst [vmem:[#allocation3 + $0x40] sm:$0xf0] %v262_v8  ;;  %v1483_v26 = vld [vmem:[%s1792_s2 + $0x160] sm:$0xff]  ;;  %v293_v27 = vld [vmem:[#allocation2 + $0xc] sm:$0xf] }
  0x29   : > { %973 = vmatpush.bf16.msra.mxu2 %v1455_v37  ;;  %v355_v23 = vpack.c.bf16 %v346_v19, %v337_v13  ;;  %v336_v24 = vld [vmem:[#allocation3 + $0x80] sm:$0xff]  ;;  %266 = vst [vmem:[#allocation3 + $0x88] sm:$0xf] %v265_v9  ;;  %v1499_v29 = vld [vmem:[%s1792_s2 + $0x1e0] sm:$0xff]  ;;  %v1474_v32 = vld [vmem:[%s1792_s2 + $0x118] sm:$0xff]  ;;  %v304_v35 = vrot.slane %v302_v25, 4 }
  0x2a   : > { %959 = vmatpush.bf16.msra.mxu1 %v1447_v46  ;;  %271 = vst [vmem:[#allocation3 + $0x88] sm:$0xf0] %v269_v14  ;;  %v281_v31 = vld [vmem:[#allocation2 + $0xe] sm:$0xf]  ;;  %v300_v34 = vld [vmem:[#allocation2 + $0x18] sm:$0xf] }
  0x2b   : > { %987 = vmatpush.bf16.msra.mxu3 %v1463_v52  ;;  %946 = vmatmul.bf16.vlgmr.msra.gmra.mxu0 %v353_v17  ;;  %v345_v30 = vld [vmem:[#allocation3 + $0x70] sm:$0xff]  ;;  %273 = vst [vmem:[#allocation3 + $0x20] sm:$0xf] %v272_v20  ;;  %v309_v44 = vld [vmem:[#allocation2 + $0x13] sm:$0xf]  ;;  %v1488_v59 = vld [vmem:[%s1792_s2 + $0x188] sm:$0xff] }
  0x2c   : > { %994 = vmatpush.bf16.msrb.mxu0 %v1478_v40  ;;  %974 = vmatmul.bf16.vlgmr.msra.gmra.mxu2 %v355_v23  ;;  %v354_v33 = vpack.c.bf16 %v345_v30, %v336_v24  ;;  %278 = vst [vmem:[#allocation3 + $0x20] sm:$0xf0] %v276_v21  ;;  %v1490_v36 = vld [vmem:[%s1792_s2 + $0x198] sm:$0xff]  ;;  %v279_v40 = vld [vmem:[#allocation2 + $0x8] sm:$0xf]  ;;  %v1473_v48 = vld [vmem:[%s1792_s2 + $0x110] sm:$0xff] }
  0x2d   : > { %1022 = vmatpush.bf16.msrb.mxu2 %v1494_v41  ;;  %v338_v37 = vld [vmem:[#allocation3 + $0x38] sm:$0xff]  ;;  %294 = vst [vmem:[#allocation3 + $0x8] sm:$0xf] %v293_v27  ;;  %v288_v38 = vld [vmem:[#allocation2 + $0x1a] sm:$0xf]  ;;  %v283_v41 = vrot.slane %v281_v31, 4 }
  0x2e   : > { %1008 = vmatpush.bf16.msrb.mxu1 %v1486_v55  ;;  %v1482_v39 = vld [vmem:[%s1792_s2 + $0x158] sm:$0xff]  ;;  %299 = vst [vmem:[#allocation3 + $0x8] sm:$0xf0] %v297_v28  ;;  %v286_v46 = vld [vmem:[#allocation2 + $0x14] sm:$0xf]  ;;  %v290_v47 = vrot.slane %v288_v38, 4 }
  0x2f   : > { %1036 = vmatpush.bf16.msrb.mxu3 %v1502_v56  ;;  %960 = vmatmul.bf16.vlgmr.msra.gmra.mxu1 %v354_v33  ;;  %v347_v42 = vld [vmem:[#allocation3 + $0x40] sm:$0xff]  ;;  %v1498_v43 = vld [vmem:[%s1792_s2 + $0x1d8] sm:$0xff]  ;;  %301 = vst [vmem:[#allocation3 + $0x68] sm:$0xf] %v300_v34  ;;  %v1489_v49 = vld [vmem:[%s1792_s2 + $0x190] sm:$0xff]  ;;  %v311_v52 = vrot.slane %v309_v44, 4 }
  0x30   : > { %995 = vmatpush.bf16.msrb.mxu0 %v1477_v58  ;;  %v356_v45 = vpack.c.bf16 %v347_v42, %v338_v37  ;;  %306 = vst [vmem:[#allocation3 + $0x68] sm:$0xf0] %v304_v35  ;;  %v316_v50 = vld [vmem:[#allocation2 + $0x1f] sm:$0xf]  ;;  %v307_v51 = vld [vmem:[#allocation2 + $0xd] sm:$0xf] }
  0x31   : > { %1023 = vmatpush.bf16.msrb.mxu2 %v1493_v61  ;;  %280 = vst [vmem:[#allocation3 + $0x28] sm:$0xf] %v279_v40  ;;  %v1481_v53 = vld [vmem:[%s1792_s2 + $0x150] sm:$0xff]  ;;  %v314_v56 = vld [vmem:[#allocation2 + $0x19] sm:$0xf]  ;;  %v318_v57 = vrot.slane %v316_v50, 4 }
  0x32   : > { %1009 = vmatpush.bf16.msrb.mxu1 %v1485_v62  ;;  %988 = vmatmul.bf16.vlgmr.msra.gmra.mxu3 %v356_v45  ;;  %285 = vst [vmem:[#allocation3 + $0x28] sm:$0xf0] %v283_v41  ;;  %v1497_v54 = vld [vmem:[%s1792_s2 + $0x1d0] sm:$0xff]  ;;  %v1472_v58 = vld [vmem:[%s1792_s2 + $0x108] sm:$0xff]  ;;  %v330_v60 = vld [vmem:[#allocation2 + $0x20] sm:$0xf] }
  0x33   : > { %1037 = vmatpush.bf16.msrb.mxu3 %v1501_v0  ;;  %287 = vst [vmem:[#allocation3 + $0x58] sm:$0xf] %v286_v46  ;;  %v323_v55 = vld [vmem:[#allocation2 + $0x14] sm:$0xf]  ;;  %v1480_v61 = vld [vmem:[%s1792_s2 + $0x148] sm:$0xff]  ;;  %v1471_v1 = vld [vmem:[%s1792_s2 + $0x100] sm:$0xff] }
  0x34   : > { %996 = vmatpush.bf16.msrb.mxu0 %v1476_v3  ;;  %292 = vst [vmem:[#allocation3 + $0x58] sm:$0xf0] %v290_v47  ;;  %v321_v62 = vld [vmem:[#allocation2 + $0xe] sm:$0xf]  ;;  %v325_v63 = vrot.slane %v323_v55, 4  ;;  %v1487_v2 = vld [vmem:[%s1792_s2 + $0x180] sm:$0xff] }
  0x35   : > { %1024 = vmatpush.bf16.msrb.mxu2 %v1492_v4  ;;  %308 = vst [vmem:[#allocation3 + $0x18] sm:$0xf] %v307_v51  ;;  %v1496_v0 = vld [vmem:[%s1792_s2 + $0x1c8] sm:$0xff]  ;;  %v339_v3 = vld [vmem:[#allocation3 + $0x88] sm:$0xff]  ;;  %v328_v4 = vld [vmem:[#allocation2 + $0x1a] sm:$0xf] }
  0x36   : > { %1010 = vmatpush.bf16.msrb.mxu1 %v1484_v11  ;;  %313 = vst [vmem:[#allocation3 + $0x18] sm:$0xf0] %v311_v52  ;;  %v332_v5 = vrot.slane %v330_v60, 4  ;;  %v348_v6 = vld [vmem:[#allocation3 + $0x20] sm:$0xff]  ;;  %v341_v7 = vld [vmem:[#allocation3 + $0x8] sm:$0xff]  ;;  %v1510_v9 = vld [vmem:[%s1792_s2 + $0x238] sm:$0xff] }
  0x37   : > { %1038 = vmatpush.bf16.msrb.mxu3 %v1500_v15  ;;  %315 = vst [vmem:[#allocation3 + $0x50] sm:$0xf] %v314_v56  ;;  %v350_v8 = vld [vmem:[#allocation3 + $0x68] sm:$0xff]  ;;  %v1479_v10 = vld [vmem:[%s1792_s2 + $0x140] sm:$0xff]  ;;  %v357_v14 = vpack.c.bf16 %v348_v6, %v339_v3  ;;  %v1508_v21 = vld [vmem:[%s1792_s2 + $0x228] sm:$0xff] }
  0x38   : > { %997 = vmatpush.bf16.msrb.mxu0 %v1475_v16  ;;  %320 = vst [vmem:[#allocation3 + $0x50] sm:$0xf0] %v318_v57  ;;  %v1495_v11 = vld [vmem:[%s1792_s2 + $0x1c0] sm:$0xff]  ;;  %v359_v15 = vpack.c.bf16 %v350_v8, %v341_v7  ;;  %v1509_v19 = vld [vmem:[%s1792_s2 + $0x230] sm:$0xff]  ;;  %v1506_v23 = vld [vmem:[%s1792_s2 + $0x218] sm:$0xff] }
  0x39   : > { %1025 = vmatpush.bf16.msrb.mxu2 %v1491_v22  ;;  %322 = vst [vmem:[#allocation3 + $0x78] sm:$0xf] %v321_v62  ;;  %v340_v12 = vld [vmem:[#allocation3 + $0x28] sm:$0xff]  ;;  %v1507_v22 = vld [vmem:[%s1792_s2 + $0x220] sm:$0xff]  ;;  %v1504_v25 = vld [vmem:[%s1792_s2 + $0x208] sm:$0xff] }
  0x3a   : > { %1011 = vmatpush.bf16.msrb.mxu1 %v1483_v26  ;;  %327 = vst [vmem:[#allocation3 + $0x78] sm:$0xf0] %v325_v63  ;;  %v1505_v24 = vld [vmem:[%s1792_s2 + $0x210] sm:$0xff]  ;;  %v1503_v26 = vld [vmem:[%s1792_s2 + $0x200] sm:$0xff] }
  0x3b   : > { %1039 = vmatpush.bf16.msrb.mxu3 %v1499_v29  ;;  %v349_v13 = vld [vmem:[#allocation3 + $0x58] sm:$0xff]  ;;  %329 = vst [vmem:[#allocation3 + $0x30] sm:$0xf] %v328_v4 }
  0x3c   : > { %998 = vmatpush.bf16.msrb.mxu0 %v1474_v32  ;;  %334 = vst [vmem:[#allocation3 + $0x30] sm:$0xf0] %v332_v5  ;;  %v358_v17 = vpack.c.bf16 %v349_v13, %v340_v12  ;;  %v1064_v57 = vld [vmem:[%s188_s13] sm:$0xff] }
  0x3d   : > { %1026 = vmatpush.bf16.msrb.mxu2 %v1490_v36  ;;  %v342_v16 = vld [vmem:[#allocation3 + $0x18] sm:$0xff] }
  0x3e   : > { %1012 = vmatpush.bf16.msrb.mxu1 %v1482_v39 }
  0x3f   : > { %1040 = vmatpush.bf16.msrb.mxu3 %v1498_v43  ;;  %v351_v18 = vld [vmem:[#allocation3 + $0x50] sm:$0xff] }
  0x40   : > { %999 = vmatpush.bf16.msrb.mxu0 %v1473_v48  ;;  %v360_v20 = vpack.c.bf16 %v351_v18, %v342_v16 }
  0x41   : > { %1027 = vmatpush.bf16.msrb.mxu2 %v1489_v49  ;;  %v343_v27 = vld [vmem:[#allocation3 + $0x78] sm:$0xff] }
  0x42   : > { %1013 = vmatpush.bf16.msrb.mxu1 %v1481_v53 }
  0x43   : > { %1041 = vmatpush.bf16.msrb.mxu3 %v1497_v54  ;;  %v352_v28 = vld [vmem:[#allocation3 + $0x30] sm:$0xff] }
  0x44   : > { %1000 = vmatpush.bf16.msrb.mxu0 %v1472_v58  ;;  %v361_v29 = vpack.c.bf16 %v352_v28, %v343_v27 }
  0x45   : > { %1028 = vmatpush.bf16.msrb.mxu2 %v1488_v59 }
  0x46   : > { %1014 = vmatpush.bf16.msrb.mxu1 %v1480_v61 }
  0x47   : > { %1042 = vmatpush.bf16.msrb.mxu3 %v1496_v0 }
  0x48   : > { %1001 = vmatpush.bf16.msrb.mxu0 %v1471_v1  ;;  %v1065_v1 = vld [vmem:[%s188_s13 + $0x8] sm:$0xff] }
  0x49   : > { %1029 = vmatpush.bf16.msrb.mxu2 %v1487_v2 }
  0x4a   : > { %1015 = vmatpush.bf16.msrb.mxu1 %v1479_v10 }
  0x4b   : > { %1043 = vmatpush.bf16.msrb.mxu3 %v1495_v11  ;;  %1002 = vmatmul.bf16.vlgmr.msrb.gmra.mxu0 %v357_v14 }
  0x4c   : > { %1050 = vmatpush.bf16.msra.mxu0 %v1510_v9  ;;  %1030 = vmatmul.bf16.vlgmr.msrb.gmra.mxu2 %v359_v15 }
  0x4d   : > { %1016 = vmatmul.bf16.vlgmr.msrb.gmra.mxu1 %v358_v17 }
  0x4e   : > { %1044 = vmatmul.bf16.vlgmr.msrb.gmra.mxu3 %v360_v20 }
  0x50   : > { %1051 = vmatpush.bf16.msra.mxu0 %v1509_v19 }
  0x54   : > { %1052 = vmatpush.bf16.msra.mxu0 %v1508_v21 }
  0x58   : > { %1053 = vmatpush.bf16.msra.mxu0 %v1507_v22 }
  0x5c   : > { %1054 = vmatpush.bf16.msra.mxu0 %v1506_v23 }
  0x60   : > { %1055 = vmatpush.bf16.msra.mxu0 %v1505_v24 }
  0x64   : > { %1056 = vmatpush.bf16.msra.mxu0 %v1504_v25 }
  0x68   : > { %1057 = vmatpush.bf16.msra.mxu0 %v1503_v26 }
  0x6b   : > { %1058 = vmatmul.bf16.vlgmr.msra.gmra.mxu0 %v361_v29 }
  0xa8   : > { %v947_v30 = vpop.f32.mrf.mxu0 }
  0xac   : > { %v961_v31 = vpop.f32.mrf.mxu1 }
  0xad   : > { %v962_v35 = vadd.f32 %v961_v31, %v947_v30 }
  0xaf   : > { %v975_v32 = vpop.f32.mrf.mxu2 }
  0xb0   : > { %v949_v33 = vpop.f32.mrf.mxu0  ;;  %v976_v37 = vadd.f32 %v975_v32, %v962_v35 }
  0xb4   : > { %v963_v36 = vpop.f32.mrf.mxu1 }
  0xb5   : > { %v989_v34 = vpop.f32.mrf.mxu3  ;;  %v964_v42 = vadd.f32 %v963_v36, %v949_v33 }
  0xb6   : > { %v990_v40 = vadd.f32 %v989_v34, %v976_v37 }
  0xb7   : > { %v977_v38 = vpop.f32.mrf.mxu2 }
  0xb8   : > { %v978_v46 = vadd.f32 %v977_v38, %v964_v42 }
  0xbd   : > { %v991_v41 = vpop.f32.mrf.mxu3 }
  0xbe   : > { %v992_v50 = vadd.f32 %v991_v41, %v978_v46 }
  0xc8   : > { %v1003_v39 = vpop.f32.mrf.mxu0 }
  0xc9   : > { %v1004_v43 = vadd.f32 %v1003_v39, %v990_v40 }
  0xca   : > { %v1017_v44 = vpop.f32.mrf.mxu1 }
  0xcb   : > { %v1018_v47 = vadd.f32 %v1017_v44, %v1004_v43 }
  0xcf   : > { %v1031_v45 = vpop.f32.mrf.mxu2 }
  0xd0   : > { %v1005_v48 = vpop.f32.mrf.mxu0  ;;  %v1032_v51 = vadd.f32 %v1031_v45, %v1018_v47 }
  0xd1   : > { %v1045_v49 = vpop.f32.mrf.mxu3  ;;  %v1006_v52 = vadd.f32 %v1005_v48, %v992_v50 }
  0xd2   : > { %v1019_v53 = vpop.f32.mrf.mxu1  ;;  %v1046_v54 = vadd.f32 %v1045_v49, %v1032_v51 }
  0xd3   : > { %v1020_v58 = vadd.f32 %v1019_v53, %v1006_v52 }
  0xd7   : > { %v1033_v55 = vpop.f32.mrf.mxu2 }
  0xd8   : > { %v1034_v60 = vadd.f32 %v1033_v55, %v1020_v58 }
  0xd9   : > { %v1047_v62 = vpop.f32.mrf.mxu3 }
  0xda   : > { %v1048_v63 = vadd.f32 %v1047_v62, %v1034_v60 }
  0xe8   : > { %v1059_v56 = vpop.f32.mrf.mxu0 }
  0xe9   : > { %v1060_v59 = vadd.f32 %v1059_v56, %v1046_v54 }
  0xeb   : > { %v1066_v61 = vadd.f32 %v1064_v57, %v1060_v59 }
  0xed   : > { %1068 = vst [vmem:[%s194_s16] sm:$0xff] %v1066_v61 }
  0xf0   : > { %v1061_v0 = vpop.f32.mrf.mxu0 }
  0xf1   : > { %v1062_v2 = vadd.f32 %v1061_v0, %v1048_v63 }
  0xf3   : > { %v1067_v3 = vadd.f32 %v1065_v1, %v1062_v2 }
  0xf5   : > { %1069 = vst [vmem:[%s194_s16 + $0x8] sm:$0xff] %v1067_v3 }
  0xf6 PF: > { %s13_s12 = sadd.s32 1, %s1526_s12  }
  0xf7   : > { %p10_p4 = scmp.ge.s32.totalorder %s13_s12, 4  }
  0xf9   :  { %12 = sbr.rel (!%p10_p4) target bundleno = 1 (0x1), region = 65 }

// kernel: densenet_forward.37
= control target key start
LH: loop header
LB: loop body
LE: loop exit
PB: predicated region body
PF: predicated region fallthrough
CT: control target
= control target key end

     0   :  { %s250_s3 = inlined_call_operand.vmem [shape: bf16[128,128], index: 3, kind: input, shape index: {}]   ;;  %s251_s1 = inlined_call_operand.vmem [shape: f32[1,128], index: 1, kind: input, shape index: {}]   ;;  %s252_s2 = inlined_call_operand.vmem [shape: f32[1,128], index: 2, kind: input, shape index: {}]   ;;  %s253_s4 = inlined_call_operand.vmem [shape: f32[1,128], index: 4, kind: input, shape index: {}]   ;;  %s254_s5 = inlined_call_operand.vmem [shape: f32[1,128], index: 5, kind: input, shape index: {}]   ;;  %s255_s0 = inlined_call_operand.vmem [shape: f32[2,128], index: 0, kind: input, shape index: {}]   ;;  %s256_s6 = inlined_call_operand.vmem [shape: f32[2,128], index: 6, kind: output, shape index: {}]  }
   0x1   :  { %v168_v0 = vld [vmem:[%s250_s3 + $0x38] sm:$0xff]  ;;  %v167_v1 = vld [vmem:[%s250_s3 + $0x30] sm:$0xff]  ;;  %v166_v2 = vld [vmem:[%s250_s3 + $0x28] sm:$0xff] }
   0x2   :  { %100 = vmatpush.bf16.msra.mxu0 %v168_v0  ;;  %v165_v3 = vld [vmem:[%s250_s3 + $0x20] sm:$0xff]  ;;  %v164_v5 = vld [vmem:[%s250_s3 + $0x18] sm:$0xff]  ;;  %v163_v9 = vld [vmem:[%s250_s3 + $0x10] sm:$0xff] }
   0x3   :  { %v169_v4 = vld [vmem:[%s251_s1] ss:$0 sm:$0xff]  ;;  %v162_v11 = vld [vmem:[%s250_s3 + $0x8] sm:$0xff] }
   0x4   :  { %v23_v6 = vld [vmem:[%s255_s0] sm:$0x3] }
   0x5   :  { %v28_v7 = vmul.f32 %v169_v4, %v23_v6  ;;  %v170_v8 = vld [vmem:[%s252_s2] ss:$0 sm:$0xff] }
   0x6   :  { %101 = vmatpush.bf16.msra.mxu0 %v167_v1  ;;  %v161_v13 = vld [vmem:[%s250_s3] sm:$0xff] }
   0x7   :  { %v33_v10 = vadd.f32 %v170_v8, %v28_v7  ;;  %v171_v15 = vld [vmem:[%s253_s4] ss:$0 sm:$0xff] }
   0x8   :  { %v172_v16 = vld [vmem:[%s254_s5] ss:$0 sm:$0xff] }
   0x9   :  { %v34_v12 = vmax.f32 %v33_v10, 0.0 }
   0xa   :  { %102 = vmatpush.bf16.msra.mxu0 %v166_v2 }
   0xb   :  { %v35_v14 = vpack.c.bf16 %v34_v12, %v34_v12 }
   0xe   :  { %103 = vmatpush.bf16.msra.mxu0 %v165_v3 }
  0x12   :  { %104 = vmatpush.bf16.msra.mxu0 %v164_v5 }
  0x16   :  { %105 = vmatpush.bf16.msra.mxu0 %v163_v9 }
  0x1a   :  { %106 = vmatpush.bf16.msra.mxu0 %v162_v11 }
  0x1e   :  { %107 = vmatpush.bf16.msra.mxu0 %v161_v13 }
  0x21   :  { %108 = vmatmul.bf16.vlgmr.msra.gmra.mxu0 %v35_v14 }
  0x9e   :  { %v109_v17 = vpop.f32.mrf.mxu0 }
  0x9f   :  { %v117_v18 = vmul.f32 %v171_v15, %v109_v17 }
  0xa1   :  { %v122_v19 = vadd.f32 %v172_v16, %v117_v18 }
  0xa3   :  { %v123_v20 = vmax.f32 %v122_v19, 0.0 }
  0xa5   :  { %124 = vst [vmem:[%s256_s6] sm:$0x3] %v123_v20 }
  0xa6   :  { %v111_v21 = vpop.f32.mrf.mxu0 }

// kernel: densenet_forward.33
= control target key start
LH: loop header
LB: loop body
LE: loop exit
PB: predicated region body
PF: predicated region fallthrough
CT: control target
= control target key end

     0   :  { %v1258_v3 = vmov 0.0   ;;  %s1513_s2 = inlined_call_operand.vmem [shape: bf16[1152,128], index: 2, kind: input, shape index: {}]   ;;  %s1514_s0 = inlined_call_operand.vmem [shape: f32[8,128], index: 0, kind: input, shape index: {}]   ;;  %s1515_s1 = inlined_call_operand.vmem [shape: f32[8,128], index: 1, kind: input, shape index: {}]   ;;  %s1516_s3 = inlined_call_operand.vmem [shape: f32[8,128], index: 3, kind: output, shape index: {}]  }
   0x1   :  { %v1192_v0 = vld [vmem:[%s1513_s2 + $0x38] sm:$0xff]  ;;  %14 = vst [vmem:[#allocation2] sm:$0xff] %v1258_v3  ;;  %v1191_v5 = vld [vmem:[%s1513_s2 + $0x30] sm:$0xff]  ;;  %v1190_v9 = vld [vmem:[%s1513_s2 + $0x28] sm:$0xff] }
   0x2   :  { %v1208_v1 = vld [vmem:[%s1513_s2 + $0xb8] sm:$0xff]  ;;  %16 = vst [vmem:[#allocation2 + $0x10] sm:$0xff] %v1258_v3  ;;  %773 = vmatpush.bf16.msra.mxu0 %v1192_v0  ;;  %v1207_v6 = vld [vmem:[%s1513_s2 + $0xb0] sm:$0xff]  ;;  %v1206_v10 = vld [vmem:[%s1513_s2 + $0xa8] sm:$0xff] }
   0x3   :  { %v1216_v2 = vld [vmem:[%s1513_s2 + $0xf8] sm:$0xff]  ;;  %799 = vmatpush.bf16.msra.mxu2 %v1208_v1  ;;  %15 = vst [vmem:[#allocation2 + $0x8] sm:$0xff] %v1258_v3  ;;  %v1215_v7 = vld [vmem:[%s1513_s2 + $0xf0] sm:$0xff]  ;;  %v1214_v11 = vld [vmem:[%s1513_s2 + $0xe8] sm:$0xff] }
   0x4   :  { %v1200_v4 = vld [vmem:[%s1513_s2 + $0x78] sm:$0xff]  ;;  %812 = vmatpush.bf16.msra.mxu3 %v1216_v2  ;;  %v1199_v8 = vld [vmem:[%s1513_s2 + $0x70] sm:$0xff]  ;;  %17 = vst [vmem:[#allocation2 + $0x18] sm:$0xff] %v1258_v3  ;;  %v1198_v12 = vld [vmem:[%s1513_s2 + $0x68] sm:$0xff] }
   0x5   :  { %786 = vmatpush.bf16.msra.mxu1 %v1200_v4  ;;  %v1189_v13 = vld [vmem:[%s1513_s2 + $0x20] sm:$0xff]  ;;  %v1188_v17 = vld [vmem:[%s1513_s2 + $0x18] sm:$0xff]  ;;  %v1187_v22 = vld [vmem:[%s1513_s2 + $0x10] sm:$0xff] }
   0x6   :  { %774 = vmatpush.bf16.msra.mxu0 %v1191_v5  ;;  %v1205_v14 = vld [vmem:[%s1513_s2 + $0xa0] sm:$0xff]  ;;  %v1204_v18 = vld [vmem:[%s1513_s2 + $0x98] sm:$0xff]  ;;  %v1203_v25 = vld [vmem:[%s1513_s2 + $0x90] sm:$0xff] }
   0x7   :  { %800 = vmatpush.bf16.msra.mxu2 %v1207_v6  ;;  %v1213_v15 = vld [vmem:[%s1513_s2 + $0xe0] sm:$0xff]  ;;  %v1212_v19 = vld [vmem:[%s1513_s2 + $0xd8] sm:$0xff]  ;;  %v1211_v26 = vld [vmem:[%s1513_s2 + $0xd0] sm:$0xff] }
   0x8   :  { %813 = vmatpush.bf16.msra.mxu3 %v1215_v7  ;;  %v1197_v16 = vld [vmem:[%s1513_s2 + $0x60] sm:$0xff]  ;;  %v1196_v20 = vld [vmem:[%s1513_s2 + $0x58] sm:$0xff]  ;;  %v1195_v28 = vld [vmem:[%s1513_s2 + $0x50] sm:$0xff] }
   0x9   :  { %787 = vmatpush.bf16.msra.mxu1 %v1199_v8  ;;  %v18_v21 = vld [vmem:[%s1514_s0] sm:$0x3]  ;;  %v22_v23 = vld [vmem:[%s1514_s0 + $0x4] sm:$0x3]  ;;  %v60_v24 = vld [vmem:[#allocation2 + $0x2] sm:$0x3] }
   0xa   :  { %775 = vmatpush.bf16.msra.mxu0 %v1190_v9  ;;  %19 = vst [vmem:[#allocation2 + $0x5] sm:$0x3] %v18_v21  ;;  %v67_v27 = vld [vmem:[#allocation2 + $0x12] sm:$0x3]  ;;  %v26_v30 = vld [vmem:[#allocation2] sm:$0x3] }
   0xb   :  { %801 = vmatpush.bf16.msra.mxu2 %v1206_v10  ;;  %23 = vst [vmem:[#allocation2 + $0x15] sm:$0x3] %v22_v23  ;;  %v69_v29 = vrot.slane %v67_v27, 4  ;;  %v33_v31 = vld [vmem:[#allocation2 + $0x10] sm:$0x3]  ;;  %v1186_v35 = vld [vmem:[%s1513_s2 + $0x8] sm:$0xff] }
   0xc   :  { %814 = vmatpush.bf16.msra.mxu3 %v1214_v11  ;;  %61 = vst [vmem:[#allocation3 + $0x18] sm:$0x3] %v60_v24  ;;  %v20_v32 = vld [vmem:[%s1514_s0 + $0x2] sm:$0x3]  ;;  %v35_v33 = vrot.slane %v33_v31, 4  ;;  %v1202_v36 = vld [vmem:[%s1513_s2 + $0x88] sm:$0xff] }
   0xd   :  { %788 = vmatpush.bf16.msra.mxu1 %v1198_v12  ;;  %27 = vst [vmem:[#allocation3 + $0x30] sm:$0x3] %v26_v30  ;;  %v24_v34 = vld [vmem:[%s1514_s0 + $0x6] sm:$0x3]  ;;  %v1210_v37 = vld [vmem:[%s1513_s2 + $0xc8] sm:$0xff]  ;;  %v1224_v47 = vld [vmem:[%s1513_s2 + $0x138] sm:$0xff] }
   0xe   :  { %776 = vmatpush.bf16.msra.mxu0 %v1189_v13  ;;  %71 = vst [vmem:[#allocation3 + $0x18] sm:$0x30] %v69_v29  ;;  %v1194_v38 = vld [vmem:[%s1513_s2 + $0x48] sm:$0xff]  ;;  %v1185_v41 = vld [vmem:[%s1513_s2] sm:$0xff]  ;;  %v1240_v51 = vld [vmem:[%s1513_s2 + $0x1b8] sm:$0xff] }
   0xf   :  { %802 = vmatpush.bf16.msra.mxu2 %v1205_v14  ;;  %21 = vst [vmem:[#allocation2 + $0x9] sm:$0x3] %v20_v32  ;;  %v1201_v46 = vld [vmem:[%s1513_s2 + $0x80] sm:$0xff]  ;;  %v1248_v54 = vld [vmem:[%s1513_s2 + $0x1f8] sm:$0xff]  ;;  %v1223_v60 = vld [vmem:[%s1513_s2 + $0x130] sm:$0xff] }
  0x10   :  { %815 = vmatpush.bf16.msra.mxu3 %v1213_v15  ;;  %37 = vst [vmem:[#allocation3 + $0x30] sm:$0x30] %v35_v33  ;;  %v1209_v52 = vld [vmem:[%s1513_s2 + $0xc0] sm:$0xff]  ;;  %v1232_v55 = vld [vmem:[%s1513_s2 + $0x178] sm:$0xff]  ;;  %v1239_v61 = vld [vmem:[%s1513_s2 + $0x1b0] sm:$0xff] }
  0x11   :  { %789 = vmatpush.bf16.msra.mxu1 %v1197_v16  ;;  %v62_v39 = vld [vmem:[#allocation2 + $0x6] sm:$0x3]  ;;  %v28_v40 = vld [vmem:[#allocation2 + $0x4] sm:$0x3]  ;;  %25 = vst [vmem:[#allocation2 + $0x19] sm:$0x3] %v24_v34 }
  0x12   :  { %777 = vmatpush.bf16.msra.mxu0 %v1188_v17  ;;  %v64_v42 = vrot.slane %v62_v39, 6  ;;  %v72_v43 = vld [vmem:[#allocation2 + $0x16] sm:$0x3]  ;;  %v30_v44 = vrot.slane %v28_v40, 6  ;;  %v38_v45 = vld [vmem:[#allocation2 + $0x14] sm:$0x3] }
  0x13   :  { %803 = vmatpush.bf16.msra.mxu2 %v1204_v18  ;;  %v74_v48 = vrot.slane %v72_v43, 2  ;;  %v40_v49 = vrot.slane %v38_v45, 2  ;;  %v84_v50 = vld [vmem:[#allocation2 + $0x14] sm:$0x3]  ;;  %v1193_v53 = vld [vmem:[%s1513_s2 + $0x40] sm:$0xff]  ;;  %v1222_v8 = vld [vmem:[%s1513_s2 + $0x128] sm:$0xff] }
  0x14   :  { %816 = vmatpush.bf16.msra.mxu3 %v1212_v19  ;;  %66 = vst [vmem:[#allocation3 + $0x18] sm:$0xc] %v64_v42  ;;  %v77_v56 = vld [vmem:[#allocation2 + $0x4] sm:$0x3]  ;;  %v86_v57 = vrot.slane %v84_v50, 4  ;;  %v1247_v5 = vld [vmem:[%s1513_s2 + $0x1f0] sm:$0xff] }
  0x15   :  { %790 = vmatpush.bf16.msra.mxu1 %v1196_v20  ;;  %76 = vst [vmem:[#allocation3 + $0x18] sm:$0xc0] %v74_v48  ;;  %v45_v59 = vld [vmem:[#allocation2 + $0x5] sm:$0x3]  ;;  %v50_v63 = vld [vmem:[#allocation2 + $0x11] sm:$0x3] }
  0x16   :  { %778 = vmatpush.bf16.msra.mxu0 %v1187_v22  ;;  %32 = vst [vmem:[#allocation3 + $0x30] sm:$0xc] %v30_v44  ;;  %v79_v58 = vld [vmem:[#allocation2 + $0x8] sm:$0x3]  ;;  %v55_v1 = vld [vmem:[#allocation2 + $0x15] sm:$0x3] }
  0x17   :  { %804 = vmatpush.bf16.msra.mxu2 %v1203_v25  ;;  %42 = vst [vmem:[#allocation3 + $0x30] sm:$0xc0] %v40_v49  ;;  %v81_v62 = vrot.slane %v79_v58, 6  ;;  %v43_v3 = vld [vmem:[#allocation2 + $0x1] sm:$0x3]  ;;  %v47_v4 = vrot.slane %v45_v59, 6 }
  0x18   :  { %817 = vmatpush.bf16.msra.mxu3 %v1211_v26  ;;  %78 = vst [vmem:[#allocation3 + $0x10] sm:$0x3] %v77_v56  ;;  %v89_v0 = vld [vmem:[#allocation2 + $0x18] sm:$0x3]  ;;  %v52_v6 = vrot.slane %v50_v63, 4  ;;  %v1231_v9 = vld [vmem:[%s1513_s2 + $0x170] sm:$0xff] }
  0x19   :  { %791 = vmatpush.bf16.msra.mxu1 %v1195_v28  ;;  %83 = vst [vmem:[#allocation3 + $0x10] sm:$0xc] %v81_v62  ;;  %v91_v2 = vrot.slane %v89_v0, 2  ;;  %v130_v7 = vld [vmem:[#allocation2 + $0xc] sm:$0x3]  ;;  %v57_v10 = vrot.slane %v55_v1, 2 }
  0x1a   :  { %779 = vmatpush.bf16.msra.mxu0 %v1186_v35  ;;  %88 = vst [vmem:[#allocation3 + $0x10] sm:$0x30] %v86_v57  ;;  %v135_v11 = vld [vmem:[#allocation2 + $0x18] sm:$0x3]  ;;  %v1238_v12 = vld [vmem:[%s1513_s2 + $0x1a8] sm:$0xff]  ;;  %v132_v18 = vrot.slane %v130_v7, 6 }
  0x1b   :  { %805 = vmatpush.bf16.msra.mxu2 %v1202_v36  ;;  %93 = vst [vmem:[#allocation3 + $0x10] sm:$0xc0] %v91_v2  ;;  %v140_v14 = vld [vmem:[#allocation2 + $0x1c] sm:$0x3]  ;;  %v1246_v15 = vld [vmem:[%s1513_s2 + $0x1e8] sm:$0xff]  ;;  %v137_v20 = vrot.slane %v135_v11, 4 }
  0x1c   :  { %818 = vmatpush.bf16.msra.mxu3 %v1210_v37  ;;  %v181_v13 = vld [vmem:[#allocation3 + $0x18] sm:$0xff]  ;;  %44 = vst [vmem:[#allocation3] sm:$0x3] %v43_v3  ;;  %v128_v17 = vld [vmem:[#allocation2 + $0x8] sm:$0x3]  ;;  %v142_v24 = vrot.slane %v140_v14, 2 }
  0x1d   :  { %792 = vmatpush.bf16.msra.mxu1 %v1194_v38  ;;  %v190_v16 = vpack.c.bf16 %v181_v13, %v181_v13  ;;  %49 = vst [vmem:[#allocation3] sm:$0xc] %v47_v4  ;;  %v96_v21 = vld [vmem:[#allocation2 + $0x9] sm:$0x3]  ;;  %v101_v25 = vld [vmem:[#allocation2 + $0x15] sm:$0x3] }
  0x1e   :  { %780 = vmatpush.bf16.msra.mxu0 %v1185_v41  ;;  %v179_v19 = vld [vmem:[#allocation3 + $0x30] sm:$0xff]  ;;  %54 = vst [vmem:[#allocation3] sm:$0x30] %v52_v6  ;;  %v1230_v22 = vld [vmem:[%s1513_s2 + $0x168] sm:$0xff]  ;;  %v1221_v26 = vld [vmem:[%s1513_s2 + $0x120] sm:$0xff]  ;;  %v98_v31 = vrot.slane %v96_v21, 6 }
  0x1f   :  { %806 = vmatpush.bf16.msra.mxu2 %v1201_v46  ;;  %v188_v23 = vpack.c.bf16 %v179_v19, %v179_v19  ;;  %59 = vst [vmem:[#allocation3] sm:$0xc0] %v57_v10  ;;  %v1237_v27 = vld [vmem:[%s1513_s2 + $0x1a0] sm:$0xff]  ;;  %v106_v28 = vld [vmem:[#allocation2 + $0x19] sm:$0x3]  ;;  %v103_v33 = vrot.slane %v101_v25, 4 }
  0x20   :  { %819 = vmatpush.bf16.msra.mxu3 %v1209_v52  ;;  %129 = vst [vmem:[#allocation3 + $0x40] sm:$0x3] %v128_v17  ;;  %v1245_v29 = vld [vmem:[%s1513_s2 + $0x1e0] sm:$0xff]  ;;  %v147_v34 = vld [vmem:[#allocation2 + $0xd] sm:$0x3]  ;;  %v108_v37 = vrot.slane %v106_v28, 2 }
  0x21   :  { %793 = vmatpush.bf16.msra.mxu1 %v1193_v53  ;;  %134 = vst [vmem:[#allocation3 + $0x40] sm:$0xc] %v132_v18  ;;  %v94_v30 = vld [vmem:[#allocation2 + $0x5] sm:$0x3]  ;;  %781 = vmatmul.bf16.vlgmr.msra.gmra.mxu0 %v188_v23  ;;  %v152_v38 = vld [vmem:[#allocation2 + $0x19] sm:$0x3] }
  0x22   :  { %825 = vmatpush.bf16.msrb.mxu0 %v1224_v47  ;;  %807 = vmatmul.bf16.vlgmr.msra.gmra.mxu2 %v190_v16  ;;  %v182_v32 = vld [vmem:[#allocation3 + $0x10] sm:$0xff]  ;;  %139 = vst [vmem:[#allocation3 + $0x40] sm:$0x30] %v137_v20  ;;  %v1229_v35 = vld [vmem:[%s1513_s2 + $0x160] sm:$0xff]  ;;  %v1220_v39 = vld [vmem:[%s1513_s2 + $0x118] sm:$0xff]  ;;  %v149_v44 = vrot.slane %v147_v34, 6 }
  0x23   :  { %851 = vmatpush.bf16.msrb.mxu2 %v1240_v51  ;;  %v191_v36 = vpack.c.bf16 %v182_v32, %v182_v32  ;;  %144 = vst [vmem:[#allocation3 + $0x40] sm:$0xc0] %v142_v24  ;;  %v1236_v40 = vld [vmem:[%s1513_s2 + $0x198] sm:$0xff]  ;;  %v145_v43 = vld [vmem:[#allocation2 + $0x9] sm:$0x3]  ;;  %v154_v46 = vrot.slane %v152_v38, 4 }
  0x24   :  { %864 = vmatpush.bf16.msrb.mxu3 %v1248_v54  ;;  %95 = vst [vmem:[#allocation3 + $0x20] sm:$0x3] %v94_v30  ;;  %v157_v41 = vld [vmem:[#allocation2 + $0x1d] sm:$0x3]  ;;  %v113_v47 = vld [vmem:[#allocation2 + $0xa] sm:$0x3] }
  0x25   :  { %838 = vmatpush.bf16.msrb.mxu1 %v1232_v55  ;;  %v1244_v42 = vld [vmem:[%s1513_s2 + $0x1d8] sm:$0xff]  ;;  %100 = vst [vmem:[#allocation3 + $0x20] sm:$0xc] %v98_v31  ;;  %820 = vmatmul.bf16.vlgmr.msra.gmra.mxu3 %v191_v36  ;;  %v159_v50 = vrot.slane %v157_v41, 2  ;;  %v118_v51 = vld [vmem:[#allocation2 + $0x16] sm:$0x3] }
  0x26   :  { %826 = vmatpush.bf16.msrb.mxu0 %v1223_v60  ;;  %v180_v45 = vld [vmem:[#allocation3] sm:$0xff]  ;;  %105 = vst [vmem:[#allocation3 + $0x20] sm:$0x30] %v103_v33  ;;  %v1228_v49 = vld [vmem:[%s1513_s2 + $0x158] sm:$0xff]  ;;  %v1219_v52 = vld [vmem:[%s1513_s2 + $0x110] sm:$0xff]  ;;  %v115_v56 = vrot.slane %v113_v47, 6 }
  0x27   :  { %852 = vmatpush.bf16.msrb.mxu2 %v1239_v61  ;;  %v189_v48 = vpack.c.bf16 %v180_v45, %v180_v45  ;;  %110 = vst [vmem:[#allocation3 + $0x20] sm:$0xc0] %v108_v37  ;;  %v123_v53 = vld [vmem:[#allocation2 + $0x1a] sm:$0x3]  ;;  %v1235_v54 = vld [vmem:[%s1513_s2 + $0x190] sm:$0xff]  ;;  %v120_v58 = vrot.slane %v118_v51, 4 }
  0x28   :  { %865 = vmatpush.bf16.msrb.mxu3 %v1247_v5  ;;  %146 = vst [vmem:[#allocation3 + $0x38] sm:$0x3] %v145_v43  ;;  %v111_v55 = vld [vmem:[#allocation2 + $0x6] sm:$0x3]  ;;  %v1243_v57 = vld [vmem:[%s1513_s2 + $0x1d0] sm:$0xff]  ;;  %v125_v61 = vrot.slane %v123_v53, 2 }
  0x29   :  { %839 = vmatpush.bf16.msrb.mxu1 %v1231_v9  ;;  %151 = vst [vmem:[#allocation3 + $0x38] sm:$0xc] %v149_v44  ;;  %v164_v59 = vld [vmem:[#allocation2 + $0xe] sm:$0x3]  ;;  %v1227_v60 = vld [vmem:[%s1513_s2 + $0x150] sm:$0xff]  ;;  %v1233_v9 = vld [vmem:[%s1513_s2 + $0x180] sm:$0xff] }
  0x2a   :  { %827 = vmatpush.bf16.msrb.mxu0 %v1222_v8  ;;  %794 = vmatmul.bf16.vlgmr.msra.gmra.mxu1 %v189_v48  ;;  %156 = vst [vmem:[#allocation3 + $0x38] sm:$0x30] %v154_v46  ;;  %v169_v62 = vld [vmem:[#allocation2 + $0x1a] sm:$0x3]  ;;  %v1218_v63 = vld [vmem:[%s1513_s2 + $0x108] sm:$0xff]  ;;  %v166_v3 = vrot.slane %v164_v59, 6 }
  0x2b   :  { %853 = vmatpush.bf16.msrb.mxu2 %v1238_v12  ;;  %161 = vst [vmem:[#allocation3 + $0x38] sm:$0xc0] %v159_v50  ;;  %v174_v0 = vld [vmem:[#allocation2 + $0x1e] sm:$0x3]  ;;  %v1234_v1 = vld [vmem:[%s1513_s2 + $0x188] sm:$0xff]  ;;  %v171_v4 = vrot.slane %v169_v62, 4 }
  0x2c   :  { %866 = vmatpush.bf16.msrb.mxu3 %v1246_v15  ;;  %112 = vst [vmem:[#allocation3 + $0x28] sm:$0x3] %v111_v55  ;;  %v162_v2 = vld [vmem:[#allocation2 + $0xa] sm:$0x3]  ;;  %v176_v7 = vrot.slane %v174_v0, 2  ;;  %v1217_v8 = vld [vmem:[%s1513_s2 + $0x100] sm:$0xff] }
  0x2d   :  { %840 = vmatpush.bf16.msrb.mxu1 %v1230_v22  ;;  %117 = vst [vmem:[#allocation3 + $0x28] sm:$0xc] %v115_v56  ;;  %v1242_v5 = vld [vmem:[%s1513_s2 + $0x1c8] sm:$0xff]  ;;  %v185_v10 = vld [vmem:[#allocation3 + $0x40] sm:$0xff]  ;;  %v1256_v12 = vld [vmem:[%s1513_s2 + $0x238] sm:$0xff] }
  0x2e   :  { %828 = vmatpush.bf16.msrb.mxu0 %v1221_v26  ;;  %122 = vst [vmem:[#allocation3 + $0x28] sm:$0x30] %v120_v58  ;;  %v1226_v6 = vld [vmem:[%s1513_s2 + $0x148] sm:$0xff]  ;;  %v183_v11 = vld [vmem:[#allocation3 + $0x20] sm:$0xff]  ;;  %v194_v16 = vpack.c.bf16 %v185_v10, %v185_v10  ;;  %v1255_v18 = vld [vmem:[%s1513_s2 + $0x230] sm:$0xff] }
  0x2f   :  { %854 = vmatpush.bf16.msrb.mxu2 %v1237_v27  ;;  %127 = vst [vmem:[#allocation3 + $0x28] sm:$0xc0] %v125_v61  ;;  %v1241_v13 = vld [vmem:[%s1513_s2 + $0x1c0] sm:$0xff]  ;;  %v192_v17 = vpack.c.bf16 %v183_v11, %v183_v11  ;;  %v1254_v22 = vld [vmem:[%s1513_s2 + $0x228] sm:$0xff]  ;;  %v1252_v24 = vld [vmem:[%s1513_s2 + $0x218] sm:$0xff] }
  0x30   :  { %867 = vmatpush.bf16.msrb.mxu3 %v1245_v29  ;;  %163 = vst [vmem:[#allocation3 + $0x8] sm:$0x3] %v162_v2  ;;  %v1225_v14 = vld [vmem:[%s1513_s2 + $0x140] sm:$0xff]  ;;  %v1251_v25 = vld [vmem:[%s1513_s2 + $0x210] sm:$0xff]  ;;  %v1250_v26 = vld [vmem:[%s1513_s2 + $0x208] sm:$0xff] }
  0x31   :  { %841 = vmatpush.bf16.msrb.mxu1 %v1229_v35  ;;  %168 = vst [vmem:[#allocation3 + $0x8] sm:$0xc] %v166_v3  ;;  %v1253_v23 = vld [vmem:[%s1513_s2 + $0x220] sm:$0xff] }
  0x32   :  { %829 = vmatpush.bf16.msrb.mxu0 %v1220_v39  ;;  %173 = vst [vmem:[#allocation3 + $0x8] sm:$0x30] %v171_v4  ;;  %v186_v15 = vld [vmem:[#allocation3 + $0x38] sm:$0xff]  ;;  %v1249_v27 = vld [vmem:[%s1513_s2 + $0x200] sm:$0xff] }
  0x33   :  { %855 = vmatpush.bf16.msrb.mxu2 %v1236_v40  ;;  %178 = vst [vmem:[#allocation3 + $0x8] sm:$0xc0] %v176_v7  ;;  %v195_v19 = vpack.c.bf16 %v186_v15, %v186_v15 }
  0x34   :  { %868 = vmatpush.bf16.msrb.mxu3 %v1244_v42 }
  0x35   :  { %842 = vmatpush.bf16.msrb.mxu1 %v1228_v49 }
  0x36   :  { %830 = vmatpush.bf16.msrb.mxu0 %v1219_v52  ;;  %v184_v20 = vld [vmem:[#allocation3 + $0x28] sm:$0xff] }
  0x37   :  { %856 = vmatpush.bf16.msrb.mxu2 %v1235_v54  ;;  %v193_v21 = vpack.c.bf16 %v184_v20, %v184_v20  ;;  %v890_v54 = vld [vmem:[%s1515_s1] sm:$0xff] }
  0x38   :  { %869 = vmatpush.bf16.msrb.mxu3 %v1243_v57 }
  0x39   :  { %843 = vmatpush.bf16.msrb.mxu1 %v1227_v60 }
  0x3a   :  { %831 = vmatpush.bf16.msrb.mxu0 %v1218_v63  ;;  %v187_v28 = vld [vmem:[#allocation3 + $0x8] sm:$0xff] }
  0x3b   :  { %857 = vmatpush.bf16.msrb.mxu2 %v1234_v1  ;;  %v196_v29 = vpack.c.bf16 %v187_v28, %v187_v28 }
  0x3c   :  { %870 = vmatpush.bf16.msrb.mxu3 %v1242_v5 }
  0x3d   :  { %844 = vmatpush.bf16.msrb.mxu1 %v1226_v6 }
  0x3e   :  { %832 = vmatpush.bf16.msrb.mxu0 %v1217_v8 }
  0x3f   :  { %858 = vmatpush.bf16.msrb.mxu2 %v1233_v9 }
  0x40   :  { %871 = vmatpush.bf16.msrb.mxu3 %v1241_v13 }
  0x41   :  { %845 = vmatpush.bf16.msrb.mxu1 %v1225_v14  ;;  %833 = vmatmul.bf16.vlgmr.msrb.gmra.mxu0 %v192_v17 }
  0x42   :  { %877 = vmatpush.bf16.msra.mxu0 %v1256_v12  ;;  %859 = vmatmul.bf16.vlgmr.msrb.gmra.mxu2 %v194_v16 }
  0x43   :  { %872 = vmatmul.bf16.vlgmr.msrb.gmra.mxu3 %v195_v19 }
  0x44   :  { %846 = vmatmul.bf16.vlgmr.msrb.gmra.mxu1 %v193_v21 }
  0x46   :  { %878 = vmatpush.bf16.msra.mxu0 %v1255_v18 }
  0x4a   :  { %879 = vmatpush.bf16.msra.mxu0 %v1254_v22 }
  0x4e   :  { %880 = vmatpush.bf16.msra.mxu0 %v1253_v23 }
  0x52   :  { %881 = vmatpush.bf16.msra.mxu0 %v1252_v24 }
  0x56   :  { %882 = vmatpush.bf16.msra.mxu0 %v1251_v25 }
  0x5a   :  { %883 = vmatpush.bf16.msra.mxu0 %v1250_v26 }
  0x5e   :  { %884 = vmatpush.bf16.msra.mxu0 %v1249_v27 }
  0x61   :  { %885 = vmatmul.bf16.vlgmr.msra.gmra.mxu0 %v196_v29 }
  0x9e   :  { %v782_v30 = vpop.f32.mrf.mxu0 }
  0xa5   :  { %v808_v31 = vpop.f32.mrf.mxu2 }
  0xa6   :  { %v784_v33 = vpop.f32.mrf.mxu0 }
  0xa7   :  { %v795_v32 = vpop.f32.mrf.mxu1 }
  0xa8   :  { %v821_v34 = vpop.f32.mrf.mxu3  ;;  %v796_v40 = vadd.f32 %v795_v32, %v782_v30 }
  0xaa   :  { %v809_v42 = vadd.f32 %v808_v31, %v796_v40 }
  0xac   :  { %v822_v46 = vadd.f32 %v821_v34, %v809_v42 }
  0xad   :  { %v810_v35 = vpop.f32.mrf.mxu2 }
  0xaf   :  { %v797_v36 = vpop.f32.mrf.mxu1 }
  0xb0   :  { %v823_v37 = vpop.f32.mrf.mxu3 }
  0xbe   :  { %v834_v38 = vpop.f32.mrf.mxu0 }
  0xbf   :  { %v835_v48 = vadd.f32 %v834_v38, %v822_v46 }
  0xc1   :  { %v847_v39 = vpop.f32.mrf.mxu1 }
  0xc2   :  { %v848_v50 = vadd.f32 %v847_v39, %v835_v48 }
  0xc5   :  { %v860_v41 = vpop.f32.mrf.mxu2 }
  0xc6   :  { %v873_v43 = vpop.f32.mrf.mxu3  ;;  %v836_v44 = vpop.f32.mrf.mxu0  ;;  %v861_v51 = vadd.f32 %v860_v41, %v848_v50 }
  0xc8   :  { %v874_v52 = vadd.f32 %v873_v43, %v861_v51 }
  0xc9   :  { %v849_v45 = vpop.f32.mrf.mxu1 }
  0xcd   :  { %v862_v47 = vpop.f32.mrf.mxu2 }
  0xce   :  { %v875_v49 = vpop.f32.mrf.mxu3 }
  0xde   :  { %v886_v53 = vpop.f32.mrf.mxu0 }
  0xdf   :  { %v887_v55 = vadd.f32 %v886_v53, %v874_v52 }
  0xe1   :  { %v891_v56 = vadd.f32 %v890_v54, %v887_v55 }
  0xe3   :  { %892 = vst [vmem:[%s1516_s3] sm:$0xff] %v891_v56 }
  0xe6   :  { %v888_v57 = vpop.f32.mrf.mxu0 }

// kernel: densenet_forward.39
= control target key start
LH: loop header
LB: loop body
LE: loop exit
PB: predicated region body
PF: predicated region fallthrough
CT: control target
= control target key end

     0   :  { %11 = vsyncpa [#allocation3], 0  ;;  %s375_s0 = inlined_call_operand.vmem [shape: f32[2,128], index: 0, kind: input, shape index: {}]   ;;  %s376_s1 = inlined_call_operand.vmem [shape: f32[1,128], index: 1, kind: input, shape index: {}]   ;;  %s377_s2 = inlined_call_operand.hbm [shape: f32[1,128], index: 2, kind: input, shape index: {}]   ;;  %s378_s3 = inlined_call_operand.vmem [shape: bf16[128,128], index: 3, kind: input, shape index: {}]   ;;  %s379_s4 = inlined_call_operand.hbm [shape: f32[1,128], index: 4, kind: input, shape index: {}]   ;;  %s380_s5 = inlined_call_operand.hbm [shape: f32[1,128], index: 5, kind: input, shape index: {}]   ;;  %s381_s6 = inlined_call_operand.vmem [shape: f32[2,128], index: 6, kind: output, shape index: {}]  }
   0x1   :  { %12 = vsyncpa [#allocation5], 0  ;;  %s35_s23 = sshll.u32 %s379_s4, 4  ;;  %s295_s24 = smov [#allocation4]   ;;  %s36_s23 = int_to_ptr.hbm [resolvable:$true] %s35_s23 }
   0x2   :  { %s37_s25 = sshll.u32 %s295_s24, 4  ;;  %s22_s28 = sshll.u32 %s377_s2, 4  ;;  %s38_s25 = int_to_ptr.vmem [resolvable:$true] %s37_s25  ;;  %s23_s28 = int_to_ptr.hbm [resolvable:$true] %s22_s28 }
   0x3   :  { %40 = dma.hbm_to_vmem [thread:$0]  %s36_s23, 16, %s38_s25, [#allocation5]  }
   0x4   :  { %s296_s29 = smov [#allocation2]   ;;  %s46_s9 = sshll.u32 %s380_s5, 4  ;;  %s47_s9 = int_to_ptr.hbm [resolvable:$true] %s46_s9 }
   0x5   :  { %s24_s30 = sshll.u32 %s296_s29, 4  ;;  %s297_s4 = smov [#allocation6]   ;;  %s25_s30 = int_to_ptr.vmem [resolvable:$true] %s24_s30 }
   0x6   :  { %27 = dma.hbm_to_vmem [thread:$0]  %s23_s28, 16, %s25_s30, [#allocation3]  }
   0x7   :  { %s48_s10 = sshll.u32 %s297_s4, 4  ;;  %s49_s10 = int_to_ptr.vmem [resolvable:$true] %s48_s10 }
   0x8   :  { %51 = dma.hbm_to_vmem [thread:$0]  %s47_s9, 16, %s49_s10, [#allocation5]  }
   0x9   :  { %291 = dma.done.wait [#allocation3], 16  }
   0xa   :  { %292 = vsyncadd [#allocation3], 4294967280 }
   0xb   :  { %293 = dma.done.wait [#allocation5], 32  }
   0xc   :  { %294 = vsyncadd [#allocation5], 4294967264  ;;  %v211_v0 = vld [vmem:[%s378_s3 + $0x38] sm:$0xff]  ;;  %v210_v1 = vld [vmem:[%s378_s3 + $0x30] sm:$0xff] }
   0xd   :  { %141 = vmatpush.bf16.msra.mxu0 %v211_v0  ;;  %v209_v2 = vld [vmem:[%s378_s3 + $0x28] sm:$0xff]  ;;  %v208_v3 = vld [vmem:[%s378_s3 + $0x20] sm:$0xff]  ;;  %v207_v5 = vld [vmem:[%s378_s3 + $0x18] sm:$0xff] }
   0xe   :  { %v215_v4 = vld [vmem:[%s376_s1] ss:$0 sm:$0xff]  ;;  %v206_v9 = vld [vmem:[%s378_s3 + $0x10] sm:$0xff]  ;;  %v205_v11 = vld [vmem:[%s378_s3 + $0x8] sm:$0xff] }
   0xf   :  { %v64_v6 = vld [vmem:[%s375_s0] sm:$0x3]  ;;  %v217_v15 = vld [vmem:[#allocation4] ss:$0 sm:$0xff]  ;;  %v218_v16 = vld [vmem:[#allocation6] ss:$0 sm:$0xff] }
  0x10   :  { %v69_v7 = vmul.f32 %v215_v4, %v64_v6  ;;  %v216_v8 = vld [vmem:[#allocation2] ss:$0 sm:$0xff] }
  0x11   :  { %142 = vmatpush.bf16.msra.mxu0 %v210_v1  ;;  %v204_v13 = vld [vmem:[%s378_s3] sm:$0xff] }
  0x12   :  { %v74_v10 = vadd.f32 %v216_v8, %v69_v7 }
  0x14   :  { %v75_v12 = vmax.f32 %v74_v10, 0.0 }
  0x15   :  { %143 = vmatpush.bf16.msra.mxu0 %v209_v2 }
  0x16   :  { %v76_v14 = vpack.c.bf16 %v75_v12, %v75_v12 }
  0x19   :  { %144 = vmatpush.bf16.msra.mxu0 %v208_v3 }
  0x1d   :  { %145 = vmatpush.bf16.msra.mxu0 %v207_v5 }
  0x21   :  { %146 = vmatpush.bf16.msra.mxu0 %v206_v9 }
  0x25   :  { %147 = vmatpush.bf16.msra.mxu0 %v205_v11 }
  0x29   :  { %148 = vmatpush.bf16.msra.mxu0 %v204_v13 }
  0x2c   :  { %149 = vmatmul.bf16.vlgmr.msra.gmra.mxu0 %v76_v14 }
  0xa9   :  { %v150_v17 = vpop.f32.mrf.mxu0 }
  0xaa   :  { %v158_v18 = vmul.f32 %v217_v15, %v150_v17 }
  0xac   :  { %v163_v19 = vadd.f32 %v218_v16, %v158_v18 }
  0xae   :  { %v164_v20 = vmax.f32 %v163_v19, 0.0 }
  0xb0   :  { %165 = vst [vmem:[%s381_s6] sm:$0x3] %v164_v20 }
  0xb1   :  { %v152_v21 = vpop.f32.mrf.mxu0 }
  0xb2   :  { %170 = vsyncpa [#allocation3], 1 }
  0xb3   :  { %171 = vsyncpa [#allocation5], 1 }

// kernel: densenet_forward.41
= control target key start
LH: loop header
LB: loop body
LE: loop exit
PB: predicated region body
PF: predicated region fallthrough
CT: control target
= control target key end

     0   :  { %vm41_vm0 = vcmask 1041408   ;;  %vm37_vm1 = vcmask 15360   ;;  %s257_s0 = inlined_call_operand.vmem [shape: f32[2,128], index: 0, kind: input, shape index: {}]   ;;  %s258_s1 = inlined_call_operand.vmem [shape: f32[1,128], index: 1, kind: input, shape index: {}]   ;;  %s259_s2 = inlined_call_operand.vmem [shape: f32[1,128], index: 2, kind: input, shape index: {}]   ;;  %s260_s3 = inlined_call_operand.vmem [shape: f32[2,2], index: 3, kind: input, shape index: {}]   ;;  %s261_s4 = inlined_call_operand.vmem [shape: f32[128,5], index: 4, kind: input, shape index: {}]   ;;  %s262_s5 = inlined_call_operand.vmem [shape: f32[1,5], index: 5, kind: input, shape index: {}]   ;;  %s263_s6 = inlined_call_operand.hbm [shape: f32[2,5], index: 6, kind: output, shape index: {}]  }
   0x1   :  { %v24_v0 = vld [vmem:[%s257_s0] sm:$0x3]  ;;  %v80_v4 = vld [vmem:[%s261_s4 + $0x78] sm:$0xff]  ;;  %v79_v5 = vld [vmem:[%s261_s4 + $0x70] sm:$0xff] }
   0x2   :  { %v126_v1 = vld [vmem:[%s258_s1] ss:$0 sm:$0xff]  ;;  %85 = vmatpush.msra.mxu1 %v80_v4  ;;  %v78_v7 = vld [vmem:[%s261_s4 + $0x68] sm:$0xff] }
   0x3   :  { %v127_v2 = vld [vmem:[%s259_s2] ss:$0 sm:$0xff]  ;;  %v29_v3 = vmul.f32 %v126_v1, %v24_v0 }
   0x4   :  { %86 = vmatpush.msra.mxu1 %v79_v5  ;;  %v36_v9 = vld [vmem:[%s260_s3] sm:$0x3] }
   0x5   :  { %v34_v6 = vadd.f32 %v127_v2, %v29_v3  ;;  %v77_v10 = vld [vmem:[%s261_s4 + $0x60] sm:$0xff] }
   0x6   :  { %87 = vmatpush.msra.mxu1 %v78_v7 }
   0x7   :  { %v35_v8 = vmax.f32 %v34_v6, 0.0 }
   0x8   :  { %11 = vsyncpa [#allocation3], 0  ;;  %v76_v11 = vld [vmem:[%s261_s4 + $0x58] sm:$0xff]  ;;  %88 = vmatpush.msra.mxu1 %v77_v10  ;;  %v75_v12 = vld [vmem:[%s261_s4 + $0x50] sm:$0xff]  ;;  %s155_s8 = smov [#allocation2]   ;;  %s114_s12 = sshll.u32 %s263_s6, 4  ;;  %s115_s12 = int_to_ptr.hbm [resolvable:$true] %s114_s12 }
   0x9   :  { %123 = vmatpush.msk.msra.mxu0 %vm41_vm0, %v35_v8  ;;  %v74_v13 = vld [vmem:[%s261_s4 + $0x48] sm:$0xff]  ;;  %v73_v14 = vld [vmem:[%s261_s4 + $0x40] sm:$0xff]  ;;  %v72_v15 = vld [vmem:[%s261_s4 + $0x38] sm:$0xff]  ;;  %s112_s9 = sshll.u32 %s155_s8, 4  ;;  %vm105_vm2 = vcmask 33792   ;;  %s113_s9 = int_to_ptr.vmem [resolvable:$true] %s112_s9 }
   0xa   :  { %124 = vmatmul.msk.f32.vlgmr.msra.gmra.mxu0 %vm37_vm1, %v36_v9  ;;  %89 = vmatpush.msra.mxu1 %v76_v11  ;;  %v71_v16 = vld [vmem:[%s261_s4 + $0x30] sm:$0xff]  ;;  %v70_v17 = vld [vmem:[%s261_s4 + $0x28] sm:$0xff]  ;;  %v69_v18 = vld [vmem:[%s261_s4 + $0x20] sm:$0xff] }
   0xb   :  { %v68_v19 = vld [vmem:[%s261_s4 + $0x18] sm:$0xff]  ;;  %v67_v20 = vld [vmem:[%s261_s4 + $0x10] sm:$0xff]  ;;  %v66_v21 = vld [vmem:[%s261_s4 + $0x8] sm:$0xff] }
   0xc   :  { %90 = vmatpush.msra.mxu1 %v75_v12  ;;  %v65_v22 = vld [vmem:[%s261_s4] sm:$0xff] }
   0xd   :  { %v128_v24 = vld [vmem:[%s262_s5] ss:$0 sm:$0xff] }
   0xe   :  { %91 = vmatpush.msra.mxu1 %v74_v13 }
  0x10   :  { %92 = vmatpush.msra.mxu1 %v73_v14 }
  0x12   :  { %93 = vmatpush.msra.mxu1 %v72_v15 }
  0x14   :  { %94 = vmatpush.msra.mxu1 %v71_v16 }
  0x16   :  { %95 = vmatpush.msra.mxu1 %v70_v17 }
  0x18   :  { %96 = vmatpush.msra.mxu1 %v69_v18 }
  0x1a   :  { %97 = vmatpush.msra.mxu1 %v68_v19 }
  0x1c   :  { %98 = vmatpush.msra.mxu1 %v67_v20 }
  0x1e   :  { %99 = vmatpush.msra.mxu1 %v66_v21 }
  0x20   :  { %100 = vmatpush.msra.mxu1 %v65_v22 }
  0x87   :  { %v62_v23 = vpop.f32.mrf.mxu0 }
  0x88   :  { %101 = vmatmul.f32.vlgmr.msra.gmra.mxu1 %v62_v23 }
 0x105   :  { %v102_v25 = vpop.f32.mrf.mxu1 }
 0x106   :  { %v103_v26 = vadd.f32 %v128_v24, %v102_v25 }
 0x108   :  { %106 = vst.msk [vmem:[#allocation2] sm:$0x3] %vm105_vm2, %v103_v26 }
 0x109   :  { %117 = dma.vmem_to_hbm [thread:$0]  %s113_s9, 32, %s115_s12, [#allocation3]  }
 0x10a   :  { %153 = dma.done.wait [#allocation3], 32  }
 0x10b   :  { %154 = vsyncadd [#allocation3], 4294967264 }
 0x10c   :  { %122 = vsyncpa [#allocation3], 1 }

// kernel: densenet_forward.38
= control target key start
LH: loop header
LB: loop body
LE: loop exit
PB: predicated region body
PF: predicated region fallthrough
CT: control target
= control target key end

     0   :  { %v1155_v3 = vmov 0.0   ;;  %s1404_s2 = inlined_call_operand.vmem [shape: bf16[1152,128], index: 2, kind: input, shape index: {}]   ;;  %s1405_s0 = inlined_call_operand.vmem [shape: f32[2,128], index: 0, kind: input, shape index: {}]   ;;  %s1406_s1 = inlined_call_operand.vmem [shape: f32[2,128], index: 1, kind: input, shape index: {}]   ;;  %s1407_s3 = inlined_call_operand.vmem [shape: f32[2,128], index: 3, kind: output, shape index: {}]  }
   0x1   :  { %v1089_v0 = vld [vmem:[%s1404_s2 + $0x38] sm:$0xff]  ;;  %14 = vst [vmem:[#allocation2] sm:$0xff] %v1155_v3  ;;  %v1088_v5 = vld [vmem:[%s1404_s2 + $0x30] sm:$0xff]  ;;  %v1087_v9 = vld [vmem:[%s1404_s2 + $0x28] sm:$0xff] }
   0x2   :  { %v1105_v1 = vld [vmem:[%s1404_s2 + $0xb8] sm:$0xff]  ;;  %15 = vst [vmem:[#allocation2 + $0x8] sm:$0xff] %v1155_v3  ;;  %670 = vmatpush.bf16.msra.mxu0 %v1089_v0  ;;  %v1104_v6 = vld [vmem:[%s1404_s2 + $0xb0] sm:$0xff]  ;;  %v1103_v10 = vld [vmem:[%s1404_s2 + $0xa8] sm:$0xff] }
   0x3   :  { %v1113_v2 = vld [vmem:[%s1404_s2 + $0xf8] sm:$0xff]  ;;  %696 = vmatpush.bf16.msra.mxu2 %v1105_v1  ;;  %16 = vst [vmem:[#allocation2 + $0x10] sm:$0x3] %v1155_v3  ;;  %v1112_v7 = vld [vmem:[%s1404_s2 + $0xf0] sm:$0xff]  ;;  %v1111_v11 = vld [vmem:[%s1404_s2 + $0xe8] sm:$0xff] }
   0x4   :  { %v1097_v4 = vld [vmem:[%s1404_s2 + $0x78] sm:$0xff]  ;;  %709 = vmatpush.bf16.msra.mxu3 %v1113_v2  ;;  %v1096_v8 = vld [vmem:[%s1404_s2 + $0x70] sm:$0xff]  ;;  %v1095_v12 = vld [vmem:[%s1404_s2 + $0x68] sm:$0xff] }
   0x5   :  { %683 = vmatpush.bf16.msra.mxu1 %v1097_v4  ;;  %v1086_v13 = vld [vmem:[%s1404_s2 + $0x20] sm:$0xff]  ;;  %v1085_v17 = vld [vmem:[%s1404_s2 + $0x18] sm:$0xff]  ;;  %v1084_v26 = vld [vmem:[%s1404_s2 + $0x10] sm:$0xff] }
   0x6   :  { %671 = vmatpush.bf16.msra.mxu0 %v1088_v5  ;;  %v1102_v14 = vld [vmem:[%s1404_s2 + $0xa0] sm:$0xff]  ;;  %v1101_v18 = vld [vmem:[%s1404_s2 + $0x98] sm:$0xff]  ;;  %v1100_v27 = vld [vmem:[%s1404_s2 + $0x90] sm:$0xff] }
   0x7   :  { %697 = vmatpush.bf16.msra.mxu2 %v1104_v6  ;;  %v1110_v15 = vld [vmem:[%s1404_s2 + $0xe0] sm:$0xff]  ;;  %v1109_v19 = vld [vmem:[%s1404_s2 + $0xd8] sm:$0xff]  ;;  %v1108_v29 = vld [vmem:[%s1404_s2 + $0xd0] sm:$0xff] }
   0x8   :  { %710 = vmatpush.bf16.msra.mxu3 %v1112_v7  ;;  %v1094_v16 = vld [vmem:[%s1404_s2 + $0x60] sm:$0xff]  ;;  %v1093_v20 = vld [vmem:[%s1404_s2 + $0x58] sm:$0xff]  ;;  %v21_v21 = vld [vmem:[#allocation2] sm:$0x1] }
   0x9   :  { %684 = vmatpush.bf16.msra.mxu1 %v1096_v8  ;;  %22 = vst [vmem:[#allocation3] sm:$0x1] %v21_v21  ;;  %v23_v22 = vld [vmem:[#allocation2 + $0x9] sm:$0x1]  ;;  %v25_v23 = vld [vmem:[#allocation2 + $0x1] sm:$0x1] }
   0xa   :  { %672 = vmatpush.bf16.msra.mxu0 %v1087_v9  ;;  %24 = vst [vmem:[#allocation3 + $0x1] sm:$0x1] %v23_v22  ;;  %v27_v24 = vld [vmem:[#allocation2 + $0xa] sm:$0x1]  ;;  %v29_v25 = vld [vmem:[#allocation2 + $0x2] sm:$0x1] }
   0xb   :  { %698 = vmatpush.bf16.msra.mxu2 %v1103_v10  ;;  %26 = vst [vmem:[#allocation3 + $0x2] sm:$0x1] %v25_v23  ;;  %v31_v28 = vld [vmem:[#allocation2 + $0xb] sm:$0x1]  ;;  %v33_v31 = vld [vmem:[#allocation2 + $0x3] sm:$0x1] }
   0xc   :  { %711 = vmatpush.bf16.msra.mxu3 %v1111_v11  ;;  %v1092_v30 = vld [vmem:[%s1404_s2 + $0x50] sm:$0xff]  ;;  %28 = vst [vmem:[#allocation3 + $0x3] sm:$0x1] %v27_v24  ;;  %v1083_v34 = vld [vmem:[%s1404_s2 + $0x8] sm:$0xff]  ;;  %v55_v36 = vld [vmem:[#allocation2 + $0x11] sm:$0x1] }
   0xd   :  { %685 = vmatpush.bf16.msra.mxu1 %v1095_v12  ;;  %30 = vst [vmem:[#allocation3 + $0x4] sm:$0x1] %v29_v25  ;;  %v35_v32 = vld [vmem:[#allocation2 + $0xc] sm:$0x1]  ;;  %v53_v33 = vld [vmem:[#allocation2 + $0x8] sm:$0x1] }
   0xe   :  { %673 = vmatpush.bf16.msra.mxu0 %v1086_v13  ;;  %32 = vst [vmem:[#allocation3 + $0x5] sm:$0x1] %v31_v28  ;;  %v1099_v35 = vld [vmem:[%s1404_s2 + $0x88] sm:$0xff]  ;;  %v17_v39 = vld [vmem:[%s1405_s0] sm:$0x1]  ;;  %v1121_v44 = vld [vmem:[%s1404_s2 + $0x138] sm:$0xff] }
   0xf   :  { %699 = vmatpush.bf16.msra.mxu2 %v1102_v14  ;;  %34 = vst [vmem:[#allocation3 + $0x6] sm:$0x1] %v33_v31  ;;  %v1107_v37 = vld [vmem:[%s1404_s2 + $0xc8] sm:$0xff]  ;;  %v19_v40 = vld [vmem:[%s1405_s0 + $0x1] sm:$0x1]  ;;  %v1137_v45 = vld [vmem:[%s1404_s2 + $0x1b8] sm:$0xff] }
  0x10   :  { %712 = vmatpush.bf16.msra.mxu3 %v1110_v15  ;;  %v1091_v38 = vld [vmem:[%s1404_s2 + $0x48] sm:$0xff]  ;;  %36 = vst [vmem:[#allocation3 + $0x7] sm:$0x1] %v35_v32  ;;  %v1082_v41 = vld [vmem:[%s1404_s2] sm:$0xff]  ;;  %v43_v46 = vld [vmem:[#allocation2 + $0xe] sm:$0x1] }
  0x11   :  { %686 = vmatpush.bf16.msra.mxu1 %v1094_v16  ;;  %54 = vst [vmem:[#allocation3 + $0x10] sm:$0x1] %v53_v33  ;;  %v41_v42 = vld [vmem:[#allocation2 + $0x5] sm:$0x1]  ;;  %v1098_v43 = vld [vmem:[%s1404_s2 + $0x80] sm:$0xff]  ;;  %v1145_v50 = vld [vmem:[%s1404_s2 + $0x1f8] sm:$0xff] }
  0x12   :  { %674 = vmatpush.bf16.msra.mxu0 %v1085_v17  ;;  %56 = vst [vmem:[#allocation3 + $0x11] sm:$0x1] %v55_v36  ;;  %v45_v47 = vld [vmem:[#allocation2 + $0x6] sm:$0x1]  ;;  %v1106_v48 = vld [vmem:[%s1404_s2 + $0xc0] sm:$0xff]  ;;  %v1129_v51 = vld [vmem:[%s1404_s2 + $0x178] sm:$0xff] }
  0x13   :  { %700 = vmatpush.bf16.msra.mxu2 %v1101_v18  ;;  %18 = vst [vmem:[#allocation2 + $0x4] sm:$0x1] %v17_v39  ;;  %v1090_v49 = vld [vmem:[%s1404_s2 + $0x40] sm:$0xff]  ;;  %v47_v52 = vld [vmem:[#allocation2 + $0xf] sm:$0x1]  ;;  %v1119_v62 = vld [vmem:[%s1404_s2 + $0x128] sm:$0xff] }
  0x14   :  { %713 = vmatpush.bf16.msra.mxu3 %v1109_v19  ;;  %20 = vst [vmem:[#allocation2 + $0xd] sm:$0x1] %v19_v40  ;;  %v49_v54 = vld [vmem:[#allocation2 + $0x7] sm:$0x1]  ;;  %v1120_v55 = vld [vmem:[%s1404_s2 + $0x130] sm:$0xff]  ;;  %v1118_v1 = vld [vmem:[%s1404_s2 + $0x120] sm:$0xff] }
  0x15   :  { %687 = vmatpush.bf16.msra.mxu1 %v1093_v20  ;;  %42 = vst [vmem:[#allocation3 + $0xa] sm:$0x1] %v41_v42  ;;  %v1136_v56 = vld [vmem:[%s1404_s2 + $0x1b0] sm:$0xff]  ;;  %v51_v60 = vld [vmem:[#allocation2 + $0x10] sm:$0x1]  ;;  %v1135_v63 = vld [vmem:[%s1404_s2 + $0x1a8] sm:$0xff] }
  0x16   :  { %675 = vmatpush.bf16.msra.mxu0 %v1084_v26  ;;  %44 = vst [vmem:[#allocation3 + $0xb] sm:$0x1] %v43_v46  ;;  %v1144_v57 = vld [vmem:[%s1404_s2 + $0x1f0] sm:$0xff]  ;;  %v1143_v0 = vld [vmem:[%s1404_s2 + $0x1e8] sm:$0xff]  ;;  %v1134_v3 = vld [vmem:[%s1404_s2 + $0x1a0] sm:$0xff] }
  0x17   :  { %701 = vmatpush.bf16.msra.mxu2 %v1100_v27  ;;  %v57_v53 = vld [vmem:[#allocation3] sm:$0xff]  ;;  %46 = vst [vmem:[#allocation3 + $0xc] sm:$0x1] %v45_v47  ;;  %v1128_v58 = vld [vmem:[%s1404_s2 + $0x170] sm:$0xff]  ;;  %v1127_v2 = vld [vmem:[%s1404_s2 + $0x168] sm:$0xff] }
  0x18   :  { %714 = vmatpush.bf16.msra.mxu3 %v1108_v29  ;;  %63 = vst [vmem:[#allocation1] ss:$4 sm:$0xff] %v57_v53  ;;  %v1142_v13 = vld [vmem:[%s1404_s2 + $0x1e0] sm:$0xff]  ;;  %v1117_v15 = vld [vmem:[%s1404_s2 + $0x118] sm:$0xff]  ;;  %v1116_v20 = vld [vmem:[%s1404_s2 + $0x110] sm:$0xff] }
  0x19   :  { %688 = vmatpush.bf16.msra.mxu1 %v1092_v30  ;;  %48 = vst [vmem:[#allocation3 + $0xd] sm:$0x1] %v47_v52  ;;  %v59_v4 = vld [vmem:[#allocation3 + $0x10] sm:$0x3]  ;;  %v1126_v14 = vld [vmem:[%s1404_s2 + $0x160] sm:$0xff]  ;;  %v1133_v16 = vld [vmem:[%s1404_s2 + $0x198] sm:$0xff] }
  0x1a   :  { %676 = vmatpush.bf16.msra.mxu0 %v1083_v34  ;;  %v37_v59 = vld [vmem:[#allocation2 + $0x4] sm:$0x1]  ;;  %50 = vst [vmem:[#allocation3 + $0xe] sm:$0x1] %v49_v54  ;;  %v1141_v18 = vld [vmem:[%s1404_s2 + $0x1d8] sm:$0xff]  ;;  %v1132_v21 = vld [vmem:[%s1404_s2 + $0x190] sm:$0xff] }
  0x1b   :  { %702 = vmatpush.bf16.msra.mxu2 %v1099_v35  ;;  %38 = vst [vmem:[#allocation3 + $0x8] sm:$0x1] %v37_v59  ;;  %v39_v61 = vld [vmem:[#allocation2 + $0xd] sm:$0x1]  ;;  %v1125_v19 = vld [vmem:[%s1404_s2 + $0x158] sm:$0xff]  ;;  %v1115_v24 = vld [vmem:[%s1404_s2 + $0x108] sm:$0xff] }
  0x1c   :  { %715 = vmatpush.bf16.msra.mxu3 %v1107_v37  ;;  %40 = vst [vmem:[#allocation3 + $0x9] sm:$0x1] %v39_v61  ;;  %v1140_v22 = vld [vmem:[%s1404_s2 + $0x1d0] sm:$0xff]  ;;  %v1131_v25 = vld [vmem:[%s1404_s2 + $0x188] sm:$0xff]  ;;  %v1114_v28 = vld [vmem:[%s1404_s2 + $0x100] sm:$0xff] }
  0x1d   :  { %689 = vmatpush.bf16.msra.mxu1 %v1091_v38  ;;  %52 = vst [vmem:[#allocation3 + $0xf] sm:$0x1] %v51_v60  ;;  %v1124_v23 = vld [vmem:[%s1404_s2 + $0x150] sm:$0xff]  ;;  %v1139_v26 = vld [vmem:[%s1404_s2 + $0x1c8] sm:$0xff]  ;;  %v1130_v29 = vld [vmem:[%s1404_s2 + $0x180] sm:$0xff] }
  0x1e   :  { %677 = vmatpush.bf16.msra.mxu0 %v1082_v41  ;;  %v1123_v27 = vld [vmem:[%s1404_s2 + $0x148] sm:$0xff]  ;;  %v1153_v32 = vld [vmem:[%s1404_s2 + $0x238] sm:$0xff]  ;;  %v1138_v33 = vld [vmem:[%s1404_s2 + $0x1c0] sm:$0xff] }
  0x1f   :  { %703 = vmatpush.bf16.msra.mxu2 %v1098_v43  ;;  %v68_v5 = vld.sshfl [vmem:[#allocation1 + $0x10] sm:$0xff pattern:$0x73625140]  ;;  %v66_v6 = vld.sshfl [vmem:[#allocation1] sm:$0xff pattern:$0x73625140] }
  0x20   :  { %716 = vmatpush.bf16.msra.mxu3 %v1106_v48  ;;  %v87_v7 = vpack.c.bf16 %v68_v5, %v68_v5  ;;  %v85_v8 = vpack.c.bf16 %v66_v6, %v66_v6  ;;  %v69_v9 = vld.sshfl [vmem:[#allocation1 + $0x18] sm:$0xff pattern:$0x73625140]  ;;  %v67_v10 = vld.sshfl [vmem:[#allocation1 + $0x8] sm:$0xff pattern:$0x73625140] }
  0x21   :  { %690 = vmatpush.bf16.msra.mxu1 %v1090_v49  ;;  %v88_v11 = vpack.c.bf16 %v69_v9, %v69_v9  ;;  %74 = vst [vmem:[#allocation1] ss:$4 sm:$0xff] %v59_v4  ;;  %v86_v12 = vpack.c.bf16 %v67_v10, %v67_v10  ;;  %v1122_v34 = vld [vmem:[%s1404_s2 + $0x140] sm:$0xff]  ;;  %v1152_v39 = vld [vmem:[%s1404_s2 + $0x230] sm:$0xff]  ;;  %v1151_v42 = vld [vmem:[%s1404_s2 + $0x228] sm:$0xff] }
  0x22   :  { %722 = vmatpush.bf16.msrb.mxu0 %v1121_v44  ;;  %704 = vmatmul.bf16.vlgmr.msra.gmra.mxu2 %v87_v7  ;;  %v1150_v43 = vld [vmem:[%s1404_s2 + $0x220] sm:$0xff]  ;;  %v1149_v44 = vld [vmem:[%s1404_s2 + $0x218] sm:$0xff]  ;;  %v1147_v46 = vld [vmem:[%s1404_s2 + $0x208] sm:$0xff] }
  0x23   :  { %748 = vmatpush.bf16.msrb.mxu2 %v1137_v45  ;;  %678 = vmatmul.bf16.vlgmr.msra.gmra.mxu0 %v85_v8  ;;  %v1148_v45 = vld [vmem:[%s1404_s2 + $0x210] sm:$0xff]  ;;  %v1146_v47 = vld [vmem:[%s1404_s2 + $0x200] sm:$0xff] }
  0x24   :  { %761 = vmatpush.bf16.msrb.mxu3 %v1145_v50  ;;  %v58_v17 = vld [vmem:[#allocation3 + $0x8] sm:$0xff]  ;;  %691 = vmatmul.bf16.vlgmr.msra.gmra.mxu1 %v86_v12  ;;  %v787_v10 = vld [vmem:[%s1406_s1] sm:$0x3] }
  0x25   :  { %735 = vmatpush.bf16.msrb.mxu1 %v1129_v51  ;;  %717 = vmatmul.bf16.vlgmr.msra.gmra.mxu3 %v88_v11  ;;  %65 = vst [vmem:[#allocation1 + $0x20] ss:$4 sm:$0xff] %v58_v17 }
  0x26   :  { %723 = vmatpush.bf16.msrb.mxu0 %v1120_v55 }
  0x27   :  { %749 = vmatpush.bf16.msrb.mxu2 %v1136_v56 }
  0x28   :  { %762 = vmatpush.bf16.msrb.mxu3 %v1144_v57  ;;  %v75_v48 = vld.sshfl [vmem:[#allocation1] sm:$0xff pattern:$0x73625140] }
  0x29   :  { %736 = vmatpush.bf16.msrb.mxu1 %v1128_v58  ;;  %v93_v49 = vpack.c.bf16 %v75_v48, %v75_v48 }
  0x2a   :  { %724 = vmatpush.bf16.msrb.mxu0 %v1119_v62 }
  0x2b   :  { %750 = vmatpush.bf16.msrb.mxu2 %v1135_v63 }
  0x2c   :  { %763 = vmatpush.bf16.msrb.mxu3 %v1143_v0  ;;  %v72_v30 = vld.sshfl [vmem:[#allocation1 + $0x30] sm:$0xff pattern:$0x73625140]  ;;  %v70_v31 = vld.sshfl [vmem:[#allocation1 + $0x20] sm:$0xff pattern:$0x73625140] }
  0x2d   :  { %737 = vmatpush.bf16.msrb.mxu1 %v1127_v2  ;;  %v73_v35 = vld.sshfl [vmem:[#allocation1 + $0x38] sm:$0xff pattern:$0x73625140]  ;;  %v91_v36 = vpack.c.bf16 %v72_v30, %v72_v30  ;;  %v89_v37 = vpack.c.bf16 %v70_v31, %v70_v31  ;;  %v71_v38 = vld.sshfl [vmem:[#allocation1 + $0x28] sm:$0xff pattern:$0x73625140] }
  0x2e   :  { %725 = vmatpush.bf16.msrb.mxu0 %v1118_v1  ;;  %v92_v40 = vpack.c.bf16 %v73_v35, %v73_v35  ;;  %v90_v41 = vpack.c.bf16 %v71_v38, %v71_v38 }
  0x2f   :  { %751 = vmatpush.bf16.msrb.mxu2 %v1134_v3 }
  0x30   :  { %764 = vmatpush.bf16.msrb.mxu3 %v1142_v13 }
  0x31   :  { %738 = vmatpush.bf16.msrb.mxu1 %v1126_v14 }
  0x32   :  { %726 = vmatpush.bf16.msrb.mxu0 %v1117_v15 }
  0x33   :  { %752 = vmatpush.bf16.msrb.mxu2 %v1133_v16 }
  0x34   :  { %765 = vmatpush.bf16.msrb.mxu3 %v1141_v18 }
  0x35   :  { %739 = vmatpush.bf16.msrb.mxu1 %v1125_v19 }
  0x36   :  { %727 = vmatpush.bf16.msrb.mxu0 %v1116_v20 }
  0x37   :  { %753 = vmatpush.bf16.msrb.mxu2 %v1132_v21 }
  0x38   :  { %766 = vmatpush.bf16.msrb.mxu3 %v1140_v22 }
  0x39   :  { %740 = vmatpush.bf16.msrb.mxu1 %v1124_v23 }
  0x3a   :  { %728 = vmatpush.bf16.msrb.mxu0 %v1115_v24 }
  0x3b   :  { %754 = vmatpush.bf16.msrb.mxu2 %v1131_v25 }
  0x3c   :  { %767 = vmatpush.bf16.msrb.mxu3 %v1139_v26 }
  0x3d   :  { %741 = vmatpush.bf16.msrb.mxu1 %v1123_v27 }
  0x3e   :  { %729 = vmatpush.bf16.msrb.mxu0 %v1114_v28 }
  0x3f   :  { %755 = vmatpush.bf16.msrb.mxu2 %v1130_v29 }
  0x40   :  { %768 = vmatpush.bf16.msrb.mxu3 %v1138_v33 }
  0x41   :  { %742 = vmatpush.bf16.msrb.mxu1 %v1122_v34  ;;  %730 = vmatmul.bf16.vlgmr.msrb.gmra.mxu0 %v89_v37 }
  0x42   :  { %774 = vmatpush.bf16.msra.mxu0 %v1153_v32  ;;  %756 = vmatmul.bf16.vlgmr.msrb.gmra.mxu2 %v91_v36 }
  0x43   :  { %769 = vmatmul.bf16.vlgmr.msrb.gmra.mxu3 %v92_v40 }
  0x44   :  { %743 = vmatmul.bf16.vlgmr.msrb.gmra.mxu1 %v90_v41 }
  0x46   :  { %775 = vmatpush.bf16.msra.mxu0 %v1152_v39 }
  0x4a   :  { %776 = vmatpush.bf16.msra.mxu0 %v1151_v42 }
  0x4e   :  { %777 = vmatpush.bf16.msra.mxu0 %v1150_v43 }
  0x52   :  { %778 = vmatpush.bf16.msra.mxu0 %v1149_v44 }
  0x56   :  { %779 = vmatpush.bf16.msra.mxu0 %v1148_v45 }
  0x5a   :  { %780 = vmatpush.bf16.msra.mxu0 %v1147_v46 }
  0x5e   :  { %781 = vmatpush.bf16.msra.mxu0 %v1146_v47 }
  0x61   :  { %782 = vmatmul.bf16.vlgmr.msra.gmra.mxu0 %v93_v49 }
  0xa0   :  { %v679_v50 = vpop.f32.mrf.mxu0 }
  0xa1   :  { %v692_v51 = vpop.f32.mrf.mxu1 }
  0xa2   :  { %v693_v60 = vadd.f32 %v692_v51, %v679_v50 }
  0xa5   :  { %v705_v52 = vpop.f32.mrf.mxu2 }
  0xa6   :  { %v706_v62 = vadd.f32 %v705_v52, %v693_v60 }
  0xa8   :  { %v718_v53 = vpop.f32.mrf.mxu3  ;;  %v681_v54 = vpop.f32.mrf.mxu0 }
  0xa9   :  { %v694_v55 = vpop.f32.mrf.mxu1  ;;  %v719_v2 = vadd.f32 %v718_v53, %v706_v62 }
  0xad   :  { %v707_v56 = vpop.f32.mrf.mxu2 }
  0xb0   :  { %v720_v57 = vpop.f32.mrf.mxu3 }
  0xbe   :  { %v731_v58 = vpop.f32.mrf.mxu0 }
  0xbf   :  { %v732_v4 = vadd.f32 %v731_v58, %v719_v2 }
  0xc1   :  { %v744_v59 = vpop.f32.mrf.mxu1 }
  0xc2   :  { %v745_v6 = vadd.f32 %v744_v59, %v732_v4 }
  0xc5   :  { %v757_v61 = vpop.f32.mrf.mxu2 }
  0xc6   :  { %v770_v63 = vpop.f32.mrf.mxu3  ;;  %v733_v0 = vpop.f32.mrf.mxu0  ;;  %v758_v7 = vadd.f32 %v757_v61, %v745_v6 }
  0xc8   :  { %v771_v8 = vadd.f32 %v770_v63, %v758_v7 }
  0xc9   :  { %v746_v1 = vpop.f32.mrf.mxu1 }
  0xcd   :  { %v759_v3 = vpop.f32.mrf.mxu2 }
  0xce   :  { %v772_v5 = vpop.f32.mrf.mxu3 }
  0xde   :  { %v783_v9 = vpop.f32.mrf.mxu0 }
  0xdf   :  { %v784_v11 = vadd.f32 %v783_v9, %v771_v8 }
  0xe1   :  { %v788_v12 = vadd.f32 %v787_v10, %v784_v11 }
  0xe3   :  { %789 = vst [vmem:[%s1407_s3] sm:$0x3] %v788_v12 }
  0xe6   :  { %v785_v13 = vpop.f32.mrf.mxu0 }

</bundles_post_ra>
